<compile_context>
chip_gen: v5e
topology: v5e:2x2
jax: 0.10.0
libtpu: 0.0.40
codegen_flags: <defaults>
</compile_context>

<pallas_src>
import jax
import jax.numpy as jnp
from jax.experimental import pallas as pl
from jax.experimental.pallas import tpu as pltpu


def _round_up(x, m):
    return ((x + m - 1) // m) * m


# ---------------------------------------------------------------------------
# Glue: im2col + pool-phase grouping, batch folded into the position axis.
# Output: (4, B*Hp*Wp, 9*Cin) where axis 0 enumerates the 2x2 pool phases
# (dh, dw) and row m = b*Hp*Wp + ip*Wp + jp.
# ---------------------------------------------------------------------------
def _im2col_pool_phases(x):
    B, H, W, Cin = x.shape
    Hc, Wc = H - 2, W - 2          # valid 3x3 conv output
    Hp, Wp = Hc // 2, Wc // 2      # after MaxPool2d(2, 2) (floor)
    cols = [x[:, kh:kh + Hc, kw:kw + Wc, :] for kh in range(3) for kw in range(3)]
    p = jnp.concatenate(cols, axis=-1)                # (B, Hc, Wc, 9*Cin)
    p = p[:, :Hp * 2, :Wp * 2, :]
    p = p.reshape(B, Hp, 2, Wp, 2, 9 * Cin)
    p = jnp.transpose(p, (2, 4, 0, 1, 3, 5))          # (2, 2, B, Hp, Wp, K)
    return p.reshape(4, B * Hp * Wp, 9 * Cin), (Hp, Wp)


# ---------------------------------------------------------------------------
# Pallas kernel 1: fused conv3x3 (im2col matmul) + bias + ReLU + 2x2 maxpool.
# One bf16 MXU matmul over (4 phases x tm positions), f32 accumulate, then
# bias/ReLU on the VPU and a pairwise max over the four phase slices.
# ---------------------------------------------------------------------------
def _conv_relu_pool_kernel(p_ref, w_ref, b_ref, o_ref):
    # p_ref: (4, tm, K) bf16   w_ref: (K, Cout) bf16
    # b_ref: (1, Cout) f32     o_ref: (tm, Cout) bf16
    tm = p_ref.shape[1]
    kdim = p_ref.shape[2]
    p = p_ref[...].reshape(4 * tm, kdim)        # collapse leading dims: free
    z = jnp.dot(p, w_ref[...], preferred_element_type=jnp.float32)
    z = jnp.maximum(z + b_ref[...], 0.0)        # bias + ReLU in f32
    pooled = jnp.maximum(jnp.maximum(z[0:tm], z[tm:2 * tm]),
                         jnp.maximum(z[2 * tm:3 * tm], z[3 * tm:4 * tm]))
    o_ref[...] = pooled.astype(o_ref.dtype)


def conv_relu_pool(x_nhwc, w, b, tm_max=256):
    B = x_nhwc.shape[0]
    phases, (Hp, Wp) = _im2col_pool_phases(x_nhwc)
    phases = phases.astype(jnp.bfloat16)
    _, M, K = phases.shape
    Cout = w.shape[1]
    # M tile: at least 2 grid steps (keeps both v7x TensorCores busy) and a
    # multiple of 16 so the (4, tm) -> 4*tm collapse / phase slices stay
    # layout-preserving for bf16.
    tm = min(tm_max, _round_up(pl.cdiv(M, 2), 16))
    g = pl.cdiv(M, tm)
    mp = g * tm
    if mp != M:
        phases = jnp.pad(phases, ((0, 0), (0, mp - M), (0, 0)))

    out = pl.pallas_call(
        _conv_relu_pool_kernel,
        out_shape=jax.ShapeDtypeStruct((mp, Cout), jnp.bfloat16),
        grid_spec=pltpu.PrefetchScalarGridSpec(
            num_scalar_prefetch=0,
            grid=(g,),
            in_specs=[
                pl.BlockSpec((4, tm, K), lambda i: (0, i, 0)),
                pl.BlockSpec((K, Cout), lambda i: (0, 0)),
                pl.BlockSpec((1, Cout), lambda i: (0, 0)),
            ],
            out_specs=pl.BlockSpec((tm, Cout), lambda i: (i, 0)),
        ),
        compiler_params=pltpu.CompilerParams(
            dimension_semantics=("parallel",),
            vmem_limit_bytes=32 * 1024 * 1024,   # valid with headroom on v7x
        ),
    )(phases, w, b)
    return out[:M].reshape(B, Hp, Wp, Cout)


# ---------------------------------------------------------------------------
# Pallas kernel 2: MLP head.  fc1 is K-tiled (reduction grid) into an f32 VMEM
# accumulator; the last step adds bias, ReLUs, and runs fc2 -> ReLU -> fc3.
# Dropout(p=0.5) is eval-mode identity (inference semantics).
# ---------------------------------------------------------------------------
def _mlp_kernel(x_ref, w1_ref, b1_ref, w2_ref, b2_ref, w3_ref, b3_ref,
                o_ref, acc_ref):
    step = pl.program_id(0)

    @pl.when(step == 0)
    def _init():
        acc_ref[...] = jnp.zeros_like(acc_ref)

    acc_ref[...] += jnp.dot(x_ref[...], w1_ref[...],
                            preferred_element_type=jnp.float32)

    @pl.when(step == pl.num_programs(0) - 1)
    def _finish():
        h = jnp.maximum(acc_ref[...] + b1_ref[...], 0.0)
        # Dropout(0.5): identity in eval mode.
        h = jnp.dot(h.astype(jnp.bfloat16), w2_ref[...],
                    preferred_element_type=jnp.float32) + b2_ref[...]
        h = jnp.maximum(h, 0.0)
        o_ref[...] = jnp.dot(h.astype(jnp.bfloat16), w3_ref[...],
                             preferred_element_type=jnp.float32) + b3_ref[...]


def mlp_head(x_flat, w1, b1, w2, b2, w3, b3, num_k_tiles=8):
    B, K = x_flat.shape
    n1, n2, n3 = w1.shape[1], w2.shape[1], w3.shape[1]
    assert K % num_k_tiles == 0 and (K // num_k_tiles) % 128 == 0, (K, num_k_tiles)
    tk = K // num_k_tiles

    def fixed(shape):
        return pl.BlockSpec(shape, lambda k: (0,) * len(shape))

    return pl.pallas_call(
        _mlp_kernel,
        out_shape=jax.ShapeDtypeStruct((B, n3), jnp.float32),
        grid_spec=pltpu.PrefetchScalarGridSpec(
            num_scalar_prefetch=0,
            grid=(num_k_tiles,),
            in_specs=[
                pl.BlockSpec((B, tk), lambda k: (0, k)),    # x K-chunk
                pl.BlockSpec((tk, n1), lambda k: (k, 0)),   # fc1 weight K-chunk
                fixed((1, n1)),
                fixed((n1, n2)), fixed((1, n2)),
                fixed((n2, n3)), fixed((1, n3)),
            ],
            out_specs=fixed((B, n3)),
            scratch_shapes=[pltpu.VMEM((B, n1), jnp.float32)],
        ),
        compiler_params=pltpu.CompilerParams(
            dimension_semantics=("arbitrary",),             # K reduction
            vmem_limit_bytes=16 * 1024 * 1024,
        ),
    )(x_flat, w1, b1, w2, b2, w3, b3)


# ---------------------------------------------------------------------------
# Full forward pass.
# ---------------------------------------------------------------------------
def eye_tracking_cnn_forward(x_nchw, params):
    # NCHW -> NHWC; activations stay bf16 between layers.
    x = jnp.transpose(x_nchw, (0, 2, 3, 1)).astype(jnp.bfloat16)
    x = conv_relu_pool(x, params["w_conv1"], params["b_conv1"])   # (B, 22, 46, 32)
    x = conv_relu_pool(x, params["w_conv2"], params["b_conv2"])   # (B, 10, 22, 64)
    x = conv_relu_pool(x, params["w_conv3"], params["b_conv3"])   # (B, 4, 10, 128)
    B = x.shape[0]
    # NHWC flatten feeds fc1 directly (its rows are pre-permuted at init), so
    # there is no transpose between conv3 and the MLP.
    x = x.reshape(B, 128 * 4 * 10)
    return mlp_head(x, params["w_fc1"], params["b_fc1"],
                    params["w_fc2"], params["b_fc2"],
                    params["w_fc3"], params["b_fc3"])


# ---------------------------------------------------------------------------
# Deterministic synthetic parameters (bf16 weights, f32 biases).
# Conv weights: (9*Cin, Cout), row = (kh*3+kw)*Cin + cin  (== PyTorch weight
# (Cout,Cin,3,3) permuted to (kh,kw,cin,cout) and reshaped).  FC weights are
# (in, out) = PyTorch weight.T; w_fc1 rows are stored in NHWC flatten order
# ((h*W + w)*C + c) — loading a PyTorch checkpoint needs a one-time host-side
# row permutation from the NCHW order (c*H*W + h*W + w).
# ---------------------------------------------------------------------------
def init_params(key):
    ks = jax.random.split(key, 12)

    def w(k, shape, s, dtype=jnp.bfloat16):
        return (s * jax.random.normal(k, shape, dtype=jnp.float32)).astype(dtype)

    return {
        "w_conv1": w(ks[0], (9 * 1, 32), 0.25),
        "b_conv1": w(ks[1], (1, 32), 0.10, jnp.float32),
        "w_conv2": w(ks[2], (9 * 32, 64), 0.06),
        "b_conv2": w(ks[3], (1, 64), 0.10, jnp.float32),
        "w_conv3": w(ks[4], (9 * 64, 128), 0.04),
        "b_conv3": w(ks[5], (1, 128), 0.10, jnp.float32),
        "w_fc1": w(ks[6], (128 * 4 * 10, 256), 0.02),
        "b_fc1": w(ks[7], (1, 256), 0.05, jnp.float32),
        "w_fc2": w(ks[8], (256, 128), 0.10),
        "b_fc2": w(ks[9], (1, 128), 0.05, jnp.float32),
        "w_fc3": w(ks[10], (128, 2), 0.20),
        "b_fc3": w(ks[11], (1, 2), 0.10, jnp.float32),
    }


# Pure-JAX f32 reference (conv -> ReLU -> MaxPool2d(2,2), then the MLP) for a
# sanity check of the bf16 Pallas path.
def reference_forward(x_nchw, params):
    hp = jax.lax.Precision.HIGHEST
    f32 = lambda a: a.astype(jnp.float32)
    x = jnp.transpose(x_nchw, (0, 2, 3, 1)).astype(jnp.float32)

    def conv_relu_pool_ref(x, w, b):
        B, H, W, Cin = x.shape
        Hc, Wc = H - 2, W - 2
        Hp, Wp = Hc // 2, Wc // 2
        cols = [x[:, kh:kh + Hc, kw:kw + Wc, :] for kh in range(3) for kw in range(3)]
        p = jnp.concatenate(cols, axis=-1)                         # (B,Hc,Wc,9Cin)
        z = jnp.einsum("bhwk,kc->bhwc", p, f32(w), precision=hp) + b
        z = jnp.maximum(z, 0.0)
        z = z[:, :Hp * 2, :Wp * 2, :].reshape(B, Hp, 2, Wp, 2, -1)
        return jnp.max(z, axis=(2, 4))                             # MaxPool2d(2,2)

    x = conv_relu_pool_ref(x, params["w_conv1"], params["b_conv1"])
    x = conv_relu_pool_ref(x, params["w_conv2"], params["b_conv2"])
    x = conv_relu_pool_ref(x, params["w_conv3"], params["b_conv3"])
    B = x.shape[0]
    x = x.reshape(B, -1)                                           # NHWC flatten
    h = jnp.maximum(jnp.dot(x, f32(params["w_fc1"]), precision=hp) + params["b_fc1"], 0.0)
    h = jnp.maximum(jnp.dot(h, f32(params["w_fc2"]), precision=hp) + params["b_fc2"], 0.0)
    return jnp.dot(h, f32(params["w_fc3"]), precision=hp) + params["b_fc3"]


if __name__ == "__main__":
    key = jax.random.PRNGKey(0)
    k_x, k_p = jax.random.split(key)
    # Input size implied by fc1 = Linear(128*4*10, 256): (B, 1, 46, 94).
    x = jax.random.normal(k_x, (2, 1, 46, 94), dtype=jnp.float32)
    params = init_params(k_p)

    out = jax.jit(eye_tracking_cnn_forward)(x, params)
    out = jax.block_until_ready(out)
    assert out.shape == (2, 2), out.shape
    assert bool(jnp.all(jnp.isfinite(out)))

    ref = reference_forward(x, params)
    # bf16 matmul path vs f32 reference -> slightly relaxed tolerance.
    assert jnp.allclose(out, ref, rtol=4e-2, atol=4e-2), (out, ref)

    print("KERNEL_OK")
</pallas_src>

<mosaic_0001>
module attributes {stable_mosaic.version = 11 : i64} {
  func.func @_conv_relu_pool_kernel(%arg0: i32, %arg1: memref<4x256x9xbf16, #tpu.memory_space<vmem>>, %arg2: memref<9x32xbf16, #tpu.memory_space<vmem>>, %arg3: memref<1x32xf32, #tpu.memory_space<vmem>>, %arg4: memref<256x32xbf16, #tpu.memory_space<vmem>>) attributes {dimension_semantics = [#tpu.dimension_semantics<parallel>], iteration_bounds = array<i64: 8>, scalar_prefetch = 0 : i64, scratch_operands = 0 : i64, tpu.core_type = #tpu.core_type<tc>, window_params = [{transform_indices = @transform_0, window_bounds = array<i64: 4, 256, 9>}, {pipeline_mode = #tpu.pipeline_mode<synchronous>, transform_indices = @transform_1, window_bounds = array<i64: 9, 32>}, {pipeline_mode = #tpu.pipeline_mode<synchronous>, transform_indices = @transform_2, window_bounds = array<i64: 1, 32>}, {transform_indices = @transform_3, window_bounds = array<i64: 256, 32>}]} {
    %c0 = arith.constant 0 : index
    %c0_0 = arith.constant 0 : index
    %c0_1 = arith.constant 0 : index
    %0 = vector.load %arg1[%c0, %c0_0, %c0_1] : memref<4x256x9xbf16, #tpu.memory_space<vmem>>, vector<4x256x9xbf16>
    %1 = vector.shape_cast %0 : vector<4x256x9xbf16> to vector<1024x9xbf16>
    %c0_2 = arith.constant 0 : index
    %c0_3 = arith.constant 0 : index
    %2 = vector.load %arg2[%c0_2, %c0_3] : memref<9x32xbf16, #tpu.memory_space<vmem>>, vector<9x32xbf16>
    %cst = arith.constant dense<0.000000e+00> : vector<1024x32xf32>
    %3 = tpu.matmul %1, %2, %cst {dimension_numbers = #tpu.dot_dimension_numbers<[1], [0], [0], [1], [0, 0, 1, 1], [], []>} : vector<1024x9xbf16>, vector<9x32xbf16>, vector<1024x32xf32> -> vector<1024x32xf32>
    %c0_4 = arith.constant 0 : index
    %c0_5 = arith.constant 0 : index
    %4 = vector.load %arg3[%c0_4, %c0_5] : memref<1x32xf32, #tpu.memory_space<vmem>>, vector<1x32xf32>
    %5 = vector.broadcast %4 : vector<1x32xf32> to vector<1024x32xf32>
    %6 = arith.addf %3, %5 : vector<1024x32xf32>
    %cst_6 = arith.constant 0.000000e+00 : f32
    %7 = vector.broadcast %cst_6 : f32 to vector<1024x32xf32>
    %8 = arith.maximumf %6, %7 : vector<1024x32xf32>
    %9 = vector.extract_strided_slice %8 {offsets = [0, 0], sizes = [256, 32], strides = [1, 1]} : vector<1024x32xf32> to vector<256x32xf32>
    %10 = vector.extract_strided_slice %8 {offsets = [256, 0], sizes = [256, 32], strides = [1, 1]} : vector<1024x32xf32> to vector<256x32xf32>
    %11 = arith.maximumf %9, %10 : vector<256x32xf32>
    %12 = vector.extract_strided_slice %8 {offsets = [512, 0], sizes = [256, 32], strides = [1, 1]} : vector<1024x32xf32> to vector<256x32xf32>
    %13 = vector.extract_strided_slice %8 {offsets = [768, 0], sizes = [256, 32], strides = [1, 1]} : vector<1024x32xf32> to vector<256x32xf32>
    %14 = arith.maximumf %12, %13 : vector<256x32xf32>
    %15 = arith.maximumf %11, %14 : vector<256x32xf32>
    %16 = arith.truncf %15 : vector<256x32xf32> to vector<256x32xbf16>
    %c0_7 = arith.constant 0 : index
    %c0_8 = arith.constant 0 : index
    %17 = vector.load %arg4[%c0_7, %c0_8] : memref<256x32xbf16, #tpu.memory_space<vmem>>, vector<256x32xbf16>
    tpu.vector_store %arg4[%c0_7, %c0_8], %16 {strides = array<i32>} : memref<256x32xbf16, #tpu.memory_space<vmem>>, vector<256x32xbf16>,
    return
  }
  func.func @transform_0(%arg0: i32) -> (i32, i32, i32) {
    %c0_i32 = arith.constant 0 : i32
    %c0_i32_0 = arith.constant 0 : i32
    %c0_i32_1 = arith.constant 0 : i32
    return %c0_i32, %arg0, %c0_i32_0 : i32, i32, i32
  }
  func.func @transform_1(%arg0: i32) -> (i32, i32) {
    %c0_i32 = arith.constant 0 : i32
    %c0_i32_0 = arith.constant 0 : i32
    %c0_i32_1 = arith.constant 0 : i32
    return %c0_i32, %c0_i32_0 : i32, i32
  }
  func.func @transform_2(%arg0: i32) -> (i32, i32) {
    %c0_i32 = arith.constant 0 : i32
    %c0_i32_0 = arith.constant 0 : i32
    %c0_i32_1 = arith.constant 0 : i32
    return %c0_i32, %c0_i32_0 : i32, i32
  }
  func.func @transform_3(%arg0: i32) -> (i32, i32) {
    %c0_i32 = arith.constant 0 : i32
    %c0_i32_0 = arith.constant 0 : i32
    return %arg0, %c0_i32 : i32, i32
  }
}

module attributes {stable_mosaic.version = 11 : i64} {
  func.func @_conv_relu_pool_kernel(%arg0: i32, %arg1: memref<4x224x288xbf16, #tpu.memory_space<vmem>>, %arg2: memref<288x64xbf16, #tpu.memory_space<vmem>>, %arg3: memref<1x64xf32, #tpu.memory_space<vmem>>, %arg4: memref<224x64xbf16, #tpu.memory_space<vmem>>) attributes {dimension_semantics = [#tpu.dimension_semantics<parallel>], iteration_bounds = array<i64: 2>, scalar_prefetch = 0 : i64, scratch_operands = 0 : i64, tpu.core_type = #tpu.core_type<tc>, window_params = [{transform_indices = @transform_0, window_bounds = array<i64: 4, 224, 288>}, {pipeline_mode = #tpu.pipeline_mode<synchronous>, transform_indices = @transform_1, window_bounds = array<i64: 288, 64>}, {pipeline_mode = #tpu.pipeline_mode<synchronous>, transform_indices = @transform_2, window_bounds = array<i64: 1, 64>}, {transform_indices = @transform_3, window_bounds = array<i64: 224, 64>}]} {
    %c0 = arith.constant 0 : index
    %c0_0 = arith.constant 0 : index
    %c0_1 = arith.constant 0 : index
    %0 = vector.load %arg1[%c0, %c0_0, %c0_1] : memref<4x224x288xbf16, #tpu.memory_space<vmem>>, vector<4x224x288xbf16>
    %1 = vector.shape_cast %0 : vector<4x224x288xbf16> to vector<896x288xbf16>
    %c0_2 = arith.constant 0 : index
    %c0_3 = arith.constant 0 : index
    %2 = vector.load %arg2[%c0_2, %c0_3] : memref<288x64xbf16, #tpu.memory_space<vmem>>, vector<288x64xbf16>
    %cst = arith.constant dense<0.000000e+00> : vector<896x64xf32>
    %3 = tpu.matmul %1, %2, %cst {dimension_numbers = #tpu.dot_dimension_numbers<[1], [0], [0], [1], [0, 0, 1, 1], [], []>} : vector<896x288xbf16>, vector<288x64xbf16>, vector<896x64xf32> -> vector<896x64xf32>
    %c0_4 = arith.constant 0 : index
    %c0_5 = arith.constant 0 : index
    %4 = vector.load %arg3[%c0_4, %c0_5] : memref<1x64xf32, #tpu.memory_space<vmem>>, vector<1x64xf32>
    %5 = vector.broadcast %4 : vector<1x64xf32> to vector<896x64xf32>
    %6 = arith.addf %3, %5 : vector<896x64xf32>
    %cst_6 = arith.constant 0.000000e+00 : f32
    %7 = vector.broadcast %cst_6 : f32 to vector<896x64xf32>
    %8 = arith.maximumf %6, %7 : vector<896x64xf32>
    %9 = vector.extract_strided_slice %8 {offsets = [0, 0], sizes = [224, 64], strides = [1, 1]} : vector<896x64xf32> to vector<224x64xf32>
    %10 = vector.extract_strided_slice %8 {offsets = [224, 0], sizes = [224, 64], strides = [1, 1]} : vector<896x64xf32> to vector<224x64xf32>
    %11 = arith.maximumf %9, %10 : vector<224x64xf32>
    %12 = vector.extract_strided_slice %8 {offsets = [448, 0], sizes = [224, 64], strides = [1, 1]} : vector<896x64xf32> to vector<224x64xf32>
    %13 = vector.extract_strided_slice %8 {offsets = [672, 0], sizes = [224, 64], strides = [1, 1]} : vector<896x64xf32> to vector<224x64xf32>
    %14 = arith.maximumf %12, %13 : vector<224x64xf32>
    %15 = arith.maximumf %11, %14 : vector<224x64xf32>
    %16 = arith.truncf %15 : vector<224x64xf32> to vector<224x64xbf16>
    %c0_7 = arith.constant 0 : index
    %c0_8 = arith.constant 0 : index
    %17 = vector.load %arg4[%c0_7, %c0_8] : memref<224x64xbf16, #tpu.memory_space<vmem>>, vector<224x64xbf16>
    tpu.vector_store %arg4[%c0_7, %c0_8], %16 {strides = array<i32>} : memref<224x64xbf16, #tpu.memory_space<vmem>>, vector<224x64xbf16>,
    return
  }
  func.func @transform_0(%arg0: i32) -> (i32, i32, i32) {
    %c0_i32 = arith.constant 0 : i32
    %c0_i32_0 = arith.constant 0 : i32
    %c0_i32_1 = arith.constant 0 : i32
    return %c0_i32, %arg0, %c0_i32_0 : i32, i32, i32
  }
  func.func @transform_1(%arg0: i32) -> (i32, i32) {
    %c0_i32 = arith.constant 0 : i32
    %c0_i32_0 = arith.constant 0 : i32
    %c0_i32_1 = arith.constant 0 : i32
    return %c0_i32, %c0_i32_0 : i32, i32
  }
  func.func @transform_2(%arg0: i32) -> (i32, i32) {
    %c0_i32 = arith.constant 0 : i32
    %c0_i32_0 = arith.constant 0 : i32
    %c0_i32_1 = arith.constant 0 : i32
    return %c0_i32, %c0_i32_0 : i32, i32
  }
  func.func @transform_3(%arg0: i32) -> (i32, i32) {
    %c0_i32 = arith.constant 0 : i32
    %c0_i32_0 = arith.constant 0 : i32
    return %arg0, %c0_i32 : i32, i32
  }
}

module attributes {stable_mosaic.version = 11 : i64} {
  func.func @_conv_relu_pool_kernel(%arg0: i32, %arg1: memref<4x48x576xbf16, #tpu.memory_space<vmem>>, %arg2: memref<576x128xbf16, #tpu.memory_space<vmem>>, %arg3: memref<1x128xf32, #tpu.memory_space<vmem>>, %arg4: memref<48x128xbf16, #tpu.memory_space<vmem>>) attributes {dimension_semantics = [#tpu.dimension_semantics<parallel>], iteration_bounds = array<i64: 2>, scalar_prefetch = 0 : i64, scratch_operands = 0 : i64, tpu.core_type = #tpu.core_type<tc>, window_params = [{transform_indices = @transform_0, window_bounds = array<i64: 4, 48, 576>}, {pipeline_mode = #tpu.pipeline_mode<synchronous>, transform_indices = @transform_1, window_bounds = array<i64: 576, 128>}, {pipeline_mode = #tpu.pipeline_mode<synchronous>, transform_indices = @transform_2, window_bounds = array<i64: 1, 128>}, {transform_indices = @transform_3, window_bounds = array<i64: 48, 128>}]} {
    %c0 = arith.constant 0 : index
    %c0_0 = arith.constant 0 : index
    %c0_1 = arith.constant 0 : index
    %0 = vector.load %arg1[%c0, %c0_0, %c0_1] : memref<4x48x576xbf16, #tpu.memory_space<vmem>>, vector<4x48x576xbf16>
    %1 = vector.shape_cast %0 : vector<4x48x576xbf16> to vector<192x576xbf16>
    %c0_2 = arith.constant 0 : index
    %c0_3 = arith.constant 0 : index
    %2 = vector.load %arg2[%c0_2, %c0_3] : memref<576x128xbf16, #tpu.memory_space<vmem>>, vector<576x128xbf16>
    %cst = arith.constant dense<0.000000e+00> : vector<192x128xf32>
    %3 = tpu.matmul %1, %2, %cst {dimension_numbers = #tpu.dot_dimension_numbers<[1], [0], [0], [1], [0, 0, 1, 1], [], []>} : vector<192x576xbf16>, vector<576x128xbf16>, vector<192x128xf32> -> vector<192x128xf32>
    %c0_4 = arith.constant 0 : index
    %c0_5 = arith.constant 0 : index
    %4 = vector.load %arg3[%c0_4, %c0_5] : memref<1x128xf32, #tpu.memory_space<vmem>>, vector<1x128xf32>
    %5 = vector.broadcast %4 : vector<1x128xf32> to vector<192x128xf32>
    %6 = arith.addf %3, %5 : vector<192x128xf32>
    %cst_6 = arith.constant 0.000000e+00 : f32
    %7 = vector.broadcast %cst_6 : f32 to vector<192x128xf32>
    %8 = arith.maximumf %6, %7 : vector<192x128xf32>
    %9 = vector.extract_strided_slice %8 {offsets = [0, 0], sizes = [48, 128], strides = [1, 1]} : vector<192x128xf32> to vector<48x128xf32>
    %10 = vector.extract_strided_slice %8 {offsets = [48, 0], sizes = [48, 128], strides = [1, 1]} : vector<192x128xf32> to vector<48x128xf32>
    %11 = arith.maximumf %9, %10 : vector<48x128xf32>
    %12 = vector.extract_strided_slice %8 {offsets = [96, 0], sizes = [48, 128], strides = [1, 1]} : vector<192x128xf32> to vector<48x128xf32>
    %13 = vector.extract_strided_slice %8 {offsets = [144, 0], sizes = [48, 128], strides = [1, 1]} : vector<192x128xf32> to vector<48x128xf32>
    %14 = arith.maximumf %12, %13 : vector<48x128xf32>
    %15 = arith.maximumf %11, %14 : vector<48x128xf32>
    %16 = arith.truncf %15 : vector<48x128xf32> to vector<48x128xbf16>
    %c0_7 = arith.constant 0 : index
    %c0_8 = arith.constant 0 : index
    %17 = vector.load %arg4[%c0_7, %c0_8] : memref<48x128xbf16, #tpu.memory_space<vmem>>, vector<48x128xbf16>
    tpu.vector_store %arg4[%c0_7, %c0_8], %16 {strides = array<i32>} : memref<48x128xbf16, #tpu.memory_space<vmem>>, vector<48x128xbf16>,
    return
  }
  func.func @transform_0(%arg0: i32) -> (i32, i32, i32) {
    %c0_i32 = arith.constant 0 : i32
    %c0_i32_0 = arith.constant 0 : i32
    %c0_i32_1 = arith.constant 0 : i32
    return %c0_i32, %arg0, %c0_i32_0 : i32, i32, i32
  }
  func.func @transform_1(%arg0: i32) -> (i32, i32) {
    %c0_i32 = arith.constant 0 : i32
    %c0_i32_0 = arith.constant 0 : i32
    %c0_i32_1 = arith.constant 0 : i32
    return %c0_i32, %c0_i32_0 : i32, i32
  }
  func.func @transform_2(%arg0: i32) -> (i32, i32) {
    %c0_i32 = arith.constant 0 : i32
    %c0_i32_0 = arith.constant 0 : i32
    %c0_i32_1 = arith.constant 0 : i32
    return %c0_i32, %c0_i32_0 : i32, i32
  }
  func.func @transform_3(%arg0: i32) -> (i32, i32) {
    %c0_i32 = arith.constant 0 : i32
    %c0_i32_0 = arith.constant 0 : i32
    return %arg0, %c0_i32 : i32, i32
  }
}

module attributes {stable_mosaic.version = 11 : i64} {
  func.func @_mlp_kernel(%arg0: i32, %arg1: memref<2x640xbf16, #tpu.memory_space<vmem>>, %arg2: memref<640x256xbf16, #tpu.memory_space<vmem>>, %arg3: memref<1x256xf32, #tpu.memory_space<vmem>>, %arg4: memref<256x128xbf16, #tpu.memory_space<vmem>>, %arg5: memref<1x128xf32, #tpu.memory_space<vmem>>, %arg6: memref<128x2xbf16, #tpu.memory_space<vmem>>, %arg7: memref<1x2xf32, #tpu.memory_space<vmem>>, %arg8: memref<2x2xf32, #tpu.memory_space<vmem>>, %arg9: memref<2x256xf32, #tpu.memory_space<vmem>>) attributes {dimension_semantics = [#tpu.dimension_semantics<arbitrary>], iteration_bounds = array<i64: 8>, scalar_prefetch = 0 : i64, scratch_operands = 1 : i64, tpu.core_type = #tpu.core_type<tc>, window_params = [{transform_indices = @transform_0, window_bounds = array<i64: 2, 640>}, {transform_indices = @transform_1, window_bounds = array<i64: 640, 256>}, {pipeline_mode = #tpu.pipeline_mode<synchronous>, transform_indices = @transform_2, window_bounds = array<i64: 1, 256>}, {pipeline_mode = #tpu.pipeline_mode<synchronous>, transform_indices = @transform_3, window_bounds = array<i64: 256, 128>}, {pipeline_mode = #tpu.pipeline_mode<synchronous>, transform_indices = @transform_4, window_bounds = array<i64: 1, 128>}, {pipeline_mode = #tpu.pipeline_mode<synchronous>, transform_indices = @transform_5, window_bounds = array<i64: 128, 2>}, {pipeline_mode = #tpu.pipeline_mode<synchronous>, transform_indices = @transform_6, window_bounds = array<i64: 1, 2>}, {pipeline_mode = #tpu.pipeline_mode<synchronous>, transform_indices = @transform_7, window_bounds = array<i64: 2, 2>}]} {
    %c0_i32 = arith.constant 0 : i32
    %0 = arith.cmpi eq, %arg0, %c0_i32 : i32
    %1 = arith.extui %0 : i1 to i32
    %c0_i32_0 = arith.constant 0 : i32
    %2 = arith.cmpi ne, %1, %c0_i32_0 : i32
    scf.if %2 {
      %cst_9 = arith.constant 0.000000e+00 : f32
      %12 = vector.broadcast %cst_9 : f32 to vector<2x256xf32>
      %c0_10 = arith.constant 0 : index
      %c0_11 = arith.constant 0 : index
      %13 = vector.load %arg9[%c0_10, %c0_11] : memref<2x256xf32, #tpu.memory_space<vmem>>, vector<2x256xf32>
      tpu.vector_store %arg9[%c0_10, %c0_11], %12 {strides = array<i32>} : memref<2x256xf32, #tpu.memory_space<vmem>>, vector<2x256xf32>,
    } else {
    }
    %c0 = arith.constant 0 : index
    %c0_1 = arith.constant 0 : index
    %3 = vector.load %arg9[%c0, %c0_1] : memref<2x256xf32, #tpu.memory_space<vmem>>, vector<2x256xf32>
    %c0_2 = arith.constant 0 : index
    %c0_3 = arith.constant 0 : index
    %4 = vector.load %arg1[%c0_2, %c0_3] : memref<2x640xbf16, #tpu.memory_space<vmem>>, vector<2x640xbf16>
    %c0_4 = arith.constant 0 : index
    %c0_5 = arith.constant 0 : index
    %5 = vector.load %arg2[%c0_4, %c0_5] : memref<640x256xbf16, #tpu.memory_space<vmem>>, vector<640x256xbf16>
    %cst = arith.constant dense<0.000000e+00> : vector<2x256xf32>
    %6 = tpu.matmul %4, %5, %cst {dimension_numbers = #tpu.dot_dimension_numbers<[1], [0], [0], [1], [0, 0, 1, 1], [], []>} : vector<2x640xbf16>, vector<640x256xbf16>, vector<2x256xf32> -> vector<2x256xf32>
    %7 = arith.addf %3, %6 : vector<2x256xf32>
    %c0_6 = arith.constant 0 : index
    %c0_7 = arith.constant 0 : index
    %8 = vector.load %arg9[%c0_6, %c0_7] : memref<2x256xf32, #tpu.memory_space<vmem>>, vector<2x256xf32>
    tpu.vector_store %arg9[%c0_6, %c0_7], %7 {strides = array<i32>} : memref<2x256xf32, #tpu.memory_space<vmem>>, vector<2x256xf32>,
    %c7_i32 = arith.constant 7 : i32
    %9 = arith.cmpi eq, %arg0, %c7_i32 : i32
    %10 = arith.extui %9 : i1 to i32
    %c0_i32_8 = arith.constant 0 : i32
    %11 = arith.cmpi ne, %10, %c0_i32_8 : i32
    scf.if %11 {
      %c0_9 = arith.constant 0 : index
      %c0_10 = arith.constant 0 : index
      %12 = vector.load %arg9[%c0_9, %c0_10] : memref<2x256xf32, #tpu.memory_space<vmem>>, vector<2x256xf32>
      %c0_11 = arith.constant 0 : index
      %c0_12 = arith.constant 0 : index
      %13 = vector.load %arg3[%c0_11, %c0_12] : memref<1x256xf32, #tpu.memory_space<vmem>>, vector<1x256xf32>
      %14 = vector.broadcast %13 : vector<1x256xf32> to vector<2x256xf32>
      %15 = arith.addf %12, %14 : vector<2x256xf32>
      %cst_13 = arith.constant 0.000000e+00 : f32
      %16 = vector.broadcast %cst_13 : f32 to vector<2x256xf32>
      %17 = arith.maximumf %15, %16 : vector<2x256xf32>
      %18 = arith.truncf %17 : vector<2x256xf32> to vector<2x256xbf16>
      %c0_14 = arith.constant 0 : index
      %c0_15 = arith.constant 0 : index
      %19 = vector.load %arg4[%c0_14, %c0_15] : memref<256x128xbf16, #tpu.memory_space<vmem>>, vector<256x128xbf16>
      %cst_16 = arith.constant dense<0.000000e+00> : vector<2x128xf32>
      %20 = tpu.matmul %18, %19, %cst_16 {dimension_numbers = #tpu.dot_dimension_numbers<[1], [0], [0], [1], [0, 0, 1, 1], [], []>} : vector<2x256xbf16>, vector<256x128xbf16>, vector<2x128xf32> -> vector<2x128xf32>
      %c0_17 = arith.constant 0 : index
      %c0_18 = arith.constant 0 : index
      %21 = vector.load %arg5[%c0_17, %c0_18] : memref<1x128xf32, #tpu.memory_space<vmem>>, vector<1x128xf32>
      %22 = vector.broadcast %21 : vector<1x128xf32> to vector<2x128xf32>
      %23 = arith.addf %20, %22 : vector<2x128xf32>
      %cst_19 = arith.constant 0.000000e+00 : f32
      %24 = vector.broadcast %cst_19 : f32 to vector<2x128xf32>
      %25 = arith.maximumf %23, %24 : vector<2x128xf32>
      %26 = arith.truncf %25 : vector<2x128xf32> to vector<2x128xbf16>
      %c0_20 = arith.constant 0 : index
      %c0_21 = arith.constant 0 : index
      %27 = vector.load %arg6[%c0_20, %c0_21] : memref<128x2xbf16, #tpu.memory_space<vmem>>, vector<128x2xbf16>
      %cst_22 = arith.constant dense<0.000000e+00> : vector<2x2xf32>
      %28 = tpu.matmul %26, %27, %cst_22 {dimension_numbers = #tpu.dot_dimension_numbers<[1], [0], [0], [1], [0, 0, 1, 1], [], []>} : vector<2x128xbf16>, vector<128x2xbf16>, vector<2x2xf32> -> vector<2x2xf32>
      %c0_23 = arith.constant 0 : index
      %c0_24 = arith.constant 0 : index
      %29 = vector.load %arg7[%c0_23, %c0_24] : memref<1x2xf32, #tpu.memory_space<vmem>>, vector<1x2xf32>
      %30 = vector.broadcast %29 : vector<1x2xf32> to vector<2x2xf32>
      %31 = arith.addf %28, %30 : vector<2x2xf32>
      %c0_25 = arith.constant 0 : index
      %c0_26 = arith.constant 0 : index
      %32 = vector.load %arg8[%c0_25, %c0_26] : memref<2x2xf32, #tpu.memory_space<vmem>>, vector<2x2xf32>
      tpu.vector_store %arg8[%c0_25, %c0_26], %31 {strides = array<i32>} : memref<2x2xf32, #tpu.memory_space<vmem>>, vector<2x2xf32>,
    } else {
    }
    return
  }
  func.func @transform_0(%arg0: i32) -> (i32, i32) {
    %c0_i32 = arith.constant 0 : i32
    %c0_i32_0 = arith.constant 0 : i32
    return %c0_i32, %arg0 : i32, i32
  }
  func.func @transform_1(%arg0: i32) -> (i32, i32) {
    %c0_i32 = arith.constant 0 : i32
    %c0_i32_0 = arith.constant 0 : i32
    return %arg0, %c0_i32 : i32, i32
  }
  func.func @transform_2(%arg0: i32) -> (i32, i32) {
    %c0_i32 = arith.constant 0 : i32
    %c0_i32_0 = arith.constant 0 : i32
    %c0_i32_1 = arith.constant 0 : i32
    return %c0_i32, %c0_i32_0 : i32, i32
  }
  func.func @transform_3(%arg0: i32) -> (i32, i32) {
    %c0_i32 = arith.constant 0 : i32
    %c0_i32_0 = arith.constant 0 : i32
    %c0_i32_1 = arith.constant 0 : i32
    return %c0_i32, %c0_i32_0 : i32, i32
  }
  func.func @transform_4(%arg0: i32) -> (i32, i32) {
    %c0_i32 = arith.constant 0 : i32
    %c0_i32_0 = arith.constant 0 : i32
    %c0_i32_1 = arith.constant 0 : i32
    return %c0_i32, %c0_i32_0 : i32, i32
  }
  func.func @transform_5(%arg0: i32) -> (i32, i32) {
    %c0_i32 = arith.constant 0 : i32
    %c0_i32_0 = arith.constant 0 : i32
    %c0_i32_1 = arith.constant 0 : i32
    return %c0_i32, %c0_i32_0 : i32, i32
  }
  func.func @transform_6(%arg0: i32) -> (i32, i32) {
    %c0_i32 = arith.constant 0 : i32
    %c0_i32_0 = arith.constant 0 : i32
    %c0_i32_1 = arith.constant 0 : i32
    return %c0_i32, %c0_i32_0 : i32, i32
  }
  func.func @transform_7(%arg0: i32) -> (i32, i32) {
    %c0_i32 = arith.constant 0 : i32
    %c0_i32_0 = arith.constant 0 : i32
    %c0_i32_1 = arith.constant 0 : i32
    return %c0_i32, %c0_i32_0 : i32, i32
  }
}

</mosaic_0001>

<bundles_post_ra>
// kernel: eye_tracking_cnn_forward.4
= control target key start
LH: loop header
LB: loop body
LE: loop exit
PB: predicated region body
PF: predicated region fallthrough
CT: control target
= control target key end

     0   :  { %s2543_s12 = smov 0   ;;  %s2545_s13 = smov 0   ;;  %s3067_s0 = inlined_call_operand.vmem [shape: bf16[4,2048,9], index: 0, kind: input, shape index: {}]   ;;  %s3068_s1 = inlined_call_operand.vmem [shape: bf16[9,32], index: 1, kind: input, shape index: {}]   ;;  %s3069_s2 = inlined_call_operand.vmem [shape: f32[1,32], index: 2, kind: input, shape index: {}]   ;;  %s3070_s3 = inlined_call_operand.vmem [shape: bf16[2048,32], index: 3, kind: output, shape index: {}]  }
   0x1   :  { %s2547_s14 = smov 0  }
   0x2 LB: > { %s2065_s15 = sadd.s32 4294967295, %s2520_s14   ;;  %s2560_s16 = sadd.s32 1, %s2520_s14   ;;  %s2520_s14 = sphi %s2547_s14, %s3073_s14   ;;  %s2516_s13 = sphi %s2545_s13, %s3072_s13   ;;  %s2512_s12 = sphi %s2543_s12, %s3071_s12  }
   0x3   : > { %s17_s17 = ssub.s32 %s2520_s14, %s2560_s16  ;;  %s20_s18 = sadd.s32 1, %s2516_s13 }
   0x4   : > { %p18_p0 = scmp.eq.s32.totalorder %s17_s17, 0  ;;  %p27_p1 = scmp.ne.s32.totalorder %s2516_s13, %s2512_s12 }
   0x5   : > { %p28_p2 = scmp.eq.s32.totalorder %s2520_s14, 0  ;;  %p2068_p4 = scmp.ge.s32.totalorder %s2520_s14, 8 }
   0x6   : > { %s2569_s19 = scalar_select %p18_p0, %s2516_s13, %s20_s18  }
   0x7   : > { %p29_p3 = por %p28_p2, %p27_p1  ;;  %127 = sbr.rel (%p2068_p4) target bundleno = 80 (0x50), region = 24 }
   0xc   : > { %130 = sbr.rel (!%p29_p3) target bundleno = 80 (0x50), region = 28  ;;  %s132_s20 = sand.u32 (%p29_p3), 1, %s2516_s13  }
   0xd   : > { %s2402_s21 = sshll.u32 (%p29_p3), %s2520_s14, 7  ;;  %s2069_s22 = sshll.u32 (%p29_p3), %s132_s20, 9 }
   0xe   : > { %s2577_s25 = scalar_lea.vmem (%p29_p3), %s3067_s0, %s2402_s21  ;;  %s2582_s26 = scalar_lea.vmem (%p29_p3), [#allocation2], %s2069_s22 }
   0xf   : > { %v154_v0 = vld [vmem:[%s2577_s25] sm:$0xff] (%p29_p3)   ;;  %v158_v1 = vld [vmem:[%s2577_s25 + $0x8] sm:$0xff] (%p29_p3)   ;;  %v162_v2 = vld [vmem:[%s2577_s25 + $0x10] sm:$0xff] (%p29_p3)  }
  0x10   : > { %155 = vst [vmem:[%s2582_s26] sm:$0xff] (%p29_p3), %v154_v0   ;;  %v166_v3 = vld [vmem:[%s2577_s25 + $0x18] sm:$0xff] (%p29_p3)   ;;  %v170_v4 = vld [vmem:[%s2577_s25 + $0x20] sm:$0xff] (%p29_p3)   ;;  %v174_v5 = vld [vmem:[%s2577_s25 + $0x28] sm:$0xff] (%p29_p3)  }
  0x11   : > { %159 = vst [vmem:[%s2582_s26 + $0x8] sm:$0xff] %v158_v1   ;;  %v178_v6 = vld [vmem:[%s2577_s25 + $0x30] sm:$0xff]   ;;  %v182_v7 = vld [vmem:[%s2577_s25 + $0x38] sm:$0xff]   ;;  %v186_v8 = vld [vmem:[%s2577_s25 + $0x40] sm:$0xff]  }
  0x12   : > { %163 = vst [vmem:[%s2582_s26 + $0x10] sm:$0xff] %v162_v2   ;;  %v190_v9 = vld [vmem:[%s2577_s25 + $0x48] sm:$0xff]   ;;  %v194_v10 = vld [vmem:[%s2577_s25 + $0x50] sm:$0xff]   ;;  %v198_v11 = vld [vmem:[%s2577_s25 + $0x58] sm:$0xff]  }
  0x13   : > { %167 = vst [vmem:[%s2582_s26 + $0x18] sm:$0xff] %v166_v3   ;;  %v202_v12 = vld [vmem:[%s2577_s25 + $0x60] sm:$0xff]   ;;  %v206_v13 = vld [vmem:[%s2577_s25 + $0x68] sm:$0xff]   ;;  %v210_v14 = vld [vmem:[%s2577_s25 + $0x70] sm:$0xff]  }
  0x14   : > { %171 = vst [vmem:[%s2582_s26 + $0x20] sm:$0xff] %v170_v4   ;;  %v214_v15 = vld [vmem:[%s2577_s25 + $0x78] sm:$0xff]   ;;  %v218_v16 = vld [vmem:[%s2577_s25 + $0x400] sm:$0xff]   ;;  %v222_v17 = vld [vmem:[%s2577_s25 + $0x408] sm:$0xff]  }
  0x15   : > { %175 = vst [vmem:[%s2582_s26 + $0x28] sm:$0xff] %v174_v5   ;;  %v226_v18 = vld [vmem:[%s2577_s25 + $0x410] sm:$0xff]   ;;  %v230_v19 = vld [vmem:[%s2577_s25 + $0x418] sm:$0xff]   ;;  %v234_v20 = vld [vmem:[%s2577_s25 + $0x420] sm:$0xff]  }
  0x16   : > { %179 = vst [vmem:[%s2582_s26 + $0x30] sm:$0xff] %v178_v6   ;;  %v238_v21 = vld [vmem:[%s2577_s25 + $0x428] sm:$0xff]   ;;  %v242_v22 = vld [vmem:[%s2577_s25 + $0x430] sm:$0xff]   ;;  %v246_v23 = vld [vmem:[%s2577_s25 + $0x438] sm:$0xff]  }
  0x17   : > { %183 = vst [vmem:[%s2582_s26 + $0x38] sm:$0xff] %v182_v7   ;;  %v250_v24 = vld [vmem:[%s2577_s25 + $0x440] sm:$0xff]   ;;  %v254_v25 = vld [vmem:[%s2577_s25 + $0x448] sm:$0xff]   ;;  %v258_v26 = vld [vmem:[%s2577_s25 + $0x450] sm:$0xff]  }
  0x18   : > { %187 = vst [vmem:[%s2582_s26 + $0x40] sm:$0xff] %v186_v8   ;;  %v262_v27 = vld [vmem:[%s2577_s25 + $0x458] sm:$0xff]   ;;  %v266_v28 = vld [vmem:[%s2577_s25 + $0x460] sm:$0xff]   ;;  %v270_v29 = vld [vmem:[%s2577_s25 + $0x468] sm:$0xff]  }
  0x19   : > { %191 = vst [vmem:[%s2582_s26 + $0x48] sm:$0xff] %v190_v9   ;;  %v274_v30 = vld [vmem:[%s2577_s25 + $0x470] sm:$0xff]   ;;  %v278_v31 = vld [vmem:[%s2577_s25 + $0x478] sm:$0xff]   ;;  %v282_v32 = vld [vmem:[%s2577_s25 + $0x800] sm:$0xff]  }
  0x1a   : > { %195 = vst [vmem:[%s2582_s26 + $0x50] sm:$0xff] %v194_v10   ;;  %v286_v33 = vld [vmem:[%s2577_s25 + $0x808] sm:$0xff]   ;;  %v290_v34 = vld [vmem:[%s2577_s25 + $0x810] sm:$0xff]   ;;  %v294_v35 = vld [vmem:[%s2577_s25 + $0x818] sm:$0xff]  }
  0x1b   : > { %199 = vst [vmem:[%s2582_s26 + $0x58] sm:$0xff] %v198_v11   ;;  %v298_v36 = vld [vmem:[%s2577_s25 + $0x820] sm:$0xff]   ;;  %v302_v37 = vld [vmem:[%s2577_s25 + $0x828] sm:$0xff]   ;;  %v306_v38 = vld [vmem:[%s2577_s25 + $0x830] sm:$0xff]  }
  0x1c   : > { %203 = vst [vmem:[%s2582_s26 + $0x60] sm:$0xff] %v202_v12   ;;  %v310_v39 = vld [vmem:[%s2577_s25 + $0x838] sm:$0xff]   ;;  %v314_v40 = vld [vmem:[%s2577_s25 + $0x840] sm:$0xff]   ;;  %v318_v41 = vld [vmem:[%s2577_s25 + $0x848] sm:$0xff]  }
  0x1d   : > { %207 = vst [vmem:[%s2582_s26 + $0x68] sm:$0xff] %v206_v13   ;;  %v322_v42 = vld [vmem:[%s2577_s25 + $0x850] sm:$0xff]   ;;  %v326_v43 = vld [vmem:[%s2577_s25 + $0x858] sm:$0xff]   ;;  %v330_v44 = vld [vmem:[%s2577_s25 + $0x860] sm:$0xff]  }
  0x1e   : > { %211 = vst [vmem:[%s2582_s26 + $0x70] sm:$0xff] %v210_v14   ;;  %v334_v45 = vld [vmem:[%s2577_s25 + $0x868] sm:$0xff]   ;;  %v338_v46 = vld [vmem:[%s2577_s25 + $0x870] sm:$0xff]   ;;  %v342_v47 = vld [vmem:[%s2577_s25 + $0x878] sm:$0xff]  }
  0x1f   : > { %215 = vst [vmem:[%s2582_s26 + $0x78] sm:$0xff] %v214_v15   ;;  %v346_v48 = vld [vmem:[%s2577_s25 + $0xc00] sm:$0xff]   ;;  %v350_v49 = vld [vmem:[%s2577_s25 + $0xc08] sm:$0xff]   ;;  %v354_v50 = vld [vmem:[%s2577_s25 + $0xc10] sm:$0xff]  }
  0x20   : > { %219 = vst [vmem:[%s2582_s26 + $0x80] sm:$0xff] %v218_v16   ;;  %v358_v51 = vld [vmem:[%s2577_s25 + $0xc18] sm:$0xff]   ;;  %v362_v52 = vld [vmem:[%s2577_s25 + $0xc20] sm:$0xff]   ;;  %v366_v53 = vld [vmem:[%s2577_s25 + $0xc28] sm:$0xff]  }
  0x21   : > { %223 = vst [vmem:[%s2582_s26 + $0x88] sm:$0xff] %v222_v17   ;;  %v370_v54 = vld [vmem:[%s2577_s25 + $0xc30] sm:$0xff]   ;;  %v374_v55 = vld [vmem:[%s2577_s25 + $0xc38] sm:$0xff]   ;;  %v378_v56 = vld [vmem:[%s2577_s25 + $0xc40] sm:$0xff]  }
  0x22   : > { %227 = vst [vmem:[%s2582_s26 + $0x90] sm:$0xff] %v226_v18   ;;  %v382_v57 = vld [vmem:[%s2577_s25 + $0xc48] sm:$0xff]   ;;  %v386_v58 = vld [vmem:[%s2577_s25 + $0xc50] sm:$0xff]   ;;  %v390_v59 = vld [vmem:[%s2577_s25 + $0xc58] sm:$0xff]  }
  0x23   : > { %231 = vst [vmem:[%s2582_s26 + $0x98] sm:$0xff] %v230_v19   ;;  %v394_v60 = vld [vmem:[%s2577_s25 + $0xc60] sm:$0xff]   ;;  %v398_v61 = vld [vmem:[%s2577_s25 + $0xc68] sm:$0xff]   ;;  %v402_v62 = vld [vmem:[%s2577_s25 + $0xc70] sm:$0xff]  }
  0x24   : > { %235 = vst [vmem:[%s2582_s26 + $0xa0] sm:$0xff] %v234_v20   ;;  %v406_v63 = vld [vmem:[%s2577_s25 + $0xc78] sm:$0xff]  }
  0x25   : > { %239 = vst [vmem:[%s2582_s26 + $0xa8] sm:$0xff] %v238_v21  }
  0x26   : > { %243 = vst [vmem:[%s2582_s26 + $0xb0] sm:$0xff] %v242_v22  }
  0x27   : > { %247 = vst [vmem:[%s2582_s26 + $0xb8] sm:$0xff] %v246_v23  }
  0x28   : > { %251 = vst [vmem:[%s2582_s26 + $0xc0] sm:$0xff] %v250_v24  }
  0x29   : > { %255 = vst [vmem:[%s2582_s26 + $0xc8] sm:$0xff] %v254_v25  }
  0x2a   : > { %259 = vst [vmem:[%s2582_s26 + $0xd0] sm:$0xff] %v258_v26  }
  0x2b   : > { %263 = vst [vmem:[%s2582_s26 + $0xd8] sm:$0xff] %v262_v27  }
  0x2c   : > { %267 = vst [vmem:[%s2582_s26 + $0xe0] sm:$0xff] %v266_v28  }
  0x2d   : > { %271 = vst [vmem:[%s2582_s26 + $0xe8] sm:$0xff] %v270_v29  }
  0x2e   : > { %275 = vst [vmem:[%s2582_s26 + $0xf0] sm:$0xff] %v274_v30  }
  0x2f   : > { %279 = vst [vmem:[%s2582_s26 + $0xf8] sm:$0xff] %v278_v31  }
  0x30   : > { %283 = vst [vmem:[%s2582_s26 + $0x100] sm:$0xff] %v282_v32  }
  0x31   : > { %287 = vst [vmem:[%s2582_s26 + $0x108] sm:$0xff] %v286_v33  }
  0x32   : > { %291 = vst [vmem:[%s2582_s26 + $0x110] sm:$0xff] %v290_v34  }
  0x33   : > { %295 = vst [vmem:[%s2582_s26 + $0x118] sm:$0xff] %v294_v35  }
  0x34   : > { %299 = vst [vmem:[%s2582_s26 + $0x120] sm:$0xff] %v298_v36  }
  0x35   : > { %303 = vst [vmem:[%s2582_s26 + $0x128] sm:$0xff] %v302_v37  }
  0x36   : > { %307 = vst [vmem:[%s2582_s26 + $0x130] sm:$0xff] %v306_v38  }
  0x37   : > { %311 = vst [vmem:[%s2582_s26 + $0x138] sm:$0xff] %v310_v39  }
  0x38   : > { %315 = vst [vmem:[%s2582_s26 + $0x140] sm:$0xff] %v314_v40  }
  0x39   : > { %319 = vst [vmem:[%s2582_s26 + $0x148] sm:$0xff] %v318_v41  }
  0x3a   : > { %323 = vst [vmem:[%s2582_s26 + $0x150] sm:$0xff] %v322_v42  }
  0x3b   : > { %327 = vst [vmem:[%s2582_s26 + $0x158] sm:$0xff] %v326_v43  }
  0x3c   : > { %331 = vst [vmem:[%s2582_s26 + $0x160] sm:$0xff] %v330_v44  }
  0x3d   : > { %335 = vst [vmem:[%s2582_s26 + $0x168] sm:$0xff] %v334_v45  }
  0x3e   : > { %339 = vst [vmem:[%s2582_s26 + $0x170] sm:$0xff] %v338_v46  }
  0x3f   : > { %343 = vst [vmem:[%s2582_s26 + $0x178] sm:$0xff] %v342_v47  }
  0x40   : > { %347 = vst [vmem:[%s2582_s26 + $0x180] sm:$0xff] %v346_v48  }
  0x41   : > { %351 = vst [vmem:[%s2582_s26 + $0x188] sm:$0xff] %v350_v49  }
  0x42   : > { %355 = vst [vmem:[%s2582_s26 + $0x190] sm:$0xff] %v354_v50  }
  0x43   : > { %359 = vst [vmem:[%s2582_s26 + $0x198] sm:$0xff] %v358_v51  }
  0x44   : > { %363 = vst [vmem:[%s2582_s26 + $0x1a0] sm:$0xff] %v362_v52  }
  0x45   : > { %367 = vst [vmem:[%s2582_s26 + $0x1a8] sm:$0xff] %v366_v53  }
  0x46   : > { %371 = vst [vmem:[%s2582_s26 + $0x1b0] sm:$0xff] %v370_v54  }
  0x47   : > { %375 = vst [vmem:[%s2582_s26 + $0x1b8] sm:$0xff] %v374_v55  }
  0x48   : > { %379 = vst [vmem:[%s2582_s26 + $0x1c0] sm:$0xff] %v378_v56  }
  0x49   : > { %383 = vst [vmem:[%s2582_s26 + $0x1c8] sm:$0xff] %v382_v57  }
  0x4a   : > { %387 = vst [vmem:[%s2582_s26 + $0x1d0] sm:$0xff] %v386_v58  }
  0x4b   : > { %391 = vst [vmem:[%s2582_s26 + $0x1d8] sm:$0xff] %v390_v59  }
  0x4c   : > { %395 = vst [vmem:[%s2582_s26 + $0x1e0] sm:$0xff] %v394_v60  }
  0x4d   : > { %399 = vst [vmem:[%s2582_s26 + $0x1e8] sm:$0xff] %v398_v61  }
  0x4e   : > { %403 = vst [vmem:[%s2582_s26 + $0x1f0] sm:$0xff] %v402_v62  }
  0x4f   : > { %407 = vst [vmem:[%s2582_s26 + $0x1f8] sm:$0xff] %v406_v63  }
  0x50 PF: > { %p2072_p5 = scmp.ge.s32.totalorder %s2520_s14, 1  ;;  %p688_p6 = scmp.lt.s32.totalorder %s2520_s14, 9 }
  0x52   : > { %p689_p7 = pnand %p2072_p5, %p688_p6 }
  0x53   : > { %s695_s4 = sand.u32 (!%p689_p7), 1, %s2512_s12   ;;  %s2074_s9 = sshll.u32 (!%p689_p7), %s2065_s15, 5 }
  0x54   : > { %692 = sbr.rel (%p689_p7) target bundleno = 490 (0x1ea), region = 69  ;;  %s2073_s5 = sshll.u32 (!%p689_p7), %s695_s4, 9 }
  0x55   : > { %s2718_s6 = scalar_lea.vmem (!%p689_p7), [#allocation2], %s2073_s5  ;;  %p720_p8 = scmp.lt.s32.totalorder (!%p689_p7), %s2074_s9, 255 }
  0x59   : > { %v2334_v0 = vld [vmem:[%s3068_s1] sm:$0xf]  ;;  %v2467_v1 = vld [vmem:[%s3068_s1] sm:$0x10]  ;;  %vm1378_vm0 = vcmask 1043456   ;;  %vm1379_vm1 = vcmask 1044480  }
  0x5a   : > { %v2335_v2 = vor.u32 %v2467_v1, %v2334_v0  ;;  %v2522_v3 = vmov 65535   ;;  %v2403_v7 = vld [vmem:[%s2718_s6] sm:$0xff]  ;;  %vm1185_vm2 = vcmask 72704   ;;  %v2404_v11 = vld [vmem:[%s2718_s6 + $0x8] sm:$0xff]  ;;  %v2405_v15 = vld [vmem:[%s2718_s6 + $0x10] sm:$0xff]  ;;  %s3075_s9 = smov (!%p720_p8, %s2074_s9), 255 }
  0x5b   : > { %v1380_v4 = vsel %vm1378_vm0, 4294967295, %v2522_v3  ;;  %v2419_v8 = vld [vmem:[%s2718_s6 + $0x80] sm:$0xff]  ;;  %v2420_v12 = vld [vmem:[%s2718_s6 + $0x88] sm:$0xff]  ;;  %v2421_v16 = vld [vmem:[%s2718_s6 + $0x90] sm:$0xff]  ;;  %s2075_s10 = sshll.u32 %s3075_s9, 2  ;;  %vm1970_vm3 = vcmask 257024  }
  0x5c   : > { %v1381_v5 = vsel %vm1379_vm1, %v1380_v4, 0  ;;  %v2435_v9 = vld [vmem:[%s2718_s6 + $0x100] sm:$0xff]  ;;  %v2436_v13 = vld [vmem:[%s2718_s6 + $0x108] sm:$0xff]  ;;  %v2437_v17 = vld [vmem:[%s2718_s6 + $0x110] sm:$0xff]  ;;  %s2808_s14 = scalar_lea.vmem %s3070_s3, %s2075_s10 }
  0x5d   : > { %v1383_v6 = vand.u32 %v2335_v2, %v1381_v5  ;;  %v2451_v10 = vld [vmem:[%s2718_s6 + $0x180] sm:$0xff]  ;;  %v2452_v14 = vld [vmem:[%s2718_s6 + $0x188] sm:$0xff]  ;;  %v2453_v18 = vld [vmem:[%s2718_s6 + $0x190] sm:$0xff] }
  0x5e   : > { %v2406_v19 = vld [vmem:[%s2718_s6 + $0x18] sm:$0xff]  ;;  %v2407_v23 = vld [vmem:[%s2718_s6 + $0x20] sm:$0xff]  ;;  %v2408_v27 = vld [vmem:[%s2718_s6 + $0x28] sm:$0xff] }
  0x5f   : > { %1392 = vmatpush.bf16.msra.mxu0 %v1383_v6  ;;  %2468 = vmatpush.bf16.msra.mxu1 %v1383_v6  ;;  %v2422_v20 = vld [vmem:[%s2718_s6 + $0x98] sm:$0xff]  ;;  %v2423_v24 = vld [vmem:[%s2718_s6 + $0xa0] sm:$0xff]  ;;  %v2424_v28 = vld [vmem:[%s2718_s6 + $0xa8] sm:$0xff] }
  0x60   : > { %2469 = vmatpush.bf16.msra.mxu2 %v1383_v6  ;;  %2470 = vmatpush.bf16.msra.mxu3 %v1383_v6  ;;  %v2438_v21 = vld [vmem:[%s2718_s6 + $0x118] sm:$0xff]  ;;  %v2439_v25 = vld [vmem:[%s2718_s6 + $0x120] sm:$0xff]  ;;  %v2440_v29 = vld [vmem:[%s2718_s6 + $0x128] sm:$0xff] }
  0x61   : > { %v2454_v22 = vld [vmem:[%s2718_s6 + $0x198] sm:$0xff]  ;;  %v2455_v26 = vld [vmem:[%s2718_s6 + $0x1a0] sm:$0xff]  ;;  %v2456_v30 = vld [vmem:[%s2718_s6 + $0x1a8] sm:$0xff] }
  0x62   : > { %2336 = vmatmul.msk.bf16.vlgmr.msra.gmra.mxu0 %vm1185_vm2, %v2403_v7  ;;  %2352 = vmatmul.msk.bf16.vlgmr.msra.gmra.mxu1 %vm1185_vm2, %v2419_v8  ;;  %v2409_v31 = vld [vmem:[%s2718_s6 + $0x30] sm:$0xff]  ;;  %v2410_v35 = vld [vmem:[%s2718_s6 + $0x38] sm:$0xff]  ;;  %v2787_v39 = vld [vmem:[%s3069_s2] ss:$0 sm:$0xff] }
  0x63   : > { %2368 = vmatmul.msk.bf16.vlgmr.msra.gmra.mxu2 %vm1185_vm2, %v2435_v9  ;;  %2384 = vmatmul.msk.bf16.vlgmr.msra.gmra.mxu3 %vm1185_vm2, %v2451_v10  ;;  %v2425_v32 = vld [vmem:[%s2718_s6 + $0xb0] sm:$0xff]  ;;  %v2426_v36 = vld [vmem:[%s2718_s6 + $0xb8] sm:$0xff]  ;;  %v2411_v40 = vld [vmem:[%s2718_s6 + $0x40] sm:$0xff] }
  0x64   : > { %v2441_v33 = vld [vmem:[%s2718_s6 + $0x130] sm:$0xff]  ;;  %v2442_v37 = vld [vmem:[%s2718_s6 + $0x138] sm:$0xff]  ;;  %v2427_v41 = vld [vmem:[%s2718_s6 + $0xc0] sm:$0xff] }
  0x65   : > { %v2457_v34 = vld [vmem:[%s2718_s6 + $0x1b0] sm:$0xff]  ;;  %v2458_v38 = vld [vmem:[%s2718_s6 + $0x1b8] sm:$0xff]  ;;  %v2443_v44 = vld [vmem:[%s2718_s6 + $0x140] sm:$0xff] }
  0x66   : > { %v2459_v45 = vld [vmem:[%s2718_s6 + $0x1c0] sm:$0xff]  ;;  %v2412_v2 = vld [vmem:[%s2718_s6 + $0x48] sm:$0xff] }
  0x67   : > { %v2428_v3 = vld [vmem:[%s2718_s6 + $0xc8] sm:$0xff] }
  0x68   : > { %v2444_v10 = vld [vmem:[%s2718_s6 + $0x148] sm:$0xff] }
  0x72   : > { %2337 = vmatmul.msk.bf16.gmra.mxu0 %vm1185_vm2, %v2404_v11  ;;  %2353 = vmatmul.msk.bf16.gmra.mxu1 %vm1185_vm2, %v2420_v12  ;;  %v2460_v11 = vld [vmem:[%s2718_s6 + $0x1c8] sm:$0xff] }
  0x73   : > { %2369 = vmatmul.msk.bf16.gmra.mxu2 %vm1185_vm2, %v2436_v13  ;;  %2385 = vmatmul.msk.bf16.gmra.mxu3 %vm1185_vm2, %v2452_v14 }
  0x82   : > { %2338 = vmatmul.msk.bf16.gmra.mxu0 %vm1185_vm2, %v2405_v15  ;;  %2354 = vmatmul.msk.bf16.gmra.mxu1 %vm1185_vm2, %v2421_v16 }
  0x83   : > { %2370 = vmatmul.msk.bf16.gmra.mxu2 %vm1185_vm2, %v2437_v17  ;;  %2386 = vmatmul.msk.bf16.gmra.mxu3 %vm1185_vm2, %v2453_v18 }
  0x92   : > { %2339 = vmatmul.msk.bf16.gmra.mxu0 %vm1185_vm2, %v2406_v19  ;;  %2355 = vmatmul.msk.bf16.gmra.mxu1 %vm1185_vm2, %v2422_v20 }
  0x93   : > { %2371 = vmatmul.msk.bf16.gmra.mxu2 %vm1185_vm2, %v2438_v21  ;;  %2387 = vmatmul.msk.bf16.gmra.mxu3 %vm1185_vm2, %v2454_v22 }
  0xa2   : > { %2340 = vmatmul.msk.bf16.gmra.mxu0 %vm1185_vm2, %v2407_v23  ;;  %2356 = vmatmul.msk.bf16.gmra.mxu1 %vm1185_vm2, %v2423_v24 }
  0xa3   : > { %2372 = vmatmul.msk.bf16.gmra.mxu2 %vm1185_vm2, %v2439_v25  ;;  %2388 = vmatmul.msk.bf16.gmra.mxu3 %vm1185_vm2, %v2455_v26 }
  0xb2   : > { %2341 = vmatmul.msk.bf16.gmra.mxu0 %vm1185_vm2, %v2408_v27  ;;  %2357 = vmatmul.msk.bf16.gmra.mxu1 %vm1185_vm2, %v2424_v28 }
  0xb3   : > { %2373 = vmatmul.msk.bf16.gmra.mxu2 %vm1185_vm2, %v2440_v29  ;;  %2389 = vmatmul.msk.bf16.gmra.mxu3 %vm1185_vm2, %v2456_v30 }
  0xc2   : > { %2342 = vmatmul.msk.bf16.gmra.mxu0 %vm1185_vm2, %v2409_v31  ;;  %2358 = vmatmul.msk.bf16.gmra.mxu1 %vm1185_vm2, %v2425_v32 }
  0xc3   : > { %2374 = vmatmul.msk.bf16.gmra.mxu2 %vm1185_vm2, %v2441_v33  ;;  %2390 = vmatmul.msk.bf16.gmra.mxu3 %vm1185_vm2, %v2457_v34 }
  0xd2   : > { %2343 = vmatmul.msk.bf16.gmra.mxu0 %vm1185_vm2, %v2410_v35  ;;  %2359 = vmatmul.msk.bf16.gmra.mxu1 %vm1185_vm2, %v2426_v36 }
  0xd3   : > { %2375 = vmatmul.msk.bf16.gmra.mxu2 %vm1185_vm2, %v2442_v37  ;;  %2391 = vmatmul.msk.bf16.gmra.mxu3 %vm1185_vm2, %v2458_v38  ;;  %v2413_v38 = vld [vmem:[%s2718_s6 + $0x50] sm:$0xff] }
  0xdf   : > { %v1394_v42 = vpop.f32.mrf.mxu0  ;;  %v1474_v43 = vpop.f32.mrf.mxu1 }
  0xe0   : > { %v1395_v46 = vadd.f32 %v2787_v39, %v1394_v42  ;;  %v1475_v47 = vadd.f32 %v2787_v39, %v1474_v43 }
  0xe2   : > { %2344 = vmatmul.msk.bf16.gmra.mxu0 %vm1185_vm2, %v2411_v40  ;;  %2360 = vmatmul.msk.bf16.gmra.mxu1 %vm1185_vm2, %v2427_v41  ;;  %v1714_v48 = vmax.f32 %v1395_v46, 0.0  ;;  %v1746_v49 = vmax.f32 %v1475_v47, 0.0  ;;  %v2429_v40 = vld [vmem:[%s2718_s6 + $0xd0] sm:$0xff] }
  0xe3   : > { %2376 = vmatmul.msk.bf16.gmra.mxu2 %vm1185_vm2, %v2443_v44  ;;  %2392 = vmatmul.msk.bf16.gmra.mxu3 %vm1185_vm2, %v2459_v45  ;;  %v2445_v47 = vld [vmem:[%s2718_s6 + $0x150] sm:$0xff] }
  0xe4   : > { %v1842_v56 = vmax.f32 %v1714_v48, %v1746_v49  ;;  %v2461_v48 = vld [vmem:[%s2718_s6 + $0x1d0] sm:$0xff] }
  0xe6   : > { %v1554_v50 = vpop.f32.mrf.mxu2  ;;  %v1634_v51 = vpop.f32.mrf.mxu3 }
  0xe7   : > { %v1555_v52 = vadd.f32 %v2787_v39, %v1554_v50  ;;  %v1635_v53 = vadd.f32 %v2787_v39, %v1634_v51  ;;  %v1396_v54 = vpop.f32.mrf.mxu0  ;;  %v1476_v55 = vpop.f32.mrf.mxu1 }
  0xe8   : > { %v1397_v59 = vadd.f32 %v2787_v39, %v1396_v54  ;;  %v1477_v61 = vadd.f32 %v2787_v39, %v1476_v55 }
  0xe9   : > { %v1778_v57 = vmax.f32 %v1555_v52, 0.0  ;;  %v1810_v58 = vmax.f32 %v1635_v53, 0.0 }
  0xea   : > { %v1715_v63 = vmax.f32 %v1397_v59, 0.0  ;;  %v1747_v5 = vmax.f32 %v1477_v61, 0.0 }
  0xeb   : > { %v1874_v60 = vmax.f32 %v1778_v57, %v1810_v58 }
  0xec   : > { %v1843_v16 = vmax.f32 %v1715_v63, %v1747_v5 }
  0xed   : > { %v1906_v62 = vmax.f32 %v1842_v56, %v1874_v60 }
  0xee   : > { %v1556_v0 = vpop.f32.mrf.mxu2  ;;  %v1636_v1 = vpop.f32.mrf.mxu3 }
  0xef   : > { %v1938_v4 = vpack.c.bf16 %v1906_v62, %v1906_v62  ;;  %v1557_v6 = vadd.f32 %v2787_v39, %v1556_v0  ;;  %v1637_v7 = vadd.f32 %v2787_v39, %v1636_v1  ;;  %v1399_v8 = vpop.f32.mrf.mxu0  ;;  %v1479_v9 = vpop.f32.mrf.mxu1 }
  0xf0   : > { %v1400_v14 = vadd.f32 %v2787_v39, %v1399_v8  ;;  %v1480_v15 = vadd.f32 %v2787_v39, %v1479_v9 }
  0xf1   : > { %1971 = vst.msk [vmem:[%s2808_s14] sm:$0xf] %vm1970_vm3, %v1938_v4  ;;  %v1779_v12 = vmax.f32 %v1557_v6, 0.0  ;;  %v1811_v13 = vmax.f32 %v1637_v7, 0.0 }
  0xf2   : > { %2345 = vmatmul.msk.bf16.gmra.mxu0 %vm1185_vm2, %v2412_v2  ;;  %2361 = vmatmul.msk.bf16.gmra.mxu1 %vm1185_vm2, %v2428_v3  ;;  %v1716_v19 = vmax.f32 %v1400_v14, 0.0  ;;  %v1748_v20 = vmax.f32 %v1480_v15, 0.0 }
  0xf3   : > { %v1875_v17 = vmax.f32 %v1779_v12, %v1811_v13  ;;  %2377 = vmatmul.msk.bf16.gmra.mxu2 %vm1185_vm2, %v2444_v10  ;;  %2393 = vmatmul.msk.bf16.gmra.mxu3 %vm1185_vm2, %v2460_v11  ;;  %v2414_v11 = vld [vmem:[%s2718_s6 + $0x58] sm:$0xff] }
  0xf4   : > { %v1844_v28 = vmax.f32 %v1716_v19, %v1748_v20  ;;  %v2430_v12 = vld [vmem:[%s2718_s6 + $0xd8] sm:$0xff] }
  0xf5   : > { %v1907_v18 = vmax.f32 %v1843_v16, %v1875_v17  ;;  %v2446_v19 = vld [vmem:[%s2718_s6 + $0x158] sm:$0xff] }
  0xf6   : > { %v1559_v21 = vpop.f32.mrf.mxu2  ;;  %v1639_v22 = vpop.f32.mrf.mxu3  ;;  %v2462_v20 = vld [vmem:[%s2718_s6 + $0x1d8] sm:$0xff] }
  0xf7   : > { %v1939_v23 = vpack.c.bf16 %v1907_v18, %v1907_v18  ;;  %v1560_v24 = vadd.f32 %v2787_v39, %v1559_v21  ;;  %v1640_v25 = vadd.f32 %v2787_v39, %v1639_v22  ;;  %v1401_v26 = vpop.f32.mrf.mxu0  ;;  %v1481_v27 = vpop.f32.mrf.mxu1 }
  0xf8   : > { %v1402_v31 = vadd.f32 %v2787_v39, %v1401_v26  ;;  %v1482_v33 = vadd.f32 %v2787_v39, %v1481_v27 }
  0xf9   : > { %1972 = vst.msk [vmem:[%s2808_s14 + $0x4] sm:$0xf] %vm1970_vm3, %v1939_v23  ;;  %v1780_v29 = vmax.f32 %v1560_v24, 0.0  ;;  %v1812_v30 = vmax.f32 %v1640_v25, 0.0 }
  0xfa   : > { %v1717_v35 = vmax.f32 %v1402_v31, 0.0  ;;  %v1749_v42 = vmax.f32 %v1482_v33, 0.0 }
  0xfb   : > { %v1876_v32 = vmax.f32 %v1780_v29, %v1812_v30 }
  0xfc   : > { %v1845_v53 = vmax.f32 %v1717_v35, %v1749_v42 }
  0xfd   : > { %v1908_v34 = vmax.f32 %v1844_v28, %v1876_v32 }
  0xfe   : > { %v1561_v36 = vpop.f32.mrf.mxu2  ;;  %v1641_v37 = vpop.f32.mrf.mxu3 }
  0xff   : > { %v1940_v41 = vpack.c.bf16 %v1908_v34, %v1908_v34  ;;  %v1562_v43 = vadd.f32 %v2787_v39, %v1561_v36  ;;  %v1642_v44 = vadd.f32 %v2787_v39, %v1641_v37  ;;  %v1404_v45 = vpop.f32.mrf.mxu0  ;;  %v1484_v46 = vpop.f32.mrf.mxu1 }
 0x100   : > { %v1405_v51 = vadd.f32 %v2787_v39, %v1404_v45  ;;  %v1485_v52 = vadd.f32 %v2787_v39, %v1484_v46 }
 0x101   : > { %1973 = vst.msk [vmem:[%s2808_s14 + $0x8] sm:$0xf] %vm1970_vm3, %v1940_v41  ;;  %v1781_v49 = vmax.f32 %v1562_v43, 0.0  ;;  %v1813_v50 = vmax.f32 %v1642_v44, 0.0 }
 0x102   : > { %2346 = vmatmul.msk.bf16.gmra.mxu0 %vm1185_vm2, %v2413_v38  ;;  %2362 = vmatmul.msk.bf16.gmra.mxu1 %vm1185_vm2, %v2429_v40  ;;  %v1718_v56 = vmax.f32 %v1405_v51, 0.0  ;;  %v1750_v57 = vmax.f32 %v1485_v52, 0.0 }
 0x103   : > { %v1877_v54 = vmax.f32 %v1781_v49, %v1813_v50  ;;  %2378 = vmatmul.msk.bf16.gmra.mxu2 %vm1185_vm2, %v2445_v47  ;;  %2394 = vmatmul.msk.bf16.gmra.mxu3 %vm1185_vm2, %v2461_v48  ;;  %v2415_v48 = vld [vmem:[%s2718_s6 + $0x60] sm:$0xff] }
 0x104   : > { %v1846_v1 = vmax.f32 %v1718_v56, %v1750_v57  ;;  %v2431_v49 = vld [vmem:[%s2718_s6 + $0xe0] sm:$0xff] }
 0x105   : > { %v1909_v55 = vmax.f32 %v1845_v53, %v1877_v54  ;;  %v2447_v56 = vld [vmem:[%s2718_s6 + $0x160] sm:$0xff] }
 0x106   : > { %v1564_v58 = vpop.f32.mrf.mxu2  ;;  %v1644_v59 = vpop.f32.mrf.mxu3  ;;  %v2463_v57 = vld [vmem:[%s2718_s6 + $0x1e0] sm:$0xff] }
 0x107   : > { %v1941_v60 = vpack.c.bf16 %v1909_v55, %v1909_v55  ;;  %v1565_v61 = vadd.f32 %v2787_v39, %v1564_v58  ;;  %v1645_v62 = vadd.f32 %v2787_v39, %v1644_v59  ;;  %v1406_v63 = vpop.f32.mrf.mxu0  ;;  %v1486_v0 = vpop.f32.mrf.mxu1 }
 0x108   : > { %v1407_v4 = vadd.f32 %v2787_v39, %v1406_v63  ;;  %v1487_v6 = vadd.f32 %v2787_v39, %v1486_v0 }
 0x109   : > { %1974 = vst.msk [vmem:[%s2808_s14 + $0xc] sm:$0xf] %vm1970_vm3, %v1941_v60  ;;  %v1782_v2 = vmax.f32 %v1565_v61, 0.0  ;;  %v1814_v3 = vmax.f32 %v1645_v62, 0.0 }
 0x10a   : > { %v1719_v8 = vmax.f32 %v1407_v4, 0.0  ;;  %v1751_v14 = vmax.f32 %v1487_v6, 0.0 }
 0x10b   : > { %v1878_v5 = vmax.f32 %v1782_v2, %v1814_v3 }
 0x10c   : > { %v1847_v25 = vmax.f32 %v1719_v8, %v1751_v14 }
 0x10d   : > { %v1910_v7 = vmax.f32 %v1846_v1, %v1878_v5 }
 0x10e   : > { %v1566_v9 = vpop.f32.mrf.mxu2  ;;  %v1646_v10 = vpop.f32.mrf.mxu3 }
 0x10f   : > { %v1942_v13 = vpack.c.bf16 %v1910_v7, %v1910_v7  ;;  %v1567_v15 = vadd.f32 %v2787_v39, %v1566_v9  ;;  %v1647_v16 = vadd.f32 %v2787_v39, %v1646_v10  ;;  %v1409_v17 = vpop.f32.mrf.mxu0  ;;  %v1489_v18 = vpop.f32.mrf.mxu1 }
 0x110   : > { %v1410_v23 = vadd.f32 %v2787_v39, %v1409_v17  ;;  %v1490_v24 = vadd.f32 %v2787_v39, %v1489_v18 }
 0x111   : > { %1975 = vst.msk [vmem:[%s2808_s14 + $0x10] sm:$0xf] %vm1970_vm3, %v1942_v13  ;;  %v1783_v21 = vmax.f32 %v1567_v15, 0.0  ;;  %v1815_v22 = vmax.f32 %v1647_v16, 0.0 }
 0x112   : > { %2347 = vmatmul.msk.bf16.gmra.mxu0 %vm1185_vm2, %v2414_v11  ;;  %2363 = vmatmul.msk.bf16.gmra.mxu1 %vm1185_vm2, %v2430_v12  ;;  %v1720_v28 = vmax.f32 %v1410_v23, 0.0  ;;  %v1752_v29 = vmax.f32 %v1490_v24, 0.0 }
 0x113   : > { %v1879_v26 = vmax.f32 %v1783_v21, %v1815_v22  ;;  %2379 = vmatmul.msk.bf16.gmra.mxu2 %vm1185_vm2, %v2446_v19  ;;  %2395 = vmatmul.msk.bf16.gmra.mxu3 %vm1185_vm2, %v2462_v20  ;;  %v2416_v20 = vld [vmem:[%s2718_s6 + $0x68] sm:$0xff] }
 0x114   : > { %v1848_v37 = vmax.f32 %v1720_v28, %v1752_v29  ;;  %v2432_v21 = vld [vmem:[%s2718_s6 + $0xe8] sm:$0xff] }
 0x115   : > { %v1911_v27 = vmax.f32 %v1847_v25, %v1879_v26  ;;  %v2448_v28 = vld [vmem:[%s2718_s6 + $0x168] sm:$0xff] }
 0x116   : > { %v1569_v30 = vpop.f32.mrf.mxu2  ;;  %v1649_v31 = vpop.f32.mrf.mxu3  ;;  %v2464_v29 = vld [vmem:[%s2718_s6 + $0x1e8] sm:$0xff] }
 0x117   : > { %v1943_v32 = vpack.c.bf16 %v1911_v27, %v1911_v27  ;;  %v1570_v33 = vadd.f32 %v2787_v39, %v1569_v30  ;;  %v1650_v34 = vadd.f32 %v2787_v39, %v1649_v31  ;;  %v1411_v35 = vpop.f32.mrf.mxu0  ;;  %v1491_v36 = vpop.f32.mrf.mxu1 }
 0x118   : > { %v1412_v41 = vadd.f32 %v2787_v39, %v1411_v35  ;;  %v1492_v43 = vadd.f32 %v2787_v39, %v1491_v36 }
 0x119   : > { %1976 = vst.msk [vmem:[%s2808_s14 + $0x14] sm:$0xf] %vm1970_vm3, %v1943_v32  ;;  %v1784_v38 = vmax.f32 %v1570_v33, 0.0  ;;  %v1816_v40 = vmax.f32 %v1650_v34, 0.0 }
 0x11a   : > { %v1721_v45 = vmax.f32 %v1412_v41, 0.0  ;;  %v1753_v51 = vmax.f32 %v1492_v43, 0.0 }
 0x11b   : > { %v1880_v42 = vmax.f32 %v1784_v38, %v1816_v40 }
 0x11c   : > { %v1849_v62 = vmax.f32 %v1721_v45, %v1753_v51 }
 0x11d   : > { %v1912_v44 = vmax.f32 %v1848_v37, %v1880_v42 }
 0x11e   : > { %v1571_v46 = vpop.f32.mrf.mxu2  ;;  %v1651_v47 = vpop.f32.mrf.mxu3 }
 0x11f   : > { %v1944_v50 = vpack.c.bf16 %v1912_v44, %v1912_v44  ;;  %v1572_v52 = vadd.f32 %v2787_v39, %v1571_v46  ;;  %v1652_v53 = vadd.f32 %v2787_v39, %v1651_v47  ;;  %v1414_v54 = vpop.f32.mrf.mxu0  ;;  %v1494_v55 = vpop.f32.mrf.mxu1 }
 0x120   : > { %v1415_v60 = vadd.f32 %v2787_v39, %v1414_v54  ;;  %v1495_v61 = vadd.f32 %v2787_v39, %v1494_v55 }
 0x121   : > { %1977 = vst.msk [vmem:[%s2808_s14 + $0x18] sm:$0xf] %vm1970_vm3, %v1944_v50  ;;  %v1785_v58 = vmax.f32 %v1572_v52, 0.0  ;;  %v1817_v59 = vmax.f32 %v1652_v53, 0.0 }
 0x122   : > { %2348 = vmatmul.msk.bf16.gmra.mxu0 %vm1185_vm2, %v2415_v48  ;;  %2364 = vmatmul.msk.bf16.gmra.mxu1 %vm1185_vm2, %v2431_v49  ;;  %v1722_v1 = vmax.f32 %v1415_v60, 0.0  ;;  %v1754_v2 = vmax.f32 %v1495_v61, 0.0 }
 0x123   : > { %v1881_v63 = vmax.f32 %v1785_v58, %v1817_v59  ;;  %2380 = vmatmul.msk.bf16.gmra.mxu2 %vm1185_vm2, %v2447_v56  ;;  %2396 = vmatmul.msk.bf16.gmra.mxu3 %vm1185_vm2, %v2463_v57  ;;  %v2417_v57 = vld [vmem:[%s2718_s6 + $0x70] sm:$0xff] }
 0x124   : > { %v1850_v10 = vmax.f32 %v1722_v1, %v1754_v2  ;;  %v2433_v58 = vld [vmem:[%s2718_s6 + $0xf0] sm:$0xff] }
 0x125   : > { %v1913_v0 = vmax.f32 %v1849_v62, %v1881_v63  ;;  %v2449_v1 = vld [vmem:[%s2718_s6 + $0x170] sm:$0xff] }
 0x126   : > { %v1574_v3 = vpop.f32.mrf.mxu2  ;;  %v1654_v4 = vpop.f32.mrf.mxu3  ;;  %v2465_v2 = vld [vmem:[%s2718_s6 + $0x1f0] sm:$0xff] }
 0x127   : > { %v1945_v5 = vpack.c.bf16 %v1913_v0, %v1913_v0  ;;  %v1575_v6 = vadd.f32 %v2787_v39, %v1574_v3  ;;  %v1655_v7 = vadd.f32 %v2787_v39, %v1654_v4  ;;  %v1416_v8 = vpop.f32.mrf.mxu0  ;;  %v1496_v9 = vpop.f32.mrf.mxu1 }
 0x128   : > { %v1417_v13 = vadd.f32 %v2787_v39, %v1416_v8  ;;  %v1497_v15 = vadd.f32 %v2787_v39, %v1496_v9 }
 0x129   : > { %1978 = vst.msk [vmem:[%s2808_s14 + $0x1c] sm:$0xf] %vm1970_vm3, %v1945_v5  ;;  %v1786_v11 = vmax.f32 %v1575_v6, 0.0  ;;  %v1818_v12 = vmax.f32 %v1655_v7, 0.0 }
 0x12a   : > { %v1723_v17 = vmax.f32 %v1417_v13, 0.0  ;;  %v1755_v23 = vmax.f32 %v1497_v15, 0.0 }
 0x12b   : > { %v1882_v14 = vmax.f32 %v1786_v11, %v1818_v12 }
 0x12c   : > { %v1851_v34 = vmax.f32 %v1723_v17, %v1755_v23 }
 0x12d   : > { %v1914_v16 = vmax.f32 %v1850_v10, %v1882_v14 }
 0x12e   : > { %v1576_v18 = vpop.f32.mrf.mxu2  ;;  %v1656_v19 = vpop.f32.mrf.mxu3 }
 0x12f   : > { %v1946_v22 = vpack.c.bf16 %v1914_v16, %v1914_v16  ;;  %v1577_v24 = vadd.f32 %v2787_v39, %v1576_v18  ;;  %v1657_v25 = vadd.f32 %v2787_v39, %v1656_v19  ;;  %v1419_v26 = vpop.f32.mrf.mxu0  ;;  %v1499_v27 = vpop.f32.mrf.mxu1 }
 0x130   : > { %v1420_v32 = vadd.f32 %v2787_v39, %v1419_v26  ;;  %v1500_v33 = vadd.f32 %v2787_v39, %v1499_v27 }
 0x131   : > { %1979 = vst.msk [vmem:[%s2808_s14 + $0x20] sm:$0xf] %vm1970_vm3, %v1946_v22  ;;  %v1787_v30 = vmax.f32 %v1577_v24, 0.0  ;;  %v1819_v31 = vmax.f32 %v1657_v25, 0.0 }
 0x132   : > { %2349 = vmatmul.msk.bf16.gmra.mxu0 %vm1185_vm2, %v2416_v20  ;;  %2365 = vmatmul.msk.bf16.gmra.mxu1 %vm1185_vm2, %v2432_v21  ;;  %v1724_v37 = vmax.f32 %v1420_v32, 0.0  ;;  %v1756_v38 = vmax.f32 %v1500_v33, 0.0 }
 0x133   : > { %v1883_v35 = vmax.f32 %v1787_v30, %v1819_v31  ;;  %2381 = vmatmul.msk.bf16.gmra.mxu2 %vm1185_vm2, %v2448_v28  ;;  %2397 = vmatmul.msk.bf16.gmra.mxu3 %vm1185_vm2, %v2464_v29  ;;  %v2418_v29 = vld [vmem:[%s2718_s6 + $0x78] sm:$0xff] }
 0x134   : > { %v1852_v47 = vmax.f32 %v1724_v37, %v1756_v38  ;;  %v2434_v30 = vld [vmem:[%s2718_s6 + $0xf8] sm:$0xff] }
 0x135   : > { %v1915_v36 = vmax.f32 %v1851_v34, %v1883_v35  ;;  %v2450_v37 = vld [vmem:[%s2718_s6 + $0x178] sm:$0xff] }
 0x136   : > { %v1579_v40 = vpop.f32.mrf.mxu2  ;;  %v1659_v41 = vpop.f32.mrf.mxu3  ;;  %v2466_v38 = vld [vmem:[%s2718_s6 + $0x1f8] sm:$0xff] }
 0x137   : > { %v1947_v42 = vpack.c.bf16 %v1915_v36, %v1915_v36  ;;  %v1580_v43 = vadd.f32 %v2787_v39, %v1579_v40  ;;  %v1660_v44 = vadd.f32 %v2787_v39, %v1659_v41  ;;  %v1421_v45 = vpop.f32.mrf.mxu0  ;;  %v1501_v46 = vpop.f32.mrf.mxu1 }
 0x138   : > { %v1422_v50 = vadd.f32 %v2787_v39, %v1421_v45  ;;  %v1502_v52 = vadd.f32 %v2787_v39, %v1501_v46 }
 0x139   : > { %1980 = vst.msk [vmem:[%s2808_s14 + $0x24] sm:$0xf] %vm1970_vm3, %v1947_v42  ;;  %v1788_v48 = vmax.f32 %v1580_v43, 0.0  ;;  %v1820_v49 = vmax.f32 %v1660_v44, 0.0 }
 0x13a   : > { %v1725_v54 = vmax.f32 %v1422_v50, 0.0  ;;  %v1757_v60 = vmax.f32 %v1502_v52, 0.0 }
 0x13b   : > { %v1884_v51 = vmax.f32 %v1788_v48, %v1820_v49 }
 0x13c   : > { %v1853_v7 = vmax.f32 %v1725_v54, %v1757_v60 }
 0x13d   : > { %v1916_v53 = vmax.f32 %v1852_v47, %v1884_v51 }
 0x13e   : > { %v1581_v55 = vpop.f32.mrf.mxu2  ;;  %v1661_v56 = vpop.f32.mrf.mxu3 }
 0x13f   : > { %v1948_v59 = vpack.c.bf16 %v1916_v53, %v1916_v53  ;;  %v1582_v61 = vadd.f32 %v2787_v39, %v1581_v55  ;;  %v1662_v62 = vadd.f32 %v2787_v39, %v1661_v56  ;;  %v1424_v63 = vpop.f32.mrf.mxu0  ;;  %v1504_v0 = vpop.f32.mrf.mxu1 }
 0x140   : > { %v1425_v5 = vadd.f32 %v2787_v39, %v1424_v63  ;;  %v1505_v6 = vadd.f32 %v2787_v39, %v1504_v0 }
 0x141   : > { %1981 = vst.msk [vmem:[%s2808_s14 + $0x28] sm:$0xf] %vm1970_vm3, %v1948_v59  ;;  %v1789_v3 = vmax.f32 %v1582_v61, 0.0  ;;  %v1821_v4 = vmax.f32 %v1662_v62, 0.0 }
 0x142   : > { %2350 = vmatmul.msk.bf16.gmra.mxu0 %vm1185_vm2, %v2417_v57  ;;  %2366 = vmatmul.msk.bf16.gmra.mxu1 %vm1185_vm2, %v2433_v58  ;;  %v1726_v10 = vmax.f32 %v1425_v5, 0.0  ;;  %v1758_v11 = vmax.f32 %v1505_v6, 0.0 }
 0x143   : > { %v1885_v8 = vmax.f32 %v1789_v3, %v1821_v4  ;;  %2382 = vmatmul.msk.bf16.gmra.mxu2 %vm1185_vm2, %v2449_v1  ;;  %2398 = vmatmul.msk.bf16.gmra.mxu3 %vm1185_vm2, %v2465_v2 }
 0x144   : > { %v1854_v19 = vmax.f32 %v1726_v10, %v1758_v11 }
 0x145   : > { %v1917_v9 = vmax.f32 %v1853_v7, %v1885_v8 }
 0x146   : > { %v1584_v12 = vpop.f32.mrf.mxu2  ;;  %v1664_v13 = vpop.f32.mrf.mxu3 }
 0x147   : > { %v1949_v14 = vpack.c.bf16 %v1917_v9, %v1917_v9  ;;  %v1585_v15 = vadd.f32 %v2787_v39, %v1584_v12  ;;  %v1665_v16 = vadd.f32 %v2787_v39, %v1664_v13  ;;  %v1426_v17 = vpop.f32.mrf.mxu0  ;;  %v1506_v18 = vpop.f32.mrf.mxu1 }
 0x148   : > { %v1427_v22 = vadd.f32 %v2787_v39, %v1426_v17  ;;  %v1507_v24 = vadd.f32 %v2787_v39, %v1506_v18 }
 0x149   : > { %1982 = vst.msk [vmem:[%s2808_s14 + $0x2c] sm:$0xf] %vm1970_vm3, %v1949_v14  ;;  %v1790_v20 = vmax.f32 %v1585_v15, 0.0  ;;  %v1822_v21 = vmax.f32 %v1665_v16, 0.0 }
 0x14a   : > { %v1727_v26 = vmax.f32 %v1427_v22, 0.0  ;;  %v1759_v32 = vmax.f32 %v1507_v24, 0.0 }
 0x14b   : > { %v1886_v23 = vmax.f32 %v1790_v20, %v1822_v21 }
 0x14c   : > { %v1855_v44 = vmax.f32 %v1727_v26, %v1759_v32 }
 0x14d   : > { %v1918_v25 = vmax.f32 %v1854_v19, %v1886_v23 }
 0x14e   : > { %v1586_v27 = vpop.f32.mrf.mxu2  ;;  %v1666_v28 = vpop.f32.mrf.mxu3 }
 0x14f   : > { %v1950_v31 = vpack.c.bf16 %v1918_v25, %v1918_v25  ;;  %v1587_v33 = vadd.f32 %v2787_v39, %v1586_v27  ;;  %v1667_v34 = vadd.f32 %v2787_v39, %v1666_v28  ;;  %v1429_v35 = vpop.f32.mrf.mxu0  ;;  %v1509_v36 = vpop.f32.mrf.mxu1 }
 0x150   : > { %v1430_v42 = vadd.f32 %v2787_v39, %v1429_v35  ;;  %v1510_v43 = vadd.f32 %v2787_v39, %v1509_v36 }
 0x151   : > { %1983 = vst.msk [vmem:[%s2808_s14 + $0x30] sm:$0xf] %vm1970_vm3, %v1950_v31  ;;  %v1791_v40 = vmax.f32 %v1587_v33, 0.0  ;;  %v1823_v41 = vmax.f32 %v1667_v34, 0.0 }
 0x152   : > { %2351 = vmatmul.msk.bf16.gmra.mxu0 %vm1185_vm2, %v2418_v29  ;;  %2367 = vmatmul.msk.bf16.gmra.mxu1 %vm1185_vm2, %v2434_v30  ;;  %v1728_v47 = vmax.f32 %v1430_v42, 0.0  ;;  %v1760_v48 = vmax.f32 %v1510_v43, 0.0 }
 0x153   : > { %v1887_v45 = vmax.f32 %v1791_v40, %v1823_v41  ;;  %2383 = vmatmul.msk.bf16.gmra.mxu2 %vm1185_vm2, %v2450_v37  ;;  %2399 = vmatmul.msk.bf16.gmra.mxu3 %vm1185_vm2, %v2466_v38 }
 0x154   : > { %v1856_v56 = vmax.f32 %v1728_v47, %v1760_v48 }
 0x155   : > { %v1919_v46 = vmax.f32 %v1855_v44, %v1887_v45 }
 0x156   : > { %v1589_v49 = vpop.f32.mrf.mxu2  ;;  %v1669_v50 = vpop.f32.mrf.mxu3 }
 0x157   : > { %v1951_v51 = vpack.c.bf16 %v1919_v46, %v1919_v46  ;;  %v1590_v52 = vadd.f32 %v2787_v39, %v1589_v49  ;;  %v1670_v53 = vadd.f32 %v2787_v39, %v1669_v50  ;;  %v1431_v54 = vpop.f32.mrf.mxu0  ;;  %v1511_v55 = vpop.f32.mrf.mxu1 }
 0x158   : > { %v1432_v59 = vadd.f32 %v2787_v39, %v1431_v54  ;;  %v1512_v61 = vadd.f32 %v2787_v39, %v1511_v55 }
 0x159   : > { %1984 = vst.msk [vmem:[%s2808_s14 + $0x34] sm:$0xf] %vm1970_vm3, %v1951_v51  ;;  %v1792_v57 = vmax.f32 %v1590_v52, 0.0  ;;  %v1824_v58 = vmax.f32 %v1670_v53, 0.0 }
 0x15a   : > { %v1729_v63 = vmax.f32 %v1432_v59, 0.0  ;;  %v1761_v3 = vmax.f32 %v1512_v61, 0.0 }
 0x15b   : > { %v1888_v60 = vmax.f32 %v1792_v57, %v1824_v58 }
 0x15c   : > { %v1857_v12 = vmax.f32 %v1729_v63, %v1761_v3 }
 0x15d   : > { %v1920_v62 = vmax.f32 %v1856_v56, %v1888_v60 }
 0x15e   : > { %v1591_v0 = vpop.f32.mrf.mxu2  ;;  %v1671_v1 = vpop.f32.mrf.mxu3 }
 0x15f   : > { %v1952_v2 = vpack.c.bf16 %v1920_v62, %v1920_v62  ;;  %v1592_v4 = vadd.f32 %v2787_v39, %v1591_v0  ;;  %v1672_v5 = vadd.f32 %v2787_v39, %v1671_v1  ;;  %v1434_v6 = vpop.f32.mrf.mxu0  ;;  %v1514_v7 = vpop.f32.mrf.mxu1 }
 0x160   : > { %v1435_v10 = vadd.f32 %v2787_v39, %v1434_v6  ;;  %v1515_v11 = vadd.f32 %v2787_v39, %v1514_v7 }
 0x161   : > { %1985 = vst.msk [vmem:[%s2808_s14 + $0x38] sm:$0xf] %vm1970_vm3, %v1952_v2  ;;  %v1793_v8 = vmax.f32 %v1592_v4, 0.0  ;;  %v1825_v9 = vmax.f32 %v1672_v5, 0.0 }
 0x162   : > { %v1730_v15 = vmax.f32 %v1435_v10, 0.0  ;;  %v1762_v16 = vmax.f32 %v1515_v11, 0.0 }
 0x163   : > { %v1889_v13 = vmax.f32 %v1793_v8, %v1825_v9 }
 0x164   : > { %v1858_v24 = vmax.f32 %v1730_v15, %v1762_v16 }
 0x165   : > { %v1921_v14 = vmax.f32 %v1857_v12, %v1889_v13 }
 0x166   : > { %v1594_v17 = vpop.f32.mrf.mxu2  ;;  %v1674_v18 = vpop.f32.mrf.mxu3 }
 0x167   : > { %v1953_v19 = vpack.c.bf16 %v1921_v14, %v1921_v14  ;;  %v1595_v20 = vadd.f32 %v2787_v39, %v1594_v17  ;;  %v1675_v21 = vadd.f32 %v2787_v39, %v1674_v18  ;;  %v1436_v22 = vpop.f32.mrf.mxu0  ;;  %v1516_v23 = vpop.f32.mrf.mxu1 }
 0x168   : > { %v1437_v27 = vadd.f32 %v2787_v39, %v1436_v22  ;;  %v1517_v29 = vadd.f32 %v2787_v39, %v1516_v23 }
 0x169   : > { %1986 = vst.msk [vmem:[%s2808_s14 + $0x3c] sm:$0xf] %vm1970_vm3, %v1953_v19  ;;  %v1794_v25 = vmax.f32 %v1595_v20, 0.0  ;;  %v1826_v26 = vmax.f32 %v1675_v21, 0.0 }
 0x16a   : > { %v1731_v31 = vmax.f32 %v1437_v27, 0.0  ;;  %v1763_v35 = vmax.f32 %v1517_v29, 0.0 }
 0x16b   : > { %v1890_v28 = vmax.f32 %v1794_v25, %v1826_v26 }
 0x16c   : > { %v1859_v45 = vmax.f32 %v1731_v31, %v1763_v35 }
 0x16d   : > { %v1922_v30 = vmax.f32 %v1858_v24, %v1890_v28 }
 0x16e   : > { %v1596_v32 = vpop.f32.mrf.mxu2  ;;  %v1676_v33 = vpop.f32.mrf.mxu3 }
 0x16f   : > { %v1954_v34 = vpack.c.bf16 %v1922_v30, %v1922_v30  ;;  %v1597_v36 = vadd.f32 %v2787_v39, %v1596_v32  ;;  %v1677_v37 = vadd.f32 %v2787_v39, %v1676_v33  ;;  %v1439_v38 = vpop.f32.mrf.mxu0  ;;  %v1519_v40 = vpop.f32.mrf.mxu1 }
 0x170   : > { %v1440_v43 = vadd.f32 %v2787_v39, %v1439_v38  ;;  %v1520_v44 = vadd.f32 %v2787_v39, %v1519_v40 }
 0x171   : > { %1987 = vst.msk [vmem:[%s2808_s14 + $0x40] sm:$0xf] %vm1970_vm3, %v1954_v34  ;;  %v1795_v41 = vmax.f32 %v1597_v36, 0.0  ;;  %v1827_v42 = vmax.f32 %v1677_v37, 0.0 }
 0x172   : > { %v1732_v48 = vmax.f32 %v1440_v43, 0.0  ;;  %v1764_v49 = vmax.f32 %v1520_v44, 0.0 }
 0x173   : > { %v1891_v46 = vmax.f32 %v1795_v41, %v1827_v42 }
 0x174   : > { %v1860_v57 = vmax.f32 %v1732_v48, %v1764_v49 }
 0x175   : > { %v1923_v47 = vmax.f32 %v1859_v45, %v1891_v46 }
 0x176   : > { %v1599_v50 = vpop.f32.mrf.mxu2  ;;  %v1679_v51 = vpop.f32.mrf.mxu3 }
 0x177   : > { %v1955_v52 = vpack.c.bf16 %v1923_v47, %v1923_v47  ;;  %v1600_v53 = vadd.f32 %v2787_v39, %v1599_v50  ;;  %v1680_v54 = vadd.f32 %v2787_v39, %v1679_v51  ;;  %v1441_v55 = vpop.f32.mrf.mxu0  ;;  %v1521_v56 = vpop.f32.mrf.mxu1 }
 0x178   : > { %v1442_v60 = vadd.f32 %v2787_v39, %v1441_v55  ;;  %v1522_v62 = vadd.f32 %v2787_v39, %v1521_v56 }
 0x179   : > { %1988 = vst.msk [vmem:[%s2808_s14 + $0x44] sm:$0xf] %vm1970_vm3, %v1955_v52  ;;  %v1796_v58 = vmax.f32 %v1600_v53, 0.0  ;;  %v1828_v59 = vmax.f32 %v1680_v54, 0.0 }
 0x17a   : > { %v1733_v0 = vmax.f32 %v1442_v60, 0.0  ;;  %v1765_v4 = vmax.f32 %v1522_v62, 0.0 }
 0x17b   : > { %v1892_v61 = vmax.f32 %v1796_v58, %v1828_v59 }
 0x17c   : > { %v1861_v13 = vmax.f32 %v1733_v0, %v1765_v4 }
 0x17d   : > { %v1924_v63 = vmax.f32 %v1860_v57, %v1892_v61 }
 0x17e   : > { %v1601_v1 = vpop.f32.mrf.mxu2  ;;  %v1681_v2 = vpop.f32.mrf.mxu3 }
 0x17f   : > { %v1956_v3 = vpack.c.bf16 %v1924_v63, %v1924_v63  ;;  %v1602_v5 = vadd.f32 %v2787_v39, %v1601_v1  ;;  %v1682_v6 = vadd.f32 %v2787_v39, %v1681_v2  ;;  %v1444_v7 = vpop.f32.mrf.mxu0  ;;  %v1524_v8 = vpop.f32.mrf.mxu1 }
 0x180   : > { %v1445_v11 = vadd.f32 %v2787_v39, %v1444_v7  ;;  %v1525_v12 = vadd.f32 %v2787_v39, %v1524_v8 }
 0x181   : > { %1989 = vst.msk [vmem:[%s2808_s14 + $0x48] sm:$0xf] %vm1970_vm3, %v1956_v3  ;;  %v1797_v9 = vmax.f32 %v1602_v5, 0.0  ;;  %v1829_v10 = vmax.f32 %v1682_v6, 0.0 }
 0x182   : > { %v1734_v16 = vmax.f32 %v1445_v11, 0.0  ;;  %v1766_v17 = vmax.f32 %v1525_v12, 0.0 }
 0x183   : > { %v1893_v14 = vmax.f32 %v1797_v9, %v1829_v10 }
 0x184   : > { %v1862_v25 = vmax.f32 %v1734_v16, %v1766_v17 }
 0x185   : > { %v1925_v15 = vmax.f32 %v1861_v13, %v1893_v14 }
 0x186   : > { %v1604_v18 = vpop.f32.mrf.mxu2  ;;  %v1684_v19 = vpop.f32.mrf.mxu3 }
 0x187   : > { %v1957_v20 = vpack.c.bf16 %v1925_v15, %v1925_v15  ;;  %v1605_v21 = vadd.f32 %v2787_v39, %v1604_v18  ;;  %v1685_v22 = vadd.f32 %v2787_v39, %v1684_v19  ;;  %v1446_v23 = vpop.f32.mrf.mxu0  ;;  %v1526_v24 = vpop.f32.mrf.mxu1 }
 0x188   : > { %v1447_v28 = vadd.f32 %v2787_v39, %v1446_v23  ;;  %v1527_v30 = vadd.f32 %v2787_v39, %v1526_v24 }
 0x189   : > { %1990 = vst.msk [vmem:[%s2808_s14 + $0x4c] sm:$0xf] %vm1970_vm3, %v1957_v20  ;;  %v1798_v26 = vmax.f32 %v1605_v21, 0.0  ;;  %v1830_v27 = vmax.f32 %v1685_v22, 0.0 }
 0x18a   : > { %v1735_v32 = vmax.f32 %v1447_v28, 0.0  ;;  %v1767_v36 = vmax.f32 %v1527_v30, 0.0 }
 0x18b   : > { %v1894_v29 = vmax.f32 %v1798_v26, %v1830_v27 }
 0x18c   : > { %v1863_v46 = vmax.f32 %v1735_v32, %v1767_v36 }
 0x18d   : > { %v1926_v31 = vmax.f32 %v1862_v25, %v1894_v29 }
 0x18e   : > { %v1606_v33 = vpop.f32.mrf.mxu2  ;;  %v1686_v34 = vpop.f32.mrf.mxu3 }
 0x18f   : > { %v1958_v35 = vpack.c.bf16 %v1926_v31, %v1926_v31  ;;  %v1607_v37 = vadd.f32 %v2787_v39, %v1606_v33  ;;  %v1687_v38 = vadd.f32 %v2787_v39, %v1686_v34  ;;  %v1449_v40 = vpop.f32.mrf.mxu0  ;;  %v1529_v41 = vpop.f32.mrf.mxu1 }
 0x190   : > { %v1450_v44 = vadd.f32 %v2787_v39, %v1449_v40  ;;  %v1530_v45 = vadd.f32 %v2787_v39, %v1529_v41 }
 0x191   : > { %1991 = vst.msk [vmem:[%s2808_s14 + $0x50] sm:$0xf] %vm1970_vm3, %v1958_v35  ;;  %v1799_v42 = vmax.f32 %v1607_v37, 0.0  ;;  %v1831_v43 = vmax.f32 %v1687_v38, 0.0 }
 0x192   : > { %v1736_v49 = vmax.f32 %v1450_v44, 0.0  ;;  %v1768_v50 = vmax.f32 %v1530_v45, 0.0 }
 0x193   : > { %v1895_v47 = vmax.f32 %v1799_v42, %v1831_v43 }
 0x194   : > { %v1864_v58 = vmax.f32 %v1736_v49, %v1768_v50 }
 0x195   : > { %v1927_v48 = vmax.f32 %v1863_v46, %v1895_v47 }
 0x196   : > { %v1609_v51 = vpop.f32.mrf.mxu2  ;;  %v1689_v52 = vpop.f32.mrf.mxu3 }
 0x197   : > { %v1959_v53 = vpack.c.bf16 %v1927_v48, %v1927_v48  ;;  %v1610_v54 = vadd.f32 %v2787_v39, %v1609_v51  ;;  %v1690_v55 = vadd.f32 %v2787_v39, %v1689_v52  ;;  %v1451_v56 = vpop.f32.mrf.mxu0  ;;  %v1531_v57 = vpop.f32.mrf.mxu1 }
 0x198   : > { %v1452_v61 = vadd.f32 %v2787_v39, %v1451_v56  ;;  %v1532_v63 = vadd.f32 %v2787_v39, %v1531_v57 }
 0x199   : > { %1992 = vst.msk [vmem:[%s2808_s14 + $0x54] sm:$0xf] %vm1970_vm3, %v1959_v53  ;;  %v1800_v59 = vmax.f32 %v1610_v54, 0.0  ;;  %v1832_v60 = vmax.f32 %v1690_v55, 0.0  ;;  %v3019_v55 = vld [vmem:[%s3069_s2] ss:$0 sm:$0xff] }
 0x19a   : > { %v1737_v1 = vmax.f32 %v1452_v61, 0.0  ;;  %v1769_v5 = vmax.f32 %v1532_v63, 0.0 }
 0x19b   : > { %v1896_v62 = vmax.f32 %v1800_v59, %v1832_v60 }
 0x19c   : > { %v1865_v14 = vmax.f32 %v1737_v1, %v1769_v5 }
 0x19d   : > { %v1928_v0 = vmax.f32 %v1864_v58, %v1896_v62 }
 0x19e   : > { %v1611_v2 = vpop.f32.mrf.mxu2  ;;  %v1691_v3 = vpop.f32.mrf.mxu3 }
 0x19f   : > { %v1960_v4 = vpack.c.bf16 %v1928_v0, %v1928_v0  ;;  %v1612_v6 = vadd.f32 %v2787_v39, %v1611_v2  ;;  %v1692_v7 = vadd.f32 %v2787_v39, %v1691_v3  ;;  %v1454_v8 = vpop.f32.mrf.mxu0  ;;  %v1534_v9 = vpop.f32.mrf.mxu1 }
 0x1a0   : > { %v1455_v12 = vadd.f32 %v2787_v39, %v1454_v8  ;;  %v1535_v13 = vadd.f32 %v2787_v39, %v1534_v9 }
 0x1a1   : > { %1993 = vst.msk [vmem:[%s2808_s14 + $0x58] sm:$0xf] %vm1970_vm3, %v1960_v4  ;;  %v1801_v10 = vmax.f32 %v1612_v6, 0.0  ;;  %v1833_v11 = vmax.f32 %v1692_v7, 0.0 }
 0x1a2   : > { %v1738_v17 = vmax.f32 %v1455_v12, 0.0  ;;  %v1770_v18 = vmax.f32 %v1535_v13, 0.0 }
 0x1a3   : > { %v1897_v15 = vmax.f32 %v1801_v10, %v1833_v11 }
 0x1a4   : > { %v1866_v26 = vmax.f32 %v1738_v17, %v1770_v18 }
 0x1a5   : > { %v1929_v16 = vmax.f32 %v1865_v14, %v1897_v15 }
 0x1a6   : > { %v1614_v19 = vpop.f32.mrf.mxu2  ;;  %v1694_v20 = vpop.f32.mrf.mxu3 }
 0x1a7   : > { %v1961_v21 = vpack.c.bf16 %v1929_v16, %v1929_v16  ;;  %v1615_v22 = vadd.f32 %v2787_v39, %v1614_v19  ;;  %v1695_v23 = vadd.f32 %v2787_v39, %v1694_v20  ;;  %v1456_v24 = vpop.f32.mrf.mxu0  ;;  %v1536_v25 = vpop.f32.mrf.mxu1 }
 0x1a8   : > { %v1457_v29 = vadd.f32 %v2787_v39, %v1456_v24  ;;  %v1537_v31 = vadd.f32 %v2787_v39, %v1536_v25 }
 0x1a9   : > { %1994 = vst.msk [vmem:[%s2808_s14 + $0x5c] sm:$0xf] %vm1970_vm3, %v1961_v21  ;;  %v1802_v27 = vmax.f32 %v1615_v22, 0.0  ;;  %v1834_v28 = vmax.f32 %v1695_v23, 0.0 }
 0x1aa   : > { %v1739_v33 = vmax.f32 %v1457_v29, 0.0  ;;  %v1771_v37 = vmax.f32 %v1537_v31, 0.0 }
 0x1ab   : > { %v1898_v30 = vmax.f32 %v1802_v27, %v1834_v28 }
 0x1ac   : > { %v1867_v47 = vmax.f32 %v1739_v33, %v1771_v37 }
 0x1ad   : > { %v1930_v32 = vmax.f32 %v1866_v26, %v1898_v30 }
 0x1ae   : > { %v1616_v34 = vpop.f32.mrf.mxu2  ;;  %v1696_v35 = vpop.f32.mrf.mxu3 }
 0x1af   : > { %v1962_v36 = vpack.c.bf16 %v1930_v32, %v1930_v32  ;;  %v1617_v38 = vadd.f32 %v2787_v39, %v1616_v34  ;;  %v1697_v40 = vadd.f32 %v2787_v39, %v1696_v35  ;;  %v1459_v41 = vpop.f32.mrf.mxu0  ;;  %v1539_v42 = vpop.f32.mrf.mxu1 }
 0x1b0   : > { %v1460_v45 = vadd.f32 %v2787_v39, %v1459_v41  ;;  %v1540_v46 = vadd.f32 %v2787_v39, %v1539_v42 }
 0x1b1   : > { %1995 = vst.msk [vmem:[%s2808_s14 + $0x60] sm:$0xf] %vm1970_vm3, %v1962_v36  ;;  %v1803_v43 = vmax.f32 %v1617_v38, 0.0  ;;  %v1835_v44 = vmax.f32 %v1697_v40, 0.0 }
 0x1b2   : > { %v1740_v50 = vmax.f32 %v1460_v45, 0.0  ;;  %v1772_v51 = vmax.f32 %v1540_v46, 0.0 }
 0x1b3   : > { %v1899_v48 = vmax.f32 %v1803_v43, %v1835_v44 }
 0x1b4   : > { %v1868_v39 = vmax.f32 %v1740_v50, %v1772_v51 }
 0x1b5   : > { %v1931_v49 = vmax.f32 %v1867_v47, %v1899_v48 }
 0x1b6   : > { %v1619_v52 = vpop.f32.mrf.mxu2  ;;  %v1699_v53 = vpop.f32.mrf.mxu3 }
 0x1b7   : > { %v1963_v54 = vpack.c.bf16 %v1931_v49, %v1931_v49  ;;  %v1620_v56 = vadd.f32 %v3019_v55, %v1619_v52  ;;  %v1700_v57 = vadd.f32 %v3019_v55, %v1699_v53  ;;  %v1461_v58 = vpop.f32.mrf.mxu0  ;;  %v1541_v59 = vpop.f32.mrf.mxu1 }
 0x1b8   : > { %v1462_v62 = vadd.f32 %v3019_v55, %v1461_v58  ;;  %v1542_v0 = vadd.f32 %v3019_v55, %v1541_v59 }
 0x1b9   : > { %1996 = vst.msk [vmem:[%s2808_s14 + $0x64] sm:$0xf] %vm1970_vm3, %v1963_v54  ;;  %v1804_v60 = vmax.f32 %v1620_v56, 0.0  ;;  %v1836_v61 = vmax.f32 %v1700_v57, 0.0 }
 0x1ba   : > { %v1741_v2 = vmax.f32 %v1462_v62, 0.0  ;;  %v1773_v6 = vmax.f32 %v1542_v0, 0.0 }
 0x1bb   : > { %v1900_v63 = vmax.f32 %v1804_v60, %v1836_v61 }
 0x1bc   : > { %v1869_v15 = vmax.f32 %v1741_v2, %v1773_v6 }
 0x1bd   : > { %v1932_v1 = vmax.f32 %v1868_v39, %v1900_v63 }
 0x1be   : > { %v1621_v3 = vpop.f32.mrf.mxu2  ;;  %v1701_v4 = vpop.f32.mrf.mxu3 }
 0x1bf   : > { %v1964_v5 = vpack.c.bf16 %v1932_v1, %v1932_v1  ;;  %v1622_v7 = vadd.f32 %v3019_v55, %v1621_v3  ;;  %v1702_v8 = vadd.f32 %v3019_v55, %v1701_v4  ;;  %v1464_v9 = vpop.f32.mrf.mxu0  ;;  %v1544_v10 = vpop.f32.mrf.mxu1 }
 0x1c0   : > { %v1465_v13 = vadd.f32 %v3019_v55, %v1464_v9  ;;  %v1545_v14 = vadd.f32 %v3019_v55, %v1544_v10 }
 0x1c1   : > { %1997 = vst.msk [vmem:[%s2808_s14 + $0x68] sm:$0xf] %vm1970_vm3, %v1964_v5  ;;  %v1805_v11 = vmax.f32 %v1622_v7, 0.0  ;;  %v1837_v12 = vmax.f32 %v1702_v8, 0.0 }
 0x1c2   : > { %v1742_v18 = vmax.f32 %v1465_v13, 0.0  ;;  %v1774_v19 = vmax.f32 %v1545_v14, 0.0 }
 0x1c3   : > { %v1901_v16 = vmax.f32 %v1805_v11, %v1837_v12 }
 0x1c4   : > { %v1870_v27 = vmax.f32 %v1742_v18, %v1774_v19 }
 0x1c5   : > { %v1933_v17 = vmax.f32 %v1869_v15, %v1901_v16 }
 0x1c6   : > { %v1624_v20 = vpop.f32.mrf.mxu2  ;;  %v1704_v21 = vpop.f32.mrf.mxu3 }
 0x1c7   : > { %v1965_v22 = vpack.c.bf16 %v1933_v17, %v1933_v17  ;;  %v1625_v23 = vadd.f32 %v3019_v55, %v1624_v20  ;;  %v1705_v24 = vadd.f32 %v3019_v55, %v1704_v21  ;;  %v1466_v25 = vpop.f32.mrf.mxu0  ;;  %v1546_v26 = vpop.f32.mrf.mxu1 }
 0x1c8   : > { %v1467_v30 = vadd.f32 %v3019_v55, %v1466_v25  ;;  %v1547_v32 = vadd.f32 %v3019_v55, %v1546_v26 }
 0x1c9   : > { %1998 = vst.msk [vmem:[%s2808_s14 + $0x6c] sm:$0xf] %vm1970_vm3, %v1965_v22  ;;  %v1806_v28 = vmax.f32 %v1625_v23, 0.0  ;;  %v1838_v29 = vmax.f32 %v1705_v24, 0.0 }
 0x1ca   : > { %v1743_v34 = vmax.f32 %v1467_v30, 0.0  ;;  %v1775_v38 = vmax.f32 %v1547_v32, 0.0 }
 0x1cb   : > { %v1902_v31 = vmax.f32 %v1806_v28, %v1838_v29 }
 0x1cc   : > { %v1871_v48 = vmax.f32 %v1743_v34, %v1775_v38 }
 0x1cd   : > { %v1934_v33 = vmax.f32 %v1870_v27, %v1902_v31 }
 0x1ce   : > { %v1626_v35 = vpop.f32.mrf.mxu2  ;;  %v1706_v36 = vpop.f32.mrf.mxu3 }
 0x1cf   : > { %v1966_v37 = vpack.c.bf16 %v1934_v33, %v1934_v33  ;;  %v1627_v40 = vadd.f32 %v3019_v55, %v1626_v35  ;;  %v1707_v41 = vadd.f32 %v3019_v55, %v1706_v36  ;;  %v1469_v42 = vpop.f32.mrf.mxu0  ;;  %v1549_v43 = vpop.f32.mrf.mxu1 }
 0x1d0   : > { %v1470_v46 = vadd.f32 %v3019_v55, %v1469_v42  ;;  %v1550_v47 = vadd.f32 %v3019_v55, %v1549_v43 }
 0x1d1   : > { %1999 = vst.msk [vmem:[%s2808_s14 + $0x70] sm:$0xf] %vm1970_vm3, %v1966_v37  ;;  %v1807_v44 = vmax.f32 %v1627_v40, 0.0  ;;  %v1839_v45 = vmax.f32 %v1707_v41, 0.0 }
 0x1d2   : > { %v1744_v51 = vmax.f32 %v1470_v46, 0.0  ;;  %v1776_v52 = vmax.f32 %v1550_v47, 0.0 }
 0x1d3   : > { %v1903_v49 = vmax.f32 %v1807_v44, %v1839_v45 }
 0x1d4   : > { %v1872_v60 = vmax.f32 %v1744_v51, %v1776_v52 }
 0x1d5   : > { %v1935_v50 = vmax.f32 %v1871_v48, %v1903_v49 }
 0x1d6   : > { %v1629_v53 = vpop.f32.mrf.mxu2  ;;  %v1709_v54 = vpop.f32.mrf.mxu3 }
 0x1d7   : > { %v1967_v56 = vpack.c.bf16 %v1935_v50, %v1935_v50  ;;  %v1630_v57 = vadd.f32 %v3019_v55, %v1629_v53  ;;  %v1710_v58 = vadd.f32 %v3019_v55, %v1709_v54  ;;  %v1471_v59 = vpop.f32.mrf.mxu0  ;;  %v1551_v39 = vpop.f32.mrf.mxu1 }
 0x1d8   : > { %v1472_v63 = vadd.f32 %v3019_v55, %v1471_v59  ;;  %v1552_v1 = vadd.f32 %v3019_v55, %v1551_v39 }
 0x1d9   : > { %2000 = vst.msk [vmem:[%s2808_s14 + $0x74] sm:$0xf] %vm1970_vm3, %v1967_v56  ;;  %v1808_v61 = vmax.f32 %v1630_v57, 0.0  ;;  %v1840_v62 = vmax.f32 %v1710_v58, 0.0 }
 0x1da   : > { %v1745_v3 = vmax.f32 %v1472_v63, 0.0  ;;  %v1777_v7 = vmax.f32 %v1552_v1, 0.0 }
 0x1db   : > { %v1904_v0 = vmax.f32 %v1808_v61, %v1840_v62 }
 0x1dc   : > { %v1873_v12 = vmax.f32 %v1745_v3, %v1777_v7 }
 0x1dd   : > { %v1936_v2 = vmax.f32 %v1872_v60, %v1904_v0 }
 0x1de   : > { %v1631_v4 = vpop.f32.mrf.mxu2  ;;  %v1711_v5 = vpop.f32.mrf.mxu3 }
 0x1df   : > { %v1968_v6 = vpack.c.bf16 %v1936_v2, %v1936_v2  ;;  %v1632_v8 = vadd.f32 %v3019_v55, %v1631_v4  ;;  %v1712_v9 = vadd.f32 %v3019_v55, %v1711_v5 }
 0x1e1   : > { %2001 = vst.msk [vmem:[%s2808_s14 + $0x78] sm:$0xf] %vm1970_vm3, %v1968_v6  ;;  %v1809_v10 = vmax.f32 %v1632_v8, 0.0  ;;  %v1841_v11 = vmax.f32 %v1712_v9, 0.0 }
 0x1e3   : > { %v1905_v13 = vmax.f32 %v1809_v10, %v1841_v11 }
 0x1e5   : > { %v1937_v14 = vmax.f32 %v1873_v12, %v1905_v13 }
 0x1e7   : > { %v1969_v15 = vpack.c.bf16 %v1937_v14, %v1937_v14 }
 0x1e9   : > { %2002 = vst.msk [vmem:[%s2808_s14 + $0x7c] sm:$0xf] %vm1970_vm3, %v1969_v15 }
 0x1ea PF: > { %p10_p9 = scmp.ge.s32.totalorder %s2560_s16, 10   ;;  %s3071_s12 = smov %s2516_s13 }
 0x1eb   : > { %s3072_s13 = smov %s2569_s19  ;;  %s3073_s14 = smov %s2560_s16 }
 0x1ec   :  { %12 = sbr.rel (!%p10_p9) target bundleno = 2 (0x2), region = 108 }

// kernel: eye_tracking_cnn_forward.5
= control target key start
LH: loop header
LB: loop body
LE: loop exit
PB: predicated region body
PF: predicated region fallthrough
CT: control target
= control target key end

     0   :  { %s4530_s12 = smov 0   ;;  %s4532_s13 = smov 0   ;;  %s6041_s0 = inlined_call_operand.vmem [shape: bf16[4,448,288], index: 0, kind: input, shape index: {}]   ;;  %s6042_s1 = inlined_call_operand.vmem [shape: bf16[288,64], index: 1, kind: input, shape index: {}]   ;;  %s6043_s2 = inlined_call_operand.vmem [shape: f32[1,64], index: 2, kind: input, shape index: {}]   ;;  %s6044_s3 = inlined_call_operand.vmem [shape: bf16[448,64], index: 3, kind: output, shape index: {}]  }
   0x1   :  { %s4534_s14 = smov 0  }
   0x2 LB: > { %s3218_s15 = sadd.s32 4294967295, %s4508_s14   ;;  %s4547_s16 = sadd.s32 1, %s4508_s14   ;;  %s4508_s14 = sphi %s4534_s14, %s6119_s14   ;;  %s4504_s13 = sphi %s4532_s13, %s6118_s13   ;;  %s4500_s12 = sphi %s4530_s12, %s6117_s12  }
   0x3   : > { %s17_s17 = ssub.s32 %s4508_s14, %s4547_s16  ;;  %s20_s18 = sadd.s32 1, %s4504_s13 }
   0x4   : > { %p18_p0 = scmp.eq.s32.totalorder %s17_s17, 0  ;;  %p27_p1 = scmp.ne.s32.totalorder %s4504_s13, %s4500_s12 }
   0x5   : > { %p28_p2 = scmp.eq.s32.totalorder %s4508_s14, 0  ;;  %p3221_p4 = scmp.ge.s32.totalorder %s4508_s14, 2 }
   0x6   : > { %s4556_s19 = scalar_select %p18_p0, %s4504_s13, %s20_s18  }
   0x7   : > { %p29_p3 = por %p28_p2, %p27_p1  ;;  %127 = sbr.rel (%p3221_p4) target bundleno = 242 (0xf2), region = 24 }
   0xc   : > { %130 = sbr.rel (!%p29_p3) target bundleno = 242 (0xf2), region = 28  ;;  %s132_s20 = sand.u32 (%p29_p3), 1, %s4504_s13  }
   0xd   : > { %s4455_s21 = smul.u32 (%p29_p3), 1344, %s132_s20 }
   0xe   : > { %s4458_s22 = smul.u32 (%p29_p3), 336, %s4508_s14 }
   0xf   : > { %s4569_s26 = scalar_lea.vmem (%p29_p3), [#allocation2], %s4455_s21 }
  0x10   : > { %s4564_s25 = scalar_lea.vmem (%p29_p3), %s6041_s0, %s4458_s22 }
  0x11   : > { %v153_v0 = vld [vmem:[%s4564_s25] sm:$0xff]  ;;  %v155_v1 = vld [vmem:[%s4564_s25 + $0xc] sm:$0xff]  ;;  %v157_v2 = vld [vmem:[%s4564_s25 + $0x18] sm:$0xff] }
  0x12   : > { %154 = vst [vmem:[%s4569_s26] sm:$0xff] %v153_v0  ;;  %v159_v3 = vld [vmem:[%s4564_s25 + $0x24] sm:$0xff]  ;;  %v161_v4 = vld [vmem:[%s4564_s25 + $0x30] sm:$0xff]  ;;  %v163_v5 = vld [vmem:[%s4564_s25 + $0x3c] sm:$0xff] }
  0x13   : > { %156 = vst [vmem:[%s4569_s26 + $0xc] sm:$0xff] %v155_v1  ;;  %v165_v6 = vld [vmem:[%s4564_s25 + $0x48] sm:$0xff]  ;;  %v167_v7 = vld [vmem:[%s4564_s25 + $0x54] sm:$0xff]  ;;  %v169_v8 = vld [vmem:[%s4564_s25 + $0x60] sm:$0xff] }
  0x14   : > { %158 = vst [vmem:[%s4569_s26 + $0x18] sm:$0xff] %v157_v2  ;;  %v171_v9 = vld [vmem:[%s4564_s25 + $0x6c] sm:$0xff]  ;;  %v173_v10 = vld [vmem:[%s4564_s25 + $0x78] sm:$0xff]  ;;  %v175_v11 = vld [vmem:[%s4564_s25 + $0x84] sm:$0xff] }
  0x15   : > { %160 = vst [vmem:[%s4569_s26 + $0x24] sm:$0xff] %v159_v3  ;;  %v177_v12 = vld [vmem:[%s4564_s25 + $0x90] sm:$0xff]  ;;  %v179_v13 = vld [vmem:[%s4564_s25 + $0x9c] sm:$0xff]  ;;  %v181_v14 = vld [vmem:[%s4564_s25 + $0xa8] sm:$0xff] }
  0x16   : > { %162 = vst [vmem:[%s4569_s26 + $0x30] sm:$0xff] %v161_v4  ;;  %v183_v15 = vld [vmem:[%s4564_s25 + $0xb4] sm:$0xff]  ;;  %v185_v16 = vld [vmem:[%s4564_s25 + $0xc0] sm:$0xff]  ;;  %v187_v17 = vld [vmem:[%s4564_s25 + $0xcc] sm:$0xff] }
  0x17   : > { %164 = vst [vmem:[%s4569_s26 + $0x3c] sm:$0xff] %v163_v5  ;;  %v189_v18 = vld [vmem:[%s4564_s25 + $0xd8] sm:$0xff]  ;;  %v191_v19 = vld [vmem:[%s4564_s25 + $0xe4] sm:$0xff]  ;;  %v193_v20 = vld [vmem:[%s4564_s25 + $0xf0] sm:$0xff] }
  0x18   : > { %166 = vst [vmem:[%s4569_s26 + $0x48] sm:$0xff] %v165_v6  ;;  %v195_v21 = vld [vmem:[%s4564_s25 + $0xfc] sm:$0xff]  ;;  %v197_v22 = vld [vmem:[%s4564_s25 + $0x108] sm:$0xff]  ;;  %v199_v23 = vld [vmem:[%s4564_s25 + $0x114] sm:$0xff] }
  0x19   : > { %168 = vst [vmem:[%s4569_s26 + $0x54] sm:$0xff] %v167_v7  ;;  %v201_v24 = vld [vmem:[%s4564_s25 + $0x120] sm:$0xff]  ;;  %v203_v25 = vld [vmem:[%s4564_s25 + $0x12c] sm:$0xff]  ;;  %v205_v26 = vld [vmem:[%s4564_s25 + $0x138] sm:$0xff] }
  0x1a   : > { %170 = vst [vmem:[%s4569_s26 + $0x60] sm:$0xff] %v169_v8  ;;  %v207_v27 = vld [vmem:[%s4564_s25 + $0x144] sm:$0xff]  ;;  %v211_v29 = vld [vmem:[%s4564_s25 + $0x2ac] sm:$0xff]  ;;  %v213_v30 = vld [vmem:[%s4564_s25 + $0x2b8] sm:$0xff] }
  0x1b   : > { %172 = vst [vmem:[%s4569_s26 + $0x6c] sm:$0xff] %v171_v9  ;;  %v209_v28 = vld [vmem:[%s4564_s25 + $0x2a0] sm:$0xff]  ;;  %v217_v32 = vld [vmem:[%s4564_s25 + $0x2d0] sm:$0xff]  ;;  %v221_v34 = vld [vmem:[%s4564_s25 + $0x2e8] sm:$0xff] }
  0x1c   : > { %174 = vst [vmem:[%s4569_s26 + $0x78] sm:$0xff] %v173_v10  ;;  %v215_v31 = vld [vmem:[%s4564_s25 + $0x2c4] sm:$0xff]  ;;  %v219_v33 = vld [vmem:[%s4564_s25 + $0x2dc] sm:$0xff]  ;;  %v223_v35 = vld [vmem:[%s4564_s25 + $0x2f4] sm:$0xff] }
  0x1d   : > { %176 = vst [vmem:[%s4569_s26 + $0x84] sm:$0xff] %v175_v11  ;;  %v225_v36 = vld [vmem:[%s4564_s25 + $0x300] sm:$0xff]  ;;  %v227_v37 = vld [vmem:[%s4564_s25 + $0x30c] sm:$0xff]  ;;  %v229_v38 = vld [vmem:[%s4564_s25 + $0x318] sm:$0xff] }
  0x1e   : > { %178 = vst [vmem:[%s4569_s26 + $0x90] sm:$0xff] %v177_v12  ;;  %v231_v39 = vld [vmem:[%s4564_s25 + $0x324] sm:$0xff]  ;;  %v233_v40 = vld [vmem:[%s4564_s25 + $0x330] sm:$0xff]  ;;  %v235_v41 = vld [vmem:[%s4564_s25 + $0x33c] sm:$0xff] }
  0x1f   : > { %180 = vst [vmem:[%s4569_s26 + $0x9c] sm:$0xff] %v179_v13  ;;  %v237_v42 = vld [vmem:[%s4564_s25 + $0x348] sm:$0xff]  ;;  %v239_v43 = vld [vmem:[%s4564_s25 + $0x354] sm:$0xff]  ;;  %v241_v44 = vld [vmem:[%s4564_s25 + $0x360] sm:$0xff] }
  0x20   : > { %182 = vst [vmem:[%s4569_s26 + $0xa8] sm:$0xff] %v181_v14  ;;  %v243_v45 = vld [vmem:[%s4564_s25 + $0x36c] sm:$0xff]  ;;  %v245_v46 = vld [vmem:[%s4564_s25 + $0x378] sm:$0xff]  ;;  %v247_v47 = vld [vmem:[%s4564_s25 + $0x384] sm:$0xff] }
  0x21   : > { %184 = vst [vmem:[%s4569_s26 + $0xb4] sm:$0xff] %v183_v15  ;;  %v249_v48 = vld [vmem:[%s4564_s25 + $0x390] sm:$0xff]  ;;  %v251_v49 = vld [vmem:[%s4564_s25 + $0x39c] sm:$0xff]  ;;  %v253_v50 = vld [vmem:[%s4564_s25 + $0x3a8] sm:$0xff] }
  0x22   : > { %186 = vst [vmem:[%s4569_s26 + $0xc0] sm:$0xff] %v185_v16  ;;  %v255_v51 = vld [vmem:[%s4564_s25 + $0x3b4] sm:$0xff]  ;;  %v257_v52 = vld [vmem:[%s4564_s25 + $0x3c0] sm:$0xff]  ;;  %v259_v53 = vld [vmem:[%s4564_s25 + $0x3cc] sm:$0xff] }
  0x23   : > { %188 = vst [vmem:[%s4569_s26 + $0xcc] sm:$0xff] %v187_v17  ;;  %v261_v54 = vld [vmem:[%s4564_s25 + $0x3d8] sm:$0xff]  ;;  %v263_v55 = vld [vmem:[%s4564_s25 + $0x3e4] sm:$0xff]  ;;  %v267_v57 = vld [vmem:[%s4564_s25 + $0x54c] sm:$0xff] }
  0x24   : > { %190 = vst [vmem:[%s4569_s26 + $0xd8] sm:$0xff] %v189_v18  ;;  %v265_v56 = vld [vmem:[%s4564_s25 + $0x540] sm:$0xff]  ;;  %v269_v58 = vld [vmem:[%s4564_s25 + $0x558] sm:$0xff]  ;;  %v273_v60 = vld [vmem:[%s4564_s25 + $0x570] sm:$0xff] }
  0x25   : > { %192 = vst [vmem:[%s4569_s26 + $0xe4] sm:$0xff] %v191_v19  ;;  %v271_v59 = vld [vmem:[%s4564_s25 + $0x564] sm:$0xff]  ;;  %v275_v61 = vld [vmem:[%s4564_s25 + $0x57c] sm:$0xff]  ;;  %v279_v63 = vld [vmem:[%s4564_s25 + $0x594] sm:$0xff] }
  0x26   : > { %194 = vst [vmem:[%s4569_s26 + $0xf0] sm:$0xff] %v193_v20  ;;  %v277_v62 = vld [vmem:[%s4564_s25 + $0x588] sm:$0xff]  ;;  %v281_v0 = vld [vmem:[%s4564_s25 + $0x5a0] sm:$0xff]  ;;  %v285_v2 = vld [vmem:[%s4564_s25 + $0x5b8] sm:$0xff] }
  0x27   : > { %196 = vst [vmem:[%s4569_s26 + $0xfc] sm:$0xff] %v195_v21  ;;  %v283_v1 = vld [vmem:[%s4564_s25 + $0x5ac] sm:$0xff]  ;;  %v287_v3 = vld [vmem:[%s4564_s25 + $0x5c4] sm:$0xff]  ;;  %v291_v5 = vld [vmem:[%s4564_s25 + $0x5dc] sm:$0xff] }
  0x28   : > { %198 = vst [vmem:[%s4569_s26 + $0x108] sm:$0xff] %v197_v22  ;;  %v289_v4 = vld [vmem:[%s4564_s25 + $0x5d0] sm:$0xff]  ;;  %v293_v6 = vld [vmem:[%s4564_s25 + $0x5e8] sm:$0xff]  ;;  %v297_v8 = vld [vmem:[%s4564_s25 + $0x600] sm:$0xff] }
  0x29   : > { %200 = vst [vmem:[%s4569_s26 + $0x114] sm:$0xff] %v199_v23  ;;  %v295_v7 = vld [vmem:[%s4564_s25 + $0x5f4] sm:$0xff]  ;;  %v299_v9 = vld [vmem:[%s4564_s25 + $0x60c] sm:$0xff]  ;;  %v303_v11 = vld [vmem:[%s4564_s25 + $0x624] sm:$0xff] }
  0x2a   : > { %202 = vst [vmem:[%s4569_s26 + $0x120] sm:$0xff] %v201_v24  ;;  %v301_v10 = vld [vmem:[%s4564_s25 + $0x618] sm:$0xff]  ;;  %v305_v12 = vld [vmem:[%s4564_s25 + $0x630] sm:$0xff]  ;;  %v309_v14 = vld [vmem:[%s4564_s25 + $0x648] sm:$0xff] }
  0x2b   : > { %204 = vst [vmem:[%s4569_s26 + $0x12c] sm:$0xff] %v203_v25  ;;  %v307_v13 = vld [vmem:[%s4564_s25 + $0x63c] sm:$0xff]  ;;  %v311_v15 = vld [vmem:[%s4564_s25 + $0x654] sm:$0xff]  ;;  %v315_v17 = vld [vmem:[%s4564_s25 + $0x66c] sm:$0xff] }
  0x2c   : > { %206 = vst [vmem:[%s4569_s26 + $0x138] sm:$0xff] %v205_v26  ;;  %v313_v16 = vld [vmem:[%s4564_s25 + $0x660] sm:$0xff]  ;;  %v317_v18 = vld [vmem:[%s4564_s25 + $0x678] sm:$0xff]  ;;  %v323_v21 = vld [vmem:[%s4564_s25 + $0x7ec] sm:$0xff] }
  0x2d   : > { %208 = vst [vmem:[%s4569_s26 + $0x144] sm:$0xff] %v207_v27  ;;  %v319_v19 = vld [vmem:[%s4564_s25 + $0x684] sm:$0xff]  ;;  %v325_v22 = vld [vmem:[%s4564_s25 + $0x7f8] sm:$0xff]  ;;  %v329_v24 = vld [vmem:[%s4564_s25 + $0x810] sm:$0xff] }
  0x2e   : > { %210 = vst [vmem:[%s4569_s26 + $0x150] sm:$0xff] %v209_v28  ;;  %v321_v20 = vld [vmem:[%s4564_s25 + $0x7e0] sm:$0xff]  ;;  %v333_v26 = vld [vmem:[%s4564_s25 + $0x828] sm:$0xff]  ;;  %v335_v27 = vld [vmem:[%s4564_s25 + $0x834] sm:$0xff] }
  0x2f   : > { %212 = vst [vmem:[%s4569_s26 + $0x15c] sm:$0xff] %v211_v29  ;;  %v327_v23 = vld [vmem:[%s4564_s25 + $0x804] sm:$0xff]  ;;  %v331_v25 = vld [vmem:[%s4564_s25 + $0x81c] sm:$0xff]  ;;  %v339_v29 = vld [vmem:[%s4564_s25 + $0x84c] sm:$0xff] }
  0x30   : > { %214 = vst [vmem:[%s4569_s26 + $0x168] sm:$0xff] %v213_v30  ;;  %v337_v28 = vld [vmem:[%s4564_s25 + $0x840] sm:$0xff]  ;;  %v341_v30 = vld [vmem:[%s4564_s25 + $0x858] sm:$0xff] }
  0x31   : > { %216 = vst [vmem:[%s4569_s26 + $0x174] sm:$0xff] %v215_v31  ;;  %v343_v31 = vld [vmem:[%s4564_s25 + $0x864] sm:$0xff] }
  0x32   : > { %218 = vst [vmem:[%s4569_s26 + $0x180] sm:$0xff] %v217_v32  ;;  %v345_v32 = vld [vmem:[%s4564_s25 + $0x870] sm:$0xff] }
  0x33   : > { %220 = vst [vmem:[%s4569_s26 + $0x18c] sm:$0xff] %v219_v33  ;;  %v347_v33 = vld [vmem:[%s4564_s25 + $0x87c] sm:$0xff] }
  0x34   : > { %222 = vst [vmem:[%s4569_s26 + $0x198] sm:$0xff] %v221_v34  ;;  %v349_v34 = vld [vmem:[%s4564_s25 + $0x888] sm:$0xff] }
  0x35   : > { %224 = vst [vmem:[%s4569_s26 + $0x1a4] sm:$0xff] %v223_v35  ;;  %v351_v35 = vld [vmem:[%s4564_s25 + $0x894] sm:$0xff] }
  0x36   : > { %226 = vst [vmem:[%s4569_s26 + $0x1b0] sm:$0xff] %v225_v36  ;;  %v353_v36 = vld [vmem:[%s4564_s25 + $0x8a0] sm:$0xff] }
  0x37   : > { %228 = vst [vmem:[%s4569_s26 + $0x1bc] sm:$0xff] %v227_v37  ;;  %v355_v37 = vld [vmem:[%s4564_s25 + $0x8ac] sm:$0xff] }
  0x38   : > { %230 = vst [vmem:[%s4569_s26 + $0x1c8] sm:$0xff] %v229_v38  ;;  %v357_v38 = vld [vmem:[%s4564_s25 + $0x8b8] sm:$0xff] }
  0x39   : > { %232 = vst [vmem:[%s4569_s26 + $0x1d4] sm:$0xff] %v231_v39  ;;  %v359_v39 = vld [vmem:[%s4564_s25 + $0x8c4] sm:$0xff] }
  0x3a   : > { %234 = vst [vmem:[%s4569_s26 + $0x1e0] sm:$0xff] %v233_v40  ;;  %v361_v40 = vld [vmem:[%s4564_s25 + $0x8d0] sm:$0xff] }
  0x3b   : > { %236 = vst [vmem:[%s4569_s26 + $0x1ec] sm:$0xff] %v235_v41  ;;  %v363_v41 = vld [vmem:[%s4564_s25 + $0x8dc] sm:$0xff] }
  0x3c   : > { %238 = vst [vmem:[%s4569_s26 + $0x1f8] sm:$0xff] %v237_v42  ;;  %v365_v42 = vld [vmem:[%s4564_s25 + $0x8e8] sm:$0xff] }
  0x3d   : > { %240 = vst [vmem:[%s4569_s26 + $0x204] sm:$0xff] %v239_v43  ;;  %v367_v43 = vld [vmem:[%s4564_s25 + $0x8f4] sm:$0xff] }
  0x3e   : > { %242 = vst [vmem:[%s4569_s26 + $0x210] sm:$0xff] %v241_v44  ;;  %v369_v44 = vld [vmem:[%s4564_s25 + $0x900] sm:$0xff] }
  0x3f   : > { %244 = vst [vmem:[%s4569_s26 + $0x21c] sm:$0xff] %v243_v45  ;;  %v371_v45 = vld [vmem:[%s4564_s25 + $0x90c] sm:$0xff] }
  0x40   : > { %246 = vst [vmem:[%s4569_s26 + $0x228] sm:$0xff] %v245_v46  ;;  %v373_v46 = vld [vmem:[%s4564_s25 + $0x918] sm:$0xff] }
  0x41   : > { %248 = vst [vmem:[%s4569_s26 + $0x234] sm:$0xff] %v247_v47  ;;  %v375_v47 = vld [vmem:[%s4564_s25 + $0x924] sm:$0xff] }
  0x42   : > { %250 = vst [vmem:[%s4569_s26 + $0x240] sm:$0xff] %v249_v48  ;;  %v3223_v48 = vld [vmem:[%s4564_s25 + $0x8] sm:$0xf] }
  0x43   : > { %252 = vst [vmem:[%s4569_s26 + $0x24c] sm:$0xff] %v251_v49  ;;  %v3225_v49 = vld [vmem:[%s4564_s25 + $0x14] sm:$0xf] }
  0x44   : > { %254 = vst [vmem:[%s4569_s26 + $0x258] sm:$0xff] %v253_v50  ;;  %v3227_v50 = vld [vmem:[%s4564_s25 + $0x20] sm:$0xf] }
  0x45   : > { %256 = vst [vmem:[%s4569_s26 + $0x264] sm:$0xff] %v255_v51  ;;  %v3229_v51 = vld [vmem:[%s4564_s25 + $0x2c] sm:$0xf] }
  0x46   : > { %258 = vst [vmem:[%s4569_s26 + $0x270] sm:$0xff] %v257_v52  ;;  %v3231_v52 = vld [vmem:[%s4564_s25 + $0x38] sm:$0xf] }
  0x47   : > { %260 = vst [vmem:[%s4569_s26 + $0x27c] sm:$0xff] %v259_v53  ;;  %v3233_v53 = vld [vmem:[%s4564_s25 + $0x44] sm:$0xf] }
  0x48   : > { %262 = vst [vmem:[%s4569_s26 + $0x288] sm:$0xff] %v261_v54  ;;  %v3235_v54 = vld [vmem:[%s4564_s25 + $0x50] sm:$0xf] }
  0x49   : > { %264 = vst [vmem:[%s4569_s26 + $0x294] sm:$0xff] %v263_v55  ;;  %v3237_v55 = vld [vmem:[%s4564_s25 + $0x5c] sm:$0xf] }
  0x4a   : > { %266 = vst [vmem:[%s4569_s26 + $0x2a0] sm:$0xff] %v265_v56  ;;  %v3239_v56 = vld [vmem:[%s4564_s25 + $0x68] sm:$0xf] }
  0x4b   : > { %268 = vst [vmem:[%s4569_s26 + $0x2ac] sm:$0xff] %v267_v57  ;;  %v3241_v57 = vld [vmem:[%s4564_s25 + $0x74] sm:$0xf] }
  0x4c   : > { %270 = vst [vmem:[%s4569_s26 + $0x2b8] sm:$0xff] %v269_v58  ;;  %v3243_v58 = vld [vmem:[%s4564_s25 + $0x80] sm:$0xf] }
  0x4d   : > { %272 = vst [vmem:[%s4569_s26 + $0x2c4] sm:$0xff] %v271_v59  ;;  %v3245_v59 = vld [vmem:[%s4564_s25 + $0x8c] sm:$0xf] }
  0x4e   : > { %274 = vst [vmem:[%s4569_s26 + $0x2d0] sm:$0xff] %v273_v60  ;;  %v3247_v60 = vld [vmem:[%s4564_s25 + $0x98] sm:$0xf] }
  0x4f   : > { %276 = vst [vmem:[%s4569_s26 + $0x2dc] sm:$0xff] %v275_v61  ;;  %v3249_v61 = vld [vmem:[%s4564_s25 + $0xa4] sm:$0xf] }
  0x50   : > { %278 = vst [vmem:[%s4569_s26 + $0x2e8] sm:$0xff] %v277_v62  ;;  %v3251_v62 = vld [vmem:[%s4564_s25 + $0xb0] sm:$0xf] }
  0x51   : > { %280 = vst [vmem:[%s4569_s26 + $0x2f4] sm:$0xff] %v279_v63  ;;  %v3253_v63 = vld [vmem:[%s4564_s25 + $0xbc] sm:$0xf] }
  0x52   : > { %282 = vst [vmem:[%s4569_s26 + $0x300] sm:$0xff] %v281_v0  ;;  %v3255_v0 = vld [vmem:[%s4564_s25 + $0xc8] sm:$0xf] }
  0x53   : > { %284 = vst [vmem:[%s4569_s26 + $0x30c] sm:$0xff] %v283_v1  ;;  %v3257_v1 = vld [vmem:[%s4564_s25 + $0xd4] sm:$0xf] }
  0x54   : > { %286 = vst [vmem:[%s4569_s26 + $0x318] sm:$0xff] %v285_v2  ;;  %v3259_v2 = vld [vmem:[%s4564_s25 + $0xe0] sm:$0xf] }
  0x55   : > { %288 = vst [vmem:[%s4569_s26 + $0x324] sm:$0xff] %v287_v3  ;;  %v3261_v3 = vld [vmem:[%s4564_s25 + $0xec] sm:$0xf] }
  0x56   : > { %290 = vst [vmem:[%s4569_s26 + $0x330] sm:$0xff] %v289_v4  ;;  %v3263_v4 = vld [vmem:[%s4564_s25 + $0xf8] sm:$0xf] }
  0x57   : > { %292 = vst [vmem:[%s4569_s26 + $0x33c] sm:$0xff] %v291_v5  ;;  %v3265_v5 = vld [vmem:[%s4564_s25 + $0x104] sm:$0xf] }
  0x58   : > { %294 = vst [vmem:[%s4569_s26 + $0x348] sm:$0xff] %v293_v6  ;;  %v3267_v6 = vld [vmem:[%s4564_s25 + $0x110] sm:$0xf] }
  0x59   : > { %296 = vst [vmem:[%s4569_s26 + $0x354] sm:$0xff] %v295_v7  ;;  %v3269_v7 = vld [vmem:[%s4564_s25 + $0x11c] sm:$0xf] }
  0x5a   : > { %298 = vst [vmem:[%s4569_s26 + $0x360] sm:$0xff] %v297_v8  ;;  %v3271_v8 = vld [vmem:[%s4564_s25 + $0x128] sm:$0xf] }
  0x5b   : > { %300 = vst [vmem:[%s4569_s26 + $0x36c] sm:$0xff] %v299_v9  ;;  %v3273_v9 = vld [vmem:[%s4564_s25 + $0x134] sm:$0xf] }
  0x5c   : > { %302 = vst [vmem:[%s4569_s26 + $0x378] sm:$0xff] %v301_v10  ;;  %v3275_v10 = vld [vmem:[%s4564_s25 + $0x140] sm:$0xf] }
  0x5d   : > { %304 = vst [vmem:[%s4569_s26 + $0x384] sm:$0xff] %v303_v11  ;;  %v3277_v11 = vld [vmem:[%s4564_s25 + $0x14c] sm:$0xf] }
  0x5e   : > { %306 = vst [vmem:[%s4569_s26 + $0x390] sm:$0xff] %v305_v12  ;;  %v3279_v12 = vld [vmem:[%s4564_s25 + $0x2a8] sm:$0xf] }
  0x5f   : > { %308 = vst [vmem:[%s4569_s26 + $0x39c] sm:$0xff] %v307_v13  ;;  %v3281_v13 = vld [vmem:[%s4564_s25 + $0x2b4] sm:$0xf] }
  0x60   : > { %310 = vst [vmem:[%s4569_s26 + $0x3a8] sm:$0xff] %v309_v14  ;;  %v3283_v14 = vld [vmem:[%s4564_s25 + $0x2c0] sm:$0xf] }
  0x61   : > { %312 = vst [vmem:[%s4569_s26 + $0x3b4] sm:$0xff] %v311_v15  ;;  %v3285_v15 = vld [vmem:[%s4564_s25 + $0x2cc] sm:$0xf] }
  0x62   : > { %314 = vst [vmem:[%s4569_s26 + $0x3c0] sm:$0xff] %v313_v16  ;;  %v3287_v16 = vld [vmem:[%s4564_s25 + $0x2d8] sm:$0xf] }
  0x63   : > { %316 = vst [vmem:[%s4569_s26 + $0x3cc] sm:$0xff] %v315_v17  ;;  %v3289_v17 = vld [vmem:[%s4564_s25 + $0x2e4] sm:$0xf] }
  0x64   : > { %318 = vst [vmem:[%s4569_s26 + $0x3d8] sm:$0xff] %v317_v18  ;;  %v3291_v18 = vld [vmem:[%s4564_s25 + $0x2f0] sm:$0xf] }
  0x65   : > { %320 = vst [vmem:[%s4569_s26 + $0x3e4] sm:$0xff] %v319_v19  ;;  %v3293_v19 = vld [vmem:[%s4564_s25 + $0x2fc] sm:$0xf] }
  0x66   : > { %322 = vst [vmem:[%s4569_s26 + $0x3f0] sm:$0xff] %v321_v20  ;;  %v3295_v20 = vld [vmem:[%s4564_s25 + $0x308] sm:$0xf] }
  0x67   : > { %324 = vst [vmem:[%s4569_s26 + $0x3fc] sm:$0xff] %v323_v21  ;;  %v3297_v21 = vld [vmem:[%s4564_s25 + $0x314] sm:$0xf] }
  0x68   : > { %326 = vst [vmem:[%s4569_s26 + $0x408] sm:$0xff] %v325_v22  ;;  %v3299_v22 = vld [vmem:[%s4564_s25 + $0x320] sm:$0xf] }
  0x69   : > { %328 = vst [vmem:[%s4569_s26 + $0x414] sm:$0xff] %v327_v23  ;;  %v3301_v23 = vld [vmem:[%s4564_s25 + $0x32c] sm:$0xf] }
  0x6a   : > { %330 = vst [vmem:[%s4569_s26 + $0x420] sm:$0xff] %v329_v24  ;;  %v3303_v24 = vld [vmem:[%s4564_s25 + $0x338] sm:$0xf] }
  0x6b   : > { %332 = vst [vmem:[%s4569_s26 + $0x42c] sm:$0xff] %v331_v25  ;;  %v3305_v25 = vld [vmem:[%s4564_s25 + $0x344] sm:$0xf] }
  0x6c   : > { %334 = vst [vmem:[%s4569_s26 + $0x438] sm:$0xff] %v333_v26  ;;  %v3307_v26 = vld [vmem:[%s4564_s25 + $0x350] sm:$0xf] }
  0x6d   : > { %336 = vst [vmem:[%s4569_s26 + $0x444] sm:$0xff] %v335_v27  ;;  %v3309_v27 = vld [vmem:[%s4564_s25 + $0x35c] sm:$0xf] }
  0x6e   : > { %338 = vst [vmem:[%s4569_s26 + $0x450] sm:$0xff] %v337_v28  ;;  %v3311_v28 = vld [vmem:[%s4564_s25 + $0x368] sm:$0xf] }
  0x6f   : > { %340 = vst [vmem:[%s4569_s26 + $0x45c] sm:$0xff] %v339_v29  ;;  %v3313_v29 = vld [vmem:[%s4564_s25 + $0x374] sm:$0xf] }
  0x70   : > { %342 = vst [vmem:[%s4569_s26 + $0x468] sm:$0xff] %v341_v30  ;;  %v3315_v30 = vld [vmem:[%s4564_s25 + $0x380] sm:$0xf] }
  0x71   : > { %344 = vst [vmem:[%s4569_s26 + $0x474] sm:$0xff] %v343_v31  ;;  %v3317_v31 = vld [vmem:[%s4564_s25 + $0x38c] sm:$0xf] }
  0x72   : > { %346 = vst [vmem:[%s4569_s26 + $0x480] sm:$0xff] %v345_v32  ;;  %v3319_v32 = vld [vmem:[%s4564_s25 + $0x398] sm:$0xf] }
  0x73   : > { %348 = vst [vmem:[%s4569_s26 + $0x48c] sm:$0xff] %v347_v33  ;;  %v3321_v33 = vld [vmem:[%s4564_s25 + $0x3a4] sm:$0xf] }
  0x74   : > { %350 = vst [vmem:[%s4569_s26 + $0x498] sm:$0xff] %v349_v34  ;;  %v3323_v34 = vld [vmem:[%s4564_s25 + $0x3b0] sm:$0xf] }
  0x75   : > { %352 = vst [vmem:[%s4569_s26 + $0x4a4] sm:$0xff] %v351_v35  ;;  %v3325_v35 = vld [vmem:[%s4564_s25 + $0x3bc] sm:$0xf] }
  0x76   : > { %354 = vst [vmem:[%s4569_s26 + $0x4b0] sm:$0xff] %v353_v36  ;;  %v3327_v36 = vld [vmem:[%s4564_s25 + $0x3c8] sm:$0xf] }
  0x77   : > { %356 = vst [vmem:[%s4569_s26 + $0x4bc] sm:$0xff] %v355_v37  ;;  %v3329_v37 = vld [vmem:[%s4564_s25 + $0x3d4] sm:$0xf] }
  0x78   : > { %358 = vst [vmem:[%s4569_s26 + $0x4c8] sm:$0xff] %v357_v38  ;;  %v3331_v38 = vld [vmem:[%s4564_s25 + $0x3e0] sm:$0xf] }
  0x79   : > { %360 = vst [vmem:[%s4569_s26 + $0x4d4] sm:$0xff] %v359_v39  ;;  %v3333_v39 = vld [vmem:[%s4564_s25 + $0x3ec] sm:$0xf] }
  0x7a   : > { %362 = vst [vmem:[%s4569_s26 + $0x4e0] sm:$0xff] %v361_v40  ;;  %v3335_v40 = vld [vmem:[%s4564_s25 + $0x548] sm:$0xf] }
  0x7b   : > { %364 = vst [vmem:[%s4569_s26 + $0x4ec] sm:$0xff] %v363_v41  ;;  %v3337_v41 = vld [vmem:[%s4564_s25 + $0x554] sm:$0xf] }
  0x7c   : > { %366 = vst [vmem:[%s4569_s26 + $0x4f8] sm:$0xff] %v365_v42  ;;  %v3339_v42 = vld [vmem:[%s4564_s25 + $0x560] sm:$0xf] }
  0x7d   : > { %368 = vst [vmem:[%s4569_s26 + $0x504] sm:$0xff] %v367_v43  ;;  %v3341_v43 = vld [vmem:[%s4564_s25 + $0x56c] sm:$0xf] }
  0x7e   : > { %370 = vst [vmem:[%s4569_s26 + $0x510] sm:$0xff] %v369_v44  ;;  %v3343_v44 = vld [vmem:[%s4564_s25 + $0x578] sm:$0xf] }
  0x7f   : > { %372 = vst [vmem:[%s4569_s26 + $0x51c] sm:$0xff] %v371_v45  ;;  %v3345_v45 = vld [vmem:[%s4564_s25 + $0x584] sm:$0xf] }
  0x80   : > { %374 = vst [vmem:[%s4569_s26 + $0x528] sm:$0xff] %v373_v46  ;;  %v3347_v46 = vld [vmem:[%s4564_s25 + $0x590] sm:$0xf] }
  0x81   : > { %376 = vst [vmem:[%s4569_s26 + $0x534] sm:$0xff] %v375_v47  ;;  %v3349_v47 = vld [vmem:[%s4564_s25 + $0x59c] sm:$0xf] }
  0x82   : > { %3224 = vst [vmem:[%s4569_s26 + $0x8] sm:$0xf] %v3223_v48  ;;  %v3351_v48 = vld [vmem:[%s4564_s25 + $0x5a8] sm:$0xf] }
  0x83   : > { %3226 = vst [vmem:[%s4569_s26 + $0x14] sm:$0xf] %v3225_v49  ;;  %v3353_v49 = vld [vmem:[%s4564_s25 + $0x5b4] sm:$0xf] }
  0x84   : > { %3228 = vst [vmem:[%s4569_s26 + $0x20] sm:$0xf] %v3227_v50  ;;  %v3355_v50 = vld [vmem:[%s4564_s25 + $0x5c0] sm:$0xf] }
  0x85   : > { %3230 = vst [vmem:[%s4569_s26 + $0x2c] sm:$0xf] %v3229_v51  ;;  %v3357_v51 = vld [vmem:[%s4564_s25 + $0x5cc] sm:$0xf] }
  0x86   : > { %3232 = vst [vmem:[%s4569_s26 + $0x38] sm:$0xf] %v3231_v52  ;;  %v3359_v52 = vld [vmem:[%s4564_s25 + $0x5d8] sm:$0xf] }
  0x87   : > { %3234 = vst [vmem:[%s4569_s26 + $0x44] sm:$0xf] %v3233_v53  ;;  %v3361_v53 = vld [vmem:[%s4564_s25 + $0x5e4] sm:$0xf] }
  0x88   : > { %3236 = vst [vmem:[%s4569_s26 + $0x50] sm:$0xf] %v3235_v54  ;;  %v3363_v54 = vld [vmem:[%s4564_s25 + $0x5f0] sm:$0xf] }
  0x89   : > { %3238 = vst [vmem:[%s4569_s26 + $0x5c] sm:$0xf] %v3237_v55  ;;  %v3365_v55 = vld [vmem:[%s4564_s25 + $0x5fc] sm:$0xf] }
  0x8a   : > { %3240 = vst [vmem:[%s4569_s26 + $0x68] sm:$0xf] %v3239_v56  ;;  %v3367_v56 = vld [vmem:[%s4564_s25 + $0x608] sm:$0xf] }
  0x8b   : > { %3242 = vst [vmem:[%s4569_s26 + $0x74] sm:$0xf] %v3241_v57  ;;  %v3369_v57 = vld [vmem:[%s4564_s25 + $0x614] sm:$0xf] }
  0x8c   : > { %3244 = vst [vmem:[%s4569_s26 + $0x80] sm:$0xf] %v3243_v58  ;;  %v3371_v58 = vld [vmem:[%s4564_s25 + $0x620] sm:$0xf] }
  0x8d   : > { %3246 = vst [vmem:[%s4569_s26 + $0x8c] sm:$0xf] %v3245_v59  ;;  %v3373_v59 = vld [vmem:[%s4564_s25 + $0x62c] sm:$0xf] }
  0x8e   : > { %3248 = vst [vmem:[%s4569_s26 + $0x98] sm:$0xf] %v3247_v60  ;;  %v3375_v60 = vld [vmem:[%s4564_s25 + $0x638] sm:$0xf] }
  0x8f   : > { %3250 = vst [vmem:[%s4569_s26 + $0xa4] sm:$0xf] %v3249_v61  ;;  %v3377_v61 = vld [vmem:[%s4564_s25 + $0x644] sm:$0xf] }
  0x90   : > { %3252 = vst [vmem:[%s4569_s26 + $0xb0] sm:$0xf] %v3251_v62  ;;  %v3379_v62 = vld [vmem:[%s4564_s25 + $0x650] sm:$0xf] }
  0x91   : > { %3254 = vst [vmem:[%s4569_s26 + $0xbc] sm:$0xf] %v3253_v63  ;;  %v3381_v63 = vld [vmem:[%s4564_s25 + $0x65c] sm:$0xf] }
  0x92   : > { %3256 = vst [vmem:[%s4569_s26 + $0xc8] sm:$0xf] %v3255_v0  ;;  %v3383_v0 = vld [vmem:[%s4564_s25 + $0x668] sm:$0xf] }
  0x93   : > { %3258 = vst [vmem:[%s4569_s26 + $0xd4] sm:$0xf] %v3257_v1  ;;  %v3385_v1 = vld [vmem:[%s4564_s25 + $0x674] sm:$0xf] }
  0x94   : > { %3260 = vst [vmem:[%s4569_s26 + $0xe0] sm:$0xf] %v3259_v2  ;;  %v3387_v2 = vld [vmem:[%s4564_s25 + $0x680] sm:$0xf] }
  0x95   : > { %3262 = vst [vmem:[%s4569_s26 + $0xec] sm:$0xf] %v3261_v3  ;;  %v3389_v3 = vld [vmem:[%s4564_s25 + $0x68c] sm:$0xf] }
  0x96   : > { %3264 = vst [vmem:[%s4569_s26 + $0xf8] sm:$0xf] %v3263_v4  ;;  %v3391_v4 = vld [vmem:[%s4564_s25 + $0x7e8] sm:$0xf] }
  0x97   : > { %3266 = vst [vmem:[%s4569_s26 + $0x104] sm:$0xf] %v3265_v5  ;;  %v3393_v5 = vld [vmem:[%s4564_s25 + $0x7f4] sm:$0xf] }
  0x98   : > { %3268 = vst [vmem:[%s4569_s26 + $0x110] sm:$0xf] %v3267_v6  ;;  %v3395_v6 = vld [vmem:[%s4564_s25 + $0x800] sm:$0xf] }
  0x99   : > { %3270 = vst [vmem:[%s4569_s26 + $0x11c] sm:$0xf] %v3269_v7  ;;  %v3397_v7 = vld [vmem:[%s4564_s25 + $0x80c] sm:$0xf] }
  0x9a   : > { %3272 = vst [vmem:[%s4569_s26 + $0x128] sm:$0xf] %v3271_v8  ;;  %v3399_v8 = vld [vmem:[%s4564_s25 + $0x818] sm:$0xf] }
  0x9b   : > { %3274 = vst [vmem:[%s4569_s26 + $0x134] sm:$0xf] %v3273_v9  ;;  %v3401_v9 = vld [vmem:[%s4564_s25 + $0x824] sm:$0xf] }
  0x9c   : > { %3276 = vst [vmem:[%s4569_s26 + $0x140] sm:$0xf] %v3275_v10  ;;  %v3403_v10 = vld [vmem:[%s4564_s25 + $0x830] sm:$0xf] }
  0x9d   : > { %3278 = vst [vmem:[%s4569_s26 + $0x14c] sm:$0xf] %v3277_v11  ;;  %v3405_v11 = vld [vmem:[%s4564_s25 + $0x83c] sm:$0xf] }
  0x9e   : > { %3280 = vst [vmem:[%s4569_s26 + $0x158] sm:$0xf] %v3279_v12  ;;  %v3407_v12 = vld [vmem:[%s4564_s25 + $0x848] sm:$0xf] }
  0x9f   : > { %3282 = vst [vmem:[%s4569_s26 + $0x164] sm:$0xf] %v3281_v13  ;;  %v3409_v13 = vld [vmem:[%s4564_s25 + $0x854] sm:$0xf] }
  0xa0   : > { %3284 = vst [vmem:[%s4569_s26 + $0x170] sm:$0xf] %v3283_v14  ;;  %v3411_v14 = vld [vmem:[%s4564_s25 + $0x860] sm:$0xf] }
  0xa1   : > { %3286 = vst [vmem:[%s4569_s26 + $0x17c] sm:$0xf] %v3285_v15  ;;  %v3413_v15 = vld [vmem:[%s4564_s25 + $0x86c] sm:$0xf] }
  0xa2   : > { %3288 = vst [vmem:[%s4569_s26 + $0x188] sm:$0xf] %v3287_v16  ;;  %v3415_v16 = vld [vmem:[%s4564_s25 + $0x878] sm:$0xf] }
  0xa3   : > { %3290 = vst [vmem:[%s4569_s26 + $0x194] sm:$0xf] %v3289_v17  ;;  %v3417_v17 = vld [vmem:[%s4564_s25 + $0x884] sm:$0xf] }
  0xa4   : > { %3292 = vst [vmem:[%s4569_s26 + $0x1a0] sm:$0xf] %v3291_v18  ;;  %v3419_v18 = vld [vmem:[%s4564_s25 + $0x890] sm:$0xf] }
  0xa5   : > { %3294 = vst [vmem:[%s4569_s26 + $0x1ac] sm:$0xf] %v3293_v19  ;;  %v3421_v19 = vld [vmem:[%s4564_s25 + $0x89c] sm:$0xf] }
  0xa6   : > { %3296 = vst [vmem:[%s4569_s26 + $0x1b8] sm:$0xf] %v3295_v20  ;;  %v3423_v20 = vld [vmem:[%s4564_s25 + $0x8a8] sm:$0xf] }
  0xa7   : > { %3298 = vst [vmem:[%s4569_s26 + $0x1c4] sm:$0xf] %v3297_v21  ;;  %v3425_v21 = vld [vmem:[%s4564_s25 + $0x8b4] sm:$0xf] }
  0xa8   : > { %3300 = vst [vmem:[%s4569_s26 + $0x1d0] sm:$0xf] %v3299_v22  ;;  %v3427_v22 = vld [vmem:[%s4564_s25 + $0x8c0] sm:$0xf] }
  0xa9   : > { %3302 = vst [vmem:[%s4569_s26 + $0x1dc] sm:$0xf] %v3301_v23  ;;  %v3429_v23 = vld [vmem:[%s4564_s25 + $0x8cc] sm:$0xf] }
  0xaa   : > { %3304 = vst [vmem:[%s4569_s26 + $0x1e8] sm:$0xf] %v3303_v24  ;;  %v3431_v24 = vld [vmem:[%s4564_s25 + $0x8d8] sm:$0xf] }
  0xab   : > { %3306 = vst [vmem:[%s4569_s26 + $0x1f4] sm:$0xf] %v3305_v25  ;;  %v3433_v25 = vld [vmem:[%s4564_s25 + $0x8e4] sm:$0xf] }
  0xac   : > { %3308 = vst [vmem:[%s4569_s26 + $0x200] sm:$0xf] %v3307_v26  ;;  %v3435_v26 = vld [vmem:[%s4564_s25 + $0x8f0] sm:$0xf] }
  0xad   : > { %3310 = vst [vmem:[%s4569_s26 + $0x20c] sm:$0xf] %v3309_v27  ;;  %v3437_v27 = vld [vmem:[%s4564_s25 + $0x8fc] sm:$0xf] }
  0xae   : > { %3312 = vst [vmem:[%s4569_s26 + $0x218] sm:$0xf] %v3311_v28  ;;  %v3439_v28 = vld [vmem:[%s4564_s25 + $0x908] sm:$0xf] }
  0xaf   : > { %3314 = vst [vmem:[%s4569_s26 + $0x224] sm:$0xf] %v3313_v29  ;;  %v3441_v29 = vld [vmem:[%s4564_s25 + $0x914] sm:$0xf] }
  0xb0   : > { %3316 = vst [vmem:[%s4569_s26 + $0x230] sm:$0xf] %v3315_v30  ;;  %v3443_v30 = vld [vmem:[%s4564_s25 + $0x920] sm:$0xf] }
  0xb1   : > { %3318 = vst [vmem:[%s4569_s26 + $0x23c] sm:$0xf] %v3317_v31  ;;  %v3445_v31 = vld [vmem:[%s4564_s25 + $0x92c] sm:$0xf] }
  0xb2   : > { %3320 = vst [vmem:[%s4569_s26 + $0x248] sm:$0xf] %v3319_v32 }
  0xb3   : > { %3322 = vst [vmem:[%s4569_s26 + $0x254] sm:$0xf] %v3321_v33 }
  0xb4   : > { %3324 = vst [vmem:[%s4569_s26 + $0x260] sm:$0xf] %v3323_v34 }
  0xb5   : > { %3326 = vst [vmem:[%s4569_s26 + $0x26c] sm:$0xf] %v3325_v35 }
  0xb6   : > { %3328 = vst [vmem:[%s4569_s26 + $0x278] sm:$0xf] %v3327_v36 }
  0xb7   : > { %3330 = vst [vmem:[%s4569_s26 + $0x284] sm:$0xf] %v3329_v37 }
  0xb8   : > { %3332 = vst [vmem:[%s4569_s26 + $0x290] sm:$0xf] %v3331_v38 }
  0xb9   : > { %3334 = vst [vmem:[%s4569_s26 + $0x29c] sm:$0xf] %v3333_v39 }
  0xba   : > { %3336 = vst [vmem:[%s4569_s26 + $0x2a8] sm:$0xf] %v3335_v40 }
  0xbb   : > { %3338 = vst [vmem:[%s4569_s26 + $0x2b4] sm:$0xf] %v3337_v41 }
  0xbc   : > { %3340 = vst [vmem:[%s4569_s26 + $0x2c0] sm:$0xf] %v3339_v42 }
  0xbd   : > { %3342 = vst [vmem:[%s4569_s26 + $0x2cc] sm:$0xf] %v3341_v43 }
  0xbe   : > { %3344 = vst [vmem:[%s4569_s26 + $0x2d8] sm:$0xf] %v3343_v44 }
  0xbf   : > { %3346 = vst [vmem:[%s4569_s26 + $0x2e4] sm:$0xf] %v3345_v45 }
  0xc0   : > { %3348 = vst [vmem:[%s4569_s26 + $0x2f0] sm:$0xf] %v3347_v46 }
  0xc1   : > { %3350 = vst [vmem:[%s4569_s26 + $0x2fc] sm:$0xf] %v3349_v47 }
  0xc2   : > { %3352 = vst [vmem:[%s4569_s26 + $0x308] sm:$0xf] %v3351_v48 }
  0xc3   : > { %3354 = vst [vmem:[%s4569_s26 + $0x314] sm:$0xf] %v3353_v49 }
  0xc4   : > { %3356 = vst [vmem:[%s4569_s26 + $0x320] sm:$0xf] %v3355_v50 }
  0xc5   : > { %3358 = vst [vmem:[%s4569_s26 + $0x32c] sm:$0xf] %v3357_v51 }
  0xc6   : > { %3360 = vst [vmem:[%s4569_s26 + $0x338] sm:$0xf] %v3359_v52 }
  0xc7   : > { %3362 = vst [vmem:[%s4569_s26 + $0x344] sm:$0xf] %v3361_v53 }
  0xc8   : > { %3364 = vst [vmem:[%s4569_s26 + $0x350] sm:$0xf] %v3363_v54 }
  0xc9   : > { %3366 = vst [vmem:[%s4569_s26 + $0x35c] sm:$0xf] %v3365_v55 }
  0xca   : > { %3368 = vst [vmem:[%s4569_s26 + $0x368] sm:$0xf] %v3367_v56 }
  0xcb   : > { %3370 = vst [vmem:[%s4569_s26 + $0x374] sm:$0xf] %v3369_v57 }
  0xcc   : > { %3372 = vst [vmem:[%s4569_s26 + $0x380] sm:$0xf] %v3371_v58 }
  0xcd   : > { %3374 = vst [vmem:[%s4569_s26 + $0x38c] sm:$0xf] %v3373_v59 }
  0xce   : > { %3376 = vst [vmem:[%s4569_s26 + $0x398] sm:$0xf] %v3375_v60 }
  0xcf   : > { %3378 = vst [vmem:[%s4569_s26 + $0x3a4] sm:$0xf] %v3377_v61 }
  0xd0   : > { %3380 = vst [vmem:[%s4569_s26 + $0x3b0] sm:$0xf] %v3379_v62 }
  0xd1   : > { %3382 = vst [vmem:[%s4569_s26 + $0x3bc] sm:$0xf] %v3381_v63 }
  0xd2   : > { %3384 = vst [vmem:[%s4569_s26 + $0x3c8] sm:$0xf] %v3383_v0 }
  0xd3   : > { %3386 = vst [vmem:[%s4569_s26 + $0x3d4] sm:$0xf] %v3385_v1 }
  0xd4   : > { %3388 = vst [vmem:[%s4569_s26 + $0x3e0] sm:$0xf] %v3387_v2 }
  0xd5   : > { %3390 = vst [vmem:[%s4569_s26 + $0x3ec] sm:$0xf] %v3389_v3 }
  0xd6   : > { %3392 = vst [vmem:[%s4569_s26 + $0x3f8] sm:$0xf] %v3391_v4 }
  0xd7   : > { %3394 = vst [vmem:[%s4569_s26 + $0x404] sm:$0xf] %v3393_v5 }
  0xd8   : > { %3396 = vst [vmem:[%s4569_s26 + $0x410] sm:$0xf] %v3395_v6 }
  0xd9   : > { %3398 = vst [vmem:[%s4569_s26 + $0x41c] sm:$0xf] %v3397_v7 }
  0xda   : > { %3400 = vst [vmem:[%s4569_s26 + $0x428] sm:$0xf] %v3399_v8 }
  0xdb   : > { %3402 = vst [vmem:[%s4569_s26 + $0x434] sm:$0xf] %v3401_v9 }
  0xdc   : > { %3404 = vst [vmem:[%s4569_s26 + $0x440] sm:$0xf] %v3403_v10 }
  0xdd   : > { %3406 = vst [vmem:[%s4569_s26 + $0x44c] sm:$0xf] %v3405_v11 }
  0xde   : > { %3408 = vst [vmem:[%s4569_s26 + $0x458] sm:$0xf] %v3407_v12 }
  0xdf   : > { %3410 = vst [vmem:[%s4569_s26 + $0x464] sm:$0xf] %v3409_v13 }
  0xe0   : > { %3412 = vst [vmem:[%s4569_s26 + $0x470] sm:$0xf] %v3411_v14 }
  0xe1   : > { %3414 = vst [vmem:[%s4569_s26 + $0x47c] sm:$0xf] %v3413_v15 }
  0xe2   : > { %3416 = vst [vmem:[%s4569_s26 + $0x488] sm:$0xf] %v3415_v16 }
  0xe3   : > { %3418 = vst [vmem:[%s4569_s26 + $0x494] sm:$0xf] %v3417_v17 }
  0xe4   : > { %3420 = vst [vmem:[%s4569_s26 + $0x4a0] sm:$0xf] %v3419_v18 }
  0xe5   : > { %3422 = vst [vmem:[%s4569_s26 + $0x4ac] sm:$0xf] %v3421_v19 }
  0xe6   : > { %3424 = vst [vmem:[%s4569_s26 + $0x4b8] sm:$0xf] %v3423_v20 }
  0xe7   : > { %3426 = vst [vmem:[%s4569_s26 + $0x4c4] sm:$0xf] %v3425_v21 }
  0xe8   : > { %3428 = vst [vmem:[%s4569_s26 + $0x4d0] sm:$0xf] %v3427_v22 }
  0xe9   : > { %3430 = vst [vmem:[%s4569_s26 + $0x4dc] sm:$0xf] %v3429_v23 }
  0xea   : > { %3432 = vst [vmem:[%s4569_s26 + $0x4e8] sm:$0xf] %v3431_v24 }
  0xeb   : > { %3434 = vst [vmem:[%s4569_s26 + $0x4f4] sm:$0xf] %v3433_v25 }
  0xec   : > { %3436 = vst [vmem:[%s4569_s26 + $0x500] sm:$0xf] %v3435_v26 }
  0xed   : > { %3438 = vst [vmem:[%s4569_s26 + $0x50c] sm:$0xf] %v3437_v27 }
  0xee   : > { %3440 = vst [vmem:[%s4569_s26 + $0x518] sm:$0xf] %v3439_v28 }
  0xef   : > { %3442 = vst [vmem:[%s4569_s26 + $0x524] sm:$0xf] %v3441_v29 }
  0xf0   : > { %3444 = vst [vmem:[%s4569_s26 + $0x530] sm:$0xf] %v3443_v30 }
  0xf1   : > { %3446 = vst [vmem:[%s4569_s26 + $0x53c] sm:$0xf] %v3445_v31 }
  0xf2 PF: > { %p3447_p5 = scmp.ge.s32.totalorder %s4508_s14, 1  ;;  %p613_p6 = scmp.lt.s32.totalorder %s4508_s14, 3 }
  0xf4   : > { %p614_p7 = pnand %p3447_p5, %p613_p6 }
  0xf6   : > { %617 = sbr.rel (%p614_p7) target bundleno = 1099 (0x44b), region = 54 }
  0xfb   : > { %v4426_v32 = vld [vmem:[%s6042_s1 + $0x38] sm:$0xff]  ;;  %v5024_v33 = vld [vmem:[%s6042_s1 + $0x88] sm:$0xff]  ;;  %s620_s6 = sand.u32 1, %s4500_s12   ;;  %v4425_v35 = vld [vmem:[%s6042_s1 + $0x30] sm:$0xff]  ;;  %vm1863_vm0 = vcmask 261120   ;;  %s644_s29 = smul.u32 28, %s3218_s15 }
  0xfc   : > { %v4434_v34 = vld [vmem:[%s6042_s1 + $0x78] sm:$0xff]  ;;  %s4457_s7 = smul.u32 1344, %s620_s6  ;;  %2032 = vmatpush.bf16.msra.mxu0 %v4426_v32  ;;  %4437 = vmatpush.bf16.msra.mxu3 %v4426_v32  ;;  %v5037_v36 = vld [vmem:[%s6042_s1 + $0x80] sm:$0xff]  ;;  %v4433_v37 = vld [vmem:[%s6042_s1 + $0x70] sm:$0xff]  ;;  %vm3123_vm1 = vcmask 519168  }
  0xfd   : > { %2616 = vmatpush.bf16.msra.mxu2 %v5024_v33  ;;  %2321 = vmatpush.bf16.msra.mxu1 %v4434_v34  ;;  %v4424_v41 = vld [vmem:[%s6042_s1 + $0x28] sm:$0xff]  ;;  %v4423_v43 = vld [vmem:[%s6042_s1 + $0x20] sm:$0xff]  ;;  %v4422_v45 = vld [vmem:[%s6042_s1 + $0x18] sm:$0xff]  ;;  %p645_p8 = scmp.lt.s32.totalorder %s644_s29, 55 }
  0xfe   : > { %s5042_s12 = scalar_lea.vmem [#allocation2], %s4457_s7  ;;  %v4432_v42 = vld [vmem:[%s6042_s1 + $0x68] sm:$0xff]  ;;  %v4431_v44 = vld [vmem:[%s6042_s1 + $0x60] sm:$0xff]  ;;  %v4430_v46 = vld [vmem:[%s6042_s1 + $0x58] sm:$0xff] }
  0xff   : > { %v3459_v38 = vld [vmem:[%s5042_s12 + $0x8] sm:$0xf]  ;;  %v4253_v39 = vld [vmem:[%s5042_s12 + $0x10] sm:$0xf0]  ;;  %v3471_v49 = vld [vmem:[%s5042_s12 + $0x20] sm:$0xf] }
 0x100   : > { %2033 = vmatpush.bf16.msra.mxu0 %v4425_v35  ;;  %4438 = vmatpush.bf16.msra.mxu3 %v4425_v35  ;;  %v3460_v40 = vor.u32 %v4253_v39, %v3459_v38  ;;  %v4421_v47 = vld [vmem:[%s6042_s1 + $0x10] sm:$0xff]  ;;  %v4256_v50 = vld [vmem:[%s5042_s12 + $0x28] sm:$0xf0]  ;;  %v4419_v54 = vld [vmem:[%s6042_s1] sm:$0xff]  ;;  %s6121_s29 = smov (!%p645_p8, %s644_s29), 55 }
 0x101   : > { %2617 = vmatpush.bf16.msra.mxu2 %v5037_v36  ;;  %2322 = vmatpush.bf16.msra.mxu1 %v4433_v37  ;;  %v4429_v48 = vld [vmem:[%s6042_s1 + $0x50] sm:$0xff]  ;;  %v3472_v51 = vor.u32 %v4256_v50, %v3471_v49  ;;  %v4420_v52 = vld [vmem:[%s6042_s1 + $0x8] sm:$0xff]  ;;  %v4427_v55 = vld [vmem:[%s6042_s1 + $0x40] sm:$0xff]  ;;  %s3448_s14 = sshll.u32 %s6121_s29, 2 }
 0x102   : > { %v4428_v53 = vld [vmem:[%s6042_s1 + $0x48] sm:$0xff]  ;;  %v3451_v56 = vld [vmem:[%s5042_s12] sm:$0xf]  ;;  %v3955_v58 = vld [vmem:[%s5042_s12 + $0x3f0] sm:$0xf]  ;;  %s5857_s4 = scalar_lea.vmem %s6044_s3, %s3448_s14 }
 0x103   : > { %v4252_v57 = vld [vmem:[%s5042_s12 + $0x8] sm:$0xf0]  ;;  %v4378_v59 = vld [vmem:[%s5042_s12 + $0x3f8] sm:$0xf0]  ;;  %v4251_v60 = vld [vmem:[%s5042_s12 + $0x4] sm:$0xf] }
 0x104   : > { %4193 = vmatmul.msk.bf16.vlgmr.msra.gmra.mxu2 %vm1863_vm0, %v3460_v40  ;;  %2034 = vmatpush.bf16.msra.mxu0 %v4424_v41  ;;  %v3453_v61 = vld [vmem:[%s5042_s12 + $0xc] sm:$0xf0]  ;;  %v3452_v62 = vor.u32 %v4252_v57, %v3451_v56  ;;  %v3956_v63 = vor.u32 %v4378_v59, %v3955_v58  ;;  %v3483_v1 = vld [vmem:[%s5042_s12 + $0x38] sm:$0xf]  ;;  %v4259_v2 = vld [vmem:[%s5042_s12 + $0x40] sm:$0xf0] }
 0x105   : > { %4439 = vmatpush.bf16.msra.mxu3 %v4424_v41  ;;  %2323 = vmatpush.bf16.msra.mxu1 %v4432_v42  ;;  %v3456_v0 = vor.u32 %v4251_v60, %v3453_v61  ;;  %v3484_v3 = vor.u32 %v4259_v2, %v3483_v1  ;;  %v3463_v4 = vld [vmem:[%s5042_s12 + $0x18] sm:$0xf]  ;;  %v4255_v5 = vld [vmem:[%s5042_s12 + $0x20] sm:$0xf0]  ;;  %v3967_v6 = vld [vmem:[%s5042_s12 + $0x408] sm:$0xf] }
 0x106   : > { %v4381_v7 = vld [vmem:[%s5042_s12 + $0x410] sm:$0xf0]  ;;  %v4254_v8 = vld [vmem:[%s5042_s12 + $0x1c] sm:$0xf]  ;;  %v3465_v9 = vld [vmem:[%s5042_s12 + $0x24] sm:$0xf0]  ;;  %v3464_v10 = vor.u32 %v4255_v5, %v3463_v4 }
 0x107   : > { %v3968_v11 = vor.u32 %v4381_v7, %v3967_v6  ;;  %v3468_v12 = vor.u32 %v4254_v8, %v3465_v9  ;;  %v3495_v13 = vld [vmem:[%s5042_s12 + $0x50] sm:$0xf]  ;;  %v4262_v14 = vld [vmem:[%s5042_s12 + $0x58] sm:$0xf0]  ;;  %v3979_v18 = vld [vmem:[%s5042_s12 + $0x420] sm:$0xf] }
 0x108   : > { %2035 = vmatpush.bf16.msra.mxu0 %v4423_v43  ;;  %v3496_v15 = vor.u32 %v4262_v14, %v3495_v13  ;;  %v3475_v16 = vld [vmem:[%s5042_s12 + $0x30] sm:$0xf]  ;;  %v4258_v17 = vld [vmem:[%s5042_s12 + $0x38] sm:$0xf0]  ;;  %v4384_v19 = vld [vmem:[%s5042_s12 + $0x428] sm:$0xf0] }
 0x109   : > { %4440 = vmatpush.bf16.msra.mxu3 %v4423_v43  ;;  %2324 = vmatpush.bf16.msra.mxu1 %v4431_v44  ;;  %v4257_v20 = vld [vmem:[%s5042_s12 + $0x34] sm:$0xf]  ;;  %v3477_v21 = vld [vmem:[%s5042_s12 + $0x3c] sm:$0xf0]  ;;  %v3476_v22 = vor.u32 %v4258_v17, %v3475_v16  ;;  %v3980_v23 = vor.u32 %v4384_v19, %v3979_v18  ;;  %v3507_v25 = vld [vmem:[%s5042_s12 + $0x68] sm:$0xf] }
 0x10a   : > { %v3480_v24 = vor.u32 %v4257_v20, %v3477_v21  ;;  %v4265_v26 = vld [vmem:[%s5042_s12 + $0x70] sm:$0xf0]  ;;  %v3487_v28 = vld [vmem:[%s5042_s12 + $0x48] sm:$0xf]  ;;  %v3991_v30 = vld [vmem:[%s5042_s12 + $0x438] sm:$0xf] }
 0x10b   : > { %v3508_v27 = vor.u32 %v4265_v26, %v3507_v25  ;;  %v4261_v29 = vld [vmem:[%s5042_s12 + $0x50] sm:$0xf0]  ;;  %v4387_v31 = vld [vmem:[%s5042_s12 + $0x440] sm:$0xf0]  ;;  %v4260_v32 = vld [vmem:[%s5042_s12 + $0x4c] sm:$0xf] }
 0x10c   : > { %2036 = vmatpush.bf16.msra.mxu0 %v4422_v45  ;;  %v3992_v35 = vor.u32 %v4387_v31, %v3991_v30  ;;  %v4268_v38 = vld [vmem:[%s5042_s12 + $0x88] sm:$0xf0]  ;;  %v3499_v40 = vld [vmem:[%s5042_s12 + $0x60] sm:$0xf]  ;;  %v4390_v43 = vld [vmem:[%s5042_s12 + $0x458] sm:$0xf0] }
 0x10d   : > { %4441 = vmatpush.bf16.msra.mxu3 %v4422_v45  ;;  %2325 = vmatpush.bf16.msra.mxu1 %v4430_v46  ;;  %v4264_v41 = vld [vmem:[%s5042_s12 + $0x68] sm:$0xf0]  ;;  %v3501_v45 = vld [vmem:[%s5042_s12 + $0x6c] sm:$0xf0]  ;;  %v3531_v49 = vld [vmem:[%s5042_s12 + $0x98] sm:$0xf] }
 0x10e   : > { %v4271_v50 = vld [vmem:[%s5042_s12 + $0xa0] sm:$0xf0]  ;;  %v4266_v56 = vld [vmem:[%s5042_s12 + $0x7c] sm:$0xf]  ;;  %v3513_v57 = vld [vmem:[%s5042_s12 + $0x84] sm:$0xf0] }
 0x10f   : > { %v3516_v60 = vor.u32 %v4266_v56, %v3513_v57  ;;  %v3543_v61 = vld [vmem:[%s5042_s12 + $0xb0] sm:$0xf]  ;;  %v4270_v1 = vld [vmem:[%s5042_s12 + $0x98] sm:$0xf0]  ;;  %v4027_v2 = vld [vmem:[%s5042_s12 + $0x480] sm:$0xf] }
 0x110   : > { %2037 = vmatpush.bf16.msra.mxu0 %v4421_v47  ;;  %v4269_v4 = vld [vmem:[%s5042_s12 + $0x94] sm:$0xf]  ;;  %v3525_v5 = vld [vmem:[%s5042_s12 + $0x9c] sm:$0xf0]  ;;  %v3555_v9 = vld [vmem:[%s5042_s12 + $0xc8] sm:$0xf] }
 0x111   : > { %4442 = vmatpush.bf16.msra.mxu3 %v4421_v47  ;;  %2326 = vmatpush.bf16.msra.mxu1 %v4429_v48  ;;  %v3528_v8 = vor.u32 %v4269_v4, %v3525_v5  ;;  %v4273_v13 = vld [vmem:[%s5042_s12 + $0xb0] sm:$0xf0]  ;;  %v4039_v14 = vld [vmem:[%s5042_s12 + $0x498] sm:$0xf]  ;;  %v4272_v16 = vld [vmem:[%s5042_s12 + $0xac] sm:$0xf] }
 0x112   : > { %v3537_v17 = vld [vmem:[%s5042_s12 + $0xb4] sm:$0xf0]  ;;  %v5163_v26 = vld [vmem:[%s6043_s2] ss:$0 sm:$0xff]  ;;  %v4402_v30 = vld [vmem:[%s5042_s12 + $0x4b8] sm:$0xf0] }
 0x113   : > { %v3540_v21 = vor.u32 %v4272_v16, %v3537_v17  ;;  %v4275_v31 = vld [vmem:[%s5042_s12 + $0xc4] sm:$0xf]  ;;  %v4278_v56 = vld [vmem:[%s5042_s12 + $0xdc] sm:$0xf]  ;;  %v3561_v57 = vld [vmem:[%s5042_s12 + $0xe4] sm:$0xf0] }
 0x114   : > { %4194 = vmatmul.msk.bf16.gmra.mxu2 %vm1863_vm0, %v3472_v51  ;;  %2038 = vmatpush.bf16.msra.mxu0 %v4420_v52  ;;  %v3532_v51 = vor.u32 %v4271_v50, %v3531_v49  ;;  %v3591_v4 = vld [vmem:[%s5042_s12 + $0x110] sm:$0xf]  ;;  %v4286_v5 = vld [vmem:[%s5042_s12 + $0x118] sm:$0xf0]  ;;  %v4408_v17 = vld [vmem:[%s5042_s12 + $0x4e8] sm:$0xf0] }
 0x115   : > { %4443 = vmatpush.bf16.msra.mxu3 %v4420_v52  ;;  %2327 = vmatpush.bf16.msra.mxu1 %v4428_v53  ;;  %v3511_v52 = vld [vmem:[%s5042_s12 + $0x78] sm:$0xf] }
 0x118   : > { %2039 = vmatpush.bf16.msra.mxu0 %v4419_v54 }
 0x119   : > { %4444 = vmatpush.bf16.msra.mxu3 %v4419_v54  ;;  %2328 = vmatpush.bf16.msra.mxu1 %v4427_v55  ;;  %v4015_v54 = vld [vmem:[%s5042_s12 + $0x468] sm:$0xf] }
 0x11b   : > { %2040 = vmatmul.bf16.vlgmr.msra.gmra.mxu0 %v3452_v62  ;;  %v4274_v62 = vld [vmem:[%s5042_s12 + $0xb8] sm:$0xf0] }
 0x11c   : > { %2250 = vmatmul.bf16.vlgmr.msra.gmra.mxu3 %v3956_v63  ;;  %2329 = vmatmul.bf16.vlgmr.msra.gmra.mxu1 %v3456_v0  ;;  %v3544_v63 = vor.u32 %v4274_v62, %v3543_v61  ;;  %v3523_v0 = vld [vmem:[%s5042_s12 + $0x90] sm:$0xf] }
 0x11d   : > { %4445 = vmatpush.bf16.msrb.mxu3 %v4434_v34  ;;  %v3488_v34 = vor.u32 %v4261_v29, %v3487_v28  ;;  %v3524_v6 = vor.u32 %v4270_v1, %v3523_v0  ;;  %v4276_v28 = vld [vmem:[%s5042_s12 + $0xc8] sm:$0xf0]  ;;  %v4051_v29 = vld [vmem:[%s5042_s12 + $0x4b0] sm:$0xf] }
 0x121   : > { %4446 = vmatpush.bf16.msrb.mxu3 %v4433_v37  ;;  %v3519_v37 = vld [vmem:[%s5042_s12 + $0x80] sm:$0xf] }
 0x122   : > { %v3520_v39 = vor.u32 %v4268_v38, %v3519_v37 }
 0x124   : > { %4195 = vmatmul.msk.bf16.gmra.mxu2 %vm1863_vm0, %v3484_v3  ;;  %v4396_v3 = vld [vmem:[%s5042_s12 + $0x488] sm:$0xf0] }
 0x125   : > { %4447 = vmatpush.bf16.msrb.mxu3 %v4432_v42  ;;  %v4003_v42 = vld [vmem:[%s5042_s12 + $0x450] sm:$0xf]  ;;  %v4028_v7 = vor.u32 %v4396_v3, %v4027_v2 }
 0x126   : > { %v4004_v47 = vor.u32 %v4390_v43, %v4003_v42  ;;  %v3579_v42 = vld [vmem:[%s5042_s12 + $0xf8] sm:$0xf]  ;;  %v4283_v43 = vld [vmem:[%s5042_s12 + $0x100] sm:$0xf0] }
 0x129   : > { %4448 = vmatpush.bf16.msrb.mxu3 %v4431_v44  ;;  %v4263_v44 = vld [vmem:[%s5042_s12 + $0x64] sm:$0xf] }
 0x12b   : > { %2045 = vmatmul.bf16.gmra.mxu0 %v3464_v10  ;;  %v4277_v10 = vld [vmem:[%s5042_s12 + $0xd0] sm:$0xf0] }
 0x12c   : > { %2255 = vmatmul.bf16.gmra.mxu3 %v3968_v11  ;;  %2334 = vmatmul.bf16.gmra.mxu1 %v3468_v12  ;;  %v3556_v11 = vor.u32 %v4277_v10, %v3555_v9  ;;  %v3535_v12 = vld [vmem:[%s5042_s12 + $0xa8] sm:$0xf]  ;;  %v3592_v9 = vor.u32 %v4286_v5, %v3591_v4 }
 0x12d   : > { %4449 = vmatpush.bf16.msrb.mxu3 %v4430_v46  ;;  %v3500_v46 = vor.u32 %v4264_v41, %v3499_v40  ;;  %v3536_v19 = vor.u32 %v4273_v13, %v3535_v12  ;;  %v3571_v13 = vld [vmem:[%s5042_s12 + $0xf0] sm:$0xf] }
 0x131   : > { %4450 = vmatpush.bf16.msrb.mxu3 %v4429_v48  ;;  %v3504_v48 = vor.u32 %v4263_v44, %v3501_v45 }
 0x134   : > { %4196 = vmatmul.msk.bf16.gmra.mxu2 %vm1863_vm0, %v3496_v15  ;;  %v4399_v15 = vld [vmem:[%s5042_s12 + $0x4a0] sm:$0xf0] }
 0x135   : > { %4451 = vmatpush.bf16.msrb.mxu3 %v4428_v53  ;;  %v4267_v53 = vld [vmem:[%s5042_s12 + $0x80] sm:$0xf0]  ;;  %v4040_v20 = vor.u32 %v4399_v15, %v4039_v14  ;;  %v4282_v14 = vld [vmem:[%s5042_s12 + $0xf8] sm:$0xf0]  ;;  %v4075_v15 = vld [vmem:[%s5042_s12 + $0x4e0] sm:$0xf] }
 0x136   : > { %v3512_v58 = vor.u32 %v4267_v53, %v3511_v52  ;;  %v4279_v52 = vld [vmem:[%s5042_s12 + $0xe0] sm:$0xf0]  ;;  %v4063_v53 = vld [vmem:[%s5042_s12 + $0x4c8] sm:$0xf] }
 0x139   : > { %4452 = vmatpush.bf16.msrb.mxu3 %v4427_v55  ;;  %v4393_v55 = vld [vmem:[%s5042_s12 + $0x470] sm:$0xf0] }
 0x13a   : > { %v4016_v59 = vor.u32 %v4393_v55, %v4015_v54  ;;  %v4405_v55 = vld [vmem:[%s5042_s12 + $0x4d0] sm:$0xf0] }
 0x13b   : > { %2050 = vmatmul.bf16.gmra.mxu0 %v3476_v22  ;;  %v3567_v22 = vld [vmem:[%s5042_s12 + $0xe0] sm:$0xf]  ;;  %v4064_v62 = vor.u32 %v4405_v55, %v4063_v53 }
 0x13c   : > { %2260 = vmatmul.bf16.gmra.mxu3 %v3980_v23  ;;  %2339 = vmatmul.bf16.gmra.mxu1 %v3480_v24  ;;  %v4280_v23 = vld [vmem:[%s5042_s12 + $0xe8] sm:$0xf0] }
 0x13d   : > { %4453 = vmatpush.bf16.msra.mxu3 %v5024_v33  ;;  %v3489_v33 = vld [vmem:[%s5042_s12 + $0x54] sm:$0xf0]  ;;  %v3568_v25 = vor.u32 %v4280_v23, %v3567_v22  ;;  %v3572_v22 = vor.u32 %v4282_v14, %v3571_v13  ;;  %v4287_v13 = vld [vmem:[%s5042_s12 + $0x124] sm:$0xf]  ;;  %v3597_v14 = vld [vmem:[%s5042_s12 + $0x12c] sm:$0xf0] }
 0x141   : > { %4454 = vmatpush.bf16.msra.mxu3 %v5037_v36  ;;  %v3492_v36 = vor.u32 %v4260_v32, %v3489_v33  ;;  %v3549_v32 = vld [vmem:[%s5042_s12 + $0xcc] sm:$0xf0] }
 0x142   : > { %v3552_v37 = vor.u32 %v4275_v31, %v3549_v32  ;;  %v3603_v31 = vld [vmem:[%s5042_s12 + $0x128] sm:$0xf]  ;;  %v4289_v32 = vld [vmem:[%s5042_s12 + $0x130] sm:$0xf0] }
 0x144   : > { %4197 = vmatmul.msk.bf16.gmra.mxu2 %vm1863_vm0, %v3508_v27  ;;  %v3547_v27 = vld [vmem:[%s5042_s12 + $0xc0] sm:$0xf] }
 0x14b   : > { %2055 = vmatmul.bf16.gmra.mxu0 %v3488_v34  ;;  %v3548_v34 = vor.u32 %v4276_v28, %v3547_v27 }
 0x14c   : > { %2265 = vmatmul.bf16.gmra.mxu3 %v3992_v35  ;;  %2344 = vmatmul.bf16.gmra.mxu1 %v3492_v36  ;;  %v4052_v36 = vor.u32 %v4402_v30, %v4051_v29 }
 0x154   : > { %4198 = vmatmul.msk.bf16.gmra.mxu2 %vm1863_vm0, %v3520_v39 }
 0x15b   : > { %2060 = vmatmul.bf16.gmra.mxu0 %v3500_v46 }
 0x15c   : > { %2270 = vmatmul.bf16.gmra.mxu3 %v4004_v47  ;;  %2349 = vmatmul.bf16.gmra.mxu1 %v3504_v48  ;;  %v3580_v47 = vor.u32 %v4283_v43, %v3579_v42  ;;  %v4285_v42 = vld [vmem:[%s5042_s12 + $0x110] sm:$0xf0]  ;;  %v4087_v43 = vld [vmem:[%s5042_s12 + $0x4f8] sm:$0xf] }
 0x164   : > { %4199 = vmatmul.msk.bf16.gmra.mxu2 %vm1863_vm0, %v3532_v51  ;;  %v3559_v51 = vld [vmem:[%s5042_s12 + $0xd8] sm:$0xf] }
 0x16b   : > { %2065 = vmatmul.bf16.gmra.mxu0 %v3512_v58 }
 0x16c   : > { %2275 = vmatmul.bf16.gmra.mxu3 %v4016_v59  ;;  %2354 = vmatmul.bf16.gmra.mxu1 %v3516_v60  ;;  %v3560_v60 = vor.u32 %v4279_v52, %v3559_v51 }
 0x174   : > { %4200 = vmatmul.msk.bf16.gmra.mxu2 %vm1863_vm0, %v3544_v63  ;;  %v3564_v63 = vor.u32 %v4278_v56, %v3561_v57 }
 0x17b   : > { %2070 = vmatmul.bf16.gmra.mxu0 %v3524_v6 }
 0x17c   : > { %2280 = vmatmul.bf16.gmra.mxu3 %v4028_v7  ;;  %2359 = vmatmul.bf16.gmra.mxu1 %v3528_v8 }
 0x184   : > { %4201 = vmatmul.msk.bf16.gmra.mxu2 %vm1863_vm0, %v3556_v11 }
 0x187   : > { %v2619_v18 = vpop.f32.mrf.mxu2 }
 0x18b   : > { %2075 = vmatmul.bf16.gmra.mxu0 %v3536_v19  ;;  %v3573_v19 = vld [vmem:[%s5042_s12 + $0xfc] sm:$0xf0] }
 0x18c   : > { %2285 = vmatmul.bf16.gmra.mxu3 %v4040_v20  ;;  %2364 = vmatmul.bf16.gmra.mxu1 %v3540_v21 }
 0x18f   : > { %v2621_v24 = vpop.f32.mrf.mxu2 }
 0x194   : > { %4202 = vmatmul.msk.bf16.gmra.mxu2 %vm1863_vm0, %v3568_v25 }
 0x197   : > { %v2624_v33 = vpop.f32.mrf.mxu2 }
 0x198   : > { %v2041_v35 = vpop.f32.mrf.mxu0 }
 0x199   : > { %v2042_v38 = vadd.f32 %v5163_v26, %v2041_v35  ;;  %v2330_v39 = vpop.f32.mrf.mxu1 }
 0x19b   : > { %v2331_v40 = vadd.f32 %v2330_v39, %v2042_v38  ;;  %2080 = vmatmul.bf16.gmra.mxu0 %v3548_v34 }
 0x19c   : > { %2290 = vmatmul.bf16.gmra.mxu3 %v4052_v36  ;;  %2369 = vmatmul.bf16.gmra.mxu1 %v3552_v37  ;;  %v3604_v36 = vor.u32 %v4289_v32, %v3603_v31 }
 0x19d   : > { %v5173_v41 = vadd.f32 %v2619_v18, %v2331_v40  ;;  %v4281_v18 = vld [vmem:[%s5042_s12 + $0xf4] sm:$0xf]  ;;  %v3583_v40 = vld [vmem:[%s5042_s12 + $0x108] sm:$0xf] }
 0x19e   : > { %v3576_v25 = vor.u32 %v4281_v18, %v3573_v19  ;;  %v3584_v51 = vor.u32 %v4285_v42, %v3583_v40  ;;  %v4291_v40 = vld [vmem:[%s5042_s12 + $0x140] sm:$0xf0]  ;;  %v4111_v42 = vld [vmem:[%s5042_s12 + $0x528] sm:$0xf] }
 0x19f   : > { %v5177_v44 = vpop.f32.mrf.mxu3  ;;  %v2626_v45 = vpop.f32.mrf.mxu2 }
 0x1a0   : > { %v2043_v46 = vpop.f32.mrf.mxu0 }
 0x1a1   : > { %v2044_v48 = vadd.f32 %v5163_v26, %v2043_v46  ;;  %v2332_v49 = vpop.f32.mrf.mxu1  ;;  %v4411_v46 = vld [vmem:[%s5042_s12 + $0x500] sm:$0xf0] }
 0x1a2   : > { %v4088_v53 = vor.u32 %v4411_v46, %v4087_v43  ;;  %v4417_v46 = vld [vmem:[%s5042_s12 + $0x530] sm:$0xf0] }
 0x1a3   : > { %v2333_v50 = vadd.f32 %v2332_v49, %v2044_v48  ;;  %v3585_v48 = vld [vmem:[%s5042_s12 + $0x114] sm:$0xf0] }
 0x1a4   : > { %4203 = vmatmul.msk.bf16.gmra.mxu2 %vm1863_vm0, %v3580_v47  ;;  %v4284_v47 = vld [vmem:[%s5042_s12 + $0x10c] sm:$0xf] }
 0x1a5   : > { %v5184_v54 = vadd.f32 %v2621_v24, %v2333_v50  ;;  %v4076_v24 = vor.u32 %v4408_v17, %v4075_v15  ;;  %v3588_v55 = vor.u32 %v4284_v47, %v3585_v48  ;;  %v4290_v47 = vld [vmem:[%s5042_s12 + $0x13c] sm:$0xf]  ;;  %v3609_v48 = vld [vmem:[%s5042_s12 + $0x144] sm:$0xf0] }
 0x1a7   : > { %v5189_v58 = vpop.f32.mrf.mxu3  ;;  %v2629_v59 = vpop.f32.mrf.mxu2 }
 0x1a8   : > { %v2046_v61 = vpop.f32.mrf.mxu0 }
 0x1a9   : > { %v2047_v0 = vadd.f32 %v5163_v26, %v2046_v61  ;;  %v2335_v1 = vpop.f32.mrf.mxu1  ;;  %v3615_v61 = vld [vmem:[%s5042_s12 + $0x140] sm:$0xf] }
 0x1ab   : > { %v2336_v2 = vadd.f32 %v2335_v1, %v2047_v0  ;;  %2085 = vmatmul.bf16.gmra.mxu0 %v3560_v60 }
 0x1ac   : > { %2295 = vmatmul.bf16.gmra.mxu3 %v4064_v62  ;;  %2374 = vmatmul.bf16.gmra.mxu1 %v3564_v63  ;;  %v4292_v62 = vld [vmem:[%s5042_s12 + $0x148] sm:$0xf0] }
 0x1ad   : > { %v5192_v3 = vadd.f32 %v2624_v33, %v2336_v2  ;;  %v3616_v2 = vor.u32 %v4292_v62, %v3615_v61 }
 0x1af   : > { %v5196_v6 = vpop.f32.mrf.mxu3  ;;  %v2631_v7 = vpop.f32.mrf.mxu2 }
 0x1b0   : > { %v2048_v8 = vpop.f32.mrf.mxu0 }
 0x1b1   : > { %v2049_v10 = vadd.f32 %v5163_v26, %v2048_v8  ;;  %v2337_v11 = vpop.f32.mrf.mxu1  ;;  %v3595_v8 = vld [vmem:[%s5042_s12 + $0x120] sm:$0xf] }
 0x1b3   : > { %v2338_v12 = vadd.f32 %v2337_v11, %v2049_v10  ;;  %v4099_v10 = vld [vmem:[%s5042_s12 + $0x510] sm:$0xf] }
 0x1b4   : > { %4204 = vmatmul.msk.bf16.gmra.mxu2 %vm1863_vm0, %v3592_v9  ;;  %v4288_v9 = vld [vmem:[%s5042_s12 + $0x128] sm:$0xf0] }
 0x1b5   : > { %v5203_v16 = vadd.f32 %v2626_v45, %v2338_v12  ;;  %v4414_v12 = vld [vmem:[%s5042_s12 + $0x518] sm:$0xf0]  ;;  %v3596_v18 = vor.u32 %v4288_v9, %v3595_v8 }
 0x1b7   : > { %v5208_v20 = vpop.f32.mrf.mxu3  ;;  %v2634_v21 = vpop.f32.mrf.mxu2 }
 0x1b8   : > { %v2051_v23 = vpop.f32.mrf.mxu0 }
 0x1b9   : > { %v2052_v27 = vadd.f32 %v5163_v26, %v2051_v23  ;;  %v2340_v28 = vpop.f32.mrf.mxu1 }
 0x1bb   : > { %v2341_v29 = vadd.f32 %v2340_v28, %v2052_v27  ;;  %2090 = vmatmul.bf16.gmra.mxu0 %v3572_v22  ;;  %v3600_v22 = vor.u32 %v4287_v13, %v3597_v14  ;;  %v3627_v28 = vld [vmem:[%s5042_s12 + $0x158] sm:$0xf]  ;;  %v4294_v13 = vld [vmem:[%s5042_s12 + $0x158] sm:$0xf0]  ;;  %v4377_v14 = vld [vmem:[%s5042_s12 + $0x3f4] sm:$0xf] }
 0x1bc   : > { %2300 = vmatmul.bf16.gmra.mxu3 %v4076_v24  ;;  %2379 = vmatmul.bf16.gmra.mxu1 %v3576_v25 }
 0x1bd   : > { %v5211_v30 = vadd.f32 %v2629_v59, %v2341_v29  ;;  %v4295_v29 = vld [vmem:[%s5042_s12 + $0x160] sm:$0xf0] }
 0x1bf   : > { %v5215_v33 = vpop.f32.mrf.mxu3  ;;  %v2636_v34 = vpop.f32.mrf.mxu2 }
 0x1c0   : > { %v2053_v35 = vpop.f32.mrf.mxu0 }
 0x1c1   : > { %v2054_v37 = vadd.f32 %v5163_v26, %v2053_v35  ;;  %v2342_v38 = vpop.f32.mrf.mxu1  ;;  %v3628_v35 = vor.u32 %v4295_v29, %v3627_v28 }
 0x1c3   : > { %v2343_v39 = vadd.f32 %v2342_v38, %v2054_v37 }
 0x1c4   : > { %4205 = vmatmul.msk.bf16.gmra.mxu2 %vm1863_vm0, %v3604_v36 }
 0x1c5   : > { %v5222_v45 = vadd.f32 %v2631_v7, %v2343_v39  ;;  %v3607_v39 = vld [vmem:[%s5042_s12 + $0x138] sm:$0xf] }
 0x1c7   : > { %v5227_v49 = vpop.f32.mrf.mxu3  ;;  %v2639_v50 = vpop.f32.mrf.mxu2 }
 0x1c8   : > { %v2056_v52 = vpop.f32.mrf.mxu0 }
 0x1c9   : > { %v2057_v56 = vadd.f32 %v5163_v26, %v2056_v52  ;;  %v2345_v57 = vpop.f32.mrf.mxu1  ;;  %v3608_v52 = vor.u32 %v4291_v40, %v3607_v39 }
 0x1cb   : > { %v2346_v59 = vadd.f32 %v2345_v57, %v2057_v56  ;;  %2095 = vmatmul.bf16.gmra.mxu0 %v3584_v51  ;;  %v3612_v56 = vor.u32 %v4290_v47, %v3609_v48 }
 0x1cc   : > { %2305 = vmatmul.bf16.gmra.mxu3 %v4088_v53  ;;  %2384 = vmatmul.bf16.gmra.mxu1 %v3588_v55  ;;  %v4112_v55 = vor.u32 %v4417_v46, %v4111_v42 }
 0x1cd   : > { %v5230_v60 = vadd.f32 %v2634_v21, %v2346_v59  ;;  %v4100_v21 = vor.u32 %v4414_v12, %v4099_v10  ;;  %v3619_v12 = vld [vmem:[%s5042_s12 + $0x150] sm:$0xf] }
 0x1cf   : > { %v5234_v63 = vpop.f32.mrf.mxu3  ;;  %v2641_v0 = vpop.f32.mrf.mxu2 }
 0x1d0   : > { %v2058_v1 = vpop.f32.mrf.mxu0 }
 0x1d1   : > { %v2059_v4 = vadd.f32 %v5163_v26, %v2058_v1  ;;  %v2347_v5 = vpop.f32.mrf.mxu1  ;;  %v4298_v1 = vld [vmem:[%s5042_s12 + $0x178] sm:$0xf0] }
 0x1d3   : > { %v2348_v7 = vadd.f32 %v2347_v5, %v2059_v4 }
 0x1d4   : > { %4206 = vmatmul.msk.bf16.gmra.mxu2 %vm1863_vm0, %v3616_v2 }
 0x1d5   : > { %v5241_v11 = vadd.f32 %v2636_v34, %v2348_v7 }
 0x1d7   : > { %v5246_v15 = vpop.f32.mrf.mxu3  ;;  %v2644_v17 = vpop.f32.mrf.mxu2 }
 0x1d8   : > { %v2061_v19 = vpop.f32.mrf.mxu0 }
 0x1d9   : > { %v2062_v23 = vadd.f32 %v5163_v26, %v2061_v19  ;;  %v2350_v24 = vpop.f32.mrf.mxu1  ;;  %v4293_v19 = vld [vmem:[%s5042_s12 + $0x154] sm:$0xf] }
 0x1db   : > { %v2351_v25 = vadd.f32 %v2350_v24, %v2062_v23  ;;  %2100 = vmatmul.bf16.gmra.mxu0 %v3596_v18  ;;  %v3957_v18 = vld [vmem:[%s5042_s12 + $0x3fc] sm:$0xf0]  ;;  %v3620_v24 = vor.u32 %v4294_v13, %v3619_v12 }
 0x1dc   : > { %2310 = vmatmul.bf16.gmra.mxu3 %v4100_v21  ;;  %2389 = vmatmul.bf16.gmra.mxu1 %v3600_v22  ;;  %v3621_v21 = vld [vmem:[%s5042_s12 + $0x15c] sm:$0xf0]  ;;  %v3960_v28 = vor.u32 %v4377_v14, %v3957_v18  ;;  %v4304_v18 = vld [vmem:[%s5042_s12 + $0x1a8] sm:$0xf0] }
 0x1dd   : > { %v5249_v27 = vadd.f32 %v2639_v50, %v2351_v25  ;;  %v3624_v29 = vor.u32 %v4293_v19, %v3621_v21  ;;  %v3663_v14 = vld [vmem:[%s5042_s12 + $0x1a0] sm:$0xf] }
 0x1df   : > { %v5253_v31 = vpop.f32.mrf.mxu3  ;;  %v2646_v32 = vpop.f32.mrf.mxu2 }
 0x1e0   : > { %v2063_v34 = vpop.f32.mrf.mxu0 }
 0x1e1   : > { %v2064_v36 = vadd.f32 %v5163_v26, %v2063_v34  ;;  %v2352_v37 = vpop.f32.mrf.mxu1 }
 0x1e3   : > { %v2353_v38 = vadd.f32 %v2352_v37, %v2064_v36  ;;  %v3651_v37 = vld [vmem:[%s5042_s12 + $0x188] sm:$0xf] }
 0x1e4   : > { %4207 = vmatmul.msk.bf16.gmra.mxu2 %vm1863_vm0, %v3628_v35 }
 0x1e5   : > { %v5260_v43 = vadd.f32 %v2641_v0, %v2353_v38  ;;  %v3639_v0 = vld [vmem:[%s5042_s12 + $0x170] sm:$0xf]  ;;  %v4301_v38 = vld [vmem:[%s5042_s12 + $0x190] sm:$0xf0] }
 0x1e6   : > { %v3640_v7 = vor.u32 %v4298_v1, %v3639_v0  ;;  %v3652_v46 = vor.u32 %v4301_v38, %v3651_v37  ;;  %v4383_v37 = vld [vmem:[%s5042_s12 + $0x424] sm:$0xf]  ;;  %v3981_v38 = vld [vmem:[%s5042_s12 + $0x42c] sm:$0xf0] }
 0x1e7   : > { %v5265_v50 = vpop.f32.mrf.mxu3  ;;  %v2649_v51 = vpop.f32.mrf.mxu2 }
 0x1e8   : > { %v2066_v53 = vpop.f32.mrf.mxu0 }
 0x1e9   : > { %v2067_v57 = vadd.f32 %v5163_v26, %v2066_v53  ;;  %v2355_v59 = vpop.f32.mrf.mxu1  ;;  %v3631_v53 = vld [vmem:[%s5042_s12 + $0x168] sm:$0xf] }
 0x1eb   : > { %v2356_v61 = vadd.f32 %v2355_v59, %v2067_v57  ;;  %2105 = vmatmul.bf16.gmra.mxu0 %v3608_v52  ;;  %v3969_v57 = vld [vmem:[%s5042_s12 + $0x414] sm:$0xf0]  ;;  %v4296_v59 = vld [vmem:[%s5042_s12 + $0x16c] sm:$0xf] }
 0x1ec   : > { %2315 = vmatmul.bf16.gmra.mxu3 %v4112_v55  ;;  %2394 = vmatmul.bf16.gmra.mxu1 %v3612_v56  ;;  %v4297_v55 = vld [vmem:[%s5042_s12 + $0x170] sm:$0xf0]  ;;  %v4380_v56 = vld [vmem:[%s5042_s12 + $0x40c] sm:$0xf] }
 0x1ed   : > { %v5268_v62 = vadd.f32 %v2644_v17, %v2356_v61  ;;  %v3633_v61 = vld [vmem:[%s5042_s12 + $0x174] sm:$0xf0] }
 0x1ef   : > { %v5272_v2 = vpop.f32.mrf.mxu3  ;;  %v2651_v4 = vpop.f32.mrf.mxu2 }
 0x1f0   : > { %v2068_v5 = vpop.f32.mrf.mxu0 }
 0x1f1   : > { %v2069_v8 = vadd.f32 %v5163_v26, %v2068_v5  ;;  %v2357_v9 = vpop.f32.mrf.mxu1  ;;  %v3632_v5 = vor.u32 %v4297_v55, %v3631_v53  ;;  %v3984_v55 = vor.u32 %v4383_v37, %v3981_v38 }
 0x1f3   : > { %v2358_v10 = vadd.f32 %v2357_v9, %v2069_v8  ;;  %v3972_v8 = vor.u32 %v4380_v56, %v3969_v57  ;;  %v3636_v9 = vor.u32 %v4296_v59, %v3633_v61 }
 0x1f4   : > { %4208 = vmatmul.msk.bf16.gmra.mxu2 %vm1863_vm0, %v3640_v7 }
 0x1f5   : > { %v5279_v17 = vadd.f32 %v2646_v32, %v2358_v10 }
 0x1f7   : > { %v5284_v22 = vpop.f32.mrf.mxu3  ;;  %v2654_v23 = vpop.f32.mrf.mxu2 }
 0x1f8   : > { %v2071_v25 = vpop.f32.mrf.mxu0 }
 0x1f9   : > { %v2072_v34 = vadd.f32 %v5163_v26, %v2071_v25  ;;  %v2360_v35 = vpop.f32.mrf.mxu1  ;;  %v3664_v25 = vor.u32 %v4304_v18, %v3663_v14 }
 0x1fb   : > { %v2361_v36 = vadd.f32 %v2360_v35, %v2072_v34  ;;  %2110 = vmatmul.bf16.gmra.mxu0 %v3620_v24  ;;  %v3643_v35 = vld [vmem:[%s5042_s12 + $0x180] sm:$0xf] }
 0x1fc   : > { %2539 = vmatmul.bf16.vlgmr.msrb.gmra.mxu3 %v3960_v28  ;;  %2399 = vmatmul.bf16.gmra.mxu1 %v3624_v29 }
 0x1fd   : > { %v5287_v32 = vadd.f32 %v2649_v51, %v2361_v36  ;;  %v4300_v36 = vld [vmem:[%s5042_s12 + $0x188] sm:$0xf0] }
 0x1ff   : > { %v5291_v39 = vpop.f32.mrf.mxu3  ;;  %v2656_v40 = vpop.f32.mrf.mxu2 }
 0x200   : > { %v2073_v42 = vpop.f32.mrf.mxu0 }
 0x201   : > { %v2074_v47 = vadd.f32 %v5163_v26, %v2073_v42  ;;  %v2362_v48 = vpop.f32.mrf.mxu1  ;;  %v4299_v42 = vld [vmem:[%s5042_s12 + $0x184] sm:$0xf] }
 0x203   : > { %v2363_v52 = vadd.f32 %v2362_v48, %v2074_v47 }
 0x204   : > { %4209 = vmatmul.msk.bf16.gmra.mxu2 %vm1863_vm0, %v3652_v46  ;;  %v3645_v46 = vld [vmem:[%s5042_s12 + $0x18c] sm:$0xf0] }
 0x205   : > { %v5298_v51 = vadd.f32 %v2651_v4, %v2363_v52  ;;  %v3644_v52 = vor.u32 %v4300_v36, %v3643_v35  ;;  %v3648_v56 = vor.u32 %v4299_v42, %v3645_v46  ;;  %v3657_v35 = vld [vmem:[%s5042_s12 + $0x1a4] sm:$0xf0] }
 0x207   : > { %v5303_v0 = vpop.f32.mrf.mxu3  ;;  %v2659_v1 = vpop.f32.mrf.mxu2 }
 0x208   : > { %v2076_v7 = vpop.f32.mrf.mxu0 }
 0x209   : > { %v2077_v10 = vadd.f32 %v5163_v26, %v2076_v7  ;;  %v2365_v12 = vpop.f32.mrf.mxu1  ;;  %v4307_v7 = vld [vmem:[%s5042_s12 + $0x1c0] sm:$0xf0] }
 0x20b   : > { %v2366_v13 = vadd.f32 %v2365_v12, %v2077_v10  ;;  %2115 = vmatmul.bf16.gmra.mxu0 %v3632_v5  ;;  %v3675_v5 = vld [vmem:[%s5042_s12 + $0x1b8] sm:$0xf] }
 0x20c   : > { %2544 = vmatmul.bf16.gmra.mxu3 %v3972_v8  ;;  %2404 = vmatmul.bf16.gmra.mxu1 %v3636_v9  ;;  %v3676_v12 = vor.u32 %v4307_v7, %v3675_v5 }
 0x20d   : > { %v5306_v4 = vadd.f32 %v2654_v23, %v2366_v13 }
 0x20f   : > { %v5310_v19 = vpop.f32.mrf.mxu3  ;;  %v2661_v21 = vpop.f32.mrf.mxu2 }
 0x210   : > { %v2078_v24 = vpop.f32.mrf.mxu0 }
 0x211   : > { %v2079_v28 = vadd.f32 %v5163_v26, %v2078_v24  ;;  %v2367_v29 = vpop.f32.mrf.mxu1  ;;  %v3655_v24 = vld [vmem:[%s5042_s12 + $0x198] sm:$0xf] }
 0x213   : > { %v2368_v34 = vadd.f32 %v2367_v29, %v2079_v28  ;;  %v4386_v28 = vld [vmem:[%s5042_s12 + $0x43c] sm:$0xf]  ;;  %v3993_v29 = vld [vmem:[%s5042_s12 + $0x444] sm:$0xf0] }
 0x214   : > { %4210 = vmatmul.msk.bf16.gmra.mxu2 %vm1863_vm0, %v3664_v25  ;;  %v4303_v25 = vld [vmem:[%s5042_s12 + $0x1a0] sm:$0xf0]  ;;  %v3996_v46 = vor.u32 %v4386_v28, %v3993_v29  ;;  %v4005_v28 = vld [vmem:[%s5042_s12 + $0x45c] sm:$0xf0]  ;;  %v4305_v29 = vld [vmem:[%s5042_s12 + $0x1b4] sm:$0xf] }
 0x215   : > { %v5317_v23 = vadd.f32 %v2656_v40, %v2368_v34  ;;  %v4302_v34 = vld [vmem:[%s5042_s12 + $0x19c] sm:$0xf]  ;;  %v3656_v38 = vor.u32 %v4303_v25, %v3655_v24  ;;  %v4389_v25 = vld [vmem:[%s5042_s12 + $0x454] sm:$0xf] }
 0x216   : > { %v4306_v24 = vld [vmem:[%s5042_s12 + $0x1b8] sm:$0xf0] }
 0x217   : > { %v5322_v47 = vpop.f32.mrf.mxu3  ;;  %v2664_v48 = vpop.f32.mrf.mxu2 }
 0x218   : > { %v2081_v53 = vpop.f32.mrf.mxu0 }
 0x219   : > { %v2082_v57 = vadd.f32 %v5163_v26, %v2081_v53  ;;  %v2370_v59 = vpop.f32.mrf.mxu1 }
 0x21b   : > { %v2371_v61 = vadd.f32 %v2370_v59, %v2082_v57  ;;  %2120 = vmatmul.bf16.gmra.mxu0 %v3644_v52  ;;  %v3660_v52 = vor.u32 %v4302_v34, %v3657_v35  ;;  %v3687_v57 = vld [vmem:[%s5042_s12 + $0x1d0] sm:$0xf]  ;;  %v4310_v59 = vld [vmem:[%s5042_s12 + $0x1d8] sm:$0xf0]  ;;  %v3669_v34 = vld [vmem:[%s5042_s12 + $0x1bc] sm:$0xf0] }
 0x21c   : > { %2549 = vmatmul.bf16.gmra.mxu3 %v3984_v55  ;;  %2409 = vmatmul.bf16.gmra.mxu1 %v3648_v56 }
 0x21d   : > { %v5325_v40 = vadd.f32 %v2659_v1, %v2371_v61 }
 0x21f   : > { %v5329_v8 = vpop.f32.mrf.mxu3  ;;  %v2666_v9 = vpop.f32.mrf.mxu2 }
 0x220   : > { %v2083_v10 = vpop.f32.mrf.mxu0 }
 0x221   : > { %v2084_v13 = vadd.f32 %v5163_v26, %v2083_v10  ;;  %v2372_v14 = vpop.f32.mrf.mxu1  ;;  %v3688_v10 = vor.u32 %v4310_v59, %v3687_v57  ;;  %v3699_v59 = vld [vmem:[%s5042_s12 + $0x1e8] sm:$0xf] }
 0x223   : > { %v2373_v18 = vadd.f32 %v2372_v14, %v2084_v13 }
 0x224   : > { %4211 = vmatmul.msk.bf16.gmra.mxu2 %vm1863_vm0, %v3676_v12 }
 0x225   : > { %v5336_v1 = vadd.f32 %v2661_v21, %v2373_v18  ;;  %v3667_v18 = vld [vmem:[%s5042_s12 + $0x1b0] sm:$0xf] }
 0x227   : > { %v5341_v36 = vpop.f32.mrf.mxu3  ;;  %v2669_v37 = vpop.f32.mrf.mxu2 }
 0x228   : > { %v2086_v42 = vpop.f32.mrf.mxu0 }
 0x229   : > { %v2087_v53 = vadd.f32 %v5163_v26, %v2086_v42  ;;  %v2375_v55 = vpop.f32.mrf.mxu1  ;;  %v3668_v42 = vor.u32 %v4306_v24, %v3667_v18 }
 0x22b   : > { %v2376_v56 = vadd.f32 %v2375_v55, %v2087_v53  ;;  %2125 = vmatmul.bf16.gmra.mxu0 %v3656_v38  ;;  %v3672_v53 = vor.u32 %v4305_v29, %v3669_v34  ;;  %v4309_v29 = vld [vmem:[%s5042_s12 + $0x1d0] sm:$0xf0]  ;;  %v4392_v34 = vld [vmem:[%s5042_s12 + $0x46c] sm:$0xf] }
 0x22c   : > { %2554 = vmatmul.bf16.gmra.mxu3 %v3996_v46  ;;  %2414 = vmatmul.bf16.gmra.mxu1 %v3660_v52  ;;  %v4008_v52 = vor.u32 %v4389_v25, %v4005_v28  ;;  %v3679_v28 = vld [vmem:[%s5042_s12 + $0x1c8] sm:$0xf] }
 0x22d   : > { %v5344_v21 = vadd.f32 %v2664_v48, %v2376_v56 }
 0x22f   : > { %v5348_v61 = vpop.f32.mrf.mxu3  ;;  %v2671_v5 = vpop.f32.mrf.mxu2 }
 0x230   : > { %v2088_v7 = vpop.f32.mrf.mxu0 }
 0x231   : > { %v2089_v12 = vadd.f32 %v5163_v26, %v2088_v7  ;;  %v2377_v13 = vpop.f32.mrf.mxu1  ;;  %v4313_v7 = vld [vmem:[%s5042_s12 + $0x1f0] sm:$0xf0] }
 0x233   : > { %v2378_v14 = vadd.f32 %v2377_v13, %v2089_v12 }
 0x234   : > { %4212 = vmatmul.msk.bf16.gmra.mxu2 %vm1863_vm0, %v3688_v10 }
 0x235   : > { %v5355_v48 = vadd.f32 %v2666_v9, %v2378_v14  ;;  %v3700_v14 = vor.u32 %v4313_v7, %v3699_v59 }
 0x237   : > { %v5360_v35 = vpop.f32.mrf.mxu3  ;;  %v2674_v38 = vpop.f32.mrf.mxu2 }
 0x238   : > { %v2091_v46 = vpop.f32.mrf.mxu0 }
 0x239   : > { %v2092_v55 = vadd.f32 %v5163_v26, %v2091_v46  ;;  %v2380_v56 = vpop.f32.mrf.mxu1  ;;  %v4308_v46 = vld [vmem:[%s5042_s12 + $0x1cc] sm:$0xf] }
 0x23b   : > { %v2381_v57 = vadd.f32 %v2380_v56, %v2092_v55  ;;  %2130 = vmatmul.bf16.gmra.mxu0 %v3668_v42  ;;  %v4017_v42 = vld [vmem:[%s5042_s12 + $0x474] sm:$0xf0]  ;;  %v3680_v56 = vor.u32 %v4309_v29, %v3679_v28 }
 0x23c   : > { %2559 = vmatmul.bf16.gmra.mxu3 %v4008_v52  ;;  %2419 = vmatmul.bf16.gmra.mxu1 %v3672_v53  ;;  %v3681_v52 = vld [vmem:[%s5042_s12 + $0x1d4] sm:$0xf0]  ;;  %v4020_v59 = vor.u32 %v4392_v34, %v4017_v42 }
 0x23d   : > { %v5363_v9 = vadd.f32 %v2669_v37, %v2381_v57  ;;  %v3684_v7 = vor.u32 %v4308_v46, %v3681_v52 }
 0x23f   : > { %v5367_v10 = vpop.f32.mrf.mxu3  ;;  %v2676_v12 = vpop.f32.mrf.mxu2 }
 0x240   : > { %v2093_v13 = vpop.f32.mrf.mxu0 }
 0x241   : > { %v2094_v18 = vadd.f32 %v5163_v26, %v2093_v13  ;;  %v2382_v24 = vpop.f32.mrf.mxu1 }
 0x243   : > { %v2383_v25 = vadd.f32 %v2382_v24, %v2094_v18  ;;  %v3711_v24 = vld [vmem:[%s5042_s12 + $0x200] sm:$0xf] }
 0x244   : > { %4213 = vmatmul.msk.bf16.gmra.mxu2 %vm1863_vm0, %v3700_v14 }
 0x245   : > { %v5374_v37 = vadd.f32 %v2671_v5, %v2383_v25  ;;  %v4316_v25 = vld [vmem:[%s5042_s12 + $0x208] sm:$0xf0] }
 0x246   : > { %v3712_v42 = vor.u32 %v4316_v25, %v3711_v24 }
 0x247   : > { %6045 = vst [vmem:[#allocation3_spill] sm:$0xff] %v5374_v37  ;;  %v5379_v53 = vpop.f32.mrf.mxu3  ;;  %v2679_v55 = vpop.f32.mrf.mxu2 }
 0x248   : > { %6046 = vst [vmem:[#allocation4_spill] sm:$0xff] %v5379_v53  ;;  %v2096_v57 = vpop.f32.mrf.mxu0  ;;  %v3729_v53 = vld [vmem:[%s5042_s12 + $0x234] sm:$0xf0] }
 0x249   : > { %v2097_v13 = vadd.f32 %v5163_v26, %v2096_v57  ;;  %v2385_v14 = vpop.f32.mrf.mxu1 }
 0x24b   : > { %v2386_v18 = vadd.f32 %v2385_v14, %v2097_v13  ;;  %2135 = vmatmul.bf16.gmra.mxu0 %v3680_v56  ;;  %v3691_v56 = vld [vmem:[%s5042_s12 + $0x1e0] sm:$0xf]  ;;  %v4029_v13 = vld [vmem:[%s5042_s12 + $0x48c] sm:$0xf0]  ;;  %v4311_v14 = vld [vmem:[%s5042_s12 + $0x1e4] sm:$0xf] }
 0x24c   : > { %2564 = vmatmul.bf16.gmra.mxu3 %v4020_v59  ;;  %2424 = vmatmul.bf16.gmra.mxu1 %v3684_v7  ;;  %v4312_v59 = vld [vmem:[%s5042_s12 + $0x1e8] sm:$0xf0]  ;;  %v4395_v7 = vld [vmem:[%s5042_s12 + $0x484] sm:$0xf] }
 0x24d   : > { %v5382_v5 = vadd.f32 %v2674_v38, %v2386_v18  ;;  %v3693_v18 = vld [vmem:[%s5042_s12 + $0x1ec] sm:$0xf0]  ;;  %v3692_v24 = vor.u32 %v4312_v59, %v3691_v56  ;;  %v4319_v56 = vld [vmem:[%s5042_s12 + $0x220] sm:$0xf0] }
 0x24e   : > { %v3696_v37 = vor.u32 %v4311_v14, %v3693_v18 }
 0x24f   : > { %6047 = vst [vmem:[#allocation5_spill] sm:$0xff] %v5382_v5  ;;  %v5386_v28 = vpop.f32.mrf.mxu3  ;;  %v2681_v29 = vpop.f32.mrf.mxu2 }
 0x250   : > { %6048 = vst [vmem:[#allocation6_spill] sm:$0xff] %v5386_v28  ;;  %v2098_v34 = vpop.f32.mrf.mxu0 }
 0x251   : > { %v2099_v46 = vadd.f32 %v5163_v26, %v2098_v34  ;;  %v2387_v52 = vpop.f32.mrf.mxu1  ;;  %v4032_v34 = vor.u32 %v4395_v7, %v4029_v13 }
 0x253   : > { %v2388_v57 = vadd.f32 %v2387_v52, %v2099_v46 }
 0x254   : > { %4214 = vmatmul.msk.bf16.gmra.mxu2 %vm1863_vm0, %v3712_v42 }
 0x255   : > { %v5393_v38 = vadd.f32 %v2676_v12, %v2388_v57  ;;  %v3723_v57 = vld [vmem:[%s5042_s12 + $0x218] sm:$0xf] }
 0x256   : > { %v3724_v14 = vor.u32 %v4319_v56, %v3723_v57 }
 0x257   : > { %6049 = vst [vmem:[#allocation7_spill] sm:$0xff] %v5393_v38  ;;  %v5398_v5 = vpop.f32.mrf.mxu3  ;;  %v2684_v28 = vpop.f32.mrf.mxu2 }
 0x258   : > { %6050 = vst [vmem:[#allocation8_spill] sm:$0xff] %v5398_v5  ;;  %v2101_v25 = vpop.f32.mrf.mxu0 }
 0x259   : > { %v2102_v46 = vadd.f32 %v5163_v26, %v2101_v25  ;;  %v2390_v42 = vpop.f32.mrf.mxu1 }
 0x25b   : > { %v2391_v52 = vadd.f32 %v2390_v42, %v2102_v46  ;;  %2140 = vmatmul.bf16.gmra.mxu0 %v3692_v24  ;;  %v3703_v24 = vld [vmem:[%s5042_s12 + $0x1f8] sm:$0xf]  ;;  %v4041_v42 = vld [vmem:[%s5042_s12 + $0x4a4] sm:$0xf0] }
 0x25c   : > { %2569 = vmatmul.bf16.gmra.mxu3 %v4032_v34  ;;  %2429 = vmatmul.bf16.gmra.mxu1 %v3696_v37  ;;  %v4315_v37 = vld [vmem:[%s5042_s12 + $0x200] sm:$0xf0]  ;;  %v4398_v34 = vld [vmem:[%s5042_s12 + $0x49c] sm:$0xf] }
 0x25d   : > { %v5401_v12 = vadd.f32 %v2679_v55, %v2391_v52  ;;  %v4314_v52 = vld [vmem:[%s5042_s12 + $0x1fc] sm:$0xf]  ;;  %v3704_v57 = vor.u32 %v4315_v37, %v3703_v24 }
 0x25e   : > { %v4322_v24 = vld [vmem:[%s5042_s12 + $0x238] sm:$0xf0] }
 0x25f   : > { %6051 = vst [vmem:[#allocation9_spill] sm:$0xff] %v5401_v12  ;;  %v5405_v59 = vpop.f32.mrf.mxu3  ;;  %v2686_v7 = vpop.f32.mrf.mxu2  ;;  %v3705_v12 = vld [vmem:[%s5042_s12 + $0x204] sm:$0xf0] }
 0x260   : > { %6052 = vst [vmem:[#allocation10_spill] sm:$0xff] %v5405_v59  ;;  %v2103_v13 = vpop.f32.mrf.mxu0  ;;  %v3708_v5 = vor.u32 %v4314_v52, %v3705_v12 }
 0x261   : > { %v2104_v18 = vadd.f32 %v5163_v26, %v2103_v13  ;;  %v2392_v25 = vpop.f32.mrf.mxu1  ;;  %v4044_v13 = vor.u32 %v4398_v34, %v4041_v42 }
 0x263   : > { %v2393_v46 = vadd.f32 %v2392_v25, %v2104_v18 }
 0x264   : > { %4215 = vmatmul.msk.bf16.gmra.mxu2 %vm1863_vm0, %v3724_v14 }
 0x265   : > { %v5412_v55 = vadd.f32 %v2681_v29, %v2393_v46  ;;  %v3735_v46 = vld [vmem:[%s5042_s12 + $0x230] sm:$0xf] }
 0x266   : > { %v3736_v42 = vor.u32 %v4322_v24, %v3735_v46 }
 0x267   : > { %6053 = vst [vmem:[#allocation11_spill] sm:$0xff] %v5412_v55  ;;  %v5417_v59 = vpop.f32.mrf.mxu3  ;;  %v2689_v38 = vpop.f32.mrf.mxu2 }
 0x268   : > { %6054 = vst [vmem:[#allocation12_spill] sm:$0xff] %v5417_v59  ;;  %v2106_v56 = vpop.f32.mrf.mxu0 }
 0x269   : > { %v2107_v18 = vadd.f32 %v5163_v26, %v2106_v56  ;;  %v2395_v14 = vpop.f32.mrf.mxu1 }
 0x26b   : > { %v2396_v25 = vadd.f32 %v2395_v14, %v2107_v18  ;;  %2145 = vmatmul.bf16.gmra.mxu0 %v3704_v57  ;;  %v3715_v57 = vld [vmem:[%s5042_s12 + $0x210] sm:$0xf]  ;;  %v4053_v14 = vld [vmem:[%s5042_s12 + $0x4bc] sm:$0xf0] }
 0x26c   : > { %2574 = vmatmul.bf16.gmra.mxu3 %v4044_v13  ;;  %2434 = vmatmul.bf16.gmra.mxu1 %v3708_v5  ;;  %v4318_v5 = vld [vmem:[%s5042_s12 + $0x218] sm:$0xf0]  ;;  %v4401_v13 = vld [vmem:[%s5042_s12 + $0x4b4] sm:$0xf] }
 0x26d   : > { %v5420_v29 = vadd.f32 %v2684_v28, %v2396_v25  ;;  %v4317_v25 = vld [vmem:[%s5042_s12 + $0x214] sm:$0xf]  ;;  %v3716_v46 = vor.u32 %v4318_v5, %v3715_v57  ;;  %v2899_v57 = vmax.f32 %v5173_v41, 0.0 }
 0x26e   : > { %v4321_v41 = vld [vmem:[%s5042_s12 + $0x230] sm:$0xf0] }
 0x26f   : > { %6055 = vst [vmem:[#allocation13_spill] sm:$0xff] %v5420_v29  ;;  %v5424_v37 = vpop.f32.mrf.mxu3  ;;  %v2691_v12 = vpop.f32.mrf.mxu2  ;;  %v3717_v29 = vld [vmem:[%s5042_s12 + $0x21c] sm:$0xf0] }
 0x270   : > { %6056 = vst [vmem:[#allocation14_spill] sm:$0xff] %v5424_v37  ;;  %v2108_v34 = vpop.f32.mrf.mxu0  ;;  %v3720_v59 = vor.u32 %v4317_v25, %v3717_v29 }
 0x271   : > { %v2109_v52 = vadd.f32 %v5163_v26, %v2108_v34  ;;  %v2397_v56 = vpop.f32.mrf.mxu1  ;;  %v4056_v34 = vor.u32 %v4401_v13, %v4053_v14 }
 0x273   : > { %v2398_v18 = vadd.f32 %v2397_v56, %v2109_v52 }
 0x274   : > { %4216 = vmatmul.msk.bf16.gmra.mxu2 %vm1863_vm0, %v3736_v42 }
 0x275   : > { %v5431_v28 = vadd.f32 %v2686_v7, %v2398_v18  ;;  %v3747_v18 = vld [vmem:[%s5042_s12 + $0x248] sm:$0xf] }
 0x277   : > { %6057 = vst [vmem:[#allocation15_spill] sm:$0xff] %v5431_v28  ;;  %v5436_v37 = vpop.f32.mrf.mxu3  ;;  %v2694_v55 = vpop.f32.mrf.mxu2  ;;  %v4325_v28 = vld [vmem:[%s5042_s12 + $0x250] sm:$0xf0] }
 0x278   : > { %6058 = vst [vmem:[#allocation16_spill] sm:$0xff] %v5436_v37  ;;  %v2111_v24 = vpop.f32.mrf.mxu0  ;;  %v2252_v37 = vadd.f32 %v5163_v26, %v5177_v44  ;;  %v3727_v44 = vld [vmem:[%s5042_s12 + $0x228] sm:$0xf] }
 0x279   : > { %v2112_v52 = vadd.f32 %v5163_v26, %v2111_v24  ;;  %v2400_v42 = vpop.f32.mrf.mxu1 }
 0x27b   : > { %v2401_v56 = vadd.f32 %v2400_v42, %v2112_v52  ;;  %2150 = vmatmul.bf16.gmra.mxu0 %v3716_v46  ;;  %v4404_v52 = vld [vmem:[%s5042_s12 + $0x4cc] sm:$0xf] }
 0x27c   : > { %2579 = vmatmul.bf16.gmra.mxu3 %v4056_v34  ;;  %2439 = vmatmul.bf16.gmra.mxu1 %v3720_v59 }
 0x27d   : > { %v2690_v7 = vadd.f32 %v2689_v38, %v2401_v56  ;;  %v3748_v38 = vor.u32 %v4325_v28, %v3747_v18  ;;  %v4065_v56 = vld [vmem:[%s5042_s12 + $0x4d4] sm:$0xf0]  ;;  %v2900_v28 = vmax.f32 %v5184_v54, 0.0 }
 0x27f   : > { %v2927_v29 = vmax.f32 %v2690_v7, 0.0  ;;  %v2540_v5 = vpop.f32.mrf.mxu3  ;;  %v2696_v13 = vpop.f32.mrf.mxu2  ;;  %v4320_v7 = vld [vmem:[%s5042_s12 + $0x22c] sm:$0xf] }
 0x280   : > { %v5444_v14 = vadd.f32 %v2540_v5, %v2252_v37  ;;  %v2113_v59 = vpop.f32.mrf.mxu0  ;;  %v2254_v37 = vadd.f32 %v5163_v26, %v5189_v58  ;;  %v3728_v5 = vor.u32 %v4321_v41, %v3727_v44  ;;  %v3759_v58 = vld [vmem:[%s5042_s12 + $0x260] sm:$0xf]  ;;  %v2257_v44 = vadd.f32 %v5163_v26, %v5196_v6 }
 0x281   : > { %v5446_v25 = vmax.f32 %v2899_v57, %v2927_v29  ;;  %v2114_v46 = vadd.f32 %v5163_v26, %v2113_v59  ;;  %v2402_v24 = vpop.f32.mrf.mxu1  ;;  %v3739_v6 = vld [vmem:[%s5042_s12 + $0x240] sm:$0xf] }
 0x282   : > { %6059 = vst [vmem:[#allocation17_spill] sm:$0xff] %v5444_v14 }
 0x283   : > { %6060 = vst [vmem:[#allocation18_spill] sm:$0xff] %v5446_v25  ;;  %v2403_v34 = vadd.f32 %v2402_v24, %v2114_v46  ;;  %v4068_v46 = vor.u32 %v4404_v52, %v4065_v56  ;;  %v3732_v24 = vor.u32 %v4320_v7, %v3729_v53  ;;  %v2901_v53 = vmax.f32 %v5192_v3, 0.0  ;;  %v4324_v3 = vld [vmem:[%s5042_s12 + $0x248] sm:$0xf0] }
 0x284   : > { %4217 = vmatmul.msk.bf16.gmra.mxu2 %vm1863_vm0, %v3748_v38 }
 0x285   : > { %v2692_v42 = vadd.f32 %v2691_v12, %v2403_v34 }
 0x287   : > { %v2928_v18 = vmax.f32 %v2692_v42, 0.0  ;;  %v2542_v57 = vpop.f32.mrf.mxu3  ;;  %v2699_v29 = vpop.f32.mrf.mxu2  ;;  %v4328_v42 = vld [vmem:[%s5042_s12 + $0x268] sm:$0xf0] }
 0x288   : > { %v5459_v59 = vadd.f32 %v2542_v57, %v2254_v37  ;;  %v2116_v38 = vpop.f32.mrf.mxu0  ;;  %v4407_v57 = vld [vmem:[%s5042_s12 + $0x4e4] sm:$0xf] }
 0x289   : > { %v5461_v12 = vmax.f32 %v2900_v28, %v2928_v18  ;;  %v2117_v34 = vadd.f32 %v5163_v26, %v2116_v38  ;;  %v2405_v25 = vpop.f32.mrf.mxu1  ;;  %v4077_v38 = vld [vmem:[%s5042_s12 + $0x4ec] sm:$0xf0] }
 0x28a   : > { %6061 = vst [vmem:[#allocation19_spill] sm:$0xff] %v5459_v59 }
 0x28b   : > { %6062 = vst [vmem:[#allocation20_spill] sm:$0xff] %v5461_v12  ;;  %v2406_v14 = vadd.f32 %v2405_v25, %v2117_v34  ;;  %2155 = vmatmul.bf16.gmra.mxu0 %v3728_v5  ;;  %v2259_v34 = vadd.f32 %v5163_v26, %v5208_v20 }
 0x28c   : > { %2584 = vmatmul.bf16.gmra.mxu3 %v4068_v46  ;;  %2444 = vmatmul.bf16.gmra.mxu1 %v3732_v24  ;;  %v4323_v46 = vld [vmem:[%s5042_s12 + $0x244] sm:$0xf]  ;;  %v3741_v24 = vld [vmem:[%s5042_s12 + $0x24c] sm:$0xf0] }
 0x28d   : > { %v2695_v54 = vadd.f32 %v2694_v55, %v2406_v14  ;;  %v3760_v55 = vor.u32 %v4328_v42, %v3759_v58 }
 0x28f   : > { %v2929_v41 = vmax.f32 %v2695_v54, 0.0  ;;  %v2545_v52 = vpop.f32.mrf.mxu3  ;;  %v2701_v25 = vpop.f32.mrf.mxu2  ;;  %v2902_v54 = vmax.f32 %v5203_v16, 0.0 }
 0x290   : > { %v5469_v56 = vadd.f32 %v2545_v52, %v2257_v44  ;;  %v2118_v7 = vpop.f32.mrf.mxu0 }
 0x291   : > { %v5471_v14 = vmax.f32 %v2901_v53, %v2929_v41  ;;  %v2119_v37 = vadd.f32 %v5163_v26, %v2118_v7  ;;  %v2407_v28 = vpop.f32.mrf.mxu1  ;;  %v3740_v53 = vor.u32 %v4324_v3, %v3739_v6  ;;  %v4080_v7 = vor.u32 %v4407_v57, %v4077_v38  ;;  %v4331_v6 = vld [vmem:[%s5042_s12 + $0x280] sm:$0xf0] }
 0x292   : > { %6063 = vst [vmem:[#allocation21_spill] sm:$0xff] %v5469_v56  ;;  %v2903_v57 = vmax.f32 %v5211_v30, 0.0  ;;  %v4327_v30 = vld [vmem:[%s5042_s12 + $0x260] sm:$0xf0] }
 0x293   : > { %6064 = vst [vmem:[#allocation22_spill] sm:$0xff] %v5471_v14  ;;  %v2408_v18 = vadd.f32 %v2407_v28, %v2119_v37  ;;  %v5491_v37 = vld [vmem:[%s6043_s2] ss:$0 sm:$0xff]  ;;  %v6072_v14 = vld [vmem:[#allocation8_spill] sm:$0xff] }
 0x294   : > { %4218 = vmatmul.msk.bf16.gmra.mxu2 %vm1863_vm0, %v3760_v55  ;;  %v3744_v55 = vor.u32 %v4323_v46, %v3741_v24  ;;  %v2262_v3 = vadd.f32 %v5491_v37, %v5215_v33  ;;  %v3751_v33 = vld [vmem:[%s5042_s12 + $0x258] sm:$0xf] }
 0x295   : > { %v2697_v5 = vadd.f32 %v2696_v13, %v2408_v18  ;;  %v3771_v18 = vld [vmem:[%s5042_s12 + $0x278] sm:$0xf] }
 0x297   : > { %v2930_v58 = vmax.f32 %v2697_v5, 0.0  ;;  %v2547_v42 = vpop.f32.mrf.mxu3  ;;  %v2704_v44 = vpop.f32.mrf.mxu2 }
 0x298   : > { %v5484_v41 = vadd.f32 %v2547_v42, %v2259_v34  ;;  %v2121_v52 = vpop.f32.mrf.mxu0 }
 0x299   : > { %v5486_v13 = vmax.f32 %v2902_v54, %v2930_v58  ;;  %v2122_v26 = vadd.f32 %v5491_v37, %v2121_v52  ;;  %v2410_v16 = vpop.f32.mrf.mxu1  ;;  %v4410_v52 = vld [vmem:[%s5042_s12 + $0x4fc] sm:$0xf] }
 0x29a   : > { %6065 = vst [vmem:[#allocation23_spill] sm:$0xff] %v5484_v41 }
 0x29b   : > { %6066 = vst [vmem:[#allocation24_spill] sm:$0xff] %v5486_v13  ;;  %v2411_v20 = vadd.f32 %v2410_v16, %v2122_v26  ;;  %2160 = vmatmul.bf16.gmra.mxu0 %v3740_v53  ;;  %v4326_v26 = vld [vmem:[%s5042_s12 + $0x25c] sm:$0xf]  ;;  %v3753_v16 = vld [vmem:[%s5042_s12 + $0x264] sm:$0xf0] }
 0x29c   : > { %2589 = vmatmul.bf16.gmra.mxu3 %v4080_v7  ;;  %2449 = vmatmul.bf16.gmra.mxu1 %v3744_v55  ;;  %v4089_v55 = vld [vmem:[%s5042_s12 + $0x504] sm:$0xf0] }
 0x29d   : > { %v2700_v28 = vadd.f32 %v2699_v29, %v2411_v20  ;;  %v3772_v29 = vor.u32 %v4331_v6, %v3771_v18  ;;  %v2264_v20 = vadd.f32 %v5491_v37, %v5227_v49  ;;  %v3783_v49 = vld [vmem:[%s5042_s12 + $0x290] sm:$0xf] }
 0x29f   : > { %v2931_v5 = vmax.f32 %v2700_v28, 0.0  ;;  %v2550_v38 = vpop.f32.mrf.mxu3  ;;  %v2706_v46 = vpop.f32.mrf.mxu2  ;;  %v2904_v28 = vmax.f32 %v5222_v45, 0.0 }
 0x2a0   : > { %v5499_v24 = vadd.f32 %v2550_v38, %v2262_v3  ;;  %v2123_v34 = vpop.f32.mrf.mxu0 }
 0x2a1   : > { %v5501_v54 = vmax.f32 %v2903_v57, %v2931_v5  ;;  %v2124_v58 = vadd.f32 %v5491_v37, %v2123_v34  ;;  %v2412_v42 = vpop.f32.mrf.mxu1  ;;  %v3752_v57 = vor.u32 %v4327_v30, %v3751_v33  ;;  %v4092_v34 = vor.u32 %v4410_v52, %v4089_v55 }
 0x2a2   : > { %v2267_v33 = vadd.f32 %v5491_v37, %v5234_v63  ;;  %v2905_v30 = vmax.f32 %v5230_v60, 0.0  ;;  %v3763_v63 = vld [vmem:[%s5042_s12 + $0x270] sm:$0xf]  ;;  %v4330_v60 = vld [vmem:[%s5042_s12 + $0x278] sm:$0xf0] }
 0x2a3   : > { %v2413_v53 = vadd.f32 %v2412_v42, %v2124_v58 }
 0x2a4   : > { %4219 = vmatmul.msk.bf16.gmra.mxu2 %vm1863_vm0, %v3772_v29  ;;  %v3756_v29 = vor.u32 %v4326_v26, %v3753_v16 }
 0x2a5   : > { %v2702_v7 = vadd.f32 %v2701_v25, %v2413_v53 }
 0x2a7   : > { %v2932_v18 = vmax.f32 %v2702_v7, 0.0  ;;  %v2552_v6 = vpop.f32.mrf.mxu3  ;;  %v2709_v3 = vpop.f32.mrf.mxu2  ;;  %v4334_v7 = vld [vmem:[%s5042_s12 + $0x298] sm:$0xf0] }
 0x2a8   : > { %v5514_v5 = vadd.f32 %v2552_v6, %v2264_v20  ;;  %v2126_v38 = vpop.f32.mrf.mxu0 }
 0x2a9   : > { %v5516_v25 = vmax.f32 %v2904_v28, %v2932_v18  ;;  %v2127_v58 = vadd.f32 %v5491_v37, %v2126_v38  ;;  %v2415_v42 = vpop.f32.mrf.mxu1  ;;  %v4413_v38 = vld [vmem:[%s5042_s12 + $0x514] sm:$0xf] }
 0x2ab   : > { %v2416_v53 = vadd.f32 %v2415_v42, %v2127_v58  ;;  %2165 = vmatmul.bf16.gmra.mxu0 %v3752_v57  ;;  %v4329_v58 = vld [vmem:[%s5042_s12 + $0x274] sm:$0xf]  ;;  %v3765_v42 = vld [vmem:[%s5042_s12 + $0x27c] sm:$0xf0] }
 0x2ac   : > { %2594 = vmatmul.bf16.gmra.mxu3 %v4092_v34  ;;  %2454 = vmatmul.bf16.gmra.mxu1 %v3756_v29  ;;  %v4101_v29 = vld [vmem:[%s5042_s12 + $0x51c] sm:$0xf0] }
 0x2ad   : > { %v2705_v45 = vadd.f32 %v2704_v44, %v2416_v53  ;;  %v3784_v44 = vor.u32 %v4334_v7, %v3783_v49  ;;  %v2269_v53 = vadd.f32 %v5491_v37, %v5246_v15  ;;  %v3795_v15 = vld [vmem:[%s5042_s12 + $0x2a8] sm:$0xf] }
 0x2af   : > { %v2933_v52 = vmax.f32 %v2705_v45, 0.0  ;;  %v2555_v55 = vpop.f32.mrf.mxu3  ;;  %v2711_v26 = vpop.f32.mrf.mxu2  ;;  %v2906_v45 = vmax.f32 %v5241_v11, 0.0 }
 0x2b0   : > { %v5524_v16 = vadd.f32 %v2555_v55, %v2267_v33  ;;  %v2128_v20 = vpop.f32.mrf.mxu0 }
 0x2b1   : > { %v5526_v28 = vmax.f32 %v2905_v30, %v2933_v52  ;;  %v2129_v18 = vadd.f32 %v5491_v37, %v2128_v20  ;;  %v2417_v6 = vpop.f32.mrf.mxu1  ;;  %v3764_v30 = vor.u32 %v4330_v60, %v3763_v63  ;;  %v4104_v20 = vor.u32 %v4413_v38, %v4101_v29 }
 0x2b2   : > { %v2272_v63 = vadd.f32 %v5491_v37, %v5253_v31  ;;  %v2907_v60 = vmax.f32 %v5249_v27, 0.0  ;;  %v3775_v31 = vld [vmem:[%s5042_s12 + $0x288] sm:$0xf]  ;;  %v4333_v27 = vld [vmem:[%s5042_s12 + $0x290] sm:$0xf0] }
 0x2b3   : > { %v2418_v57 = vadd.f32 %v2417_v6, %v2129_v18 }
 0x2b4   : > { %4220 = vmatmul.msk.bf16.gmra.mxu2 %vm1863_vm0, %v3784_v44  ;;  %v3768_v44 = vor.u32 %v4329_v58, %v3765_v42 }
 0x2b5   : > { %v2707_v34 = vadd.f32 %v2706_v46, %v2418_v57 }
 0x2b7   : > { %v2934_v49 = vmax.f32 %v2707_v34, 0.0  ;;  %v2557_v7 = vpop.f32.mrf.mxu3  ;;  %v2714_v33 = vpop.f32.mrf.mxu2  ;;  %v4337_v34 = vld [vmem:[%s5042_s12 + $0x2b0] sm:$0xf0] }
 0x2b8   : > { %v5539_v52 = vadd.f32 %v2557_v7, %v2269_v53  ;;  %v2131_v55 = vpop.f32.mrf.mxu0 }
 0x2b9   : > { %v5541_v46 = vmax.f32 %v2906_v45, %v2934_v49  ;;  %v2132_v18 = vadd.f32 %v5491_v37, %v2131_v55  ;;  %v2420_v6 = vpop.f32.mrf.mxu1  ;;  %v4416_v55 = vld [vmem:[%s5042_s12 + $0x52c] sm:$0xf] }
 0x2bb   : > { %v2421_v57 = vadd.f32 %v2420_v6, %v2132_v18  ;;  %2170 = vmatmul.bf16.gmra.mxu0 %v3764_v30  ;;  %v4332_v18 = vld [vmem:[%s5042_s12 + $0x28c] sm:$0xf]  ;;  %v3777_v6 = vld [vmem:[%s5042_s12 + $0x294] sm:$0xf0] }
 0x2bc   : > { %2599 = vmatmul.bf16.gmra.mxu3 %v4104_v20  ;;  %2459 = vmatmul.bf16.gmra.mxu1 %v3768_v44  ;;  %v4113_v44 = vld [vmem:[%s5042_s12 + $0x534] sm:$0xf0] }
 0x2bd   : > { %v2710_v11 = vadd.f32 %v2709_v3, %v2421_v57  ;;  %v3796_v3 = vor.u32 %v4337_v34, %v3795_v15  ;;  %v2274_v57 = vadd.f32 %v5491_v37, %v5265_v50  ;;  %v3807_v50 = vld [vmem:[%s5042_s12 + $0x2c0] sm:$0xf] }
 0x2bf   : > { %v2935_v38 = vmax.f32 %v2710_v11, 0.0  ;;  %v2560_v29 = vpop.f32.mrf.mxu3  ;;  %v2716_v58 = vpop.f32.mrf.mxu2  ;;  %v2908_v11 = vmax.f32 %v5260_v43, 0.0 }
 0x2c0   : > { %v5549_v42 = vadd.f32 %v2560_v29, %v2272_v63  ;;  %v2133_v53 = vpop.f32.mrf.mxu0 }
 0x2c1   : > { %v5551_v45 = vmax.f32 %v2907_v60, %v2935_v38  ;;  %v2134_v49 = vadd.f32 %v5491_v37, %v2133_v53  ;;  %v2422_v7 = vpop.f32.mrf.mxu1  ;;  %v3776_v60 = vor.u32 %v4333_v27, %v3775_v31  ;;  %v4116_v53 = vor.u32 %v4416_v55, %v4113_v44 }
 0x2c2   : > { %v2277_v31 = vadd.f32 %v5491_v37, %v5272_v2  ;;  %v2909_v27 = vmax.f32 %v5268_v62, 0.0  ;;  %v3787_v2 = vld [vmem:[%s5042_s12 + $0x2a0] sm:$0xf]  ;;  %v4336_v62 = vld [vmem:[%s5042_s12 + $0x2a8] sm:$0xf0] }
 0x2c3   : > { %v2423_v30 = vadd.f32 %v2422_v7, %v2134_v49 }
 0x2c4   : > { %4221 = vmatmul.msk.bf16.gmra.mxu2 %vm1863_vm0, %v3796_v3  ;;  %v3780_v3 = vor.u32 %v4332_v18, %v3777_v6 }
 0x2c5   : > { %v2712_v20 = vadd.f32 %v2711_v26, %v2423_v30 }
 0x2c7   : > { %v2936_v15 = vmax.f32 %v2712_v20, 0.0  ;;  %v2562_v34 = vpop.f32.mrf.mxu3  ;;  %v2719_v63 = vpop.f32.mrf.mxu2  ;;  %v4340_v20 = vld [vmem:[%s5042_s12 + $0x2c8] sm:$0xf0] }
 0x2c8   : > { %v5564_v38 = vadd.f32 %v2562_v34, %v2274_v57  ;;  %v2136_v29 = vpop.f32.mrf.mxu0 }
 0x2c9   : > { %v5566_v26 = vmax.f32 %v2908_v11, %v2936_v15  ;;  %v2137_v49 = vadd.f32 %v5491_v37, %v2136_v29  ;;  %v2425_v7 = vpop.f32.mrf.mxu1  ;;  %v3987_v29 = vld [vmem:[%s5042_s12 + $0x428] sm:$0xf] }
 0x2cb   : > { %v2426_v30 = vadd.f32 %v2425_v7, %v2137_v49  ;;  %2175 = vmatmul.bf16.gmra.mxu0 %v3776_v60  ;;  %v4335_v49 = vld [vmem:[%s5042_s12 + $0x2a4] sm:$0xf]  ;;  %v3789_v7 = vld [vmem:[%s5042_s12 + $0x2ac] sm:$0xf0] }
 0x2cc   : > { %2604 = vmatmul.bf16.gmra.mxu3 %v4116_v53  ;;  %2464 = vmatmul.bf16.gmra.mxu1 %v3780_v3  ;;  %v4385_v3 = vld [vmem:[%s5042_s12 + $0x430] sm:$0xf0] }
 0x2cd   : > { %v2715_v43 = vadd.f32 %v2714_v33, %v2426_v30  ;;  %v3808_v33 = vor.u32 %v4340_v20, %v3807_v50  ;;  %v2279_v30 = vadd.f32 %v5491_v37, %v5284_v22  ;;  %v3819_v22 = vld [vmem:[%s5042_s12 + $0x2d8] sm:$0xf] }
 0x2cf   : > { %v2937_v55 = vmax.f32 %v2715_v43, 0.0  ;;  %v2565_v44 = vpop.f32.mrf.mxu3  ;;  %v2721_v18 = vpop.f32.mrf.mxu2  ;;  %v2910_v43 = vmax.f32 %v5279_v17, 0.0 }
 0x2d0   : > { %v5574_v6 = vadd.f32 %v2565_v44, %v2277_v31  ;;  %v2138_v57 = vpop.f32.mrf.mxu0 }
 0x2d1   : > { %v5576_v11 = vmax.f32 %v2909_v27, %v2937_v55  ;;  %v2139_v15 = vadd.f32 %v5491_v37, %v2138_v57  ;;  %v2427_v34 = vpop.f32.mrf.mxu1  ;;  %v3788_v27 = vor.u32 %v4336_v62, %v3787_v2  ;;  %v3988_v57 = vor.u32 %v4385_v3, %v3987_v29  ;;  %v4343_v2 = vld [vmem:[%s5042_s12 + $0x2e0] sm:$0xf0] }
 0x2d2   : > { %v2282_v62 = vadd.f32 %v5491_v37, %v5291_v39  ;;  %v2911_v29 = vmax.f32 %v5287_v32, 0.0  ;;  %v3799_v39 = vld [vmem:[%s5042_s12 + $0x2b8] sm:$0xf]  ;;  %v4339_v32 = vld [vmem:[%s5042_s12 + $0x2c0] sm:$0xf0] }
 0x2d3   : > { %v2428_v60 = vadd.f32 %v2427_v34, %v2139_v15 }
 0x2d4   : > { %4222 = vmatmul.msk.bf16.gmra.mxu2 %vm1863_vm0, %v3808_v33  ;;  %v3792_v33 = vor.u32 %v4335_v49, %v3789_v7 }
 0x2d5   : > { %v2717_v53 = vadd.f32 %v2716_v58, %v2428_v60 }
 0x2d7   : > { %v2938_v50 = vmax.f32 %v2717_v53, 0.0  ;;  %v2567_v20 = vpop.f32.mrf.mxu3  ;;  %v2724_v31 = vpop.f32.mrf.mxu2 }
 0x2d8   : > { %v5589_v55 = vadd.f32 %v2567_v20, %v2279_v30  ;;  %v2141_v44 = vpop.f32.mrf.mxu0 }
 0x2d9   : > { %v5591_v58 = vmax.f32 %v2910_v43, %v2938_v50  ;;  %v2142_v15 = vadd.f32 %v5491_v37, %v2141_v44  ;;  %v2430_v34 = vpop.f32.mrf.mxu1  ;;  %v3999_v44 = vld [vmem:[%s5042_s12 + $0x440] sm:$0xf] }
 0x2db   : > { %v2431_v60 = vadd.f32 %v2430_v34, %v2142_v15  ;;  %2180 = vmatmul.bf16.gmra.mxu0 %v3788_v27  ;;  %v4338_v15 = vld [vmem:[%s5042_s12 + $0x2bc] sm:$0xf]  ;;  %v3801_v34 = vld [vmem:[%s5042_s12 + $0x2c4] sm:$0xf0] }
 0x2dc   : > { %4237 = vmatmul.msk.bf16.vlgmr.msra.gmra.mxu3 %vm1863_vm0, %v3988_v57  ;;  %2469 = vmatmul.bf16.gmra.mxu1 %v3792_v33  ;;  %v4388_v33 = vld [vmem:[%s5042_s12 + $0x448] sm:$0xf0] }
 0x2dd   : > { %v2720_v17 = vadd.f32 %v2719_v63, %v2431_v60  ;;  %v3820_v63 = vor.u32 %v4343_v2, %v3819_v22  ;;  %v2284_v60 = vadd.f32 %v5491_v37, %v5303_v0  ;;  %v3831_v0 = vld [vmem:[%s5042_s12 + $0x2f0] sm:$0xf] }
 0x2df   : > { %v2939_v53 = vmax.f32 %v2720_v17, 0.0  ;;  %v2570_v3 = vpop.f32.mrf.mxu3  ;;  %v2726_v49 = vpop.f32.mrf.mxu2  ;;  %v2912_v17 = vmax.f32 %v5298_v51, 0.0 }
 0x2e0   : > { %v5600_v7 = vadd.f32 %v2570_v3, %v2282_v62  ;;  %v2143_v30 = vpop.f32.mrf.mxu0 }
 0x2e1   : > { %v5602_v43 = vmax.f32 %v2911_v29, %v2939_v53  ;;  %v2144_v50 = vadd.f32 %v5491_v37, %v2143_v30  ;;  %v2432_v20 = vpop.f32.mrf.mxu1  ;;  %v3800_v29 = vor.u32 %v4339_v32, %v3799_v39  ;;  %v4000_v30 = vor.u32 %v4388_v33, %v3999_v44  ;;  %v4346_v39 = vld [vmem:[%s5042_s12 + $0x2f8] sm:$0xf0] }
 0x2e2   : > { %v2287_v32 = vadd.f32 %v5491_v37, %v5310_v19  ;;  %v2913_v44 = vmax.f32 %v5306_v4, 0.0  ;;  %v3811_v19 = vld [vmem:[%s5042_s12 + $0x2d0] sm:$0xf]  ;;  %v4342_v4 = vld [vmem:[%s5042_s12 + $0x2d8] sm:$0xf0] }
 0x2e3   : > { %v2433_v27 = vadd.f32 %v2432_v20, %v2144_v50 }
 0x2e4   : > { %4223 = vmatmul.msk.bf16.gmra.mxu2 %vm1863_vm0, %v3820_v63  ;;  %v3804_v63 = vor.u32 %v4338_v15, %v3801_v34 }
 0x2e5   : > { %v2722_v57 = vadd.f32 %v2721_v18, %v2433_v27 }
 0x2e7   : > { %v2940_v22 = vmax.f32 %v2722_v57, 0.0  ;;  %v2572_v2 = vpop.f32.mrf.mxu3  ;;  %v2729_v62 = vpop.f32.mrf.mxu2 }
 0x2e8   : > { %v5615_v53 = vadd.f32 %v2572_v2, %v2284_v60  ;;  %v2146_v3 = vpop.f32.mrf.mxu0 }
 0x2e9   : > { %v5617_v18 = vmax.f32 %v2912_v17, %v2940_v22  ;;  %v2147_v50 = vadd.f32 %v5491_v37, %v2146_v3  ;;  %v2435_v20 = vpop.f32.mrf.mxu1  ;;  %v4011_v3 = vld [vmem:[%s5042_s12 + $0x458] sm:$0xf] }
 0x2eb   : > { %v2436_v27 = vadd.f32 %v2435_v20, %v2147_v50  ;;  %2185 = vmatmul.bf16.gmra.mxu0 %v3800_v29  ;;  %v4341_v50 = vld [vmem:[%s5042_s12 + $0x2d4] sm:$0xf]  ;;  %v3813_v20 = vld [vmem:[%s5042_s12 + $0x2dc] sm:$0xf0] }
 0x2ec   : > { %4238 = vmatmul.msk.bf16.gmra.mxu3 %vm1863_vm0, %v4000_v30  ;;  %2474 = vmatmul.bf16.gmra.mxu1 %v3804_v63  ;;  %v4391_v63 = vld [vmem:[%s5042_s12 + $0x460] sm:$0xf0] }
 0x2ed   : > { %v2725_v51 = vadd.f32 %v2724_v31, %v2436_v27  ;;  %v3832_v31 = vor.u32 %v4346_v39, %v3831_v0  ;;  %v2289_v27 = vadd.f32 %v5491_v37, %v5322_v47  ;;  %v3843_v47 = vld [vmem:[%s5042_s12 + $0x308] sm:$0xf] }
 0x2ef   : > { %v2941_v57 = vmax.f32 %v2725_v51, 0.0  ;;  %v2575_v33 = vpop.f32.mrf.mxu3  ;;  %v2731_v15 = vpop.f32.mrf.mxu2  ;;  %v2914_v51 = vmax.f32 %v5317_v23, 0.0 }
 0x2f0   : > { %v5626_v34 = vadd.f32 %v2575_v33, %v2287_v32  ;;  %v2148_v60 = vpop.f32.mrf.mxu0 }
 0x2f1   : > { %v5628_v17 = vmax.f32 %v2913_v44, %v2941_v57  ;;  %v2149_v22 = vadd.f32 %v5491_v37, %v2148_v60  ;;  %v2437_v2 = vpop.f32.mrf.mxu1  ;;  %v3812_v44 = vor.u32 %v4342_v4, %v3811_v19  ;;  %v4012_v60 = vor.u32 %v4391_v63, %v4011_v3  ;;  %v4349_v19 = vld [vmem:[%s5042_s12 + $0x310] sm:$0xf0] }
 0x2f2   : > { %v2292_v4 = vadd.f32 %v5491_v37, %v5329_v8  ;;  %v2915_v3 = vmax.f32 %v5325_v40, 0.0  ;;  %v3823_v8 = vld [vmem:[%s5042_s12 + $0x2e8] sm:$0xf]  ;;  %v4345_v40 = vld [vmem:[%s5042_s12 + $0x2f0] sm:$0xf0] }
 0x2f3   : > { %v2438_v29 = vadd.f32 %v2437_v2, %v2149_v22 }
 0x2f4   : > { %4224 = vmatmul.msk.bf16.gmra.mxu2 %vm1863_vm0, %v3832_v31  ;;  %v3816_v31 = vor.u32 %v4341_v50, %v3813_v20 }
 0x2f5   : > { %v2727_v30 = vadd.f32 %v2726_v49, %v2438_v29 }
 0x2f7   : > { %v2942_v0 = vmax.f32 %v2727_v30, 0.0  ;;  %v2577_v39 = vpop.f32.mrf.mxu3  ;;  %v2734_v32 = vpop.f32.mrf.mxu2 }
 0x2f8   : > { %v5641_v57 = vadd.f32 %v2577_v39, %v2289_v27  ;;  %v2151_v33 = vpop.f32.mrf.mxu0 }
 0x2f9   : > { %v5643_v49 = vmax.f32 %v2914_v51, %v2942_v0  ;;  %v2152_v22 = vadd.f32 %v5491_v37, %v2151_v33  ;;  %v2440_v2 = vpop.f32.mrf.mxu1  ;;  %v4023_v33 = vld [vmem:[%s5042_s12 + $0x470] sm:$0xf] }
 0x2fb   : > { %v2441_v29 = vadd.f32 %v2440_v2, %v2152_v22  ;;  %2190 = vmatmul.bf16.gmra.mxu0 %v3812_v44  ;;  %v4344_v22 = vld [vmem:[%s5042_s12 + $0x2ec] sm:$0xf]  ;;  %v3825_v2 = vld [vmem:[%s5042_s12 + $0x2f4] sm:$0xf0] }
 0x2fc   : > { %4239 = vmatmul.msk.bf16.gmra.mxu3 %vm1863_vm0, %v4012_v60  ;;  %2479 = vmatmul.bf16.gmra.mxu1 %v3816_v31  ;;  %v4394_v31 = vld [vmem:[%s5042_s12 + $0x478] sm:$0xf0] }
 0x2fd   : > { %v2730_v23 = vadd.f32 %v2729_v62, %v2441_v29  ;;  %v3844_v62 = vor.u32 %v4349_v19, %v3843_v47  ;;  %v2294_v29 = vadd.f32 %v5491_v37, %v5341_v36  ;;  %v3855_v36 = vld [vmem:[%s5042_s12 + $0x320] sm:$0xf] }
 0x2ff   : > { %v2943_v30 = vmax.f32 %v2730_v23, 0.0  ;;  %v2580_v63 = vpop.f32.mrf.mxu3  ;;  %v2736_v50 = vpop.f32.mrf.mxu2  ;;  %v2916_v23 = vmax.f32 %v5336_v1, 0.0 }
 0x300   : > { %v5652_v20 = vadd.f32 %v2580_v63, %v2292_v4  ;;  %v2153_v27 = vpop.f32.mrf.mxu0 }
 0x301   : > { %v5654_v51 = vmax.f32 %v2915_v3, %v2943_v30  ;;  %v2154_v0 = vadd.f32 %v5491_v37, %v2153_v27  ;;  %v2442_v39 = vpop.f32.mrf.mxu1  ;;  %v3824_v3 = vor.u32 %v4345_v40, %v3823_v8  ;;  %v4024_v27 = vor.u32 %v4394_v31, %v4023_v33  ;;  %v4352_v8 = vld [vmem:[%s5042_s12 + $0x328] sm:$0xf0] }
 0x302   : > { %v2297_v40 = vadd.f32 %v5491_v37, %v5348_v61  ;;  %v2917_v33 = vmax.f32 %v5344_v21, 0.0  ;;  %v3835_v61 = vld [vmem:[%s5042_s12 + $0x300] sm:$0xf]  ;;  %v4348_v21 = vld [vmem:[%s5042_s12 + $0x308] sm:$0xf0] }
 0x303   : > { %v2443_v44 = vadd.f32 %v2442_v39, %v2154_v0 }
 0x304   : > { %4225 = vmatmul.msk.bf16.gmra.mxu2 %vm1863_vm0, %v3844_v62  ;;  %v3828_v62 = vor.u32 %v4344_v22, %v3825_v2 }
 0x305   : > { %v2732_v60 = vadd.f32 %v2731_v15, %v2443_v44 }
 0x307   : > { %v2944_v47 = vmax.f32 %v2732_v60, 0.0  ;;  %v2582_v19 = vpop.f32.mrf.mxu3  ;;  %v2739_v4 = vpop.f32.mrf.mxu2 }
 0x308   : > { %v5667_v30 = vadd.f32 %v2582_v19, %v2294_v29  ;;  %v2156_v63 = vpop.f32.mrf.mxu0 }
 0x309   : > { %v5669_v15 = vmax.f32 %v2916_v23, %v2944_v47  ;;  %v2157_v0 = vadd.f32 %v5491_v37, %v2156_v63  ;;  %v2445_v39 = vpop.f32.mrf.mxu1  ;;  %v4035_v63 = vld [vmem:[%s5042_s12 + $0x488] sm:$0xf] }
 0x30b   : > { %v2446_v44 = vadd.f32 %v2445_v39, %v2157_v0  ;;  %2195 = vmatmul.bf16.gmra.mxu0 %v3824_v3  ;;  %v4347_v0 = vld [vmem:[%s5042_s12 + $0x304] sm:$0xf]  ;;  %v3837_v39 = vld [vmem:[%s5042_s12 + $0x30c] sm:$0xf0] }
 0x30c   : > { %4240 = vmatmul.msk.bf16.gmra.mxu3 %vm1863_vm0, %v4024_v27  ;;  %2484 = vmatmul.bf16.gmra.mxu1 %v3828_v62  ;;  %v4397_v62 = vld [vmem:[%s5042_s12 + $0x490] sm:$0xf0] }
 0x30d   : > { %v2735_v1 = vadd.f32 %v2734_v32, %v2446_v44  ;;  %v3856_v32 = vor.u32 %v4352_v8, %v3855_v36  ;;  %v2299_v44 = vadd.f32 %v5491_v37, %v5360_v35  ;;  %v3867_v35 = vld [vmem:[%s5042_s12 + $0x338] sm:$0xf] }
 0x30f   : > { %v2945_v60 = vmax.f32 %v2735_v1, 0.0  ;;  %v2585_v31 = vpop.f32.mrf.mxu3  ;;  %v2741_v22 = vpop.f32.mrf.mxu2  ;;  %v2918_v1 = vmax.f32 %v5355_v48, 0.0 }
 0x310   : > { %v5678_v2 = vadd.f32 %v2585_v31, %v2297_v40  ;;  %v2158_v29 = vpop.f32.mrf.mxu0 }
 0x311   : > { %v5680_v23 = vmax.f32 %v2917_v33, %v2945_v60  ;;  %v2159_v47 = vadd.f32 %v5491_v37, %v2158_v29  ;;  %v2447_v19 = vpop.f32.mrf.mxu1  ;;  %v3836_v33 = vor.u32 %v4348_v21, %v3835_v61  ;;  %v4036_v29 = vor.u32 %v4397_v62, %v4035_v63  ;;  %v4355_v61 = vld [vmem:[%s5042_s12 + $0x340] sm:$0xf0] }
 0x312   : > { %v2302_v21 = vadd.f32 %v5491_v37, %v5367_v10  ;;  %v2919_v63 = vmax.f32 %v5363_v9, 0.0  ;;  %v3847_v10 = vld [vmem:[%s5042_s12 + $0x318] sm:$0xf]  ;;  %v4351_v9 = vld [vmem:[%s5042_s12 + $0x320] sm:$0xf0] }
 0x313   : > { %v2448_v3 = vadd.f32 %v2447_v19, %v2159_v47 }
 0x314   : > { %4226 = vmatmul.msk.bf16.gmra.mxu2 %vm1863_vm0, %v3856_v32  ;;  %v3840_v32 = vor.u32 %v4347_v0, %v3837_v39 }
 0x315   : > { %v2737_v27 = vadd.f32 %v2736_v50, %v2448_v3 }
 0x317   : > { %v2946_v36 = vmax.f32 %v2737_v27, 0.0  ;;  %v2587_v8 = vpop.f32.mrf.mxu3  ;;  %v2744_v40 = vpop.f32.mrf.mxu2 }
 0x318   : > { %v5693_v60 = vadd.f32 %v2587_v8, %v2299_v44  ;;  %v2161_v31 = vpop.f32.mrf.mxu0 }
 0x319   : > { %v5695_v50 = vmax.f32 %v2918_v1, %v2946_v36  ;;  %v2162_v47 = vadd.f32 %v5491_v37, %v2161_v31  ;;  %v2450_v19 = vpop.f32.mrf.mxu1  ;;  %v4047_v31 = vld [vmem:[%s5042_s12 + $0x4a0] sm:$0xf] }
 0x31b   : > { %v2451_v3 = vadd.f32 %v2450_v19, %v2162_v47  ;;  %2200 = vmatmul.bf16.gmra.mxu0 %v3836_v33  ;;  %v4350_v47 = vld [vmem:[%s5042_s12 + $0x31c] sm:$0xf]  ;;  %v3849_v19 = vld [vmem:[%s5042_s12 + $0x324] sm:$0xf0] }
 0x31c   : > { %4241 = vmatmul.msk.bf16.gmra.mxu3 %vm1863_vm0, %v4036_v29  ;;  %2489 = vmatmul.bf16.gmra.mxu1 %v3840_v32  ;;  %v4400_v32 = vld [vmem:[%s5042_s12 + $0x4a8] sm:$0xf0] }
 0x31d   : > { %v2740_v48 = vadd.f32 %v2739_v4, %v2451_v3  ;;  %v3868_v4 = vor.u32 %v4355_v61, %v3867_v35  ;;  %v6067_v3 = vld [vmem:[#allocation4_spill] sm:$0xff] }
 0x31f   : > { %v2947_v27 = vmax.f32 %v2740_v48, 0.0  ;;  %v2590_v62 = vpop.f32.mrf.mxu3  ;;  %v2746_v0 = vpop.f32.mrf.mxu2  ;;  %v2304_v48 = vadd.f32 %v5491_v37, %v6067_v3  ;;  %v3879_v3 = vld [vmem:[%s5042_s12 + $0x350] sm:$0xf] }
 0x320   : > { %v5704_v39 = vadd.f32 %v2590_v62, %v2302_v21  ;;  %v2163_v44 = vpop.f32.mrf.mxu0  ;;  %v6068_v21 = vld [vmem:[#allocation3_spill] sm:$0xff]  ;;  %v3848_v62 = vor.u32 %v4351_v9, %v3847_v10  ;;  %v4358_v10 = vld [vmem:[%s5042_s12 + $0x358] sm:$0xf0] }
 0x321   : > { %v5706_v1 = vmax.f32 %v2919_v63, %v2947_v27  ;;  %v2164_v36 = vadd.f32 %v5491_v37, %v2163_v44  ;;  %v2452_v8 = vpop.f32.mrf.mxu1  ;;  %v2920_v35 = vmax.f32 %v6068_v21, 0.0  ;;  %v6069_v9 = vld [vmem:[#allocation6_spill] sm:$0xff] }
 0x323   : > { %v2453_v33 = vadd.f32 %v2452_v8, %v2164_v36  ;;  %v4048_v36 = vor.u32 %v4400_v32, %v4047_v31  ;;  %v3852_v8 = vor.u32 %v4350_v47, %v3849_v19  ;;  %v2307_v31 = vadd.f32 %v5491_v37, %v6069_v9  ;;  %v6070_v32 = vld [vmem:[#allocation5_spill] sm:$0xff] }
 0x324   : > { %4227 = vmatmul.msk.bf16.gmra.mxu2 %vm1863_vm0, %v3868_v4  ;;  %v2921_v47 = vmax.f32 %v6070_v32, 0.0  ;;  %v4353_v9 = vld [vmem:[%s5042_s12 + $0x334] sm:$0xf]  ;;  %v3861_v32 = vld [vmem:[%s5042_s12 + $0x33c] sm:$0xf0] }
 0x325   : > { %v2742_v29 = vadd.f32 %v2741_v22, %v2453_v33  ;;  %v3864_v56 = vor.u32 %v4353_v9, %v3861_v32 }
 0x327   : > { %v2948_v61 = vmax.f32 %v2742_v29, 0.0  ;;  %v2592_v63 = vpop.f32.mrf.mxu3  ;;  %v2749_v27 = vpop.f32.mrf.mxu2 }
 0x328   : > { %v5719_v44 = vadd.f32 %v2592_v63, %v2304_v48  ;;  %v2166_v4 = vpop.f32.mrf.mxu0 }
 0x329   : > { %v5721_v22 = vmax.f32 %v2920_v35, %v2948_v61  ;;  %v2167_v33 = vadd.f32 %v5491_v37, %v2166_v4  ;;  %v2455_v13 = vpop.f32.mrf.mxu1  ;;  %v3859_v4 = vld [vmem:[%s5042_s12 + $0x330] sm:$0xf] }
 0x32b   : > { %v2456_v41 = vadd.f32 %v2455_v13, %v2167_v33  ;;  %2205 = vmatmul.bf16.gmra.mxu0 %v3848_v62 }
 0x32c   : > { %4242 = vmatmul.msk.bf16.gmra.mxu3 %vm1863_vm0, %v4048_v36  ;;  %2494 = vmatmul.bf16.gmra.mxu1 %v3852_v8  ;;  %v4354_v36 = vld [vmem:[%s5042_s12 + $0x338] sm:$0xf0]  ;;  %v4059_v8 = vld [vmem:[%s5042_s12 + $0x4b8] sm:$0xf] }
 0x32d   : > { %v2745_v29 = vadd.f32 %v2744_v40, %v2456_v41  ;;  %v3880_v41 = vor.u32 %v4358_v10, %v3879_v3 }
 0x32f   : > { %v2949_v19 = vmax.f32 %v2745_v29, 0.0  ;;  %v2595_v48 = vpop.f32.mrf.mxu3  ;;  %v2751_v13 = vpop.f32.mrf.mxu2  ;;  %v4403_v29 = vld [vmem:[%s5042_s12 + $0x4c0] sm:$0xf0] }
 0x330   : > { %v5730_v21 = vadd.f32 %v2595_v48, %v2307_v31  ;;  %v2168_v35 = vpop.f32.mrf.mxu0  ;;  %v2309_v31 = vadd.f32 %v5491_v37, %v6072_v14  ;;  %v6073_v48 = vld [vmem:[#allocation7_spill] sm:$0xff] }
 0x331   : > { %v5732_v40 = vmax.f32 %v2921_v47, %v2949_v19  ;;  %v2169_v61 = vadd.f32 %v5491_v37, %v2168_v35  ;;  %v2457_v63 = vpop.f32.mrf.mxu1  ;;  %v2922_v3 = vmax.f32 %v6073_v48, 0.0  ;;  %v3860_v35 = vor.u32 %v4354_v36, %v3859_v4  ;;  %v4361_v4 = vld [vmem:[%s5042_s12 + $0x370] sm:$0xf0]  ;;  %v6075_v36 = vld [vmem:[#allocation10_spill] sm:$0xff] }
 0x333   : > { %6071 = vst [vmem:[#allocation4_spill] sm:$0xff] %v5732_v40  ;;  %v2458_v62 = vadd.f32 %v2457_v63, %v2169_v61  ;;  %v4060_v63 = vor.u32 %v4403_v29, %v4059_v8  ;;  %v2312_v8 = vadd.f32 %v5491_v37, %v6075_v36  ;;  %v6076_v29 = vld [vmem:[#allocation9_spill] sm:$0xff]  ;;  %v4356_v36 = vld [vmem:[%s5042_s12 + $0x34c] sm:$0xf] }
 0x334   : > { %4228 = vmatmul.msk.bf16.gmra.mxu2 %vm1863_vm0, %v3880_v41  ;;  %v2923_v9 = vmax.f32 %v6076_v29, 0.0  ;;  %v3873_v29 = vld [vmem:[%s5042_s12 + $0x354] sm:$0xf0] }
 0x335   : > { %v2747_v33 = vadd.f32 %v2746_v0, %v2458_v62 }
 0x337   : > { %v2950_v10 = vmax.f32 %v2747_v33, 0.0  ;;  %v2597_v47 = vpop.f32.mrf.mxu3  ;;  %v2754_v19 = vpop.f32.mrf.mxu2  ;;  %v3891_v33 = vld [vmem:[%s5042_s12 + $0x368] sm:$0xf] }
 0x338   : > { %v5745_v61 = vadd.f32 %v2597_v47, %v2309_v31  ;;  %v2171_v41 = vpop.f32.mrf.mxu0 }
 0x339   : > { %v5747_v0 = vmax.f32 %v2922_v3, %v2950_v10  ;;  %v2172_v62 = vadd.f32 %v5491_v37, %v2171_v41  ;;  %v2460_v12 = vpop.f32.mrf.mxu1  ;;  %v4357_v41 = vld [vmem:[%s5042_s12 + $0x350] sm:$0xf0] }
 0x33b   : > { %6074 = vst [vmem:[#allocation3_spill] sm:$0xff] %v5747_v0  ;;  %v2461_v59 = vadd.f32 %v2460_v12, %v2172_v62  ;;  %2210 = vmatmul.bf16.gmra.mxu0 %v3860_v35  ;;  %v3871_v35 = vld [vmem:[%s5042_s12 + $0x348] sm:$0xf] }
 0x33c   : > { %4243 = vmatmul.msk.bf16.gmra.mxu3 %vm1863_vm0, %v4060_v63  ;;  %2499 = vmatmul.bf16.gmra.mxu1 %v3864_v56  ;;  %v4071_v63 = vld [vmem:[%s5042_s12 + $0x4d0] sm:$0xf]  ;;  %v6079_v0 = vld [vmem:[#allocation12_spill] sm:$0xff] }
 0x33d   : > { %v2750_v14 = vadd.f32 %v2749_v27, %v2461_v59  ;;  %v3892_v59 = vor.u32 %v4361_v4, %v3891_v33 }
 0x33f   : > { %v2951_v32 = vmax.f32 %v2750_v14, 0.0  ;;  %v2600_v31 = vpop.f32.mrf.mxu3  ;;  %v2756_v12 = vpop.f32.mrf.mxu2  ;;  %v4406_v14 = vld [vmem:[%s5042_s12 + $0x4d8] sm:$0xf0] }
 0x340   : > { %v5756_v48 = vadd.f32 %v2600_v31, %v2312_v8  ;;  %v2173_v56 = vpop.f32.mrf.mxu0  ;;  %v2314_v8 = vadd.f32 %v5491_v37, %v6079_v0  ;;  %v6080_v31 = vld [vmem:[#allocation11_spill] sm:$0xff] }
 0x341   : > { %v5758_v27 = vmax.f32 %v2923_v9, %v2951_v32  ;;  %v2174_v3 = vadd.f32 %v5491_v37, %v2173_v56  ;;  %v2462_v10 = vpop.f32.mrf.mxu1  ;;  %v2924_v33 = vmax.f32 %v6080_v31, 0.0  ;;  %v3872_v56 = vor.u32 %v4357_v41, %v3871_v35  ;;  %v4364_v35 = vld [vmem:[%s5042_s12 + $0x388] sm:$0xf0]  ;;  %v6083_v41 = vld [vmem:[#allocation14_spill] sm:$0xff] }
 0x342   : > { %6077 = vst [vmem:[#allocation6_spill] sm:$0xff] %v5756_v48 }
 0x343   : > { %6078 = vst [vmem:[#allocation5_spill] sm:$0xff] %v5758_v27  ;;  %v2463_v47 = vadd.f32 %v2462_v10, %v2174_v3  ;;  %v4072_v10 = vor.u32 %v4406_v14, %v4071_v63  ;;  %v3876_v27 = vor.u32 %v4356_v36, %v3873_v29  ;;  %v2317_v63 = vadd.f32 %v5491_v37, %v6083_v41  ;;  %v6084_v14 = vld [vmem:[#allocation13_spill] sm:$0xff]  ;;  %v4359_v41 = vld [vmem:[%s5042_s12 + $0x364] sm:$0xf] }
 0x344   : > { %4229 = vmatmul.msk.bf16.gmra.mxu2 %vm1863_vm0, %v3892_v59  ;;  %v2925_v36 = vmax.f32 %v6084_v14, 0.0  ;;  %v3885_v14 = vld [vmem:[%s5042_s12 + $0x36c] sm:$0xf0] }
 0x345   : > { %v2752_v62 = vadd.f32 %v2751_v13, %v2463_v47 }
 0x347   : > { %v2952_v4 = vmax.f32 %v2752_v62, 0.0  ;;  %v2602_v9 = vpop.f32.mrf.mxu3  ;;  %v2759_v32 = vpop.f32.mrf.mxu2  ;;  %v3903_v62 = vld [vmem:[%s5042_s12 + $0x380] sm:$0xf] }
 0x348   : > { %v5771_v3 = vadd.f32 %v2602_v9, %v2314_v8  ;;  %v2176_v59 = vpop.f32.mrf.mxu0 }
 0x349   : > { %v5773_v13 = vmax.f32 %v2924_v33, %v2952_v4  ;;  %v2177_v47 = vadd.f32 %v5491_v37, %v2176_v59  ;;  %v2465_v48 = vpop.f32.mrf.mxu1  ;;  %v4360_v59 = vld [vmem:[%s5042_s12 + $0x368] sm:$0xf0] }
 0x34a   : > { %6081 = vst [vmem:[#allocation8_spill] sm:$0xff] %v5771_v3 }
 0x34b   : > { %6082 = vst [vmem:[#allocation7_spill] sm:$0xff] %v5773_v13  ;;  %v2466_v40 = vadd.f32 %v2465_v48, %v2177_v47  ;;  %2215 = vmatmul.bf16.gmra.mxu0 %v3872_v56  ;;  %v3883_v56 = vld [vmem:[%s5042_s12 + $0x360] sm:$0xf]  ;;  %v6087_v13 = vld [vmem:[#allocation16_spill] sm:$0xff] }
 0x34c   : > { %4244 = vmatmul.msk.bf16.gmra.mxu3 %vm1863_vm0, %v4072_v10  ;;  %2504 = vmatmul.bf16.gmra.mxu1 %v3876_v27  ;;  %v4083_v10 = vld [vmem:[%s5042_s12 + $0x4e8] sm:$0xf] }
 0x34d   : > { %v2755_v0 = vadd.f32 %v2754_v19, %v2466_v40  ;;  %v3904_v40 = vor.u32 %v4364_v35, %v3903_v62 }
 0x34f   : > { %v2953_v29 = vmax.f32 %v2755_v0, 0.0  ;;  %v2605_v8 = vpop.f32.mrf.mxu3  ;;  %v2761_v48 = vpop.f32.mrf.mxu2  ;;  %v4409_v0 = vld [vmem:[%s5042_s12 + $0x4f0] sm:$0xf0] }
 0x350   : > { %v5782_v31 = vadd.f32 %v2605_v8, %v2317_v63  ;;  %v2178_v27 = vpop.f32.mrf.mxu0  ;;  %v2319_v63 = vadd.f32 %v5491_v37, %v6087_v13  ;;  %v6088_v8 = vld [vmem:[#allocation15_spill] sm:$0xff] }
 0x351   : > { %v5784_v19 = vmax.f32 %v2925_v36, %v2953_v29  ;;  %v2179_v33 = vadd.f32 %v5491_v37, %v2178_v27  ;;  %v2467_v4 = vpop.f32.mrf.mxu1  ;;  %v2926_v62 = vmax.f32 %v6088_v8, 0.0  ;;  %v3884_v27 = vor.u32 %v4360_v59, %v3883_v56  ;;  %v3915_v59 = vld [vmem:[%s5042_s12 + $0x398] sm:$0xf] }
 0x352   : > { %6085 = vst [vmem:[#allocation10_spill] sm:$0xff] %v5782_v31 }
 0x353   : > { %6086 = vst [vmem:[#allocation9_spill] sm:$0xff] %v5784_v19  ;;  %v2468_v9 = vadd.f32 %v2467_v4, %v2179_v33  ;;  %v4084_v4 = vor.u32 %v4409_v0, %v4083_v10  ;;  %v3888_v19 = vor.u32 %v4359_v41, %v3885_v14  ;;  %v4367_v10 = vld [vmem:[%s5042_s12 + $0x3a0] sm:$0xf0] }
 0x354   : > { %4230 = vmatmul.msk.bf16.gmra.mxu2 %vm1863_vm0, %v3904_v40  ;;  %v3916_v14 = vor.u32 %v4367_v10, %v3915_v59 }
 0x355   : > { %v2757_v47 = vadd.f32 %v2756_v12, %v2468_v9 }
 0x357   : > { %v2954_v35 = vmax.f32 %v2757_v47, 0.0  ;;  %v2607_v36 = vpop.f32.mrf.mxu3  ;;  %v2764_v29 = vpop.f32.mrf.mxu2 }
 0x358   : > { %v5797_v33 = vadd.f32 %v2607_v36, %v2319_v63  ;;  %v2181_v40 = vpop.f32.mrf.mxu0 }
 0x359   : > { %v5799_v12 = vmax.f32 %v2926_v62, %v2954_v35  ;;  %v2182_v9 = vadd.f32 %v5491_v37, %v2181_v40  ;;  %v2470_v31 = vpop.f32.mrf.mxu1  ;;  %v3895_v62 = vld [vmem:[%s5042_s12 + $0x378] sm:$0xf]  ;;  %v4363_v35 = vld [vmem:[%s5042_s12 + $0x380] sm:$0xf0]  ;;  %v3897_v40 = vld [vmem:[%s5042_s12 + $0x384] sm:$0xf0] }
 0x35a   : > { %6089 = vst [vmem:[#allocation12_spill] sm:$0xff] %v5797_v33 }
 0x35b   : > { %6090 = vst [vmem:[#allocation11_spill] sm:$0xff] %v5799_v12  ;;  %v2471_v13 = vadd.f32 %v2470_v31, %v2182_v9  ;;  %2220 = vmatmul.bf16.gmra.mxu0 %v3884_v27  ;;  %v4362_v27 = vld [vmem:[%s5042_s12 + $0x37c] sm:$0xf] }
 0x35c   : > { %4245 = vmatmul.msk.bf16.gmra.mxu3 %vm1863_vm0, %v4084_v4  ;;  %2509 = vmatmul.bf16.gmra.mxu1 %v3888_v19  ;;  %v4095_v19 = vld [vmem:[%s5042_s12 + $0x500] sm:$0xf] }
 0x35d   : > { %v5803_v56 = vadd.f32 %v2759_v32, %v2471_v13  ;;  %v4412_v32 = vld [vmem:[%s5042_s12 + $0x508] sm:$0xf0]  ;;  %v3896_v13 = vor.u32 %v4363_v35, %v3895_v62  ;;  %v4370_v62 = vld [vmem:[%s5042_s12 + $0x3b8] sm:$0xf0] }
 0x35e   : > { %v4096_v10 = vor.u32 %v4412_v32, %v4095_v19 }
 0x35f   : > { %6091 = vst [vmem:[#allocation14_spill] sm:$0xff] %v5803_v56  ;;  %v2766_v47 = vpop.f32.mrf.mxu2  ;;  %v2839_v0 = vpop.f32.mrf.mxu3  ;;  %v4373_v56 = vld [vmem:[%s5042_s12 + $0x3d0] sm:$0xf0] }
 0x360   : > { %v2183_v41 = vpop.f32.mrf.mxu0 }
 0x361   : > { %v2184_v63 = vadd.f32 %v5491_v37, %v2183_v41  ;;  %v2472_v31 = vpop.f32.mrf.mxu1  ;;  %v3900_v41 = vor.u32 %v4362_v27, %v3897_v40  ;;  %v5828_v27 = vld [vmem:[%s6043_s2] ss:$0 sm:$0xff] }
 0x363   : > { %v2473_v8 = vadd.f32 %v2472_v31, %v2184_v63 }
 0x364   : > { %4231 = vmatmul.msk.bf16.gmra.mxu2 %vm1863_vm0, %v3916_v14 }
 0x365   : > { %v5812_v36 = vadd.f32 %v2761_v48, %v2473_v8  ;;  %v3927_v8 = vld [vmem:[%s5042_s12 + $0x3b0] sm:$0xf] }
 0x366   : > { %v3928_v32 = vor.u32 %v4370_v62, %v3927_v8  ;;  %v3909_v8 = vld [vmem:[%s5042_s12 + $0x39c] sm:$0xf0] }
 0x367   : > { %6092 = vst [vmem:[#allocation13_spill] sm:$0xff] %v5812_v36  ;;  %v2769_v4 = vpop.f32.mrf.mxu2  ;;  %v2841_v9 = vpop.f32.mrf.mxu3  ;;  %v2840_v36 = vadd.f32 %v2839_v0, %v5499_v24 }
 0x368   : > { %v2186_v59 = vpop.f32.mrf.mxu0 }
 0x369   : > { %v2187_v63 = vadd.f32 %v5491_v37, %v2186_v59  ;;  %v2475_v31 = vpop.f32.mrf.mxu1  ;;  %v3907_v59 = vld [vmem:[%s5042_s12 + $0x390] sm:$0xf]  ;;  %v2987_v3 = vmax.f32 %v2840_v36, 0.0 }
 0x36b   : > { %v2476_v14 = vadd.f32 %v2475_v31, %v2187_v63  ;;  %2225 = vmatmul.bf16.gmra.mxu0 %v3896_v13  ;;  %v4415_v31 = vld [vmem:[%s5042_s12 + $0x520] sm:$0xf0] }
 0x36c   : > { %4246 = vmatmul.msk.bf16.gmra.mxu3 %vm1863_vm0, %v4096_v10  ;;  %2514 = vmatmul.bf16.gmra.mxu1 %v3900_v41  ;;  %v4366_v10 = vld [vmem:[%s5042_s12 + $0x398] sm:$0xf0]  ;;  %v4107_v41 = vld [vmem:[%s5042_s12 + $0x518] sm:$0xf] }
 0x36d   : > { %v5819_v48 = vadd.f32 %v2764_v29, %v2476_v14  ;;  %v4365_v14 = vld [vmem:[%s5042_s12 + $0x394] sm:$0xf] }
 0x36f   : > { %6093 = vst [vmem:[#allocation16_spill] sm:$0xff] %v5819_v48  ;;  %v2771_v35 = vpop.f32.mrf.mxu2  ;;  %v5823_v19 = vpop.f32.mrf.mxu3 }
 0x370   : > { %v2188_v37 = vpop.f32.mrf.mxu0 }
 0x371   : > { %v2189_v40 = vadd.f32 %v5828_v27, %v2188_v37  ;;  %v2477_v13 = vpop.f32.mrf.mxu1  ;;  %v3908_v37 = vor.u32 %v4366_v10, %v3907_v59 }
 0x373   : > { %v2478_v29 = vadd.f32 %v2477_v13, %v2189_v40  ;;  %v4108_v40 = vor.u32 %v4415_v31, %v4107_v41  ;;  %v3912_v13 = vor.u32 %v4365_v14, %v3909_v8 }
 0x374   : > { %4232 = vmatmul.msk.bf16.gmra.mxu2 %vm1863_vm0, %v3928_v32 }
 0x375   : > { %v5837_v63 = vadd.f32 %v2766_v47, %v2478_v29 }
 0x377   : > { %6094 = vst [vmem:[#allocation15_spill] sm:$0xff] %v5837_v63  ;;  %v2774_v62 = vpop.f32.mrf.mxu2  ;;  %v5842_v12 = vpop.f32.mrf.mxu3  ;;  %v3939_v63 = vld [vmem:[%s5042_s12 + $0x3c8] sm:$0xf] }
 0x378   : > { %v2191_v48 = vpop.f32.mrf.mxu0  ;;  %v3940_v31 = vor.u32 %v4373_v56, %v3939_v63  ;;  %v3919_v56 = vld [vmem:[%s5042_s12 + $0x3a8] sm:$0xf]  ;;  %v4119_v63 = vld [vmem:[%s5042_s12 + $0x530] sm:$0xf] }
 0x379   : > { %v2192_v33 = vadd.f32 %v5828_v27, %v2191_v48  ;;  %v2480_v32 = vpop.f32.mrf.mxu1 }
 0x37b   : > { %v2481_v47 = vadd.f32 %v2480_v32, %v2192_v33  ;;  %2230 = vmatmul.bf16.gmra.mxu0 %v3908_v37 }
 0x37c   : > { %4247 = vmatmul.msk.bf16.gmra.mxu3 %vm1863_vm0, %v4108_v40  ;;  %2519 = vmatmul.bf16.gmra.mxu1 %v3912_v13  ;;  %v4418_v40 = vld [vmem:[%s5042_s12 + $0x538] sm:$0xf0]  ;;  %v4368_v13 = vld [vmem:[%s5042_s12 + $0x3ac] sm:$0xf] }
 0x37d   : > { %v2770_v29 = vadd.f32 %v2769_v4, %v2481_v47  ;;  %v2842_v4 = vadd.f32 %v2841_v9, %v5514_v5  ;;  %v3921_v5 = vld [vmem:[%s5042_s12 + $0x3b4] sm:$0xf0] }
 0x37f   : > { %v2959_v59 = vmax.f32 %v2770_v29, 0.0  ;;  %v2776_v10 = vpop.f32.mrf.mxu2  ;;  %v5849_v48 = vpop.f32.mrf.mxu3  ;;  %v2988_v9 = vmax.f32 %v2842_v4, 0.0 }
 0x380   : > { %v2193_v41 = vpop.f32.mrf.mxu0 }
 0x381   : > { %v3043_v24 = vmax.f32 %v2959_v59, %v2987_v3  ;;  %v2194_v33 = vadd.f32 %v5828_v27, %v2193_v41  ;;  %v2482_v0 = vpop.f32.mrf.mxu1  ;;  %v4369_v3 = vld [vmem:[%s5042_s12 + $0x3b0] sm:$0xf0]  ;;  %v4120_v41 = vor.u32 %v4418_v40, %v4119_v63  ;;  %v4376_v63 = vld [vmem:[%s5042_s12 + $0x3e8] sm:$0xf0] }
 0x382   : > { %v3920_v29 = vor.u32 %v4369_v3, %v3919_v56  ;;  %v3951_v3 = vld [vmem:[%s5042_s12 + $0x3e0] sm:$0xf] }
 0x383   : > { %v3071_v36 = vmax.f32 %v5501_v54, %v3043_v24  ;;  %v2483_v14 = vadd.f32 %v2482_v0, %v2194_v33  ;;  %v2845_v0 = vadd.f32 %v5823_v19, %v5524_v16  ;;  %v3952_v19 = vor.u32 %v4376_v63, %v3951_v3 }
 0x384   : > { %4233 = vmatmul.msk.bf16.gmra.mxu2 %vm1863_vm0, %v3940_v31  ;;  %v3924_v31 = vor.u32 %v4368_v13, %v3921_v5 }
 0x385   : > { %v3099_v8 = vpack.c.bf16 %v3071_v36, %v3071_v36  ;;  %v2772_v37 = vadd.f32 %v2771_v35, %v2483_v14 }
 0x387   : > { %3128 = vst.msk [vmem:[%s5857_s4 + $0x10] sm:$0xf] %vm3123_vm1, %v3099_v8  ;;  %v2960_v54 = vmax.f32 %v2772_v37, 0.0  ;;  %v2779_v32 = vpop.f32.mrf.mxu2  ;;  %v5868_v47 = vpop.f32.mrf.mxu3  ;;  %v2989_v8 = vmax.f32 %v2845_v0, 0.0 }
 0x388   : > { %v2196_v59 = vpop.f32.mrf.mxu0 }
 0x389   : > { %v3044_v24 = vmax.f32 %v2960_v54, %v2988_v9  ;;  %v2197_v35 = vadd.f32 %v5828_v27, %v2196_v59  ;;  %v2485_v33 = vpop.f32.mrf.mxu1  ;;  %v2847_v9 = vadd.f32 %v5842_v12, %v5539_v52  ;;  %v3931_v59 = vld [vmem:[%s5042_s12 + $0x3c0] sm:$0xf] }
 0x38b   : > { %v3072_v4 = vmax.f32 %v5516_v25, %v3044_v24  ;;  %v2486_v36 = vadd.f32 %v2485_v33, %v2197_v35  ;;  %2235 = vmatmul.bf16.gmra.mxu0 %v3920_v29  ;;  %v4371_v35 = vld [vmem:[%s5042_s12 + $0x3c4] sm:$0xf]  ;;  %v3933_v33 = vld [vmem:[%s5042_s12 + $0x3cc] sm:$0xf0]  ;;  %v2990_v0 = vmax.f32 %v2847_v9, 0.0 }
 0x38c   : > { %4248 = vmatmul.msk.bf16.gmra.mxu3 %vm1863_vm0, %v4120_v41  ;;  %2524 = vmatmul.bf16.gmra.mxu1 %v3924_v31  ;;  %v4372_v41 = vld [vmem:[%s5042_s12 + $0x3c8] sm:$0xf0]  ;;  %v3936_v12 = vor.u32 %v4371_v35, %v3933_v33  ;;  %v3943_v35 = vld [vmem:[%s5042_s12 + $0x3d8] sm:$0xf]  ;;  %v4375_v33 = vld [vmem:[%s5042_s12 + $0x3e0] sm:$0xf0] }
 0x38d   : > { %v3100_v14 = vpack.c.bf16 %v3072_v4, %v3072_v4  ;;  %v2775_v56 = vadd.f32 %v2774_v62, %v2486_v36  ;;  %v3932_v52 = vor.u32 %v4372_v41, %v3931_v59 }
 0x38f   : > { %3129 = vst.msk [vmem:[%s5857_s4 + $0x14] sm:$0xf] %vm3123_vm1, %v3100_v14  ;;  %v2961_v37 = vmax.f32 %v2775_v56, 0.0  ;;  %v2781_v40 = vpop.f32.mrf.mxu2  ;;  %v5879_v16 = vpop.f32.mrf.mxu3 }
 0x390   : > { %v2198_v25 = vpop.f32.mrf.mxu0 }
 0x391   : > { %v3045_v13 = vmax.f32 %v2961_v37, %v2989_v8  ;;  %v2199_v5 = vadd.f32 %v5828_v27, %v2198_v25  ;;  %v2487_v62 = vpop.f32.mrf.mxu1 }
 0x393   : > { %v3073_v54 = vmax.f32 %v5526_v28, %v3045_v13  ;;  %v2488_v29 = vadd.f32 %v2487_v62, %v2199_v5  ;;  %v3963_v13 = vld [vmem:[%s5042_s12 + $0x3f8] sm:$0xf]  ;;  %v4379_v5 = vld [vmem:[%s5042_s12 + $0x400] sm:$0xf0] }
 0x394   : > { %4234 = vmatmul.msk.bf16.gmra.mxu2 %vm1863_vm0, %v3952_v19 }
 0x395   : > { %v3101_v31 = vpack.c.bf16 %v3073_v54, %v3073_v54  ;;  %v2777_v24 = vadd.f32 %v2776_v10, %v2488_v29  ;;  %v2850_v10 = vadd.f32 %v5849_v48, %v5549_v42 }
 0x397   : > { %3130 = vst.msk [vmem:[%s5857_s4 + $0x18] sm:$0xf] %vm3123_vm1, %v3101_v31  ;;  %v2962_v4 = vmax.f32 %v2777_v24, 0.0  ;;  %v2784_v36 = vpop.f32.mrf.mxu2  ;;  %v5892_v14 = vpop.f32.mrf.mxu3  ;;  %v2991_v62 = vmax.f32 %v2850_v10, 0.0 }
 0x398   : > { %v2201_v28 = vpop.f32.mrf.mxu0 }
 0x399   : > { %v3046_v56 = vmax.f32 %v2962_v4, %v2990_v0  ;;  %v2202_v3 = vadd.f32 %v5828_v27, %v2201_v28  ;;  %v2490_v63 = vpop.f32.mrf.mxu1  ;;  %v3945_v28 = vld [vmem:[%s5042_s12 + $0x3e4] sm:$0xf0] }
 0x39b   : > { %v3074_v8 = vmax.f32 %v5541_v46, %v3046_v56  ;;  %v2491_v37 = vadd.f32 %v2490_v63, %v2202_v3  ;;  %2240 = vmatmul.bf16.gmra.mxu0 %v3932_v52  ;;  %v3964_v46 = vor.u32 %v4379_v5, %v3963_v13  ;;  %v4374_v52 = vld [vmem:[%s5042_s12 + $0x3dc] sm:$0xf] }
 0x39c   : > { %2529 = vmatmul.bf16.gmra.mxu1 %v3936_v12 }
 0x39d   : > { %v3102_v25 = vpack.c.bf16 %v3074_v8, %v3074_v8  ;;  %v2780_v19 = vadd.f32 %v2779_v32, %v2491_v37  ;;  %v2852_v32 = vadd.f32 %v5868_v47, %v5564_v38  ;;  %v3944_v38 = vor.u32 %v4375_v33, %v3943_v35 }
 0x39e   : > { %v3948_v47 = vor.u32 %v4374_v52, %v3945_v28 }
 0x39f   : > { %3131 = vst.msk [vmem:[%s5857_s4 + $0x1c] sm:$0xf] %vm3123_vm1, %v3102_v25  ;;  %v2963_v9 = vmax.f32 %v2780_v19, 0.0  ;;  %v2786_v54 = vpop.f32.mrf.mxu2  ;;  %v2859_v29 = vpop.f32.mrf.mxu3  ;;  %v2992_v12 = vmax.f32 %v2852_v32, 0.0 }
 0x3a0   : > { %v2203_v42 = vpop.f32.mrf.mxu0 }
 0x3a1   : > { %v3047_v48 = vmax.f32 %v2963_v9, %v2991_v62  ;;  %v2204_v59 = vadd.f32 %v5828_v27, %v2203_v42  ;;  %v2492_v41 = vpop.f32.mrf.mxu1  ;;  %v3975_v62 = vld [vmem:[%s5042_s12 + $0x410] sm:$0xf]  ;;  %v4382_v9 = vld [vmem:[%s5042_s12 + $0x418] sm:$0xf0] }
 0x3a2   : > { %v3976_v32 = vor.u32 %v4382_v9, %v3975_v62 }
 0x3a3   : > { %v3075_v31 = vmax.f32 %v5551_v45, %v3047_v48  ;;  %v2493_v24 = vadd.f32 %v2492_v41, %v2204_v59 }
 0x3a4   : > { %4235 = vmatmul.msk.bf16.gmra.mxu2 %vm1863_vm0, %v3964_v46 }
 0x3a5   : > { %v3103_v0 = vpack.c.bf16 %v3075_v31, %v3075_v31  ;;  %v2782_v4 = vadd.f32 %v2781_v40, %v2493_v24  ;;  %v2855_v40 = vadd.f32 %v5879_v16, %v5574_v6  ;;  %v2857_v16 = vadd.f32 %v5892_v14, %v5589_v55 }
 0x3a6   : > { %v2860_v55 = vadd.f32 %v2859_v29, %v5600_v7 }
 0x3a7   : > { %3132 = vst.msk [vmem:[%s5857_s4 + $0x20] sm:$0xf] %vm3123_vm1, %v3103_v0  ;;  %v2964_v56 = vmax.f32 %v2782_v4, 0.0  ;;  %v2789_v3 = vpop.f32.mrf.mxu2  ;;  %v2861_v63 = vpop.f32.mrf.mxu3  ;;  %v2993_v42 = vmax.f32 %v2855_v40, 0.0  ;;  %v2994_v0 = vmax.f32 %v2857_v16, 0.0 }
 0x3a8   : > { %v2206_v45 = vpop.f32.mrf.mxu0  ;;  %v2862_v62 = vadd.f32 %v2861_v63, %v5615_v53 }
 0x3a9   : > { %v3048_v10 = vmax.f32 %v2964_v56, %v2992_v12  ;;  %v2207_v8 = vadd.f32 %v5828_v27, %v2206_v45  ;;  %v2495_v37 = vpop.f32.mrf.mxu1 }
 0x3ab   : > { %v3076_v25 = vmax.f32 %v5566_v26, %v3048_v10  ;;  %v2496_v19 = vadd.f32 %v2495_v37, %v2207_v8  ;;  %2245 = vmatmul.bf16.gmra.mxu0 %v3944_v38 }
 0x3ac   : > { %2534 = vmatmul.bf16.gmra.mxu1 %v3948_v47 }
 0x3ad   : > { %v3104_v13 = vpack.c.bf16 %v3076_v25, %v3076_v25  ;;  %v2785_v5 = vadd.f32 %v2784_v36, %v2496_v19 }
 0x3af   : > { %3133 = vst.msk [vmem:[%s5857_s4 + $0x24] sm:$0xf] %vm3123_vm1, %v3104_v13  ;;  %v2965_v46 = vmax.f32 %v2785_v5, 0.0  ;;  %v2791_v48 = vpop.f32.mrf.mxu2  ;;  %v2864_v59 = vpop.f32.mrf.mxu3 }
 0x3b0   : > { %v2208_v41 = vpop.f32.mrf.mxu0 }
 0x3b1   : > { %v3049_v31 = vmax.f32 %v2965_v46, %v2993_v42  ;;  %v2209_v6 = vadd.f32 %v5828_v27, %v2208_v41  ;;  %v2497_v26 = vpop.f32.mrf.mxu1 }
 0x3b3   : > { %v3077_v36 = vmax.f32 %v5576_v11, %v3049_v31  ;;  %v2498_v24 = vadd.f32 %v2497_v26, %v2209_v6  ;;  %v2865_v26 = vadd.f32 %v2864_v59, %v5626_v34 }
 0x3b4   : > { %4236 = vmatmul.msk.bf16.gmra.mxu2 %vm1863_vm0, %v3976_v32 }
 0x3b5   : > { %v3105_v35 = vpack.c.bf16 %v3077_v36, %v3077_v36  ;;  %v2787_v33 = vadd.f32 %v2786_v54, %v2498_v24  ;;  %v2995_v54 = vmax.f32 %v2860_v55, 0.0 }
 0x3b7   : > { %3134 = vst.msk [vmem:[%s5857_s4 + $0x28] sm:$0xf] %vm3123_vm1, %v3105_v35  ;;  %v2966_v4 = vmax.f32 %v2787_v33, 0.0  ;;  %v2794_v52 = vpop.f32.mrf.mxu2  ;;  %v2866_v28 = vpop.f32.mrf.mxu3 }
 0x3b8   : > { %v2211_v12 = vpop.f32.mrf.mxu0 }
 0x3b9   : > { %v3050_v56 = vmax.f32 %v2966_v4, %v2994_v0  ;;  %v2212_v38 = vadd.f32 %v5828_v27, %v2211_v12  ;;  %v2500_v45 = vpop.f32.mrf.mxu1 }
 0x3bb   : > { %v3078_v11 = vmax.f32 %v5591_v58, %v3050_v56  ;;  %v2501_v14 = vadd.f32 %v2500_v45, %v2212_v38  ;;  %v2867_v56 = vadd.f32 %v2866_v28, %v5641_v57 }
 0x3bd   : > { %v3106_v47 = vpack.c.bf16 %v3078_v11, %v3078_v11  ;;  %v2790_v10 = vadd.f32 %v2789_v3, %v2501_v14  ;;  %v2996_v3 = vmax.f32 %v2862_v62, 0.0  ;;  %v2998_v45 = vmax.f32 %v2867_v56, 0.0 }
 0x3bf   : > { %3135 = vst.msk [vmem:[%s5857_s4 + $0x2c] sm:$0xf] %vm3123_vm1, %v3106_v47  ;;  %v2967_v8 = vmax.f32 %v2790_v10, 0.0  ;;  %v2796_v37 = vpop.f32.mrf.mxu2  ;;  %v2869_v5 = vpop.f32.mrf.mxu3 }
 0x3c0   : > { %v2213_v40 = vpop.f32.mrf.mxu0 }
 0x3c1   : > { %v3051_v25 = vmax.f32 %v2967_v8, %v2995_v54  ;;  %v2214_v19 = vadd.f32 %v5828_v27, %v2213_v40  ;;  %v2502_v13 = vpop.f32.mrf.mxu1  ;;  %v2870_v8 = vadd.f32 %v2869_v5, %v5652_v20 }
 0x3c3   : > { %v3079_v7 = vmax.f32 %v5602_v43, %v3051_v25  ;;  %v2503_v58 = vadd.f32 %v2502_v13, %v2214_v19 }
 0x3c5   : > { %v3107_v29 = vpack.c.bf16 %v3079_v7, %v3079_v7  ;;  %v2792_v9 = vadd.f32 %v2791_v48, %v2503_v58  ;;  %v2997_v48 = vmax.f32 %v2865_v26, 0.0 }
 0x3c7   : > { %3136 = vst.msk [vmem:[%s5857_s4 + $0x30] sm:$0xf] %vm3123_vm1, %v3107_v29  ;;  %v2968_v42 = vmax.f32 %v2792_v9, 0.0  ;;  %v2799_v46 = vpop.f32.mrf.mxu2  ;;  %v2871_v43 = vpop.f32.mrf.mxu3 }
 0x3c8   : > { %v2216_v41 = vpop.f32.mrf.mxu0  ;;  %v2872_v9 = vadd.f32 %v2871_v43, %v5667_v30 }
 0x3c9   : > { %v3052_v32 = vmax.f32 %v2968_v42, %v2996_v3  ;;  %v2217_v31 = vadd.f32 %v5828_v27, %v2216_v41  ;;  %v2505_v6 = vpop.f32.mrf.mxu1 }
 0x3ca   : > { %v3000_v42 = vmax.f32 %v2872_v9, 0.0 }
 0x3cb   : > { %v3080_v53 = vmax.f32 %v5617_v18, %v3052_v32  ;;  %v2506_v63 = vadd.f32 %v2505_v6, %v2217_v31 }
 0x3cd   : > { %v3108_v16 = vpack.c.bf16 %v3080_v53, %v3080_v53  ;;  %v2795_v36 = vadd.f32 %v2794_v52, %v2506_v63 }
 0x3cf   : > { %3137 = vst.msk [vmem:[%s5857_s4 + $0x34] sm:$0xf] %vm3123_vm1, %v3108_v16  ;;  %v2969_v24 = vmax.f32 %v2795_v36, 0.0  ;;  %v2801_v35 = vpop.f32.mrf.mxu2  ;;  %v2874_v52 = vpop.f32.mrf.mxu3 }
 0x3d0   : > { %v2218_v33 = vpop.f32.mrf.mxu0  ;;  %v2875_v63 = vadd.f32 %v2874_v52, %v5678_v2 }
 0x3d1   : > { %v3053_v0 = vmax.f32 %v2969_v24, %v2997_v48  ;;  %v2219_v4 = vadd.f32 %v5828_v27, %v2218_v33  ;;  %v2507_v12 = vpop.f32.mrf.mxu1 }
 0x3d2   : > { %v3001_v36 = vmax.f32 %v2875_v63, 0.0 }
 0x3d3   : > { %v3081_v34 = vmax.f32 %v5628_v17, %v3053_v0  ;;  %v2508_v18 = vadd.f32 %v2507_v12, %v2219_v4 }
 0x3d5   : > { %v3109_v59 = vpack.c.bf16 %v3081_v34, %v3081_v34  ;;  %v2797_v38 = vadd.f32 %v2796_v37, %v2508_v18  ;;  %v2999_v37 = vmax.f32 %v2870_v8, 0.0 }
 0x3d7   : > { %3138 = vst.msk [vmem:[%s5857_s4 + $0x38] sm:$0xf] %vm3123_vm1, %v3109_v59  ;;  %v2970_v55 = vmax.f32 %v2797_v38, 0.0  ;;  %v2804_v11 = vpop.f32.mrf.mxu2  ;;  %v2876_v13 = vpop.f32.mrf.mxu3 }
 0x3d8   : > { %v2221_v14 = vpop.f32.mrf.mxu0  ;;  %v2877_v12 = vadd.f32 %v2876_v13, %v5693_v60 }
 0x3d9   : > { %v3054_v47 = vmax.f32 %v2970_v55, %v2998_v45  ;;  %v2222_v10 = vadd.f32 %v5828_v27, %v2221_v14  ;;  %v2510_v54 = vpop.f32.mrf.mxu1 }
 0x3da   : > { %v3002_v59 = vmax.f32 %v2877_v12, 0.0 }
 0x3db   : > { %v3082_v57 = vmax.f32 %v5643_v49, %v3054_v47  ;;  %v2511_v17 = vadd.f32 %v2510_v54, %v2222_v10 }
 0x3dd   : > { %v3110_v28 = vpack.c.bf16 %v3082_v57, %v3082_v57  ;;  %v2800_v40 = vadd.f32 %v2799_v46, %v2511_v17 }
 0x3df   : > { %3139 = vst.msk [vmem:[%s5857_s4 + $0x3c] sm:$0xf] %vm3123_vm1, %v3110_v28  ;;  %v2971_v25 = vmax.f32 %v2800_v40, 0.0  ;;  %v2806_v19 = vpop.f32.mrf.mxu2  ;;  %v2879_v53 = vpop.f32.mrf.mxu3 }
 0x3e0   : > { %v2223_v62 = vpop.f32.mrf.mxu0  ;;  %v2880_v47 = vadd.f32 %v2879_v53, %v5704_v39 }
 0x3e1   : > { %v3055_v7 = vmax.f32 %v2971_v25, %v2999_v37  ;;  %v2224_v58 = vadd.f32 %v5828_v27, %v2223_v62  ;;  %v2512_v29 = vpop.f32.mrf.mxu1 }
 0x3e2   : > { %v3003_v57 = vmax.f32 %v2880_v47, 0.0 }
 0x3e3   : > { %v3083_v20 = vmax.f32 %v5654_v51, %v3055_v7  ;;  %v2513_v49 = vadd.f32 %v2512_v29, %v2224_v58 }
 0x3e5   : > { %v3111_v5 = vpack.c.bf16 %v3083_v20, %v3083_v20  ;;  %v2802_v3 = vadd.f32 %v2801_v35, %v2513_v49 }
 0x3e7   : > { %3140 = vst.msk [vmem:[%s5857_s4 + $0x40] sm:$0xf] %vm3123_vm1, %v3111_v5  ;;  %v2972_v46 = vmax.f32 %v2802_v3, 0.0  ;;  %v2809_v41 = vpop.f32.mrf.mxu2 }
 0x3e8   : > { %v2226_v32 = vpop.f32.mrf.mxu0 }
 0x3e9   : > { %v3056_v31 = vmax.f32 %v2972_v46, %v3000_v42  ;;  %v2227_v6 = vadd.f32 %v5828_v27, %v2226_v32  ;;  %v2515_v26 = vpop.f32.mrf.mxu1 }
 0x3eb   : > { %v3084_v30 = vmax.f32 %v5669_v15, %v3056_v31  ;;  %v2516_v51 = vadd.f32 %v2515_v26, %v2227_v6  ;;  %v2881_v15 = vpop.f32.mrf.mxu3 }
 0x3ec   : > { %v2882_v13 = vadd.f32 %v2881_v15, %v5719_v44  ;;  %v6096_v15 = vld [vmem:[#allocation6_spill] sm:$0xff] }
 0x3ed   : > { %v3112_v43 = vpack.c.bf16 %v3084_v30, %v3084_v30  ;;  %v2805_v16 = vadd.f32 %v2804_v11, %v2516_v51 }
 0x3ee   : > { %v3004_v58 = vmax.f32 %v2882_v13, 0.0 }
 0x3ef   : > { %3141 = vst.msk [vmem:[%s5857_s4 + $0x44] sm:$0xf] %vm3123_vm1, %v3112_v43  ;;  %v2973_v48 = vmax.f32 %v2805_v16, 0.0  ;;  %v2811_v24 = vpop.f32.mrf.mxu2 }
 0x3f0   : > { %v2228_v35 = vpop.f32.mrf.mxu0 }
 0x3f1   : > { %v3057_v33 = vmax.f32 %v2973_v48, %v3001_v36  ;;  %v2229_v0 = vadd.f32 %v5828_v27, %v2228_v35  ;;  %v2517_v4 = vpop.f32.mrf.mxu1 }
 0x3f3   : > { %v3085_v2 = vmax.f32 %v5680_v23, %v3057_v33  ;;  %v2518_v56 = vadd.f32 %v2517_v4, %v2229_v0  ;;  %v2884_v8 = vpop.f32.mrf.mxu3 }
 0x3f4   : > { %v2885_v46 = vadd.f32 %v2884_v8, %v5730_v21  ;;  %v6095_v21 = vld [vmem:[#allocation4_spill] sm:$0xff] }
 0x3f5   : > { %v3113_v34 = vpack.c.bf16 %v3085_v2, %v3085_v2  ;;  %v2807_v18 = vadd.f32 %v2806_v19, %v2518_v56 }
 0x3f6   : > { %v3005_v31 = vmax.f32 %v2885_v46, 0.0  ;;  %v6103_v46 = vld [vmem:[#allocation7_spill] sm:$0xff] }
 0x3f7   : > { %3142 = vst.msk [vmem:[%s5857_s4 + $0x48] sm:$0xf] %vm3123_vm1, %v3113_v34  ;;  %v2974_v38 = vmax.f32 %v2807_v18, 0.0  ;;  %v2814_v52 = vpop.f32.mrf.mxu2  ;;  %v6097_v18 = vld [vmem:[#allocation3_spill] sm:$0xff] }
 0x3f8   : > { %v2231_v45 = vpop.f32.mrf.mxu0 }
 0x3f9   : > { %v3058_v55 = vmax.f32 %v2974_v38, %v3002_v59  ;;  %v2232_v11 = vadd.f32 %v5828_v27, %v2231_v45  ;;  %v2520_v14 = vpop.f32.mrf.mxu1 }
 0x3fb   : > { %v3086_v60 = vmax.f32 %v5695_v50, %v3058_v55  ;;  %v2521_v23 = vadd.f32 %v2520_v14, %v2232_v11  ;;  %v2886_v20 = vpop.f32.mrf.mxu3 }
 0x3fc   : > { %v2887_v16 = vadd.f32 %v2886_v20, %v5745_v61  ;;  %v6101_v20 = vld [vmem:[#allocation14_spill] sm:$0xff] }
 0x3fd   : > { %v3114_v10 = vpack.c.bf16 %v3086_v60, %v3086_v60  ;;  %v2810_v54 = vadd.f32 %v2809_v41, %v2521_v23 }
 0x3fe   : > { %v3006_v35 = vmax.f32 %v2887_v16, 0.0  ;;  %v6105_v16 = vld [vmem:[#allocation19_spill] sm:$0xff] }
 0x3ff   : > { %3143 = vst.msk [vmem:[%s5857_s4 + $0x4c] sm:$0xf] %vm3123_vm1, %v3114_v10  ;;  %v2975_v17 = vmax.f32 %v2810_v54, 0.0  ;;  %v2816_v28 = vpop.f32.mrf.mxu2  ;;  %v6098_v54 = vld [vmem:[#allocation8_spill] sm:$0xff] }
 0x400   : > { %v2233_v40 = vpop.f32.mrf.mxu0 }
 0x401   : > { %v3059_v37 = vmax.f32 %v2975_v17, %v3003_v57  ;;  %v2234_v25 = vadd.f32 %v5828_v27, %v2233_v40  ;;  %v2522_v19 = vpop.f32.mrf.mxu1  ;;  %v6099_v57 = vld [vmem:[#allocation5_spill] sm:$0xff] }
 0x403   : > { %v3087_v39 = vmax.f32 %v5706_v1, %v3059_v37  ;;  %v2523_v50 = vadd.f32 %v2522_v19, %v2234_v25  ;;  %v2889_v43 = vpop.f32.mrf.mxu3 }
 0x404   : > { %v2890_v34 = vadd.f32 %v2889_v43, %v6096_v15 }
 0x405   : > { %v3115_v62 = vpack.c.bf16 %v3087_v39, %v3087_v39  ;;  %v2812_v7 = vadd.f32 %v2811_v24, %v2523_v50  ;;  %v6100_v50 = vld [vmem:[#allocation17_spill] sm:$0xff] }
 0x406   : > { %v3007_v55 = vmax.f32 %v2890_v34, 0.0 }
 0x407   : > { %3144 = vst.msk [vmem:[%s5857_s4 + $0x50] sm:$0xf] %vm3123_vm1, %v3115_v62  ;;  %v2976_v29 = vmax.f32 %v2812_v7, 0.0  ;;  %v2819_v9 = vpop.f32.mrf.mxu2 }
 0x408   : > { %v2236_v49 = vpop.f32.mrf.mxu0 }
 0x409   : > { %v3060_v5 = vmax.f32 %v2976_v29, %v3004_v58  ;;  %v2237_v3 = vadd.f32 %v5828_v27, %v2236_v49  ;;  %v2525_v42 = vpop.f32.mrf.mxu1  ;;  %v2955_v49 = vmax.f32 %v6101_v20, 0.0 }
 0x40b   : > { %v3088_v44 = vmax.f32 %v5721_v22, %v3060_v5  ;;  %v2526_v1 = vadd.f32 %v2525_v42, %v2237_v3  ;;  %v2891_v38 = vpop.f32.mrf.mxu3  ;;  %v6102_v3 = vld [vmem:[#allocation10_spill] sm:$0xff] }
 0x40c   : > { %v2892_v8 = vadd.f32 %v2891_v38, %v6098_v54 }
 0x40d   : > { %v3116_v41 = vpack.c.bf16 %v3088_v44, %v3088_v44  ;;  %v2815_v32 = vadd.f32 %v2814_v52, %v2526_v1 }
 0x40e   : > { %v3008_v19 = vmax.f32 %v2892_v8, 0.0 }
 0x40f   : > { %3145 = vst.msk [vmem:[%s5857_s4 + $0x54] sm:$0xf] %vm3123_vm1, %v3116_v41  ;;  %v2977_v6 = vmax.f32 %v2815_v32, 0.0  ;;  %v2821_v26 = vpop.f32.mrf.mxu2 }
 0x410   : > { %v2238_v53 = vpop.f32.mrf.mxu0 }
 0x411   : > { %v3061_v63 = vmax.f32 %v2977_v6, %v3005_v31  ;;  %v2239_v30 = vadd.f32 %v5828_v27, %v2238_v53  ;;  %v2527_v51 = vpop.f32.mrf.mxu1  ;;  %v6104_v6 = vld [vmem:[#allocation18_spill] sm:$0xff] }
 0x413   : > { %v3089_v36 = vmax.f32 %v6095_v21, %v3061_v63  ;;  %v2528_v22 = vadd.f32 %v2527_v51, %v2239_v30  ;;  %v2894_v25 = vpop.f32.mrf.mxu3 }
 0x414   : > { %v2895_v42 = vadd.f32 %v2894_v25, %v6102_v3 }
 0x415   : > { %v3117_v48 = vpack.c.bf16 %v3089_v36, %v3089_v36  ;;  %v2817_v24 = vadd.f32 %v2816_v28, %v2528_v22 }
 0x416   : > { %v3009_v53 = vmax.f32 %v2895_v42, 0.0 }
 0x417   : > { %3146 = vst.msk [vmem:[%s5857_s4 + $0x58] sm:$0xf] %vm3123_vm1, %v3117_v48  ;;  %v2978_v33 = vmax.f32 %v2817_v24, 0.0  ;;  %v2824_v0 = vpop.f32.mrf.mxu2 }
 0x418   : > { %v2241_v4 = vpop.f32.mrf.mxu0 }
 0x419   : > { %v3062_v12 = vmax.f32 %v2978_v33, %v3006_v35  ;;  %v2242_v2 = vadd.f32 %v5828_v27, %v2241_v4  ;;  %v2530_v56 = vpop.f32.mrf.mxu1  ;;  %v6106_v35 = vld [vmem:[#allocation13_spill] sm:$0xff]  ;;  %v6107_v4 = vld [vmem:[#allocation12_spill] sm:$0xff] }
 0x41a   : > { %v2956_v33 = vmax.f32 %v6106_v35, 0.0 }
 0x41b   : > { %v3090_v61 = vmax.f32 %v6097_v18, %v3062_v12  ;;  %v2531_v59 = vadd.f32 %v2530_v56, %v2242_v2  ;;  %v2896_v51 = vpop.f32.mrf.mxu3  ;;  %v6108_v2 = vld [vmem:[#allocation9_spill] sm:$0xff] }
 0x41c   : > { %v2897_v12 = vadd.f32 %v2896_v51, %v6107_v4 }
 0x41d   : > { %v3118_v52 = vpack.c.bf16 %v3090_v61, %v3090_v61  ;;  %v2820_v45 = vadd.f32 %v2819_v9, %v2531_v59  ;;  %v6109_v59 = vld [vmem:[#allocation20_spill] sm:$0xff] }
 0x41f   : > { %3147 = vst.msk [vmem:[%s5857_s4 + $0x5c] sm:$0xf] %vm3123_vm1, %v3118_v52  ;;  %v2979_v11 = vmax.f32 %v2820_v45, 0.0  ;;  %v2826_v14 = vpop.f32.mrf.mxu2  ;;  %v3010_v52 = vmax.f32 %v2897_v12, 0.0 }
 0x420   : > { %v2243_v47 = vpop.f32.mrf.mxu0 }
 0x421   : > { %v3063_v60 = vmax.f32 %v2979_v11, %v3007_v55  ;;  %v2244_v23 = vadd.f32 %v5828_v27, %v2243_v47  ;;  %v2532_v10 = vpop.f32.mrf.mxu1  ;;  %v6110_v11 = vld [vmem:[#allocation21_spill] sm:$0xff] }
 0x423   : > { %v3091_v17 = vmax.f32 %v6099_v57, %v3063_v60  ;;  %v2533_v28 = vadd.f32 %v2532_v10, %v2244_v23  ;;  %v6111_v23 = vld [vmem:[#allocation16_spill] sm:$0xff] }
 0x424   : > { %v2957_v10 = vmax.f32 %v6111_v23, 0.0 }
 0x425   : > { %v3119_v40 = vpack.c.bf16 %v3091_v17, %v3091_v17  ;;  %v2822_v37 = vadd.f32 %v2821_v26, %v2533_v28  ;;  %v6113_v28 = vld [vmem:[#allocation22_spill] sm:$0xff] }
 0x427   : > { %3148 = vst.msk [vmem:[%s5857_s4 + $0x60] sm:$0xf] %vm3123_vm1, %v3119_v40  ;;  %v2980_v13 = vmax.f32 %v2822_v37, 0.0  ;;  %v2829_v39 = vpop.f32.mrf.mxu2 }
 0x428   : > { %v2830_v62 = vadd.f32 %v2829_v39, %v6100_v50  ;;  %v2246_v7 = vpop.f32.mrf.mxu0  ;;  %v6115_v39 = vld [vmem:[#allocation15_spill] sm:$0xff] }
 0x429   : > { %v3064_v58 = vmax.f32 %v2980_v13, %v3008_v19  ;;  %v2247_v29 = vadd.f32 %v5828_v27, %v2246_v7  ;;  %v2535_v9 = vpop.f32.mrf.mxu1  ;;  %v6114_v19 = vld [vmem:[#allocation23_spill] sm:$0xff]  ;;  %v2958_v50 = vmax.f32 %v6115_v39, 0.0 }
 0x42a   : > { %v2983_v5 = vmax.f32 %v2830_v62, 0.0 }
 0x42b   : > { %v3092_v44 = vmax.f32 %v6103_v46, %v3064_v58  ;;  %v2536_v1 = vadd.f32 %v2535_v9, %v2247_v29  ;;  %v6116_v58 = vld [vmem:[#allocation24_spill] sm:$0xff] }
 0x42c   : > { %v3039_v41 = vmax.f32 %v2955_v49, %v2983_v5 }
 0x42d   : > { %v3120_v32 = vpack.c.bf16 %v3092_v44, %v3092_v44  ;;  %v2825_v31 = vadd.f32 %v2824_v0, %v2536_v1 }
 0x42e   : > { %v3067_v26 = vmax.f32 %v6104_v6, %v3039_v41 }
 0x42f   : > { %3149 = vst.msk [vmem:[%s5857_s4 + $0x64] sm:$0xf] %vm3123_vm1, %v3120_v32  ;;  %v2981_v63 = vmax.f32 %v2825_v31, 0.0  ;;  %v2831_v30 = vpop.f32.mrf.mxu2 }
 0x430   : > { %v3095_v43 = vpack.c.bf16 %v3067_v26, %v3067_v26  ;;  %v2832_v21 = vadd.f32 %v2831_v30, %v6105_v16  ;;  %v2248_v36 = vpop.f32.mrf.mxu0 }
 0x431   : > { %v3065_v22 = vmax.f32 %v2981_v63, %v3009_v53  ;;  %v2249_v48 = vadd.f32 %v5828_v27, %v2248_v36  ;;  %v2537_v24 = vpop.f32.mrf.mxu1 }
 0x432   : > { %3124 = vst.msk [vmem:[%s5857_s4] sm:$0xf] %vm3123_vm1, %v3095_v43  ;;  %v2984_v0 = vmax.f32 %v2832_v21, 0.0 }
 0x433   : > { %v3093_v56 = vmax.f32 %v6108_v2, %v3065_v22  ;;  %v2538_v15 = vadd.f32 %v2537_v24, %v2249_v48 }
 0x434   : > { %v3040_v34 = vmax.f32 %v2956_v33, %v2984_v0 }
 0x435   : > { %v3121_v18 = vpack.c.bf16 %v3093_v56, %v3093_v56  ;;  %v2827_v61 = vadd.f32 %v2826_v14, %v2538_v15  ;;  %v6112_v14 = vld [vmem:[#allocation11_spill] sm:$0xff] }
 0x436   : > { %v3068_v38 = vmax.f32 %v6109_v59, %v3040_v34 }
 0x437   : > { %3150 = vst.msk [vmem:[%s5857_s4 + $0x68] sm:$0xf] %vm3123_vm1, %v3121_v18  ;;  %v2982_v27 = vmax.f32 %v2827_v61, 0.0  ;;  %v2834_v45 = vpop.f32.mrf.mxu2 }
 0x438   : > { %v3096_v55 = vpack.c.bf16 %v3068_v38, %v3068_v38  ;;  %v2835_v47 = vadd.f32 %v2834_v45, %v6110_v11 }
 0x439   : > { %v3066_v60 = vmax.f32 %v2982_v27, %v3010_v52 }
 0x43a   : > { %3125 = vst.msk [vmem:[%s5857_s4 + $0x4] sm:$0xf] %vm3123_vm1, %v3096_v55  ;;  %v2985_v54 = vmax.f32 %v2835_v47, 0.0 }
 0x43b   : > { %v3094_v8 = vmax.f32 %v6112_v14, %v3066_v60 }
 0x43c   : > { %v3041_v57 = vmax.f32 %v2957_v10, %v2985_v54 }
 0x43d   : > { %v3122_v17 = vpack.c.bf16 %v3094_v8, %v3094_v8 }
 0x43e   : > { %v3069_v40 = vmax.f32 %v6113_v28, %v3041_v57 }
 0x43f   : > { %3151 = vst.msk [vmem:[%s5857_s4 + $0x6c] sm:$0xf] %vm3123_vm1, %v3122_v17  ;;  %v2836_v37 = vpop.f32.mrf.mxu2 }
 0x440   : > { %v3097_v25 = vpack.c.bf16 %v3069_v40, %v3069_v40  ;;  %v2837_v13 = vadd.f32 %v2836_v37, %v6114_v19 }
 0x442   : > { %3126 = vst.msk [vmem:[%s5857_s4 + $0x8] sm:$0xf] %vm3123_vm1, %v3097_v25  ;;  %v2986_v62 = vmax.f32 %v2837_v13, 0.0 }
 0x444   : > { %v3042_v7 = vmax.f32 %v2958_v50, %v2986_v62 }
 0x446   : > { %v3070_v29 = vmax.f32 %v6116_v58, %v3042_v7 }
 0x448   : > { %v3098_v9 = vpack.c.bf16 %v3070_v29, %v3070_v29 }
 0x44a   : > { %3127 = vst.msk [vmem:[%s5857_s4 + $0xc] sm:$0xf] %vm3123_vm1, %v3098_v9 }
 0x44b PF: > { %p10_p9 = scmp.ge.s32.totalorder %s4547_s16, 4   ;;  %s6117_s12 = smov %s4504_s13 }
 0x44c   : > { %s6118_s13 = smov %s4556_s19  ;;  %s6119_s14 = smov %s4547_s16 }
 0x44d   :  { %12 = sbr.rel (!%p10_p9) target bundleno = 2 (0x2), region = 99 }

// kernel: eye_tracking_cnn_forward.6
= control target key start
LH: loop header
LB: loop body
LE: loop exit
PB: predicated region body
PF: predicated region fallthrough
CT: control target
= control target key end

     0   :  { %s2176_s12 = smov 0   ;;  %s2178_s13 = smov 0   ;;  %s2796_s0 = inlined_call_operand.vmem [shape: bf16[4,96,576], index: 0, kind: input, shape index: {}]   ;;  %s2797_s1 = inlined_call_operand.vmem [shape: bf16[576,128], index: 1, kind: input, shape index: {}]   ;;  %s2798_s2 = inlined_call_operand.vmem [shape: f32[1,128], index: 2, kind: input, shape index: {}]   ;;  %s2799_s3 = inlined_call_operand.vmem [shape: bf16[96,128], index: 3, kind: output, shape index: {}]  }
   0x1   :  { %s2180_s14 = smov 0  }
   0x2 LB: > { %s1513_s15 = sadd.s32 4294967295, %s2154_s14   ;;  %s2193_s16 = sadd.s32 1, %s2154_s14   ;;  %s2154_s14 = sphi %s2180_s14, %s2802_s14   ;;  %s2150_s13 = sphi %s2178_s13, %s2801_s13   ;;  %s2146_s12 = sphi %s2176_s12, %s2800_s12  }
   0x3   : > { %s17_s17 = ssub.s32 %s2154_s14, %s2193_s16  ;;  %s20_s18 = sadd.s32 1, %s2150_s13 }
   0x4   : > { %p18_p0 = scmp.eq.s32.totalorder %s17_s17, 0  ;;  %p27_p1 = scmp.ne.s32.totalorder %s2150_s13, %s2146_s12 }
   0x5   : > { %p28_p2 = scmp.eq.s32.totalorder %s2154_s14, 0  ;;  %p1516_p4 = scmp.ge.s32.totalorder %s2154_s14, 2 }
   0x6   : > { %s2202_s19 = scalar_select %p18_p0, %s2150_s13, %s20_s18  }
   0x7   : > { %p29_p3 = por %p28_p2, %p27_p1  ;;  %127 = sbr.rel (%p1516_p4) target bundleno = 90 (0x5a), region = 24 }
   0xc   : > { %130 = sbr.rel (!%p29_p3) target bundleno = 90 (0x5a), region = 28  ;;  %s132_s20 = sand.u32 (%p29_p3), 1, %s2150_s13  }
   0xd   : > { %s2103_s21 = smul.u32 (%p29_p3), 480, %s132_s20 }
   0xe   : > { %s2106_s22 = smul.u32 (%p29_p3), 120, %s2154_s14 }
   0xf   : > { %s2215_s26 = scalar_lea.vmem (%p29_p3), [#allocation2], %s2103_s21 }
  0x10   : > { %s2210_s25 = scalar_lea.vmem (%p29_p3), %s2796_s0, %s2106_s22 }
  0x11   : > { %v153_v0 = vld [vmem:[%s2210_s25] sm:$0xff]  ;;  %v155_v1 = vld [vmem:[%s2210_s25 + $0x8] sm:$0xff]  ;;  %v157_v2 = vld [vmem:[%s2210_s25 + $0x14] sm:$0xff] }
  0x12   : > { %154 = vst [vmem:[%s2215_s26] sm:$0xff] %v153_v0  ;;  %v159_v3 = vld [vmem:[%s2210_s25 + $0x1c] sm:$0xff]  ;;  %v161_v4 = vld [vmem:[%s2210_s25 + $0x28] sm:$0xff]  ;;  %v163_v5 = vld [vmem:[%s2210_s25 + $0x30] sm:$0xff] }
  0x13   : > { %156 = vst [vmem:[%s2215_s26 + $0x8] sm:$0xff] %v155_v1  ;;  %v165_v6 = vld [vmem:[%s2210_s25 + $0x3c] sm:$0xff]  ;;  %v167_v7 = vld [vmem:[%s2210_s25 + $0x44] sm:$0xff]  ;;  %v169_v8 = vld [vmem:[%s2210_s25 + $0x50] sm:$0xff] }
  0x14   : > { %158 = vst [vmem:[%s2215_s26 + $0x14] sm:$0xff] %v157_v2  ;;  %v171_v9 = vld [vmem:[%s2210_s25 + $0x58] sm:$0xff]  ;;  %v173_v10 = vld [vmem:[%s2210_s25 + $0x64] sm:$0xff]  ;;  %v175_v11 = vld [vmem:[%s2210_s25 + $0x6c] sm:$0xff] }
  0x15   : > { %160 = vst [vmem:[%s2215_s26 + $0x1c] sm:$0xff] %v159_v3  ;;  %v177_v12 = vld [vmem:[%s2210_s25 + $0xf0] sm:$0xff]  ;;  %v179_v13 = vld [vmem:[%s2210_s25 + $0xf8] sm:$0xff]  ;;  %v181_v14 = vld [vmem:[%s2210_s25 + $0x104] sm:$0xff] }
  0x16   : > { %162 = vst [vmem:[%s2215_s26 + $0x28] sm:$0xff] %v161_v4  ;;  %v183_v15 = vld [vmem:[%s2210_s25 + $0x10c] sm:$0xff]  ;;  %v185_v16 = vld [vmem:[%s2210_s25 + $0x118] sm:$0xff]  ;;  %v187_v17 = vld [vmem:[%s2210_s25 + $0x120] sm:$0xff] }
  0x17   : > { %164 = vst [vmem:[%s2215_s26 + $0x30] sm:$0xff] %v163_v5  ;;  %v189_v18 = vld [vmem:[%s2210_s25 + $0x12c] sm:$0xff]  ;;  %v191_v19 = vld [vmem:[%s2210_s25 + $0x134] sm:$0xff]  ;;  %v193_v20 = vld [vmem:[%s2210_s25 + $0x140] sm:$0xff] }
  0x18   : > { %166 = vst [vmem:[%s2215_s26 + $0x3c] sm:$0xff] %v165_v6  ;;  %v195_v21 = vld [vmem:[%s2210_s25 + $0x148] sm:$0xff]  ;;  %v197_v22 = vld [vmem:[%s2210_s25 + $0x154] sm:$0xff]  ;;  %v199_v23 = vld [vmem:[%s2210_s25 + $0x15c] sm:$0xff] }
  0x19   : > { %168 = vst [vmem:[%s2215_s26 + $0x44] sm:$0xff] %v167_v7  ;;  %v201_v24 = vld [vmem:[%s2210_s25 + $0x1e0] sm:$0xff]  ;;  %v203_v25 = vld [vmem:[%s2210_s25 + $0x1e8] sm:$0xff]  ;;  %v205_v26 = vld [vmem:[%s2210_s25 + $0x1f4] sm:$0xff] }
  0x1a   : > { %170 = vst [vmem:[%s2215_s26 + $0x50] sm:$0xff] %v169_v8  ;;  %v207_v27 = vld [vmem:[%s2210_s25 + $0x1fc] sm:$0xff]  ;;  %v209_v28 = vld [vmem:[%s2210_s25 + $0x208] sm:$0xff]  ;;  %v211_v29 = vld [vmem:[%s2210_s25 + $0x210] sm:$0xff] }
  0x1b   : > { %172 = vst [vmem:[%s2215_s26 + $0x58] sm:$0xff] %v171_v9  ;;  %v213_v30 = vld [vmem:[%s2210_s25 + $0x21c] sm:$0xff]  ;;  %v215_v31 = vld [vmem:[%s2210_s25 + $0x224] sm:$0xff]  ;;  %v217_v32 = vld [vmem:[%s2210_s25 + $0x230] sm:$0xff] }
  0x1c   : > { %174 = vst [vmem:[%s2215_s26 + $0x64] sm:$0xff] %v173_v10  ;;  %v219_v33 = vld [vmem:[%s2210_s25 + $0x238] sm:$0xff]  ;;  %v221_v34 = vld [vmem:[%s2210_s25 + $0x244] sm:$0xff]  ;;  %v223_v35 = vld [vmem:[%s2210_s25 + $0x24c] sm:$0xff] }
  0x1d   : > { %176 = vst [vmem:[%s2215_s26 + $0x6c] sm:$0xff] %v175_v11  ;;  %v225_v36 = vld [vmem:[%s2210_s25 + $0x2d0] sm:$0xff]  ;;  %v227_v37 = vld [vmem:[%s2210_s25 + $0x2d8] sm:$0xff]  ;;  %v229_v38 = vld [vmem:[%s2210_s25 + $0x2e4] sm:$0xff] }
  0x1e   : > { %178 = vst [vmem:[%s2215_s26 + $0x78] sm:$0xff] %v177_v12  ;;  %v231_v39 = vld [vmem:[%s2210_s25 + $0x2ec] sm:$0xff]  ;;  %v233_v40 = vld [vmem:[%s2210_s25 + $0x2f8] sm:$0xff]  ;;  %v235_v41 = vld [vmem:[%s2210_s25 + $0x300] sm:$0xff] }
  0x1f   : > { %180 = vst [vmem:[%s2215_s26 + $0x80] sm:$0xff] %v179_v13  ;;  %v237_v42 = vld [vmem:[%s2210_s25 + $0x30c] sm:$0xff]  ;;  %v239_v43 = vld [vmem:[%s2210_s25 + $0x314] sm:$0xff]  ;;  %v241_v44 = vld [vmem:[%s2210_s25 + $0x320] sm:$0xff] }
  0x20   : > { %182 = vst [vmem:[%s2215_s26 + $0x8c] sm:$0xff] %v181_v14  ;;  %v243_v45 = vld [vmem:[%s2210_s25 + $0x328] sm:$0xff]  ;;  %v245_v46 = vld [vmem:[%s2210_s25 + $0x334] sm:$0xff]  ;;  %v247_v47 = vld [vmem:[%s2210_s25 + $0x33c] sm:$0xff] }
  0x21   : > { %184 = vst [vmem:[%s2215_s26 + $0x94] sm:$0xff] %v183_v15  ;;  %v1518_v48 = vld [vmem:[%s2210_s25 + $0x10] sm:$0xf]  ;;  %v1520_v49 = vld [vmem:[%s2210_s25 + $0x24] sm:$0xf] }
  0x22   : > { %186 = vst [vmem:[%s2215_s26 + $0xa0] sm:$0xff] %v185_v16  ;;  %v1522_v50 = vld [vmem:[%s2210_s25 + $0x38] sm:$0xf]  ;;  %v1524_v51 = vld [vmem:[%s2210_s25 + $0x4c] sm:$0xf] }
  0x23   : > { %188 = vst [vmem:[%s2215_s26 + $0xa8] sm:$0xff] %v187_v17  ;;  %v1526_v52 = vld [vmem:[%s2210_s25 + $0x60] sm:$0xf]  ;;  %v1528_v53 = vld [vmem:[%s2210_s25 + $0x74] sm:$0xf] }
  0x24   : > { %190 = vst [vmem:[%s2215_s26 + $0xb4] sm:$0xff] %v189_v18  ;;  %v1530_v54 = vld [vmem:[%s2210_s25 + $0x100] sm:$0xf]  ;;  %v1532_v55 = vld [vmem:[%s2210_s25 + $0x114] sm:$0xf] }
  0x25   : > { %192 = vst [vmem:[%s2215_s26 + $0xbc] sm:$0xff] %v191_v19  ;;  %v1534_v56 = vld [vmem:[%s2210_s25 + $0x128] sm:$0xf]  ;;  %v1536_v57 = vld [vmem:[%s2210_s25 + $0x13c] sm:$0xf] }
  0x26   : > { %194 = vst [vmem:[%s2215_s26 + $0xc8] sm:$0xff] %v193_v20  ;;  %v1538_v58 = vld [vmem:[%s2210_s25 + $0x150] sm:$0xf]  ;;  %v1540_v59 = vld [vmem:[%s2210_s25 + $0x164] sm:$0xf] }
  0x27   : > { %196 = vst [vmem:[%s2215_s26 + $0xd0] sm:$0xff] %v195_v21  ;;  %v1542_v60 = vld [vmem:[%s2210_s25 + $0x1f0] sm:$0xf]  ;;  %v1544_v61 = vld [vmem:[%s2210_s25 + $0x204] sm:$0xf] }
  0x28   : > { %198 = vst [vmem:[%s2215_s26 + $0xdc] sm:$0xff] %v197_v22  ;;  %v1546_v62 = vld [vmem:[%s2210_s25 + $0x218] sm:$0xf]  ;;  %v1548_v63 = vld [vmem:[%s2210_s25 + $0x22c] sm:$0xf] }
  0x29   : > { %200 = vst [vmem:[%s2215_s26 + $0xe4] sm:$0xff] %v199_v23  ;;  %v1550_v0 = vld [vmem:[%s2210_s25 + $0x240] sm:$0xf]  ;;  %v1552_v1 = vld [vmem:[%s2210_s25 + $0x254] sm:$0xf] }
  0x2a   : > { %202 = vst [vmem:[%s2215_s26 + $0xf0] sm:$0xff] %v201_v24  ;;  %v1554_v2 = vld [vmem:[%s2210_s25 + $0x2e0] sm:$0xf]  ;;  %v1556_v3 = vld [vmem:[%s2210_s25 + $0x2f4] sm:$0xf] }
  0x2b   : > { %204 = vst [vmem:[%s2215_s26 + $0xf8] sm:$0xff] %v203_v25  ;;  %v1558_v4 = vld [vmem:[%s2210_s25 + $0x308] sm:$0xf]  ;;  %v1560_v5 = vld [vmem:[%s2210_s25 + $0x31c] sm:$0xf] }
  0x2c   : > { %206 = vst [vmem:[%s2215_s26 + $0x104] sm:$0xff] %v205_v26  ;;  %v1562_v6 = vld [vmem:[%s2210_s25 + $0x330] sm:$0xf]  ;;  %v1564_v7 = vld [vmem:[%s2210_s25 + $0x344] sm:$0xf] }
  0x2d   : > { %208 = vst [vmem:[%s2215_s26 + $0x10c] sm:$0xff] %v207_v27 }
  0x2e   : > { %210 = vst [vmem:[%s2215_s26 + $0x118] sm:$0xff] %v209_v28 }
  0x2f   : > { %212 = vst [vmem:[%s2215_s26 + $0x120] sm:$0xff] %v211_v29 }
  0x30   : > { %214 = vst [vmem:[%s2215_s26 + $0x12c] sm:$0xff] %v213_v30 }
  0x31   : > { %216 = vst [vmem:[%s2215_s26 + $0x134] sm:$0xff] %v215_v31 }
  0x32   : > { %218 = vst [vmem:[%s2215_s26 + $0x140] sm:$0xff] %v217_v32 }
  0x33   : > { %220 = vst [vmem:[%s2215_s26 + $0x148] sm:$0xff] %v219_v33 }
  0x34   : > { %222 = vst [vmem:[%s2215_s26 + $0x154] sm:$0xff] %v221_v34 }
  0x35   : > { %224 = vst [vmem:[%s2215_s26 + $0x15c] sm:$0xff] %v223_v35 }
  0x36   : > { %226 = vst [vmem:[%s2215_s26 + $0x168] sm:$0xff] %v225_v36 }
  0x37   : > { %228 = vst [vmem:[%s2215_s26 + $0x170] sm:$0xff] %v227_v37 }
  0x38   : > { %230 = vst [vmem:[%s2215_s26 + $0x17c] sm:$0xff] %v229_v38 }
  0x39   : > { %232 = vst [vmem:[%s2215_s26 + $0x184] sm:$0xff] %v231_v39 }
  0x3a   : > { %234 = vst [vmem:[%s2215_s26 + $0x190] sm:$0xff] %v233_v40 }
  0x3b   : > { %236 = vst [vmem:[%s2215_s26 + $0x198] sm:$0xff] %v235_v41 }
  0x3c   : > { %238 = vst [vmem:[%s2215_s26 + $0x1a4] sm:$0xff] %v237_v42 }
  0x3d   : > { %240 = vst [vmem:[%s2215_s26 + $0x1ac] sm:$0xff] %v239_v43 }
  0x3e   : > { %242 = vst [vmem:[%s2215_s26 + $0x1b8] sm:$0xff] %v241_v44 }
  0x3f   : > { %244 = vst [vmem:[%s2215_s26 + $0x1c0] sm:$0xff] %v243_v45 }
  0x40   : > { %246 = vst [vmem:[%s2215_s26 + $0x1cc] sm:$0xff] %v245_v46 }
  0x41   : > { %248 = vst [vmem:[%s2215_s26 + $0x1d4] sm:$0xff] %v247_v47 }
  0x42   : > { %1519 = vst [vmem:[%s2215_s26 + $0x10] sm:$0xf] %v1518_v48 }
  0x43   : > { %1521 = vst [vmem:[%s2215_s26 + $0x24] sm:$0xf] %v1520_v49 }
  0x44   : > { %1523 = vst [vmem:[%s2215_s26 + $0x38] sm:$0xf] %v1522_v50 }
  0x45   : > { %1525 = vst [vmem:[%s2215_s26 + $0x4c] sm:$0xf] %v1524_v51 }
  0x46   : > { %1527 = vst [vmem:[%s2215_s26 + $0x60] sm:$0xf] %v1526_v52 }
  0x47   : > { %1529 = vst [vmem:[%s2215_s26 + $0x74] sm:$0xf] %v1528_v53 }
  0x48   : > { %1531 = vst [vmem:[%s2215_s26 + $0x88] sm:$0xf] %v1530_v54 }
  0x49   : > { %1533 = vst [vmem:[%s2215_s26 + $0x9c] sm:$0xf] %v1532_v55 }
  0x4a   : > { %1535 = vst [vmem:[%s2215_s26 + $0xb0] sm:$0xf] %v1534_v56 }
  0x4b   : > { %1537 = vst [vmem:[%s2215_s26 + $0xc4] sm:$0xf] %v1536_v57 }
  0x4c   : > { %1539 = vst [vmem:[%s2215_s26 + $0xd8] sm:$0xf] %v1538_v58 }
  0x4d   : > { %1541 = vst [vmem:[%s2215_s26 + $0xec] sm:$0xf] %v1540_v59 }
  0x4e   : > { %1543 = vst [vmem:[%s2215_s26 + $0x100] sm:$0xf] %v1542_v60 }
  0x4f   : > { %1545 = vst [vmem:[%s2215_s26 + $0x114] sm:$0xf] %v1544_v61 }
  0x50   : > { %1547 = vst [vmem:[%s2215_s26 + $0x128] sm:$0xf] %v1546_v62 }
  0x51   : > { %1549 = vst [vmem:[%s2215_s26 + $0x13c] sm:$0xf] %v1548_v63 }
  0x52   : > { %1551 = vst [vmem:[%s2215_s26 + $0x150] sm:$0xf] %v1550_v0 }
  0x53   : > { %1553 = vst [vmem:[%s2215_s26 + $0x164] sm:$0xf] %v1552_v1 }
  0x54   : > { %1555 = vst [vmem:[%s2215_s26 + $0x178] sm:$0xf] %v1554_v2 }
  0x55   : > { %1557 = vst [vmem:[%s2215_s26 + $0x18c] sm:$0xf] %v1556_v3 }
  0x56   : > { %1559 = vst [vmem:[%s2215_s26 + $0x1a0] sm:$0xf] %v1558_v4 }
  0x57   : > { %1561 = vst [vmem:[%s2215_s26 + $0x1b4] sm:$0xf] %v1560_v5 }
  0x58   : > { %1563 = vst [vmem:[%s2215_s26 + $0x1c8] sm:$0xf] %v1562_v6 }
  0x59   : > { %1565 = vst [vmem:[%s2215_s26 + $0x1dc] sm:$0xf] %v1564_v7 }
  0x5a PF: > { %p1566_p5 = scmp.ge.s32.totalorder %s2154_s14, 1  ;;  %p309_p6 = scmp.lt.s32.totalorder %s2154_s14, 3 }
  0x5c   : > { %p310_p7 = pnand %p1566_p5, %p309_p6 }
  0x5d   : > { %s316_s10 = sand.u32 (!%p310_p7), 1, %s2146_s12  }
  0x5e   : > { %313 = sbr.rel (%p310_p7) target bundleno = 510 (0x1fe), region = 54 }
  0x5f   : > { %s2105_s18 = smul.u32 (!%p310_p7), 480, %s316_s10 }
  0x61   : > { %s2385_s12 = scalar_lea.vmem (!%p310_p7), [#allocation2], %s2105_s18 }
  0x63   : > { %v2033_v8 = vld [vmem:[%s2797_s1 + $0x38] sm:$0xff]  ;;  %v2032_v9 = vld [vmem:[%s2797_s1 + $0x30] sm:$0xff]  ;;  %v2031_v10 = vld [vmem:[%s2797_s1 + $0x28] sm:$0xff]  ;;  %vm1011_vm0 = vcmask 523264  }
  0x64   : > { %2079 = vmatpush.bf16.msra.mxu1 %v2033_v8  ;;  %2080 = vmatpush.bf16.msra.mxu2 %v2033_v8  ;;  %v2030_v11 = vld [vmem:[%s2797_s1 + $0x20] sm:$0xff]  ;;  %v2029_v12 = vld [vmem:[%s2797_s1 + $0x18] sm:$0xff]  ;;  %v2028_v13 = vld [vmem:[%s2797_s1 + $0x10] sm:$0xff] }
  0x65   : > { %2081 = vmatpush.bf16.msra.mxu3 %v2033_v8  ;;  %1048 = vmatpush.bf16.msra.mxu0 %v2033_v8  ;;  %v2027_v14 = vld [vmem:[%s2797_s1 + $0x8] sm:$0xff]  ;;  %v2026_v15 = vld [vmem:[%s2797_s1] sm:$0xff]  ;;  %v1630_v16 = vld [vmem:[%s2385_s12 + $0x78] sm:$0xf] }
  0x66   : > { %v1983_v17 = vld [vmem:[%s2385_s12 + $0x88] sm:$0xf0]  ;;  %v1690_v18 = vld [vmem:[%s2385_s12 + $0xf0] sm:$0xf]  ;;  %v1998_v19 = vld [vmem:[%s2385_s12 + $0x100] sm:$0xf0] }
  0x67   : > { %v1750_v20 = vld [vmem:[%s2385_s12 + $0x168] sm:$0xf]  ;;  %v2013_v21 = vld [vmem:[%s2385_s12 + $0x178] sm:$0xf0]  ;;  %v1570_v22 = vld [vmem:[%s2385_s12] sm:$0xf]  ;;  %v1631_v26 = vor.u32 %v1983_v17, %v1630_v16  ;;  %v1691_v27 = vor.u32 %v1998_v19, %v1690_v18 }
  0x68   : > { %2082 = vmatpush.bf16.msra.mxu1 %v2032_v9  ;;  %2083 = vmatpush.bf16.msra.mxu2 %v2032_v9  ;;  %v1968_v23 = vld [vmem:[%s2385_s12 + $0x10] sm:$0xf0]  ;;  %v2049_v24 = vld [vmem:[%s2797_s1 + $0xb8] sm:$0xff]  ;;  %v1751_v28 = vor.u32 %v2013_v21, %v1750_v20  ;;  %v2047_v36 = vld [vmem:[%s2797_s1 + $0xa8] sm:$0xff] }
  0x69   : > { %2084 = vmatpush.bf16.msra.mxu3 %v2032_v9  ;;  %1049 = vmatpush.bf16.msra.mxu0 %v2032_v9  ;;  %v2057_v25 = vld [vmem:[%s2797_s1 + $0xf8] sm:$0xff]  ;;  %v1571_v29 = vor.u32 %v1968_v23, %v1570_v22  ;;  %v2048_v32 = vld [vmem:[%s2797_s1 + $0xb0] sm:$0xff]  ;;  %v2055_v37 = vld [vmem:[%s2797_s1 + $0xe8] sm:$0xff] }
  0x6a   : > { %v2041_v30 = vld [vmem:[%s2797_s1 + $0x78] sm:$0xff]  ;;  %v2056_v33 = vld [vmem:[%s2797_s1 + $0xf0] sm:$0xff]  ;;  %v2039_v38 = vld [vmem:[%s2797_s1 + $0x68] sm:$0xff] }
  0x6b   : > { %v2061_v31 = vld [vmem:[%s2797_s1 + $0x118] sm:$0xff]  ;;  %v2040_v34 = vld [vmem:[%s2797_s1 + $0x70] sm:$0xff]  ;;  %v2059_v39 = vld [vmem:[%s2797_s1 + $0x108] sm:$0xff] }
  0x6c   : > { %2085 = vmatpush.bf16.msra.mxu1 %v2031_v10  ;;  %2086 = vmatpush.bf16.msra.mxu2 %v2031_v10  ;;  %v2060_v35 = vld [vmem:[%s2797_s1 + $0x110] sm:$0xff]  ;;  %v1650_v40 = vld [vmem:[%s2385_s12 + $0xa0] sm:$0xf]  ;;  %v1710_v44 = vld [vmem:[%s2385_s12 + $0x118] sm:$0xf] }
  0x6d   : > { %2087 = vmatpush.bf16.msra.mxu3 %v2031_v10  ;;  %1050 = vmatpush.bf16.msra.mxu0 %v2031_v10  ;;  %v2046_v41 = vld [vmem:[%s2797_s1 + $0xa0] sm:$0xff]  ;;  %v1988_v43 = vld [vmem:[%s2385_s12 + $0xb0] sm:$0xf0]  ;;  %v2003_v45 = vld [vmem:[%s2385_s12 + $0x128] sm:$0xf0] }
  0x6e   : > { %v2054_v42 = vld [vmem:[%s2797_s1 + $0xe0] sm:$0xff]  ;;  %v1770_v46 = vld [vmem:[%s2385_s12 + $0x190] sm:$0xf]  ;;  %v1590_v48 = vld [vmem:[%s2385_s12 + $0x28] sm:$0xf]  ;;  %v1651_v54 = vor.u32 %v1988_v43, %v1650_v40  ;;  %v1711_v55 = vor.u32 %v2003_v45, %v1710_v44 }
  0x6f   : > { %v2018_v47 = vld [vmem:[%s2385_s12 + $0x1a0] sm:$0xf0]  ;;  %v1973_v49 = vld [vmem:[%s2385_s12 + $0x38] sm:$0xf0]  ;;  %v2044_v59 = vld [vmem:[%s2797_s1 + $0x90] sm:$0xff] }
  0x70   : > { %2088 = vmatpush.bf16.msra.mxu1 %v2030_v11  ;;  %2089 = vmatpush.bf16.msra.mxu2 %v2030_v11  ;;  %v2038_v50 = vld [vmem:[%s2797_s1 + $0x60] sm:$0xff]  ;;  %v2045_v52 = vld [vmem:[%s2797_s1 + $0x98] sm:$0xff]  ;;  %v1771_v56 = vor.u32 %v2018_v47, %v1770_v46  ;;  %v1591_v57 = vor.u32 %v1973_v49, %v1590_v48  ;;  %v2052_v60 = vld [vmem:[%s2797_s1 + $0xd0] sm:$0xff] }
  0x71   : > { %2090 = vmatpush.bf16.msra.mxu3 %v2030_v11  ;;  %1051 = vmatpush.bf16.msra.mxu0 %v2030_v11  ;;  %v2058_v51 = vld [vmem:[%s2797_s1 + $0x100] sm:$0xff]  ;;  %v2053_v53 = vld [vmem:[%s2797_s1 + $0xd8] sm:$0xff]  ;;  %v2036_v61 = vld [vmem:[%s2797_s1 + $0x50] sm:$0xff] }
  0x72   : > { %v2037_v58 = vld [vmem:[%s2797_s1 + $0x58] sm:$0xff]  ;;  %v2043_v62 = vld [vmem:[%s2797_s1 + $0x88] sm:$0xff]  ;;  %v2042_v1 = vld [vmem:[%s2797_s1 + $0x80] sm:$0xff] }
  0x73   : > { %v2051_v63 = vld [vmem:[%s2797_s1 + $0xc8] sm:$0xff]  ;;  %v2050_v2 = vld [vmem:[%s2797_s1 + $0xc0] sm:$0xff]  ;;  %v1993_v4 = vld [vmem:[%s2385_s12 + $0xd8] sm:$0xf0] }
  0x74   : > { %2091 = vmatpush.bf16.msra.mxu1 %v2029_v12  ;;  %2092 = vmatpush.bf16.msra.mxu2 %v2029_v12  ;;  %v2035_v0 = vld [vmem:[%s2797_s1 + $0x48] sm:$0xff]  ;;  %v1730_v5 = vld [vmem:[%s2385_s12 + $0x140] sm:$0xf]  ;;  %v2008_v6 = vld [vmem:[%s2385_s12 + $0x150] sm:$0xf0] }
  0x75   : > { %2093 = vmatpush.bf16.msra.mxu3 %v2029_v12  ;;  %1052 = vmatpush.bf16.msra.mxu0 %v2029_v12  ;;  %v1670_v3 = vld [vmem:[%s2385_s12 + $0xc8] sm:$0xf]  ;;  %v1790_v7 = vld [vmem:[%s2385_s12 + $0x1b8] sm:$0xf]  ;;  %v2023_v8 = vld [vmem:[%s2385_s12 + $0x1c8] sm:$0xf0] }
  0x76   : > { %v1610_v9 = vld [vmem:[%s2385_s12 + $0x50] sm:$0xf]  ;;  %v1978_v10 = vld [vmem:[%s2385_s12 + $0x60] sm:$0xf0]  ;;  %v1671_v12 = vor.u32 %v1993_v4, %v1670_v3  ;;  %v1572_v17 = vld [vmem:[%s2385_s12 + $0x14] sm:$0xf0] }
  0x77   : > { %v2034_v11 = vld [vmem:[%s2797_s1 + $0x40] sm:$0xff]  ;;  %v1578_v18 = vld [vmem:[%s2385_s12 + $0x8] sm:$0xf]  ;;  %v1969_v19 = vld [vmem:[%s2385_s12 + $0x18] sm:$0xf0] }
  0x78   : > { %2094 = vmatpush.bf16.msra.mxu1 %v2028_v13  ;;  %2095 = vmatpush.bf16.msra.mxu2 %v2028_v13  ;;  %v1966_v16 = vld [vmem:[%s2385_s12 + $0x4] sm:$0xf]  ;;  %v1967_v20 = vld [vmem:[%s2385_s12 + $0xc] sm:$0xf]  ;;  %v1580_v21 = vld [vmem:[%s2385_s12 + $0x1c] sm:$0xf0] }
  0x79   : > { %2096 = vmatpush.bf16.msra.mxu3 %v2028_v13  ;;  %1053 = vmatpush.bf16.msra.mxu0 %v2028_v13  ;;  %v1731_v13 = vor.u32 %v2008_v6, %v1730_v5  ;;  %v1586_v22 = vld [vmem:[%s2385_s12 + $0x10] sm:$0xf]  ;;  %v1970_v23 = vld [vmem:[%s2385_s12 + $0x20] sm:$0xf0]  ;;  %v1976_v40 = vld [vmem:[%s2385_s12 + $0x54] sm:$0xf] }
  0x7a   : > { %v1979_v43 = vld [vmem:[%s2385_s12 + $0x68] sm:$0xf0]  ;;  %v1977_v44 = vld [vmem:[%s2385_s12 + $0x5c] sm:$0xf]  ;;  %v1620_v45 = vld [vmem:[%s2385_s12 + $0x6c] sm:$0xf0] }
  0x7b   : > { %v1626_v46 = vld [vmem:[%s2385_s12 + $0x60] sm:$0xf]  ;;  %v1980_v47 = vld [vmem:[%s2385_s12 + $0x70] sm:$0xf0]  ;;  %v1989_v3 = vld [vmem:[%s2385_s12 + $0xb8] sm:$0xf0] }
  0x7c   : > { %2097 = vmatpush.bf16.msra.mxu1 %v2027_v14  ;;  %2098 = vmatpush.bf16.msra.mxu2 %v2027_v14  ;;  %v1987_v4 = vld [vmem:[%s2385_s12 + $0xac] sm:$0xf]  ;;  %v1660_v5 = vld [vmem:[%s2385_s12 + $0xbc] sm:$0xf0]  ;;  %v1666_v6 = vld [vmem:[%s2385_s12 + $0xb0] sm:$0xf] }
  0x7d   : > { %2099 = vmatpush.bf16.msra.mxu3 %v2027_v14  ;;  %1054 = vmatpush.bf16.msra.mxu0 %v2027_v14  ;;  %v1791_v14 = vor.u32 %v2023_v8, %v1790_v7  ;;  %v1990_v7 = vld [vmem:[%s2385_s12 + $0xc0] sm:$0xf0] }
  0x80   : > { %2100 = vmatpush.bf16.msra.mxu1 %v2026_v15  ;;  %2101 = vmatpush.bf16.msra.mxu2 %v2026_v15 }
  0x81   : > { %2102 = vmatpush.bf16.msra.mxu3 %v2026_v15  ;;  %1055 = vmatpush.bf16.msra.mxu0 %v2026_v15  ;;  %v1611_v15 = vor.u32 %v1978_v10, %v1610_v9  ;;  %v1663_v10 = vor.u32 %v1987_v4, %v1660_v5 }
  0x83   : > { %1071 = vmatmul.bf16.vlgmr.msra.gmra.mxu1 %v1631_v26  ;;  %1086 = vmatmul.bf16.vlgmr.msra.gmra.mxu2 %v1691_v27  ;;  %v1583_v26 = vor.u32 %v1967_v20, %v1580_v21  ;;  %v1587_v27 = vor.u32 %v1970_v23, %v1586_v22 }
  0x84   : > { %1186 = vmatpush.bf16.msrb.mxu2 %v2049_v24  ;;  %1101 = vmatmul.bf16.vlgmr.msra.gmra.mxu3 %v1751_v28  ;;  %v1575_v24 = vor.u32 %v1966_v16, %v1572_v17  ;;  %v1971_v28 = vld [vmem:[%s2385_s12 + $0x2c] sm:$0xf]  ;;  %v1992_v16 = vld [vmem:[%s2385_s12 + $0xd4] sm:$0xf]  ;;  %v1680_v17 = vld [vmem:[%s2385_s12 + $0xe4] sm:$0xf0] }
  0x85   : > { %1255 = vmatpush.bf16.msrb.mxu3 %v2057_v25  ;;  %1056 = vmatmul.bf16.vlgmr.msra.gmra.mxu0 %v1571_v29  ;;  %v1579_v25 = vor.u32 %v1969_v19, %v1578_v18  ;;  %v1592_v29 = vld [vmem:[%s2385_s12 + $0x3c] sm:$0xf0]  ;;  %v1686_v18 = vld [vmem:[%s2385_s12 + $0xd8] sm:$0xf]  ;;  %v1995_v19 = vld [vmem:[%s2385_s12 + $0xe8] sm:$0xf0]  ;;  %v1683_v23 = vor.u32 %v1992_v16, %v1680_v17 }
  0x86   : > { %1117 = vmatpush.bf16.msrb.mxu1 %v2041_v30  ;;  %1328 = vmatpush.bf16.msrb.mxu0 %v2061_v31  ;;  %v1598_v30 = vld [vmem:[%s2385_s12 + $0x30] sm:$0xf]  ;;  %v1974_v31 = vld [vmem:[%s2385_s12 + $0x40] sm:$0xf0] }
  0x88   : > { %1187 = vmatpush.bf16.msrb.mxu2 %v2048_v32  ;;  %v1972_v32 = vld [vmem:[%s2385_s12 + $0x34] sm:$0xf] }
  0x89   : > { %1256 = vmatpush.bf16.msrb.mxu3 %v2056_v33  ;;  %v1600_v33 = vld [vmem:[%s2385_s12 + $0x44] sm:$0xf0] }
  0x8a   : > { %1118 = vmatpush.bf16.msrb.mxu1 %v2040_v34  ;;  %1329 = vmatpush.bf16.msrb.mxu0 %v2060_v35  ;;  %v1606_v34 = vld [vmem:[%s2385_s12 + $0x38] sm:$0xf]  ;;  %v1975_v35 = vld [vmem:[%s2385_s12 + $0x48] sm:$0xf0] }
  0x8c   : > { %1188 = vmatpush.bf16.msrb.mxu2 %v2047_v36  ;;  %v1595_v36 = vor.u32 %v1971_v28, %v1592_v29 }
  0x8d   : > { %1257 = vmatpush.bf16.msrb.mxu3 %v2055_v37  ;;  %v1599_v37 = vor.u32 %v1974_v31, %v1598_v30  ;;  %v1996_v30 = vld [vmem:[%s2385_s12 + $0xf4] sm:$0xf]  ;;  %v1692_v31 = vld [vmem:[%s2385_s12 + $0x104] sm:$0xf0] }
  0x8e   : > { %1119 = vmatpush.bf16.msrb.mxu1 %v2039_v38  ;;  %1330 = vmatpush.bf16.msrb.mxu0 %v2059_v39  ;;  %v1603_v38 = vor.u32 %v1972_v32, %v1600_v33  ;;  %v1607_v39 = vor.u32 %v1975_v35, %v1606_v34  ;;  %v1698_v32 = vld [vmem:[%s2385_s12 + $0xf8] sm:$0xf]  ;;  %v1999_v33 = vld [vmem:[%s2385_s12 + $0x108] sm:$0xf0]  ;;  %v1997_v34 = vld [vmem:[%s2385_s12 + $0xfc] sm:$0xf] }
  0x8f   : > { %v1700_v35 = vld [vmem:[%s2385_s12 + $0x10c] sm:$0xf0] }
  0x90   : > { %1189 = vmatpush.bf16.msrb.mxu2 %v2046_v41  ;;  %v1612_v41 = vld [vmem:[%s2385_s12 + $0x64] sm:$0xf0] }
  0x91   : > { %1258 = vmatpush.bf16.msrb.mxu3 %v2054_v42  ;;  %v1618_v42 = vld [vmem:[%s2385_s12 + $0x58] sm:$0xf]  ;;  %v1615_v48 = vor.u32 %v1976_v40, %v1612_v41  ;;  %v1695_v40 = vor.u32 %v1996_v30, %v1692_v31  ;;  %v1699_v41 = vor.u32 %v1999_v33, %v1698_v32 }
  0x92   : > { %1120 = vmatpush.bf16.msrb.mxu1 %v2038_v50  ;;  %1331 = vmatpush.bf16.msrb.mxu0 %v2058_v51  ;;  %v1619_v49 = vor.u32 %v1979_v43, %v1618_v42  ;;  %v1623_v50 = vor.u32 %v1977_v44, %v1620_v45  ;;  %v1627_v51 = vor.u32 %v1980_v47, %v1626_v46 }
  0x93   : > { %1076 = vmatmul.bf16.gmra.mxu1 %v1651_v54  ;;  %1091 = vmatmul.bf16.gmra.mxu2 %v1711_v55  ;;  %v1638_v54 = vld [vmem:[%s2385_s12 + $0x80] sm:$0xf]  ;;  %v1984_v55 = vld [vmem:[%s2385_s12 + $0x90] sm:$0xf0]  ;;  %v1703_v43 = vor.u32 %v1997_v34, %v1700_v35 }
  0x94   : > { %1190 = vmatpush.bf16.msrb.mxu2 %v2045_v52  ;;  %1106 = vmatmul.bf16.gmra.mxu3 %v1771_v56  ;;  %v1981_v52 = vld [vmem:[%s2385_s12 + $0x7c] sm:$0xf]  ;;  %v1982_v56 = vld [vmem:[%s2385_s12 + $0x84] sm:$0xf] }
  0x95   : > { %1259 = vmatpush.bf16.msrb.mxu3 %v2053_v53  ;;  %1061 = vmatmul.bf16.gmra.mxu0 %v1591_v57  ;;  %v1632_v53 = vld [vmem:[%s2385_s12 + $0x8c] sm:$0xf0]  ;;  %v1640_v57 = vld [vmem:[%s2385_s12 + $0x94] sm:$0xf0] }
  0x96   : > { %1121 = vmatpush.bf16.msrb.mxu1 %v2037_v58  ;;  %v1646_v58 = vld [vmem:[%s2385_s12 + $0x88] sm:$0xf] }
  0x98   : > { %1191 = vmatpush.bf16.msrb.mxu2 %v2044_v59  ;;  %v1985_v59 = vld [vmem:[%s2385_s12 + $0x98] sm:$0xf0] }
  0x99   : > { %1260 = vmatpush.bf16.msrb.mxu3 %v2052_v60  ;;  %v1635_v60 = vor.u32 %v1981_v52, %v1632_v53  ;;  %v1718_v52 = vld [vmem:[%s2385_s12 + $0x120] sm:$0xf]  ;;  %v2004_v53 = vld [vmem:[%s2385_s12 + $0x130] sm:$0xf0] }
  0x9a   : > { %1122 = vmatpush.bf16.msrb.mxu1 %v2036_v61  ;;  %v1639_v61 = vor.u32 %v1984_v55, %v1638_v54  ;;  %v2002_v54 = vld [vmem:[%s2385_s12 + $0x124] sm:$0xf]  ;;  %v1720_v55 = vld [vmem:[%s2385_s12 + $0x134] sm:$0xf0] }
  0x9c   : > { %1192 = vmatpush.bf16.msrb.mxu2 %v2043_v62  ;;  %v1643_v62 = vor.u32 %v1982_v56, %v1640_v57  ;;  %v1726_v56 = vld [vmem:[%s2385_s12 + $0x128] sm:$0xf]  ;;  %v2005_v57 = vld [vmem:[%s2385_s12 + $0x138] sm:$0xf0] }
  0x9d   : > { %1261 = vmatpush.bf16.msrb.mxu3 %v2051_v63  ;;  %v1647_v63 = vor.u32 %v1985_v59, %v1646_v58 }
  0x9e   : > { %1123 = vmatpush.bf16.msrb.mxu1 %v2035_v0  ;;  %v1986_v0 = vld [vmem:[%s2385_s12 + $0xa4] sm:$0xf] }
  0xa0   : > { %1193 = vmatpush.bf16.msrb.mxu2 %v2042_v1  ;;  %v1652_v1 = vld [vmem:[%s2385_s12 + $0xb4] sm:$0xf0] }
  0xa1   : > { %1262 = vmatpush.bf16.msrb.mxu3 %v2050_v2  ;;  %v1658_v2 = vld [vmem:[%s2385_s12 + $0xa8] sm:$0xf]  ;;  %v1655_v8 = vor.u32 %v1986_v0, %v1652_v1  ;;  %v1727_v0 = vor.u32 %v2005_v57, %v1726_v56 }
  0xa2   : > { %1124 = vmatpush.bf16.msrb.mxu1 %v2034_v11  ;;  %v1659_v9 = vor.u32 %v1989_v3, %v1658_v2  ;;  %v1667_v11 = vor.u32 %v1990_v7, %v1666_v6  ;;  %v2614_v6 = vld [vmem:[%s2798_s2] ss:$0 sm:$0xff]  ;;  %v2006_v7 = vld [vmem:[%s2385_s12 + $0x144] sm:$0xf] }
  0xa3   : > { %1081 = vmatmul.bf16.gmra.mxu1 %v1671_v12  ;;  %1096 = vmatmul.bf16.gmra.mxu2 %v1731_v13  ;;  %v1991_v12 = vld [vmem:[%s2385_s12 + $0xcc] sm:$0xf]  ;;  %v1672_v13 = vld [vmem:[%s2385_s12 + $0xdc] sm:$0xf0] }
  0xa4   : > { %1111 = vmatmul.bf16.gmra.mxu3 %v1791_v14  ;;  %v1678_v14 = vld [vmem:[%s2385_s12 + $0xd0] sm:$0xf]  ;;  %v1675_v20 = vor.u32 %v1991_v12, %v1672_v13  ;;  %v1740_v12 = vld [vmem:[%s2385_s12 + $0x15c] sm:$0xf0] }
  0xa5   : > { %1066 = vmatmul.bf16.gmra.mxu0 %v1611_v15  ;;  %v1994_v15 = vld [vmem:[%s2385_s12 + $0xe0] sm:$0xf0]  ;;  %v1746_v13 = vld [vmem:[%s2385_s12 + $0x150] sm:$0xf] }
  0xa6   : > { %v1679_v21 = vor.u32 %v1994_v15, %v1678_v14  ;;  %v2010_v14 = vld [vmem:[%s2385_s12 + $0x160] sm:$0xf0] }
  0xb3   : > { %1125 = vmatmul.bf16.vlgmr.msrb.gmra.mxu1 %v1575_v24  ;;  %1194 = vmatmul.bf16.vlgmr.msrb.gmra.mxu2 %v1579_v25  ;;  %v1687_v24 = vor.u32 %v1995_v19, %v1686_v18 }
  0xb4   : > { %1263 = vmatmul.bf16.vlgmr.msrb.gmra.mxu3 %v1583_v26 }
  0xb5   : > { %1952 = vmatmul.msk.bf16.vlgmr.msrb.gmra.mxu0 %vm1011_vm0, %v1587_v27 }
  0xc3   : > { %1130 = vmatmul.bf16.gmra.mxu1 %v1595_v36  ;;  %1199 = vmatmul.bf16.gmra.mxu2 %v1599_v37  ;;  %v1706_v36 = vld [vmem:[%s2385_s12 + $0x100] sm:$0xf]  ;;  %v2000_v37 = vld [vmem:[%s2385_s12 + $0x110] sm:$0xf0] }
  0xc4   : > { %1268 = vmatmul.bf16.gmra.mxu3 %v1603_v38  ;;  %v1707_v44 = vor.u32 %v2000_v37, %v1706_v36 }
  0xc5   : > { %1953 = vmatmul.msk.bf16.gmra.mxu0 %vm1011_vm0, %v1607_v39 }
  0xd3   : > { %1135 = vmatmul.bf16.gmra.mxu1 %v1615_v48  ;;  %1204 = vmatmul.bf16.gmra.mxu2 %v1619_v49 }
  0xd4   : > { %1273 = vmatmul.bf16.gmra.mxu3 %v1623_v50  ;;  %v2001_v50 = vld [vmem:[%s2385_s12 + $0x11c] sm:$0xf] }
  0xd5   : > { %1954 = vmatmul.msk.bf16.gmra.mxu0 %vm1011_vm0, %v1627_v51  ;;  %v1712_v51 = vld [vmem:[%s2385_s12 + $0x12c] sm:$0xf0] }
  0xe3   : > { %1140 = vmatmul.bf16.gmra.mxu1 %v1635_v60  ;;  %1209 = vmatmul.bf16.gmra.mxu2 %v1639_v61  ;;  %v1715_v60 = vor.u32 %v2001_v50, %v1712_v51  ;;  %v1719_v61 = vor.u32 %v2004_v53, %v1718_v52  ;;  %v2014_v50 = vld [vmem:[%s2385_s12 + $0x180] sm:$0xf0]  ;;  %v2012_v51 = vld [vmem:[%s2385_s12 + $0x174] sm:$0xf]  ;;  %v1760_v52 = vld [vmem:[%s2385_s12 + $0x184] sm:$0xf0] }
  0xe4   : > { %1278 = vmatmul.bf16.gmra.mxu3 %v1643_v62  ;;  %v1766_v53 = vld [vmem:[%s2385_s12 + $0x178] sm:$0xf] }
  0xe5   : > { %1955 = vmatmul.msk.bf16.gmra.mxu0 %vm1011_vm0, %v1647_v63  ;;  %v1723_v63 = vor.u32 %v2002_v54, %v1720_v55  ;;  %v2015_v54 = vld [vmem:[%s2385_s12 + $0x188] sm:$0xf0] }
  0xf3   : > { %1145 = vmatmul.bf16.gmra.mxu1 %v1655_v8  ;;  %1214 = vmatmul.bf16.gmra.mxu2 %v1659_v9  ;;  %v1732_v8 = vld [vmem:[%s2385_s12 + $0x154] sm:$0xf0]  ;;  %v1738_v9 = vld [vmem:[%s2385_s12 + $0x148] sm:$0xf] }
  0xf4   : > { %1283 = vmatmul.bf16.gmra.mxu3 %v1663_v10  ;;  %v2009_v10 = vld [vmem:[%s2385_s12 + $0x158] sm:$0xf0]  ;;  %v1735_v18 = vor.u32 %v2006_v7, %v1732_v8  ;;  %v1767_v7 = vor.u32 %v2015_v54, %v1766_v53 }
  0xf5   : > { %1956 = vmatmul.msk.bf16.gmra.mxu0 %vm1011_vm0, %v1667_v11  ;;  %v2007_v11 = vld [vmem:[%s2385_s12 + $0x14c] sm:$0xf]  ;;  %v1739_v19 = vor.u32 %v2009_v10, %v1738_v9 }
 0x100   : > { %v2548_v22 = vpop.f32.mrf.mxu1 }
 0x102   : > { %v2550_v25 = vpop.f32.mrf.mxu0 }
 0x103   : > { %1150 = vmatmul.bf16.gmra.mxu1 %v1675_v20  ;;  %1219 = vmatmul.bf16.gmra.mxu2 %v1679_v21  ;;  %v1058_v16 = vadd.f32 %v2614_v6, %v2550_v25  ;;  %v1743_v21 = vor.u32 %v2007_v11, %v1740_v12 }
 0x104   : > { %1288 = vmatmul.bf16.gmra.mxu3 %v1683_v23  ;;  %v1747_v23 = vor.u32 %v2010_v14, %v1746_v13 }
 0x105   : > { %1957 = vmatmul.msk.bf16.gmra.mxu0 %vm1011_vm0, %v1687_v24 }
 0x106   : > { %v2553_v26 = vpop.f32.mrf.mxu2 }
 0x107   : > { %v2555_v27 = vpop.f32.mrf.mxu3 }
 0x108   : > { %v2557_v28 = vpop.f32.mrf.mxu1 }
 0x10a   : > { %v2559_v29 = vpop.f32.mrf.mxu0 }
 0x10b   : > { %v1060_v31 = vadd.f32 %v2614_v6, %v2559_v29 }
 0x10e   : > { %v2569_v38 = vpop.f32.mrf.mxu2 }
 0x10f   : > { %v2571_v39 = vpop.f32.mrf.mxu3 }
 0x110   : > { %v2573_v42 = vpop.f32.mrf.mxu1 }
 0x112   : > { %v2575_v45 = vpop.f32.mrf.mxu0 }
 0x113   : > { %1155 = vmatmul.bf16.gmra.mxu1 %v1695_v40  ;;  %1224 = vmatmul.bf16.gmra.mxu2 %v1699_v41  ;;  %v2011_v41 = vld [vmem:[%s2385_s12 + $0x16c] sm:$0xf]  ;;  %v1063_v29 = vadd.f32 %v2614_v6, %v2575_v45 }
 0x114   : > { %1293 = vmatmul.bf16.gmra.mxu3 %v1703_v43  ;;  %v1752_v43 = vld [vmem:[%s2385_s12 + $0x17c] sm:$0xf0] }
 0x115   : > { %1958 = vmatmul.msk.bf16.gmra.mxu0 %vm1011_vm0, %v1707_v44  ;;  %v1758_v44 = vld [vmem:[%s2385_s12 + $0x170] sm:$0xf] }
 0x116   : > { %v2578_v46 = vpop.f32.mrf.mxu2 }
 0x117   : > { %v2580_v47 = vpop.f32.mrf.mxu3 }
 0x118   : > { %v2582_v48 = vpop.f32.mrf.mxu1 }
 0x11a   : > { %v2584_v49 = vpop.f32.mrf.mxu0 }
 0x11b   : > { %v1065_v12 = vadd.f32 %v2614_v6, %v2584_v49 }
 0x11e   : > { %v2594_v58 = vpop.f32.mrf.mxu2 }
 0x11f   : > { %v2596_v59 = vpop.f32.mrf.mxu3 }
 0x120   : > { %v2598_v62 = vpop.f32.mrf.mxu1 }
 0x122   : > { %v2600_v1 = vpop.f32.mrf.mxu0 }
 0x123   : > { %1160 = vmatmul.bf16.gmra.mxu1 %v1715_v60  ;;  %1229 = vmatmul.bf16.gmra.mxu2 %v1719_v61  ;;  %v1755_v60 = vor.u32 %v2011_v41, %v1752_v43  ;;  %v1759_v61 = vor.u32 %v2014_v50, %v1758_v44  ;;  %v1068_v49 = vadd.f32 %v2614_v6, %v2600_v1 }
 0x124   : > { %1298 = vmatmul.bf16.gmra.mxu3 %v1723_v63 }
 0x125   : > { %1959 = vmatmul.msk.bf16.gmra.mxu0 %vm1011_vm0, %v1727_v0  ;;  %v1763_v0 = vor.u32 %v2012_v51, %v1760_v52 }
 0x126   : > { %v2603_v2 = vpop.f32.mrf.mxu2 }
 0x127   : > { %v2605_v3 = vpop.f32.mrf.mxu3 }
 0x128   : > { %v2607_v4 = vpop.f32.mrf.mxu1 }
 0x12a   : > { %v2609_v5 = vpop.f32.mrf.mxu0 }
 0x12e   : > { %v2624_v15 = vpop.f32.mrf.mxu2 }
 0x12f   : > { %v2628_v17 = vpop.f32.mrf.mxu3 }
 0x130   : > { %v1126_v20 = vpop.f32.mrf.mxu1 }
 0x131   : > { %v1127_v24 = vadd.f32 %v1126_v20, %v1058_v16 }
 0x132   : > { %v1333_v30 = vpop.f32.mrf.mxu0 }
 0x133   : > { %1165 = vmatmul.bf16.gmra.mxu1 %v1735_v18  ;;  %1234 = vmatmul.bf16.gmra.mxu2 %v1739_v19 }
 0x134   : > { %1303 = vmatmul.bf16.gmra.mxu3 %v1743_v21 }
 0x135   : > { %1960 = vmatmul.msk.bf16.gmra.mxu0 %vm1011_vm0, %v1747_v23  ;;  %v2016_v23 = vld [vmem:[%s2385_s12 + $0x194] sm:$0xf] }
 0x136   : > { %v1195_v25 = vpop.f32.mrf.mxu2 }
 0x137   : > { %v1196_v32 = vadd.f32 %v1195_v25, %v1127_v24  ;;  %v1264_v33 = vpop.f32.mrf.mxu3  ;;  %v1772_v24 = vld [vmem:[%s2385_s12 + $0x1a4] sm:$0xf0]  ;;  %v2019_v25 = vld [vmem:[%s2385_s12 + $0x1a8] sm:$0xf0] }
 0x138   : > { %v1128_v34 = vpop.f32.mrf.mxu1  ;;  %v1775_v41 = vor.u32 %v2016_v23, %v1772_v24 }
 0x139   : > { %v1265_v35 = vadd.f32 %v1264_v33, %v1196_v32  ;;  %v1129_v36 = vadd.f32 %v1128_v34, %v1060_v31  ;;  %v2017_v31 = vld [vmem:[%s2385_s12 + $0x19c] sm:$0xf]  ;;  %v1780_v32 = vld [vmem:[%s2385_s12 + $0x1ac] sm:$0xf0]  ;;  %v1786_v33 = vld [vmem:[%s2385_s12 + $0x1a0] sm:$0xf] }
 0x13a   : > { %v1335_v37 = vpop.f32.mrf.mxu0  ;;  %v2020_v34 = vld [vmem:[%s2385_s12 + $0x1b0] sm:$0xf0]  ;;  %v1783_v50 = vor.u32 %v2017_v31, %v1780_v32 }
 0x13b   : > { %v2633_v40 = vadd.f32 %v1333_v30, %v1265_v35  ;;  %v1778_v30 = vld [vmem:[%s2385_s12 + $0x198] sm:$0xf]  ;;  %v1787_v51 = vor.u32 %v2020_v34, %v1786_v33 }
 0x13c   : > { %v1779_v43 = vor.u32 %v2019_v25, %v1778_v30 }
 0x13e   : > { %v1197_v55 = vpop.f32.mrf.mxu2 }
 0x13f   : > { %v1198_v56 = vadd.f32 %v1197_v55, %v1129_v36  ;;  %v1266_v57 = vpop.f32.mrf.mxu3 }
 0x140   : > { %v1131_v63 = vpop.f32.mrf.mxu1 }
 0x141   : > { %v1267_v8 = vadd.f32 %v1266_v57, %v1198_v56  ;;  %v1132_v9 = vadd.f32 %v1131_v63, %v1063_v29  ;;  %v1070_v29 = vadd.f32 %v2614_v6, %v2609_v5  ;;  %v1073_v5 = vadd.f32 %v2614_v6, %v2548_v22 }
 0x142   : > { %v1338_v10 = vpop.f32.mrf.mxu0  ;;  %v1075_v22 = vadd.f32 %v2614_v6, %v2557_v28 }
 0x143   : > { %v2645_v11 = vadd.f32 %v1335_v37, %v1267_v8  ;;  %1170 = vmatmul.bf16.gmra.mxu1 %v1755_v60  ;;  %1239 = vmatmul.bf16.gmra.mxu2 %v1759_v61  ;;  %v2021_v8 = vld [vmem:[%s2385_s12 + $0x1bc] sm:$0xf] }
 0x144   : > { %1308 = vmatmul.bf16.gmra.mxu3 %v1763_v0 }
 0x145   : > { %1961 = vmatmul.msk.bf16.gmra.mxu0 %vm1011_vm0, %v1767_v7 }
 0x146   : > { %v1200_v45 = vpop.f32.mrf.mxu2 }
 0x147   : > { %v1201_v13 = vadd.f32 %v1200_v45, %v1132_v9  ;;  %v1269_v14 = vpop.f32.mrf.mxu3  ;;  %v1792_v9 = vld [vmem:[%s2385_s12 + $0x1cc] sm:$0xf0]  ;;  %v2024_v45 = vld [vmem:[%s2385_s12 + $0x1d0] sm:$0xf0] }
 0x148   : > { %v1133_v16 = vpop.f32.mrf.mxu1  ;;  %v1795_v23 = vor.u32 %v2021_v8, %v1792_v9  ;;  %v1394_v8 = vmax.f32 %v2645_v11, 0.0  ;;  %v1083_v11 = vadd.f32 %v2614_v6, %v2598_v62 }
 0x149   : > { %v1270_v18 = vadd.f32 %v1269_v14, %v1201_v13  ;;  %v1134_v19 = vadd.f32 %v1133_v16, %v1065_v12  ;;  %v2022_v12 = vld [vmem:[%s2385_s12 + $0x1c4] sm:$0xf]  ;;  %v1800_v13 = vld [vmem:[%s2385_s12 + $0x1d4] sm:$0xf0]  ;;  %v1806_v14 = vld [vmem:[%s2385_s12 + $0x1c8] sm:$0xf] }
 0x14a   : > { %v1340_v20 = vpop.f32.mrf.mxu0  ;;  %v2025_v16 = vld [vmem:[%s2385_s12 + $0x1d8] sm:$0xf0]  ;;  %v1803_v25 = vor.u32 %v2022_v12, %v1800_v13 }
 0x14b   : > { %v2650_v21 = vadd.f32 %v1338_v10, %v1270_v18  ;;  %v1798_v10 = vld [vmem:[%s2385_s12 + $0x1c0] sm:$0xf]  ;;  %v1807_v31 = vor.u32 %v2025_v16, %v1806_v14  ;;  %s340_s12 = smul.u32 6, %s1513_s15 }
 0x14c   : > { %v1799_v24 = vor.u32 %v2024_v45, %v1798_v10 }
 0x14d   : > { %p341_p8 = scmp.lt.s32.totalorder %s340_s12, 11 }
 0x14e   : > { %v1202_v35 = vpop.f32.mrf.mxu2 }
 0x14f   : > { %v1203_v36 = vadd.f32 %v1202_v35, %v1134_v19  ;;  %v1271_v37 = vpop.f32.mrf.mxu3  ;;  %s2804_s12 = smov (!%p341_p8, %s340_s12), 11 }
 0x150   : > { %v1136_v44 = vpop.f32.mrf.mxu1  ;;  %s1567_s14 = sshll.u32 %s2804_s12, 2 }
 0x151   : > { %v1272_v52 = vadd.f32 %v1271_v37, %v1203_v36  ;;  %v1137_v53 = vadd.f32 %v1136_v44, %v1068_v49  ;;  %s2757_s20 = scalar_lea.vmem %s2799_s3, %s1567_s14 }
 0x152   : > { %v1343_v54 = vpop.f32.mrf.mxu0 }
 0x153   : > { %v2662_v55 = vadd.f32 %v1340_v20, %v1272_v52  ;;  %1175 = vmatmul.bf16.gmra.mxu1 %v1775_v41  ;;  %1244 = vmatmul.bf16.gmra.mxu2 %v1779_v43  ;;  %v1393_v52 = vmax.f32 %v2633_v40, 0.0  ;;  %v1080_v40 = vadd.f32 %v2614_v6, %v2582_v48 }
 0x154   : > { %1313 = vmatmul.bf16.gmra.mxu3 %v1783_v50 }
 0x155   : > { %1962 = vmatmul.msk.bf16.gmra.mxu0 %vm1011_vm0, %v1787_v51 }
 0x156   : > { %v1205_v1 = vpop.f32.mrf.mxu2 }
 0x157   : > { %v1206_v56 = vadd.f32 %v1205_v1, %v1137_v53  ;;  %v1274_v57 = vpop.f32.mrf.mxu3  ;;  %v1078_v1 = vadd.f32 %v2614_v6, %v2573_v42 }
 0x158   : > { %v1138_v60 = vpop.f32.mrf.mxu1 }
 0x159   : > { %v1275_v61 = vadd.f32 %v1274_v57, %v1206_v56  ;;  %v1139_v63 = vadd.f32 %v1138_v60, %v1070_v29 }
 0x15a   : > { %v1345_v0 = vpop.f32.mrf.mxu0 }
 0x15b   : > { %v2667_v7 = vadd.f32 %v1343_v54, %v1275_v61 }
 0x15e   : > { %v1207_v18 = vpop.f32.mrf.mxu2 }
 0x15f   : > { %v1208_v19 = vadd.f32 %v1207_v18, %v1139_v63  ;;  %v1276_v20 = vpop.f32.mrf.mxu3 }
 0x160   : > { %v1141_v30 = vpop.f32.mrf.mxu1 }
 0x161   : > { %v1277_v32 = vadd.f32 %v1276_v20, %v1208_v19  ;;  %v1142_v33 = vadd.f32 %v1141_v30, %v1073_v5  ;;  %v1395_v19 = vmax.f32 %v2650_v21, 0.0  ;;  %v1085_v21 = vadd.f32 %v2614_v6, %v2607_v4 }
 0x162   : > { %v1348_v34 = vpop.f32.mrf.mxu0 }
 0x163   : > { %v2679_v35 = vadd.f32 %v1345_v0, %v1277_v32  ;;  %1180 = vmatmul.bf16.gmra.mxu1 %v1795_v23  ;;  %1249 = vmatmul.bf16.gmra.mxu2 %v1799_v24 }
 0x164   : > { %1318 = vmatmul.bf16.gmra.mxu3 %v1803_v25 }
 0x165   : > { %1963 = vmatmul.msk.bf16.gmra.mxu0 %vm1011_vm0, %v1807_v31 }
 0x166   : > { %v1210_v49 = vpop.f32.mrf.mxu2 }
 0x167   : > { %v1211_v36 = vadd.f32 %v1210_v49, %v1142_v33  ;;  %v1279_v37 = vpop.f32.mrf.mxu3  ;;  %v1396_v49 = vmax.f32 %v2662_v55, 0.0 }
 0x168   : > { %v1143_v41 = vpop.f32.mrf.mxu1 }
 0x169   : > { %v1280_v43 = vadd.f32 %v1279_v37, %v1211_v36  ;;  %v1144_v44 = vadd.f32 %v1143_v41, %v1075_v22 }
 0x16a   : > { %v1350_v50 = vpop.f32.mrf.mxu0 }
 0x16b   : > { %v1349_v51 = vadd.f32 %v1348_v34, %v1280_v43 }
 0x16d   : > { %v1399_v53 = vmax.f32 %v1349_v51, 0.0 }
 0x16e   : > { %v1212_v54 = vpop.f32.mrf.mxu2 }
 0x16f   : > { %v2687_v29 = vmax.f32 %v1393_v52, %v1399_v53  ;;  %v1213_v56 = vadd.f32 %v1212_v54, %v1144_v44  ;;  %v1281_v57 = vpop.f32.mrf.mxu3  ;;  %v1397_v53 = vmax.f32 %v2667_v7, 0.0 }
 0x170   : > { %v1146_v60 = vpop.f32.mrf.mxu1 }
 0x171   : > { %v1282_v28 = vadd.f32 %v1281_v57, %v1213_v56  ;;  %v1147_v61 = vadd.f32 %v1146_v60, %v1078_v1 }
 0x172   : > { %v1353_v63 = vpop.f32.mrf.mxu0 }
 0x173   : > { %v1351_v0 = vadd.f32 %v1350_v50, %v1282_v28 }
 0x175   : > { %v1400_v9 = vmax.f32 %v1351_v0, 0.0 }
 0x176   : > { %v1215_v10 = vpop.f32.mrf.mxu2 }
 0x177   : > { %v2692_v45 = vmax.f32 %v1394_v8, %v1400_v9  ;;  %v1216_v12 = vadd.f32 %v1215_v10, %v1147_v61  ;;  %v1284_v42 = vpop.f32.mrf.mxu3 }
 0x178   : > { %v1148_v13 = vpop.f32.mrf.mxu1 }
 0x179   : > { %v1285_v14 = vadd.f32 %v1284_v42, %v1216_v12  ;;  %v1149_v16 = vadd.f32 %v1148_v13, %v1080_v40 }
 0x17a   : > { %v1355_v18 = vpop.f32.mrf.mxu0 }
 0x17b   : > { %v1354_v5 = vadd.f32 %v1353_v63, %v1285_v14  ;;  %v1398_v63 = vmax.f32 %v2679_v35, 0.0 }
 0x17d   : > { %v1401_v20 = vmax.f32 %v1354_v5, 0.0 }
 0x17e   : > { %v1217_v23 = vpop.f32.mrf.mxu2 }
 0x17f   : > { %v2697_v24 = vmax.f32 %v1395_v19, %v1401_v20  ;;  %v1218_v30 = vadd.f32 %v1217_v23, %v1149_v16  ;;  %v1286_v48 = vpop.f32.mrf.mxu3 }
 0x180   : > { %v1151_v25 = vpop.f32.mrf.mxu1 }
 0x181   : > { %v1287_v31 = vadd.f32 %v1286_v48, %v1218_v30  ;;  %v1152_v32 = vadd.f32 %v1151_v25, %v1083_v11 }
 0x182   : > { %v1358_v33 = vpop.f32.mrf.mxu0 }
 0x183   : > { %v1356_v34 = vadd.f32 %v1355_v18, %v1287_v31 }
 0x185   : > { %v1402_v22 = vmax.f32 %v1356_v34, 0.0 }
 0x186   : > { %v1220_v36 = vpop.f32.mrf.mxu2 }
 0x187   : > { %v2702_v37 = vmax.f32 %v1396_v49, %v1402_v22  ;;  %v1221_v41 = vadd.f32 %v1220_v36, %v1152_v32  ;;  %v1289_v62 = vpop.f32.mrf.mxu3  ;;  %v1088_v32 = vadd.f32 %v2614_v6, %v2553_v26 }
 0x188   : > { %v1153_v43 = vpop.f32.mrf.mxu1 }
 0x189   : > { %v1290_v44 = vadd.f32 %v1289_v62, %v1221_v41  ;;  %v1154_v50 = vadd.f32 %v1153_v43, %v1085_v21  ;;  %v1103_v41 = vadd.f32 %v2614_v6, %v2555_v27  ;;  %v1090_v62 = vadd.f32 %v2614_v6, %v2569_v38 }
 0x18a   : > { %v1360_v51 = vpop.f32.mrf.mxu0  ;;  %v1093_v27 = vadd.f32 %v2614_v6, %v2578_v46 }
 0x18b   : > { %v1359_v52 = vadd.f32 %v1358_v33, %v1290_v44 }
 0x18d   : > { %v1403_v54 = vmax.f32 %v1359_v52, 0.0 }
 0x18e   : > { %v1222_v1 = vpop.f32.mrf.mxu2 }
 0x18f   : > { %v2705_v56 = vmax.f32 %v1397_v53, %v1403_v54  ;;  %v1223_v55 = vadd.f32 %v1222_v1, %v1154_v50  ;;  %v1291_v57 = vpop.f32.mrf.mxu3 }
 0x190   : > { %v1156_v60 = vpop.f32.mrf.mxu1 }
 0x191   : > { %v1292_v28 = vadd.f32 %v1291_v57, %v1223_v55  ;;  %v1157_v34 = vadd.f32 %v1156_v60, %v1088_v32  ;;  %v1105_v60 = vadd.f32 %v2614_v6, %v2571_v39 }
 0x192   : > { %v1363_v4 = vpop.f32.mrf.mxu0 }
 0x193   : > { %v1361_v61 = vadd.f32 %v1360_v51, %v1292_v28 }
 0x195   : > { %v1404_v0 = vmax.f32 %v1361_v61, 0.0 }
 0x196   : > { %v1225_v8 = vpop.f32.mrf.mxu2 }
 0x197   : > { %v2708_v9 = vmax.f32 %v1398_v63, %v1404_v0  ;;  %v1294_v10 = vpop.f32.mrf.mxu3  ;;  %v1226_v36 = vadd.f32 %v1225_v8, %v1157_v34 }
 0x198   : > { %v1158_v40 = vpop.f32.mrf.mxu1 }
 0x199   : > { %v1295_v43 = vadd.f32 %v1294_v10, %v1226_v36  ;;  %v1159_v51 = vadd.f32 %v1158_v40, %v1090_v62 }
 0x19a   : > { %v1365_v12 = vpop.f32.mrf.mxu0 }
 0x19b   : > { %v1364_v54 = vadd.f32 %v1363_v4, %v1295_v43 }
 0x19d   : > { %v1405_v38 = vmax.f32 %v1364_v54, 0.0 }
 0x19e   : > { %v1227_v7 = vpop.f32.mrf.mxu2 }
 0x19f   : > { %v1296_v42 = vpop.f32.mrf.mxu3  ;;  %v1228_v1 = vadd.f32 %v1227_v7, %v1159_v51 }
 0x1a0   : > { %v1161_v13 = vpop.f32.mrf.mxu1 }
 0x1a1   : > { %v1297_v61 = vadd.f32 %v1296_v42, %v1228_v1  ;;  %v1162_v10 = vadd.f32 %v1161_v13, %v1093_v27  ;;  %v1095_v42 = vadd.f32 %v2614_v6, %v2594_v58  ;;  %v1110_v58 = vadd.f32 %v2614_v6, %v2596_v59 }
 0x1a2   : > { %v2710_v14 = vpop.f32.mrf.mxu0  ;;  %v1098_v1 = vadd.f32 %v2614_v6, %v2603_v2 }
 0x1a3   : > { %v1366_v34 = vadd.f32 %v1365_v12, %v1297_v61 }
 0x1a5   : > { %v1406_v13 = vmax.f32 %v1366_v34, 0.0 }
 0x1a6   : > { %v1230_v16 = vpop.f32.mrf.mxu2 }
 0x1a7   : > { %v1299_v18 = vpop.f32.mrf.mxu3 }
 0x1a8   : > { %v1163_v5 = vpop.f32.mrf.mxu1 }
 0x1a9   : > { %v1164_v51 = vadd.f32 %v1163_v5, %v1095_v42 }
 0x1aa   : > { %v2712_v19 = vpop.f32.mrf.mxu0 }
 0x1ae   : > { %v2714_v20 = vpop.f32.mrf.mxu2 }
 0x1af   : > { %v2716_v35 = vpop.f32.mrf.mxu3 }
 0x1b0   : > { %v2718_v23 = vpop.f32.mrf.mxu1 }
 0x1b2   : > { %v2720_v11 = vpop.f32.mrf.mxu0 }
 0x1b6   : > { %v2722_v30 = vpop.f32.mrf.mxu2 }
 0x1b7   : > { %v2724_v48 = vpop.f32.mrf.mxu3 }
 0x1b8   : > { %v2726_v25 = vpop.f32.mrf.mxu1 }
 0x1ba   : > { %v2728_v31 = vpop.f32.mrf.mxu0 }
 0x1be   : > { %v2732_v33 = vpop.f32.mrf.mxu2 }
 0x1bf   : > { %v2734_v49 = vpop.f32.mrf.mxu3 }
 0x1c0   : > { %v1171_v22 = vpop.f32.mrf.mxu1 }
 0x1c1   : > { %v1172_v44 = vadd.f32 %v1171_v22, %v1103_v41  ;;  %v1231_v22 = vadd.f32 %v1230_v16, %v1162_v10 }
 0x1c2   : > { %v1378_v21 = vpop.f32.mrf.mxu0 }
 0x1c3   : > { %v1300_v62 = vadd.f32 %v1299_v18, %v1231_v22 }
 0x1c6   : > { %v1240_v50 = vpop.f32.mrf.mxu2 }
 0x1c7   : > { %v1241_v26 = vadd.f32 %v1240_v50, %v1172_v44  ;;  %v1309_v52 = vpop.f32.mrf.mxu3 }
 0x1c8   : > { %v1173_v53 = vpop.f32.mrf.mxu1 }
 0x1c9   : > { %v1310_v55 = vadd.f32 %v1309_v52, %v1241_v26  ;;  %v1174_v0 = vadd.f32 %v1173_v53, %v1105_v60  ;;  %v1369_v52 = vadd.f32 %v2710_v14, %v1300_v62 }
 0x1ca   : > { %v1380_v57 = vpop.f32.mrf.mxu0 }
 0x1cb   : > { %v1379_v28 = vadd.f32 %v1378_v21, %v1310_v55  ;;  %v1108_v21 = vadd.f32 %v2614_v6, %v2580_v47  ;;  %v1233_v47 = vadd.f32 %v2714_v20, %v1164_v51  ;;  %v1407_v14 = vmax.f32 %v1369_v52, 0.0 }
 0x1cd   : > { %v1411_v63 = vmax.f32 %v1379_v28, 0.0  ;;  %v1302_v20 = vadd.f32 %v2716_v35, %v1233_v47  ;;  %v1167_v28 = vadd.f32 %v2718_v23, %v1098_v1  ;;  %v1113_v35 = vadd.f32 %v2614_v6, %v2605_v3 }
 0x1ce   : > { %v1242_v8 = vpop.f32.mrf.mxu2 }
 0x1cf   : > { %v1423_v40 = vmax.f32 %v1405_v38, %v1411_v63  ;;  %v1243_v4 = vadd.f32 %v1242_v8, %v1174_v0  ;;  %v1311_v7 = vpop.f32.mrf.mxu3  ;;  %v1371_v59 = vadd.f32 %v2712_v19, %v1302_v20  ;;  %v1236_v0 = vadd.f32 %v2722_v30, %v1167_v28 }
 0x1d0   : > { %v1176_v32 = vpop.f32.mrf.mxu1 }
 0x1d1   : > { %v1429_v39 = vmax.f32 %v2687_v29, %v1423_v40  ;;  %v1312_v36 = vadd.f32 %v1311_v7, %v1243_v4  ;;  %v1177_v44 = vadd.f32 %v1176_v32, %v1108_v21  ;;  %v1100_v40 = vadd.f32 %v2614_v6, %v2624_v15 }
 0x1d2   : > { %v1383_v41 = vpop.f32.mrf.mxu0  ;;  %v1408_v4 = vmax.f32 %v1371_v59, 0.0  ;;  %v1305_v23 = vadd.f32 %v2724_v48, %v1236_v0  ;;  %v1115_v48 = vadd.f32 %v2614_v6, %v2628_v17 }
 0x1d3   : > { %v1381_v46 = vadd.f32 %v1380_v57, %v1312_v36  ;;  %v1169_v19 = vadd.f32 %v2726_v25, %v1100_v40 }
 0x1d4   : > { %v1374_v36 = vadd.f32 %v2720_v11, %v1305_v23 }
 0x1d5   : > { %v1412_v43 = vmax.f32 %v1381_v46, 0.0  ;;  %v1238_v3 = vadd.f32 %v2732_v33, %v1169_v19 }
 0x1d6   : > { %v1245_v50 = vpop.f32.mrf.mxu2 }
 0x1d7   : > { %v1424_v12 = vmax.f32 %v1406_v13, %v1412_v43  ;;  %v1246_v16 = vadd.f32 %v1245_v50, %v1177_v44  ;;  %v1314_v29 = vpop.f32.mrf.mxu3  ;;  %v1409_v13 = vmax.f32 %v1374_v36, 0.0  ;;  %v1307_v25 = vadd.f32 %v2734_v49, %v1238_v3 }
 0x1d8   : > { %v1178_v26 = vpop.f32.mrf.mxu1 }
 0x1d9   : > { %v1430_v53 = vmax.f32 %v2692_v45, %v1424_v12  ;;  %v1315_v54 = vadd.f32 %v1314_v29, %v1246_v16  ;;  %v1179_v55 = vadd.f32 %v1178_v26, %v1110_v58 }
 0x1da   : > { %v1385_v57 = vpop.f32.mrf.mxu0 }
 0x1db   : > { %v2065_v18 = vpack.c.bf16 %v1430_v53, %v1429_v39  ;;  %v1384_v5 = vadd.f32 %v1383_v41, %v1315_v54 }
 0x1dd   : > { %2066 = vst [vmem:[%s2757_s20] sm:$0xff] %v2065_v18   ;;  %v1413_v45 = vmax.f32 %v1384_v5, 0.0 }
 0x1de   : > { %v1247_v60 = vpop.f32.mrf.mxu2 }
 0x1df   : > { %v1425_v27 = vmax.f32 %v1407_v14, %v1413_v45  ;;  %v1248_v38 = vadd.f32 %v1247_v60, %v1179_v55  ;;  %v1316_v61 = vpop.f32.mrf.mxu3 }
 0x1e0   : > { %v1181_v63 = vpop.f32.mrf.mxu1 }
 0x1e1   : > { %v1431_v2 = vmax.f32 %v2697_v24, %v1425_v27  ;;  %v1317_v8 = vadd.f32 %v1316_v61, %v1248_v38  ;;  %v1182_v32 = vadd.f32 %v1181_v63, %v1113_v35 }
 0x1e2   : > { %v1388_v39 = vpop.f32.mrf.mxu0 }
 0x1e3   : > { %v1386_v10 = vadd.f32 %v1385_v57, %v1317_v8 }
 0x1e5   : > { %v1414_v7 = vmax.f32 %v1386_v10, 0.0 }
 0x1e6   : > { %v1250_v34 = vpop.f32.mrf.mxu2 }
 0x1e7   : > { %v1426_v30 = vmax.f32 %v1408_v4, %v1414_v7  ;;  %v1251_v22 = vadd.f32 %v1250_v34, %v1182_v32  ;;  %v1319_v24 = vpop.f32.mrf.mxu3 }
 0x1e8   : > { %v1183_v46 = vpop.f32.mrf.mxu1 }
 0x1e9   : > { %v1432_v21 = vmax.f32 %v2702_v37, %v1426_v30  ;;  %v1320_v15 = vadd.f32 %v1319_v24, %v1251_v22  ;;  %v1184_v43 = vadd.f32 %v1183_v46, %v1115_v48  ;;  %v1376_v37 = vadd.f32 %v2728_v31, %v1307_v25 }
 0x1ea   : > { %v1390_v16 = vpop.f32.mrf.mxu0 }
 0x1eb   : > { %v2070_v42 = vpack.c.bf16 %v1432_v21, %v1431_v2  ;;  %v1389_v41 = vadd.f32 %v1388_v39, %v1320_v15  ;;  %v1410_v17 = vmax.f32 %v1376_v37, 0.0 }
 0x1ed   : > { %2077 = vst [vmem:[%s2757_s20 + $0x8] sm:$0xff] %v2070_v42   ;;  %v1415_v62 = vmax.f32 %v1389_v41, 0.0 }
 0x1ee   : > { %v1252_v44 = vpop.f32.mrf.mxu2 }
 0x1ef   : > { %v1427_v11 = vmax.f32 %v1409_v13, %v1415_v62  ;;  %v1253_v50 = vadd.f32 %v1252_v44, %v1184_v43  ;;  %v1321_v33 = vpop.f32.mrf.mxu3 }
 0x1f1   : > { %v1433_v51 = vmax.f32 %v2705_v56, %v1427_v11  ;;  %v1322_v12 = vadd.f32 %v1321_v33, %v1253_v50 }
 0x1f3   : > { %v1391_v6 = vadd.f32 %v1390_v16, %v1322_v12 }
 0x1f5   : > { %v1416_v29 = vmax.f32 %v1391_v6, 0.0 }
 0x1f7   : > { %v1428_v26 = vmax.f32 %v1410_v17, %v1416_v29 }
 0x1f9   : > { %v1434_v49 = vmax.f32 %v2708_v9, %v1428_v26 }
 0x1fb   : > { %v2075_v52 = vpack.c.bf16 %v1434_v49, %v1433_v51 }
 0x1fd   : > { %2078 = vst [vmem:[%s2757_s20 + $0x10] sm:$0xff] %v2075_v52  }
 0x1fe PF: > { %p10_p9 = scmp.ge.s32.totalorder %s2193_s16, 4   ;;  %s2800_s12 = smov %s2150_s13 }
 0x1ff   : > { %s2801_s13 = smov %s2202_s19  ;;  %s2802_s14 = smov %s2193_s16 }
 0x200   :  { %12 = sbr.rel (!%p10_p9) target bundleno = 2 (0x2), region = 99 }

// kernel: eye_tracking_cnn_forward.7
= control target key start
LH: loop header
LB: loop body
LE: loop exit
PB: predicated region body
PF: predicated region fallthrough
CT: control target
= control target key end

     0   :  { %12 = vsyncpa [#allocation4], 0  ;;  %s1881_s24 = smov 0   ;;  %s2181_s0 = inlined_call_operand.vmem [shape: bf16[2,5120], index: 0, kind: input, shape index: {}]   ;;  %s2182_s1 = inlined_call_operand.vmem [shape: bf16[5120,256], index: 1, kind: input, shape index: {}]   ;;  %s2183_s2 = inlined_call_operand.vmem [shape: f32[1,256], index: 2, kind: input, shape index: {}]   ;;  %s2184_s3 = inlined_call_operand.vmem [shape: bf16[256,128], index: 3, kind: input, shape index: {}]   ;;  %s2185_s4 = inlined_call_operand.vmem [shape: f32[1,128], index: 4, kind: input, shape index: {}]   ;;  %s2186_s5 = inlined_call_operand.vmem [shape: bf16[128,2], index: 5, kind: input, shape index: {}]   ;;  %s2187_s6 = inlined_call_operand.vmem [shape: f32[1,2], index: 6, kind: input, shape index: {}]   ;;  %s2188_s7 = inlined_call_operand.hbm [shape: f32[2,2], index: 7, kind: output, shape index: {}]  }
   0x1 LB: > { %s1887_s25 = sadd.s32 4294967295, %s1837_s24   ;;  %p1251_p0 = scmp.ge.s32.totalorder %s1837_s24, 1  ;;  %s1837_s24 = sphi %s1881_s24, %s18_s24  }
   0x2   : > { %p245_p1 = scmp.lt.s32.totalorder %s1837_s24, 9 }
   0x4   : > { %p246_p2 = pnand %p1251_p0, %p245_p1 }
   0x5   : > { %s277_s26 = smul.u32 (!%p246_p2), 5, %s1887_s25  ;;  %p1254_p5 = scmp.ne.s32.totalorder (!%p246_p2), %s1887_s25, 0 }
   0x6   : > { %249 = sbr.rel (%p246_p2) target bundleno = 565 (0x235), region = 48 }
   0x7   : > { %s282_s27 = smul.u32 (!%p246_p2), 80, %s1887_s25  ;;  %p278_p3 = scmp.lt.s32.totalorder (!%p246_p2), %s277_s26, 39 }
   0x9   : > { %p283_p4 = scmp.lt.s32.totalorder (!%p246_p2), %s282_s27, 639 }
   0xb   : > { %s2190_s26 = smov (!%p278_p3, %s277_s26), 39  ;;  %s2192_s27 = smov (!%p283_p4, %s282_s27), 639 }
   0xc   : > { %s280_s30 = scalar_lea.vmem %s2181_s0, %s2190_s26  ;;  %s1676_s8 = sshll.u32 %s2192_s27, 3 }
   0xd   : > { %s1902_s11 = scalar_lea.vmem %s2182_s1, %s1676_s8  ;;  %292 = sbr.rel (%p1254_p5) target bundleno = 20 (0x14), region = 52 }
  0x12   : > { %v1839_v0 = vmov 0.0  }
  0x13   : > { %293 = vst [vmem:[#allocation2] sm:$0xf] %v1839_v0 }
  0x14 PF: > { %v1313_v1 = vld [vmem:[%s1902_s11 + $0x70] sm:$0xf]  ;;  %v1692_v2 = vld [vmem:[%s1902_s11 + $0x74] sm:$0xf0]  ;;  %v1305_v6 = vld [vmem:[%s1902_s11 + $0x60] sm:$0xf] }
  0x15   : > { %v1377_v3 = vld [vmem:[%s1902_s11 + $0xf0] sm:$0xf]  ;;  %v1314_v4 = vor.u32 %v1692_v2, %v1313_v1  ;;  %v1708_v5 = vld [vmem:[%s1902_s11 + $0xf4] sm:$0xf0]  ;;  %v1690_v7 = vld [vmem:[%s1902_s11 + $0x64] sm:$0xf0] }
  0x16   : > { %v1378_v8 = vor.u32 %v1708_v5, %v1377_v3  ;;  %v1369_v9 = vld [vmem:[%s1902_s11 + $0xe0] sm:$0xf]  ;;  %v1706_v10 = vld [vmem:[%s1902_s11 + $0xe4] sm:$0xf0]  ;;  %v1306_v11 = vor.u32 %v1690_v7, %v1305_v6  ;;  %v1297_v12 = vld [vmem:[%s1902_s11 + $0x50] sm:$0xf] }
  0x17   : > { %788 = vmatpush.bf16.msra.mxu0 %v1314_v4  ;;  %v1688_v13 = vld [vmem:[%s1902_s11 + $0x54] sm:$0xf0]  ;;  %v1370_v14 = vor.u32 %v1706_v10, %v1369_v9  ;;  %v1441_v15 = vld [vmem:[%s1902_s11 + $0x170] sm:$0xf]  ;;  %v1433_v23 = vld [vmem:[%s1902_s11 + $0x160] sm:$0xf] }
  0x18   : > { %801 = vmatpush.bf16.msra.mxu1 %v1378_v8  ;;  %v1724_v16 = vld [vmem:[%s1902_s11 + $0x174] sm:$0xf0]  ;;  %v1505_v17 = vld [vmem:[%s1902_s11 + $0x1f0] sm:$0xf]  ;;  %v1298_v24 = vor.u32 %v1688_v13, %v1297_v12  ;;  %v1722_v25 = vld [vmem:[%s1902_s11 + $0x164] sm:$0xf0] }
  0x19   : > { %v1361_v18 = vld [vmem:[%s1902_s11 + $0xd0] sm:$0xf]  ;;  %v1704_v19 = vld [vmem:[%s1902_s11 + $0xd4] sm:$0xf0]  ;;  %v1442_v20 = vor.u32 %v1724_v16, %v1441_v15  ;;  %v1497_v26 = vld [vmem:[%s1902_s11 + $0x1e0] sm:$0xf]  ;;  %v1434_v32 = vor.u32 %v1722_v25, %v1433_v23 }
  0x1a   : > { %v1740_v21 = vld [vmem:[%s1902_s11 + $0x1f4] sm:$0xf0]  ;;  %v1738_v27 = vld [vmem:[%s1902_s11 + $0x1e4] sm:$0xf0]  ;;  %v1362_v28 = vor.u32 %v1704_v19, %v1361_v18  ;;  %v1289_v29 = vld [vmem:[%s1902_s11 + $0x40] sm:$0xf] }
  0x1b   : > { %v1506_v22 = vor.u32 %v1740_v21, %v1505_v17  ;;  %789 = vmatpush.bf16.msra.mxu0 %v1306_v11  ;;  %814 = vmatpush.bf16.msra.mxu2 %v1442_v20  ;;  %v1686_v30 = vld [vmem:[%s1902_s11 + $0x44] sm:$0xf0]  ;;  %v1353_v31 = vld [vmem:[%s1902_s11 + $0xc0] sm:$0xf]  ;;  %v1498_v33 = vor.u32 %v1738_v27, %v1497_v26  ;;  %v1425_v35 = vld [vmem:[%s1902_s11 + $0x150] sm:$0xf] }
  0x1c   : > { %802 = vmatpush.bf16.msra.mxu1 %v1370_v14  ;;  %v1702_v34 = vld [vmem:[%s1902_s11 + $0xc4] sm:$0xf0]  ;;  %v1720_v36 = vld [vmem:[%s1902_s11 + $0x154] sm:$0xf0]  ;;  %v1489_v37 = vld [vmem:[%s1902_s11 + $0x1d0] sm:$0xf]  ;;  %v1290_v39 = vor.u32 %v1686_v30, %v1289_v29 }
  0x1d   : > { %827 = vmatpush.bf16.msra.mxu3 %v1506_v22  ;;  %v1736_v38 = vld [vmem:[%s1902_s11 + $0x1d4] sm:$0xf0]  ;;  %v1281_v40 = vld [vmem:[%s1902_s11 + $0x30] sm:$0xf]  ;;  %v1426_v42 = vor.u32 %v1720_v36, %v1425_v35  ;;  %v1354_v43 = vor.u32 %v1702_v34, %v1353_v31  ;;  %v1417_v46 = vld [vmem:[%s1902_s11 + $0x140] sm:$0xf] }
  0x1e   : > { %v1684_v41 = vld [vmem:[%s1902_s11 + $0x34] sm:$0xf0]  ;;  %v1345_v44 = vld [vmem:[%s1902_s11 + $0xb0] sm:$0xf]  ;;  %v1490_v45 = vor.u32 %v1736_v38, %v1489_v37  ;;  %v1718_v47 = vld [vmem:[%s1902_s11 + $0x144] sm:$0xf0] }
  0x1f   : > { %790 = vmatpush.bf16.msra.mxu0 %v1298_v24  ;;  %815 = vmatpush.bf16.msra.mxu2 %v1434_v32  ;;  %v1700_v48 = vld [vmem:[%s1902_s11 + $0xb4] sm:$0xf0]  ;;  %v1481_v49 = vld [vmem:[%s1902_s11 + $0x1c0] sm:$0xf]  ;;  %v1734_v50 = vld [vmem:[%s1902_s11 + $0x1c4] sm:$0xf0]  ;;  %v1282_v51 = vor.u32 %v1684_v41, %v1281_v40  ;;  %v1418_v54 = vor.u32 %v1718_v47, %v1417_v46 }
  0x20   : > { %803 = vmatpush.bf16.msra.mxu1 %v1362_v28  ;;  %v1273_v52 = vld [vmem:[%s1902_s11 + $0x20] sm:$0xf]  ;;  %v1682_v53 = vld [vmem:[%s1902_s11 + $0x24] sm:$0xf0]  ;;  %v1346_v55 = vor.u32 %v1700_v48, %v1345_v44  ;;  %v1482_v57 = vor.u32 %v1734_v50, %v1481_v49  ;;  %v1409_v58 = vld [vmem:[%s1902_s11 + $0x130] sm:$0xf] }
  0x21   : > { %828 = vmatpush.bf16.msra.mxu3 %v1498_v33  ;;  %v1337_v56 = vld [vmem:[%s1902_s11 + $0xa0] sm:$0xf]  ;;  %v1716_v59 = vld [vmem:[%s1902_s11 + $0x134] sm:$0xf0]  ;;  %v1698_v60 = vld [vmem:[%s1902_s11 + $0xa4] sm:$0xf0]  ;;  %v1274_v63 = vor.u32 %v1682_v53, %v1273_v52 }
  0x22   : > { %v1473_v61 = vld [vmem:[%s1902_s11 + $0x1b0] sm:$0xf]  ;;  %v1732_v62 = vld [vmem:[%s1902_s11 + $0x1b4] sm:$0xf0]  ;;  %v1410_v2 = vor.u32 %v1716_v59, %v1409_v58  ;;  %v1338_v3 = vor.u32 %v1698_v60, %v1337_v56  ;;  %v1401_v6 = vld [vmem:[%s1902_s11 + $0x120] sm:$0xf] }
  0x23   : > { %791 = vmatpush.bf16.msra.mxu0 %v1290_v39  ;;  %816 = vmatpush.bf16.msra.mxu2 %v1426_v42  ;;  %v1265_v0 = vld [vmem:[%s1902_s11 + $0x10] sm:$0xf]  ;;  %v1680_v1 = vld [vmem:[%s1902_s11 + $0x14] sm:$0xf0]  ;;  %v1474_v5 = vor.u32 %v1732_v62, %v1473_v61  ;;  %v1714_v7 = vld [vmem:[%s1902_s11 + $0x124] sm:$0xf0] }
  0x24   : > { %804 = vmatpush.bf16.msra.mxu1 %v1354_v43  ;;  %v1329_v4 = vld [vmem:[%s1902_s11 + $0x90] sm:$0xf]  ;;  %v1696_v8 = vld [vmem:[%s1902_s11 + $0x94] sm:$0xf0]  ;;  %v1465_v9 = vld [vmem:[%s1902_s11 + $0x1a0] sm:$0xf]  ;;  %v1266_v11 = vor.u32 %v1680_v1, %v1265_v0  ;;  %v1402_v15 = vor.u32 %v1714_v7, %v1401_v6 }
  0x25   : > { %829 = vmatpush.bf16.msra.mxu3 %v1490_v45  ;;  %v1730_v10 = vld [vmem:[%s1902_s11 + $0x1a4] sm:$0xf0]  ;;  %v1257_v12 = vld [vmem:[%s1902_s11] sm:$0xf]  ;;  %v1330_v16 = vor.u32 %v1696_v8, %v1329_v4  ;;  %v1393_v19 = vld [vmem:[%s1902_s11 + $0x110] sm:$0xf] }
  0x26   : > { %v1678_v13 = vld [vmem:[%s1902_s11 + $0x4] sm:$0xf0]  ;;  %v1321_v14 = vld [vmem:[%s1902_s11 + $0x80] sm:$0xf]  ;;  %v1466_v18 = vor.u32 %v1730_v10, %v1465_v9  ;;  %v1712_v20 = vld [vmem:[%s1902_s11 + $0x114] sm:$0xf0] }
  0x27   : > { %792 = vmatpush.bf16.msra.mxu0 %v1282_v51  ;;  %817 = vmatpush.bf16.msra.mxu2 %v1418_v54  ;;  %v1694_v17 = vld [vmem:[%s1902_s11 + $0x84] sm:$0xf0]  ;;  %v1569_v21 = vld [vmem:[%s1902_s11 + $0x270] sm:$0xf]  ;;  %v1756_v22 = vld [vmem:[%s1902_s11 + $0x274] sm:$0xf0]  ;;  %v1258_v27 = vor.u32 %v1678_v13, %v1257_v12  ;;  %v1394_v28 = vor.u32 %v1712_v20, %v1393_v19 }
  0x28   : > { %805 = vmatpush.bf16.msra.mxu1 %v1346_v55  ;;  %v1691_v23 = vld [vmem:[%s1902_s11 + $0x74] sm:$0xf]  ;;  %v1315_v24 = vld [vmem:[%s1902_s11 + $0x78] sm:$0xf0]  ;;  %v1457_v25 = vld [vmem:[%s1902_s11 + $0x190] sm:$0xf]  ;;  %v1322_v30 = vor.u32 %v1694_v17, %v1321_v14  ;;  %v1570_v31 = vor.u32 %v1756_v22, %v1569_v21 }
  0x29   : > { %830 = vmatpush.bf16.msra.mxu3 %v1482_v57  ;;  %v1728_v26 = vld [vmem:[%s1902_s11 + $0x194] sm:$0xf0]  ;;  %v1561_v29 = vld [vmem:[%s1902_s11 + $0x260] sm:$0xf]  ;;  %v1754_v32 = vld [vmem:[%s1902_s11 + $0x264] sm:$0xf0]  ;;  %v1318_v35 = vor.u32 %v1691_v23, %v1315_v24 }
  0x2a   : > { %v1385_v33 = vld [vmem:[%s1902_s11 + $0x100] sm:$0xf]  ;;  %v1710_v34 = vld [vmem:[%s1902_s11 + $0x104] sm:$0xf0]  ;;  %v1689_v36 = vld [vmem:[%s1902_s11 + $0x64] sm:$0xf]  ;;  %v1458_v37 = vor.u32 %v1728_v26, %v1457_v25  ;;  %v1562_v47 = vor.u32 %v1754_v32, %v1561_v29 }
  0x2b   : > { %793 = vmatpush.bf16.msra.mxu0 %v1274_v63  ;;  %818 = vmatpush.bf16.msra.mxu2 %v1410_v2  ;;  %v1707_v38 = vld [vmem:[%s1902_s11 + $0xf4] sm:$0xf]  ;;  %v1379_v39 = vld [vmem:[%s1902_s11 + $0xf8] sm:$0xf0]  ;;  %v1307_v40 = vld [vmem:[%s1902_s11 + $0x68] sm:$0xf0]  ;;  %v1386_v43 = vor.u32 %v1710_v34, %v1385_v33 }
  0x2c   : > { %806 = vmatpush.bf16.msra.mxu1 %v1338_v3  ;;  %v1449_v41 = vld [vmem:[%s1902_s11 + $0x180] sm:$0xf]  ;;  %v1726_v42 = vld [vmem:[%s1902_s11 + $0x184] sm:$0xf0]  ;;  %v1723_v44 = vld [vmem:[%s1902_s11 + $0x174] sm:$0xf]  ;;  %v1382_v49 = vor.u32 %v1707_v38, %v1379_v39  ;;  %v1310_v50 = vor.u32 %v1689_v36, %v1307_v40 }
  0x2d   : > { %831 = vmatpush.bf16.msra.mxu3 %v1474_v5  ;;  %v1443_v45 = vld [vmem:[%s1902_s11 + $0x178] sm:$0xf0]  ;;  %v295_v46 = vld [vmem:[%s280_s30] sm:$0x1f]  ;;  %v1553_v48 = vld [vmem:[%s1902_s11 + $0x250] sm:$0xf]  ;;  %v1450_v52 = vor.u32 %v1726_v42, %v1449_v41 }
  0x2e   : > { %377 = vst [vmem:[#allocation1] ss:$9 sm:$0xff] %v295_v46  ;;  %v1752_v51 = vld [vmem:[%s1902_s11 + $0x254] sm:$0xf0]  ;;  %v1705_v53 = vld [vmem:[%s1902_s11 + $0xe4] sm:$0xf]  ;;  %v1446_v57 = vor.u32 %v1723_v44, %v1443_v45 }
  0x2f   : > { %794 = vmatpush.bf16.msra.mxu0 %v1266_v11  ;;  %819 = vmatpush.bf16.msra.mxu2 %v1402_v15  ;;  %v1371_v54 = vld [vmem:[%s1902_s11 + $0xe8] sm:$0xf0]  ;;  %v1687_v55 = vld [vmem:[%s1902_s11 + $0x54] sm:$0xf]  ;;  %v1299_v56 = vld [vmem:[%s1902_s11 + $0x58] sm:$0xf0]  ;;  %v1554_v60 = vor.u32 %v1752_v51, %v1553_v48 }
  0x30   : > { %807 = vmatpush.bf16.msra.mxu1 %v1330_v16  ;;  %v1721_v58 = vld [vmem:[%s1902_s11 + $0x164] sm:$0xf]  ;;  %v1435_v59 = vld [vmem:[%s1902_s11 + $0x168] sm:$0xf0]  ;;  %v1545_v61 = vld [vmem:[%s1902_s11 + $0x240] sm:$0xf]  ;;  %v1374_v62 = vor.u32 %v1705_v53, %v1371_v54  ;;  %v1302_v63 = vor.u32 %v1687_v55, %v1299_v56 }
  0x31   : > { %832 = vmatpush.bf16.msra.mxu3 %v1466_v18  ;;  %v1750_v0 = vld [vmem:[%s1902_s11 + $0x244] sm:$0xf0]  ;;  %v1703_v1 = vld [vmem:[%s1902_s11 + $0xd4] sm:$0xf]  ;;  %v1363_v2 = vld [vmem:[%s1902_s11 + $0xd8] sm:$0xf0]  ;;  %v1438_v5 = vor.u32 %v1721_v58, %v1435_v59 }
  0x32   : > { %v1685_v3 = vld [vmem:[%s1902_s11 + $0x44] sm:$0xf]  ;;  %v1291_v4 = vld [vmem:[%s1902_s11 + $0x48] sm:$0xf0]  ;;  %v1719_v6 = vld [vmem:[%s1902_s11 + $0x154] sm:$0xf]  ;;  %v1546_v10 = vor.u32 %v1750_v0, %v1545_v61  ;;  %v1366_v12 = vor.u32 %v1703_v1, %v1363_v2 }
  0x33   : > { %795 = vmatpush.bf16.msra.mxu0 %v1258_v27  ;;  %820 = vmatpush.bf16.msra.mxu2 %v1394_v28  ;;  %v1427_v8 = vld [vmem:[%s1902_s11 + $0x158] sm:$0xf0]  ;;  %v1537_v11 = vld [vmem:[%s1902_s11 + $0x230] sm:$0xf]  ;;  %v1294_v15 = vor.u32 %v1685_v3, %v1291_v4  ;;  %v1748_v16 = vld [vmem:[%s1902_s11 + $0x234] sm:$0xf0] }
  0x34   : > { %808 = vmatpush.bf16.msra.mxu1 %v1322_v30  ;;  %v1701_v17 = vld [vmem:[%s1902_s11 + $0xc4] sm:$0xf]  ;;  %v1355_v18 = vld [vmem:[%s1902_s11 + $0xc8] sm:$0xf0]  ;;  %v1683_v19 = vld [vmem:[%s1902_s11 + $0x34] sm:$0xf]  ;;  %v1430_v21 = vor.u32 %v1719_v6, %v1427_v8  ;;  %v1538_v24 = vor.u32 %v1748_v16, %v1537_v11 }
  0x35   : > { %833 = vmatpush.bf16.msra.mxu3 %v1458_v37  ;;  %v2001_v7 = vld [vmem:[#allocation1] sm:$0xff]  ;;  %v2004_v9 = vld [vmem:[#allocation1 + $0x9] sm:$0xff]  ;;  %v2007_v13 = vld [vmem:[#allocation1 + $0x12] sm:$0xff]  ;;  %v1358_v26 = vor.u32 %v1701_v17, %v1355_v18  ;;  %vm921_vm0 = vcmask 1041408   ;;  %p1575_p6 = scmp.ne.s32.totalorder %s1887_s25, 7 }
  0x36   : > { %v2009_v14 = vld [vmem:[#allocation1 + $0x1b] sm:$0xff]  ;;  %796 = vmatmul.bf16.vlgmr.msra.gmra.mxu0 %v2001_v7  ;;  %v1717_v22 = vld [vmem:[%s1902_s11 + $0x144] sm:$0xf]  ;;  %v1419_v23 = vld [vmem:[%s1902_s11 + $0x148] sm:$0xf0] }
  0x37   : > { %840 = vmatpush.bf16.msrb.mxu0 %v1570_v31  ;;  %821 = vmatpush.bf16.msra.mxu2 %v1386_v43  ;;  %v1283_v20 = vld [vmem:[%s1902_s11 + $0x38] sm:$0xf0]  ;;  %v1529_v25 = vld [vmem:[%s1902_s11 + $0x220] sm:$0xf]  ;;  %v1746_v28 = vld [vmem:[%s1902_s11 + $0x224] sm:$0xf0]  ;;  %v1422_v33 = vor.u32 %v1717_v22, %v1419_v23 }
  0x38   : > { %853 = vmatpush.bf16.msrb.mxu1 %v1318_v35  ;;  %v1286_v27 = vor.u32 %v1683_v19, %v1283_v20  ;;  %v1699_v29 = vld [vmem:[%s1902_s11 + $0xb4] sm:$0xf]  ;;  %v1347_v30 = vld [vmem:[%s1902_s11 + $0xb8] sm:$0xf0]  ;;  %v1681_v31 = vld [vmem:[%s1902_s11 + $0x24] sm:$0xf]  ;;  %v1530_v36 = vor.u32 %v1746_v28, %v1529_v25 }
  0x39   : > { %834 = vmatpush.bf16.msra.mxu3 %v1450_v52  ;;  %809 = vmatmul.bf16.vlgmr.msra.gmra.mxu1 %v2004_v9  ;;  %v1275_v32 = vld [vmem:[%s1902_s11 + $0x28] sm:$0xf0]  ;;  %v1715_v34 = vld [vmem:[%s1902_s11 + $0x134] sm:$0xf]  ;;  %v1411_v35 = vld [vmem:[%s1902_s11 + $0x138] sm:$0xf0]  ;;  %v1350_v38 = vor.u32 %v1699_v29, %v1347_v30 }
  0x3a   : > { %822 = vmatmul.bf16.vlgmr.msra.gmra.mxu2 %v2007_v13  ;;  %v1521_v37 = vld [vmem:[%s1902_s11 + $0x210] sm:$0xf]  ;;  %v1278_v39 = vor.u32 %v1681_v31, %v1275_v32  ;;  %v1744_v40 = vld [vmem:[%s1902_s11 + $0x214] sm:$0xf0]  ;;  %v1697_v41 = vld [vmem:[%s1902_s11 + $0xa4] sm:$0xf]  ;;  %v1414_v45 = vor.u32 %v1715_v34, %v1411_v35 }
  0x3b   : > { %841 = vmatpush.bf16.msrb.mxu0 %v1562_v47  ;;  %866 = vmatpush.bf16.msrb.mxu2 %v1382_v49  ;;  %v1339_v42 = vld [vmem:[%s1902_s11 + $0xa8] sm:$0xf0]  ;;  %v1679_v43 = vld [vmem:[%s1902_s11 + $0x14] sm:$0xf]  ;;  %v1267_v44 = vld [vmem:[%s1902_s11 + $0x18] sm:$0xf0]  ;;  %v1522_v48 = vor.u32 %v1744_v40, %v1521_v37 }
  0x3c   : > { %854 = vmatpush.bf16.msrb.mxu1 %v1310_v50  ;;  %835 = vmatmul.bf16.vlgmr.msra.gmra.mxu3 %v2009_v14  ;;  %v1713_v46 = vld [vmem:[%s1902_s11 + $0x124] sm:$0xf]  ;;  %v1403_v47 = vld [vmem:[%s1902_s11 + $0x128] sm:$0xf0]  ;;  %v1513_v49 = vld [vmem:[%s1902_s11 + $0x200] sm:$0xf]  ;;  %v1342_v52 = vor.u32 %v1697_v41, %v1339_v42  ;;  %v1270_v53 = vor.u32 %v1679_v43, %v1267_v44 }
  0x3d   : > { %879 = vmatpush.bf16.msrb.mxu3 %v1446_v57  ;;  %v1742_v50 = vld [vmem:[%s1902_s11 + $0x204] sm:$0xf0]  ;;  %v1677_v51 = vld [vmem:[%s1902_s11 + $0x4] sm:$0xf]  ;;  %v1259_v54 = vld [vmem:[%s1902_s11 + $0x8] sm:$0xf0] }
  0x3e   : > { %v1695_v55 = vld [vmem:[%s1902_s11 + $0x94] sm:$0xf]  ;;  %v1331_v56 = vld [vmem:[%s1902_s11 + $0x98] sm:$0xf0]  ;;  %v1514_v0 = vor.u32 %v1742_v50, %v1513_v49  ;;  %v1262_v2 = vor.u32 %v1677_v51, %v1259_v54  ;;  %v1693_v4 = vld [vmem:[%s1902_s11 + $0x84] sm:$0xf] }
  0x3f   : > { %842 = vmatpush.bf16.msrb.mxu0 %v1554_v60  ;;  %867 = vmatpush.bf16.msrb.mxu2 %v1374_v62  ;;  %v1739_v57 = vld [vmem:[%s1902_s11 + $0x1f4] sm:$0xf]  ;;  %v1507_v58 = vld [vmem:[%s1902_s11 + $0x1f8] sm:$0xf0]  ;;  %v1406_v60 = vor.u32 %v1713_v46, %v1403_v47  ;;  %v1334_v1 = vor.u32 %v1695_v55, %v1331_v56  ;;  %v1737_v8 = vld [vmem:[%s1902_s11 + $0x1e4] sm:$0xf] }
  0x40   : > { %855 = vmatpush.bf16.msrb.mxu1 %v1302_v63  ;;  %v1755_v59 = vld [vmem:[%s1902_s11 + $0x274] sm:$0xf]  ;;  %v1571_v61 = vld [vmem:[%s1902_s11 + $0x278] sm:$0xf0]  ;;  %v1510_v3 = vor.u32 %v1739_v57, %v1507_v58  ;;  %v1753_v11 = vld [vmem:[%s1902_s11 + $0x264] sm:$0xf] }
  0x41   : > { %880 = vmatpush.bf16.msrb.mxu3 %v1438_v5  ;;  %v1711_v62 = vld [vmem:[%s1902_s11 + $0x114] sm:$0xf]  ;;  %v1395_v63 = vld [vmem:[%s1902_s11 + $0x118] sm:$0xf0]  ;;  %v1323_v5 = vld [vmem:[%s1902_s11 + $0x88] sm:$0xf0]  ;;  %v1574_v6 = vor.u32 %v1755_v59, %v1571_v61 }
  0x42   : > { %v1709_v16 = vld [vmem:[%s1902_s11 + $0x104] sm:$0xf]  ;;  %v1387_v17 = vld [vmem:[%s1902_s11 + $0x108] sm:$0xf0]  ;;  %v1326_v19 = vor.u32 %v1693_v4, %v1323_v5  ;;  %v1735_v22 = vld [vmem:[%s1902_s11 + $0x1d4] sm:$0xf] }
  0x43   : > { %843 = vmatpush.bf16.msrb.mxu0 %v1546_v10  ;;  %868 = vmatpush.bf16.msrb.mxu2 %v1366_v12  ;;  %v1499_v10 = vld [vmem:[%s1902_s11 + $0x1e8] sm:$0xf0]  ;;  %v1398_v12 = vor.u32 %v1711_v62, %v1395_v63  ;;  %v2058_v18 = vld [vmem:[#allocation1 + $0x24] sm:$0xff]  ;;  %v1491_v23 = vld [vmem:[%s1902_s11 + $0x1d8] sm:$0xf0] }
  0x44   : > { %856 = vmatpush.bf16.msrb.mxu1 %v1294_v15  ;;  %v1563_v15 = vld [vmem:[%s1902_s11 + $0x268] sm:$0xf0]  ;;  %v1502_v20 = vor.u32 %v1737_v8, %v1499_v10  ;;  %v1751_v25 = vld [vmem:[%s1902_s11 + $0x254] sm:$0xf]  ;;  %v1733_v29 = vld [vmem:[%s1902_s11 + $0x1c4] sm:$0xf] }
  0x45   : > { %881 = vmatpush.bf16.msrb.mxu3 %v1430_v21  ;;  %v1566_v21 = vor.u32 %v1753_v11, %v1563_v15  ;;  %v1483_v30 = vld [vmem:[%s1902_s11 + $0x1c8] sm:$0xf0]  ;;  %v1749_v31 = vld [vmem:[%s1902_s11 + $0x244] sm:$0xf]  ;;  %v1731_v34 = vld [vmem:[%s1902_s11 + $0x1b4] sm:$0xf] }
  0x46   : > { %v1547_v32 = vld [vmem:[%s1902_s11 + $0x248] sm:$0xf0]  ;;  %v1475_v35 = vld [vmem:[%s1902_s11 + $0x1b8] sm:$0xf0]  ;;  %v1745_v41 = vld [vmem:[%s1902_s11 + $0x224] sm:$0xf] }
  0x47   : > { %844 = vmatpush.bf16.msrb.mxu0 %v1538_v24  ;;  %869 = vmatpush.bf16.msrb.mxu2 %v1358_v26  ;;  %v1390_v24 = vor.u32 %v1709_v16, %v1387_v17  ;;  %v1555_v26 = vld [vmem:[%s1902_s11 + $0x258] sm:$0xf0]  ;;  %v1467_v40 = vld [vmem:[%s1902_s11 + $0x1a8] sm:$0xf0]  ;;  %v1727_v44 = vld [vmem:[%s1902_s11 + $0x194] sm:$0xf] }
  0x48   : > { %857 = vmatpush.bf16.msrb.mxu1 %v1286_v27  ;;  %v1494_v27 = vor.u32 %v1735_v22, %v1491_v23  ;;  %v1558_v28 = vor.u32 %v1751_v25, %v1555_v26  ;;  %v1539_v37 = vld [vmem:[%s1902_s11 + $0x238] sm:$0xf0]  ;;  %v1743_v46 = vld [vmem:[%s1902_s11 + $0x214] sm:$0xf]  ;;  %v1725_v50 = vld [vmem:[%s1902_s11 + $0x184] sm:$0xf] }
  0x49   : > { %882 = vmatpush.bf16.msrb.mxu3 %v1422_v33  ;;  %v1550_v33 = vor.u32 %v1749_v31, %v1547_v32  ;;  %v1523_v47 = vld [vmem:[%s1902_s11 + $0x218] sm:$0xf0]  ;;  %v1451_v51 = vld [vmem:[%s1902_s11 + $0x188] sm:$0xf0] }
  0x4a   : > { %v1526_v49 = vor.u32 %v1743_v46, %v1523_v47  ;;  %v1454_v54 = vor.u32 %v1725_v50, %v1451_v51 }
  0x4b   : > { %845 = vmatpush.bf16.msrb.mxu0 %v1530_v36  ;;  %870 = vmatpush.bf16.msrb.mxu2 %v1350_v38  ;;  %v1747_v36 = vld [vmem:[%s1902_s11 + $0x234] sm:$0xf] }
  0x4c   : > { %858 = vmatpush.bf16.msrb.mxu1 %v1278_v39  ;;  %v1542_v38 = vor.u32 %v1747_v36, %v1539_v37  ;;  %v1729_v39 = vld [vmem:[%s1902_s11 + $0x1a4] sm:$0xf] }
  0x4d   : > { %883 = vmatpush.bf16.msrb.mxu3 %v1414_v45  ;;  %v1470_v42 = vor.u32 %v1729_v39, %v1467_v40  ;;  %v1459_v45 = vld [vmem:[%s1902_s11 + $0x198] sm:$0xf0] }
  0x4f   : > { %846 = vmatpush.bf16.msrb.mxu0 %v1522_v48  ;;  %871 = vmatpush.bf16.msrb.mxu2 %v1342_v52  ;;  %v1462_v48 = vor.u32 %v1727_v44, %v1459_v45  ;;  %v1741_v52 = vld [vmem:[%s1902_s11 + $0x204] sm:$0xf] }
  0x50   : > { %859 = vmatpush.bf16.msrb.mxu1 %v1270_v53  ;;  %v1515_v53 = vld [vmem:[%s1902_s11 + $0x208] sm:$0xf0] }
  0x51   : > { %884 = vmatpush.bf16.msrb.mxu3 %v1406_v60  ;;  %v1518_v55 = vor.u32 %v1741_v52, %v1515_v53 }
  0x53   : > { %847 = vmatpush.bf16.msrb.mxu0 %v1514_v0  ;;  %872 = vmatpush.bf16.msrb.mxu2 %v1334_v1 }
  0x54   : > { %860 = vmatpush.bf16.msrb.mxu1 %v1262_v2 }
  0x55   : > { %885 = vmatpush.bf16.msrb.mxu3 %v1398_v12 }
  0x56   : > { %848 = vmatmul.bf16.vlgmr.msrb.gmra.mxu0 %v2058_v18 }
  0x57   : > { %892 = vmatpush.bf16.msra.mxu0 %v1510_v3  ;;  %873 = vmatpush.bf16.msrb.mxu2 %v1326_v19 }
  0x58   : > { %905 = vmatpush.bf16.msra.mxu1 %v1574_v6 }
  0x59   : > { %861 = vmatmul.bf16.vlgmr.msrb.gmra.mxu1 %v2001_v7  ;;  %886 = vmatpush.bf16.msrb.mxu3 %v1390_v24  ;;  %v1486_v7 = vor.u32 %v1733_v29, %v1483_v30 }
  0x5a   : > { %874 = vmatmul.bf16.vlgmr.msrb.gmra.mxu2 %v2004_v9  ;;  %v1478_v9 = vor.u32 %v1731_v34, %v1475_v35 }
  0x5b   : > { %893 = vmatpush.bf16.msra.mxu0 %v1502_v20 }
  0x5c   : > { %906 = vmatpush.bf16.msra.mxu1 %v1566_v21  ;;  %887 = vmatmul.bf16.vlgmr.msrb.gmra.mxu3 %v2007_v13  ;;  %v1531_v13 = vld [vmem:[%s1902_s11 + $0x228] sm:$0xf0]  ;;  %v294_v21 = vld [vmem:[#allocation2] sm:$0xf] }
  0x5d   : > { %v1534_v43 = vor.u32 %v1745_v41, %v1531_v13 }
  0x5f   : > { %894 = vmatpush.bf16.msra.mxu0 %v1494_v27 }
  0x60   : > { %907 = vmatpush.bf16.msra.mxu1 %v1558_v28 }
  0x63   : > { %895 = vmatpush.bf16.msra.mxu0 %v1486_v7 }
  0x64   : > { %908 = vmatpush.bf16.msra.mxu1 %v1550_v33 }
  0x67   : > { %896 = vmatpush.bf16.msra.mxu0 %v1478_v9 }
  0x68   : > { %909 = vmatpush.bf16.msra.mxu1 %v1542_v38 }
  0x6b   : > { %897 = vmatpush.bf16.msra.mxu0 %v1470_v42 }
  0x6c   : > { %910 = vmatpush.bf16.msra.mxu1 %v1534_v43 }
  0x6f   : > { %898 = vmatpush.bf16.msra.mxu0 %v1462_v48 }
  0x70   : > { %911 = vmatpush.bf16.msra.mxu1 %v1526_v49 }
  0x73   : > { %899 = vmatpush.bf16.msra.mxu0 %v1454_v54 }
  0x74   : > { %912 = vmatpush.bf16.msra.mxu1 %v1518_v55 }
  0x76   : > { %900 = vmatmul.bf16.vlgmr.msra.gmra.mxu0 %v2009_v14 }
  0x77   : > { %913 = vmatmul.bf16.vlgmr.msra.gmra.mxu1 %v2058_v18 }
  0xb3   : > { %v797_v56 = vpop.f32.mrf.mxu0 }
  0xb6   : > { %v810_v57 = vpop.f32.mrf.mxu1 }
  0xb7   : > { %v811_v10 = vadd.f32 %v810_v57, %v797_v56 }
  0xbb   : > { %v799_v58 = vpop.f32.mrf.mxu0 }
  0xbd   : > { %v823_v59 = vpop.f32.mrf.mxu2 }
  0xbe   : > { %v812_v60 = vpop.f32.mrf.mxu1  ;;  %v824_v11 = vadd.f32 %v823_v59, %v811_v10 }
  0xbf   : > { %v836_v61 = vpop.f32.mrf.mxu3 }
  0xc0   : > { %v837_v16 = vadd.f32 %v836_v61, %v824_v11 }
  0xc5   : > { %v825_v62 = vpop.f32.mrf.mxu2 }
  0xc7   : > { %v838_v63 = vpop.f32.mrf.mxu3 }
  0xd3   : > { %v849_v0 = vpop.f32.mrf.mxu0 }
  0xd4   : > { %v850_v20 = vadd.f32 %v849_v0, %v837_v16 }
  0xd6   : > { %v862_v1 = vpop.f32.mrf.mxu1 }
  0xdb   : > { %v851_v2 = vpop.f32.mrf.mxu0 }
  0xdd   : > { %v875_v4 = vpop.f32.mrf.mxu2 }
  0xde   : > { %v864_v3 = vpop.f32.mrf.mxu1  ;;  %v876_v14 = vadd.f32 %v875_v4, %v862_v1 }
  0xdf   : > { %v888_v5 = vpop.f32.mrf.mxu3 }
  0xe0   : > { %v889_v12 = vadd.f32 %v888_v5, %v876_v14 }
  0xe5   : > { %v877_v6 = vpop.f32.mrf.mxu2 }
  0xe7   : > { %v890_v8 = vpop.f32.mrf.mxu3 }
  0xf3   : > { %v901_v15 = vpop.f32.mrf.mxu0 }
  0xf4   : > { %v902_v17 = vadd.f32 %v901_v15, %v889_v12  ;;  %v914_v18 = vpop.f32.mrf.mxu1 }
  0xf6   : > { %v915_v19 = vadd.f32 %v914_v18, %v902_v17 }
  0xf8   : > { %v920_v22 = vrot.slane %v915_v19, 6 }
  0xf9   : > { %929 = sbr.rel (%p1575_p6) target bundleno = 560 (0x230), region = 56 }
  0xfa   : > { %v922_v23 = vsel %vm921_vm0, %v850_v20, %v920_v22 }
  0xfb   : > { %v924_v24 = vadd.f32 %v922_v23, %v294_v21  ;;  %v903_v25 = vpop.f32.mrf.mxu0 }
  0xfc   : > { %v916_v26 = vpop.f32.mrf.mxu1 }
  0xfd   : > { %925 = vst [vmem:[#allocation2] sm:$0xf] %v924_v24 }
  0xfe   : > { %v1764_v27 = vld [vmem:[%s2184_s3 + $0x38] sm:$0xff]  ;;  %v1763_v29 = vld [vmem:[%s2184_s3 + $0x30] sm:$0xff]  ;;  %v931_v31 = vld [vmem:[%s2183_s2] sm:$0x3]  ;;  %vm1189_vm1 = vcmask 9216  }
  0xff   : > { %v1772_v28 = vld [vmem:[%s2184_s3 + $0x78] sm:$0xff]  ;;  %1080 = vmatpush.bf16.msra.mxu0 %v1764_v27  ;;  %v1771_v30 = vld [vmem:[%s2184_s3 + $0x70] sm:$0xff]  ;;  %v1762_v32 = vld [vmem:[%s2184_s3 + $0x28] sm:$0xff]  ;;  %v933_v33 = vperm.slane %v931_v31, 0  ;;  %v934_v34 = vperm.slane %v931_v31, 1 }
 0x100   : > { %1093 = vmatpush.bf16.msra.mxu1 %v1772_v28  ;;  %v1770_v7 = vld [vmem:[%s2184_s3 + $0x68] sm:$0xff]  ;;  %v1780_v35 = vld [vmem:[%s2186_s5 + $0x38] sm:$0xff]  ;;  %v1779_v9 = vld [vmem:[%s2186_s5 + $0x30] sm:$0xff] }
 0x101   : > { %v935_v37 = vrot.slane %v934_v34, 6  ;;  %1176 = vmatpush.bf16.msra.mxu2 %v1780_v35  ;;  %v1761_v38 = vld [vmem:[%s2184_s3 + $0x20] sm:$0xff]  ;;  %v1778_v13 = vld [vmem:[%s2186_s5 + $0x28] sm:$0xff]  ;;  %v1760_v43 = vld [vmem:[%s2184_s3 + $0x18] sm:$0xff] }
 0x102   : > { %v1769_v39 = vld [vmem:[%s2184_s3 + $0x60] sm:$0xff]  ;;  %v1768_v44 = vld [vmem:[%s2184_s3 + $0x58] sm:$0xff]  ;;  %v1759_v46 = vld [vmem:[%s2184_s3 + $0x10] sm:$0xff] }
 0x103   : > { %1081 = vmatpush.bf16.msra.mxu0 %v1763_v29  ;;  %v936_v40 = vsel %vm921_vm0, %v933_v33, %v935_v37  ;;  %v1777_v45 = vld [vmem:[%s2186_s5 + $0x20] sm:$0xff]  ;;  %v1767_v47 = vld [vmem:[%s2184_s3 + $0x50] sm:$0xff]  ;;  %v1776_v48 = vld [vmem:[%s2186_s5 + $0x18] sm:$0xff] }
 0x104   : > { %1094 = vmatpush.bf16.msra.mxu1 %v1771_v30  ;;  %v930_v36 = vld [vmem:[#allocation2] sm:$0xf]  ;;  %v1775_v51 = vld [vmem:[%s2186_s5 + $0x10] sm:$0xff]  ;;  %v1757_v52 = vld [vmem:[%s2184_s3] sm:$0xff] }
 0x105   : > { %v938_v41 = vadd.f32 %v936_v40, %v930_v36  ;;  %1177 = vmatpush.bf16.msra.mxu2 %v1779_v9  ;;  %v1758_v49 = vld [vmem:[%s2184_s3 + $0x8] sm:$0xff]  ;;  %v1765_v53 = vld [vmem:[%s2184_s3 + $0x40] sm:$0xff] }
 0x106   : > { %v1766_v50 = vld [vmem:[%s2184_s3 + $0x48] sm:$0xff]  ;;  %v1773_v59 = vld [vmem:[%s2186_s5] sm:$0xff] }
 0x107   : > { %1082 = vmatpush.bf16.msra.mxu0 %v1762_v32  ;;  %v939_v42 = vmax.f32 %v938_v41, 0.0  ;;  %v1774_v58 = vld [vmem:[%s2186_s5 + $0x8] sm:$0xff]  ;;  %v1797_v60 = vld [vmem:[%s2185_s4] ss:$0 sm:$0xff] }
 0x108   : > { %1095 = vmatpush.bf16.msra.mxu1 %v1770_v7  ;;  %v1798_v5 = vld [vmem:[%s2187_s6] ss:$0 sm:$0xff] }
 0x109   : > { %941 = vst [vmem:[#allocation1] ss:$4 sm:$0xff] %v939_v42  ;;  %1178 = vmatpush.bf16.msra.mxu2 %v1778_v13 }
 0x10b   : > { %1083 = vmatpush.bf16.msra.mxu0 %v1761_v38 }
 0x10c   : > { %1096 = vmatpush.bf16.msra.mxu1 %v1769_v39 }
 0x10d   : > { %1179 = vmatpush.bf16.msra.mxu2 %v1777_v45 }
 0x10f   : > { %1084 = vmatpush.bf16.msra.mxu0 %v1760_v43 }
 0x110   : > { %1097 = vmatpush.bf16.msra.mxu1 %v1768_v44  ;;  %v942_v54 = vld.sshfl [vmem:[#allocation1] sm:$0xff pattern:$0x73625140]  ;;  %v943_v55 = vld.sshfl [vmem:[#allocation1 + $0x8] sm:$0xff pattern:$0x73625140] }
 0x111   : > { %1180 = vmatpush.bf16.msra.mxu2 %v1776_v48  ;;  %v946_v56 = vpack.c.bf16 %v942_v54, %v942_v54  ;;  %v947_v57 = vpack.c.bf16 %v943_v55, %v943_v55 }
 0x113   : > { %1085 = vmatpush.bf16.msra.mxu0 %v1759_v46 }
 0x114   : > { %1098 = vmatpush.bf16.msra.mxu1 %v1767_v47 }
 0x115   : > { %1181 = vmatpush.bf16.msra.mxu2 %v1775_v51 }
 0x117   : > { %1086 = vmatpush.bf16.msra.mxu0 %v1758_v49 }
 0x118   : > { %1099 = vmatpush.bf16.msra.mxu1 %v1766_v50 }
 0x119   : > { %1182 = vmatpush.bf16.msra.mxu2 %v1774_v58 }
 0x11b   : > { %1087 = vmatpush.bf16.msra.mxu0 %v1757_v52 }
 0x11c   : > { %1100 = vmatpush.bf16.msra.mxu1 %v1765_v53 }
 0x11d   : > { %1183 = vmatpush.bf16.msra.mxu2 %v1773_v59 }
 0x11e   : > { %1088 = vmatmul.bf16.vlgmr.msra.gmra.mxu0 %v946_v56 }
 0x11f   : > { %1101 = vmatmul.bf16.vlgmr.msra.gmra.mxu1 %v947_v57 }
 0x19b   : > { %v1089_v61 = vpop.f32.mrf.mxu0 }
 0x19c   : > { %v1102_v62 = vpop.f32.mrf.mxu1  ;;  %v1090_v63 = vadd.f32 %v1797_v60, %v1089_v61 }
 0x19e   : > { %v1103_v0 = vadd.f32 %v1102_v62, %v1090_v63 }
 0x1a0   : > { %v1106_v1 = vmax.f32 %v1103_v0, 0.0 }
 0x1a2   : > { %v1107_v2 = vpack.c.bf16 %v1106_v1, %v1106_v1 }
 0x1a3   : > { %v1091_v3 = vpop.f32.mrf.mxu0 }
 0x1a4   : > { %v1104_v4 = vpop.f32.mrf.mxu1  ;;  %1184 = vmatmul.bf16.vlgmr.msra.gmra.mxu2 %v1107_v2 }
 0x227   : > { %v1185_v6 = vpop.f32.mrf.mxu2 }
 0x228   : > { %v1186_v8 = vadd.f32 %v1798_v5, %v1185_v6 }
 0x22a   : > { %1190 = vst.msk [vmem:[#allocation3] sm:$0x3] %vm1189_vm1, %v1186_v8 }
 0x22f   : > { %v1187_v10 = vpop.f32.mrf.mxu2 }
 0x230 PF: > { %p1785_p7 = scmp.eq.s32.totalorder %s1887_s25, 7  ;;  %s1840_s28 = smov [#allocation3]  }
 0x231   : > { %s1197_s29 = sshll.u32 %s1840_s28, 4  ;;  %s1199_s9 = sshll.u32 %s2188_s7, 4  ;;  %s1198_s29 = int_to_ptr.vmem [resolvable:$true] %s1197_s29  ;;  %s1200_s9 = int_to_ptr.hbm [resolvable:$true] %s1199_s9 }
 0x232   : > { %1782 = dma.vmem_to_hbm [thread:$0]  (%p1785_p7), %s1198_s29, 32, %s1200_s9, [#allocation4]  }
 0x233   : > { %1832 = dma.done.wait (%p1785_p7), [#allocation4], 32  }
 0x234   : > { %1834 = vsyncadd (%p1785_p7), [#allocation4], 4294967264 }
 0x235 PF: > { %s18_s24 = sadd.s32 1, %s1837_s24  }
 0x236   : > { %p15_p8 = scmp.ge.s32.totalorder %s18_s24, 10  }
 0x238   :  { %17 = sbr.rel (!%p15_p8) target bundleno = 1 (0x1), region = 86 }
 0x23d   :  { %1213 = vsyncpa [#allocation4], 1 }
 0x23e   :  { %1215 = vsyncpa [#allocation4 + $0x1], 1 }

</bundles_post_ra>
